<compile_context>
chip_gen: v5e
topology: v5e:2x2
jax: 0.10.0
libtpu: 0.0.40
codegen_flags: <defaults>
</compile_context>

<pallas_src>
import functools

import numpy as np
import jax
import jax.numpy as jnp
from jax import lax
from jax.experimental import pallas as pl
from jax.experimental.pallas import tpu as pltpu

EPS = 1e-5
NEG = -1e30   # "-inf" stand-in for the maxpool halo (bf16-representable; every 3x3 window
              # with pad=1 contains at least one real element, so it never leaks into results)


# ----------------------------- fused Pallas kernel -----------------------------

def _inception_kernel(x_ref, w1_ref, s1_ref, b1_ref,
                      w3_ref, s3_ref, b3_ref,
                      w5_ref, s5_ref, b5_ref,
                      w4_ref, s4_ref, b4_ref,
                      o_ref,
                      mid3_scr, mid5_scr, pool_scr,
                      *, H, W, TH, out_1x1, red3, out3, red5, out5, pool_out,
                      compute_dtype):
    h = pl.program_id(1)
    cin = x_ref.shape[-1]
    row0 = pl.multiple_of(h * TH, TH)            # first output row of this H tile

    # -------- fused 1x1 convs (branch-1 + 3x3-reduce + 5x5-reduce) on the halo-extended tile ----
    # x_ref holds the H-padded image (2 zero rows top/bottom): padded row p <-> original row p-2.
    # We need original rows [row0-2, row0+TH+2)  ==  padded rows [row0, row0+TH+4).
    x_ext = x_ref[pl.ds(row0, TH + 4), :, :]                     # (TH+4, W, Cin) bf16
    xf = x_ext.reshape((TH + 4) * W, cin)
    y = jnp.dot(xf, w1_ref[...], preferred_element_type=jnp.float32)
    y = jnp.maximum(y * s1_ref[...] + b1_ref[...], 0.0)          # ((TH+4)*W, c1) f32

    # branch-1 output rows (no halo)
    y1 = y[2 * W:(TH + 2) * W, 0:out_1x1]                        # (TH*W, out_1x1) f32

    # 3x3-reduce features with +-1 row halo; zero out rows that fall outside the image
    mid3 = y[W:(TH + 3) * W, out_1x1:out_1x1 + red3].reshape(TH + 2, W, red3)
    r3 = lax.broadcasted_iota(jnp.int32, (TH + 2, W, red3), 0) + (row0 - 1)
    mid3 = jnp.where((r3 >= 0) & (r3 < H), mid3, 0.0).astype(compute_dtype)

    # 5x5-reduce features with +-2 row halo
    mid5 = y[:, out_1x1 + red3:].reshape(TH + 4, W, red5)
    r5 = lax.broadcasted_iota(jnp.int32, (TH + 4, W, red5), 0) + (row0 - 2)
    mid5 = jnp.where((r5 >= 0) & (r5 < H), mid5, 0.0).astype(compute_dtype)

    # -------- branch 2: 3x3 conv (pad 1) via im2col -> single MXU dot, K = 9*red3 --------
    mid3_scr[:, 0:1, :] = jnp.zeros((TH + 2, 1, red3), compute_dtype)        # W halo (left)
    mid3_scr[:, W + 1:W + 2, :] = jnp.zeros((TH + 2, 1, red3), compute_dtype)  # W halo (right)
    mid3_scr[:, 1:W + 1, :] = mid3
    taps3 = [mid3_scr[kh:kh + TH, kw:kw + W, :].reshape(TH * W, red3)
             for kh in range(3) for kw in range(3)]
    patches3 = jnp.concatenate(taps3, axis=-1)                   # (TH*W, 9*red3) bf16
    y2 = jnp.dot(patches3, w3_ref[...], preferred_element_type=jnp.float32)
    y2 = jnp.maximum(y2 * s3_ref[...] + b3_ref[...], 0.0)

    # -------- branch 3: 5x5 conv (pad 2) via im2col -> single MXU dot, K = 25*red5 --------
    mid5_scr[:, 0:2, :] = jnp.zeros((TH + 4, 2, red5), compute_dtype)
    mid5_scr[:, W + 2:W + 4, :] = jnp.zeros((TH + 4, 2, red5), compute_dtype)
    mid5_scr[:, 2:W + 2, :] = mid5
    taps5 = [mid5_scr[kh:kh + TH, kw:kw + W, :].reshape(TH * W, red5)
             for kh in range(5) for kw in range(5)]
    patches5 = jnp.concatenate(taps5, axis=-1)                   # (TH*W, 25*red5) bf16
    y3 = jnp.dot(patches5, w5_ref[...], preferred_element_type=jnp.float32)
    y3 = jnp.maximum(y3 * s5_ref[...] + b5_ref[...], 0.0)

    # -------- branch 4: 3x3/s1 maxpool (pad 1) + 1x1 conv, directly from resident x --------
    xp = x_ref[pl.ds(row0 + 1, TH + 2), :, :]                    # original rows [row0-1, row0+TH+1)
    rp = lax.broadcasted_iota(jnp.int32, (TH + 2, W, cin), 0) + (row0 - 1)
    xp = jnp.where((rp >= 0) & (rp < H), xp, NEG).astype(compute_dtype)
    pool_scr[:, 0:1, :] = jnp.full((TH + 2, 1, cin), NEG, compute_dtype)
    pool_scr[:, W + 1:W + 2, :] = jnp.full((TH + 2, 1, cin), NEG, compute_dtype)
    pool_scr[:, 1:W + 1, :] = xp
    pooled = pool_scr[0:TH, 0:W, :]
    for kh in range(3):
        for kw in range(3):
            if kh == 0 and kw == 0:
                continue
            pooled = jnp.maximum(pooled, pool_scr[kh:kh + TH, kw:kw + W, :])
    y4 = jnp.dot(pooled.reshape(TH * W, cin), w4_ref[...],
                 preferred_element_type=jnp.float32)
    y4 = jnp.maximum(y4 * s4_ref[...] + b4_ref[...], 0.0)

    # -------- single lane-dense store: [b1 | b2 | b3 | b4] along channels --------
    o_ref[...] = jnp.concatenate([y1, y2, y3, y4], axis=-1)


# ----------------------------- wrapper (glue) -----------------------------

def inception_block(x_nchw, p, *, tile_h=None, compute_dtype=jnp.bfloat16):
    """InceptionBlock forward: [N, C, H, W] f32 -> [N, C_total, H, W] f32."""
    x = jnp.transpose(x_nchw, (0, 2, 3, 1)).astype(compute_dtype)   # NCHW -> NHWC, bf16 feed
    N, H, W, Cin = x.shape
    # Zero-pad H once by the max halo (2) so every tile reads its halo rows in-bounds; the
    # halo *values* are masked in-kernel (reduce features -> 0, pool -> -1e30).
    x_pad = jnp.pad(x, ((0, 0), (2, 2), (0, 0), (0, 0)))

    out_1x1 = p["b1"]["w"].shape[-1]
    red3, out3 = p["b2"]["w"].shape[2], p["b2"]["w"].shape[3]
    red5, out5 = p["b3"]["w"].shape[2], p["b3"]["w"].shape[3]
    pool_out = p["b4"]["w"].shape[-1]
    c1 = out_1x1 + red3 + red5
    ctot = out_1x1 + out3 + out5 + pool_out

    # Tile height: aim for >= 256 rows per MXU dot (M dim) and a sublane-aligned store.
    if tile_h is None:
        TH = H
        for cand in range(1, H + 1):
            if H % cand == 0 and cand * W >= 256 and (cand * W) % 8 == 0:
                TH = cand
                break
    else:
        TH = tile_h
    assert H % TH == 0 and ((TH * W) % 8 == 0 or TH == H)
    grid = (N, H // TH)

    # fold the three x-consuming 1x1 Conv_Blocks into one weight / scale / bias triple
    w1 = jnp.concatenate([p["b1"]["w"][0, 0], p["b2_red"]["w"][0, 0],
                          p["b3_red"]["w"][0, 0]], axis=-1).astype(compute_dtype)
    s1 = jnp.concatenate([p["b1"]["scale"], p["b2_red"]["scale"],
                          p["b3_red"]["scale"]]).reshape(1, c1)
    bi1 = jnp.concatenate([p["b1"]["bias"], p["b2_red"]["bias"],
                           p["b3_red"]["bias"]]).reshape(1, c1)

    # im2col weight layouts: (kh, kw, cin, cout) -> ((kh*kw*cin), cout)
    w3 = p["b2"]["w"].reshape(9 * red3, out3).astype(compute_dtype)
    s3 = p["b2"]["scale"].reshape(1, out3)
    bi3 = p["b2"]["bias"].reshape(1, out3)
    w5 = p["b3"]["w"].reshape(25 * red5, out5).astype(compute_dtype)
    s5 = p["b3"]["scale"].reshape(1, out5)
    bi5 = p["b3"]["bias"].reshape(1, out5)
    w4 = p["b4"]["w"][0, 0].astype(compute_dtype)
    s4 = p["b4"]["scale"].reshape(1, pool_out)
    bi4 = p["b4"]["bias"].reshape(1, pool_out)

    kern = functools.partial(
        _inception_kernel, H=H, W=W, TH=TH, out_1x1=out_1x1,
        red3=red3, out3=out3, red5=red5, out5=out5, pool_out=pool_out,
        compute_dtype=compute_dtype)

    out = pl.pallas_call(
        kern,
        out_shape=jax.ShapeDtypeStruct((N, H * W, ctot), jnp.float32),
        grid=grid,
        in_specs=[
            # x (H-padded) stays resident across the H-tile axis -> one DMA per image
            pl.BlockSpec((None, H + 4, W, Cin), lambda n, h: (n, 0, 0, 0)),
            pl.BlockSpec((Cin, c1), lambda n, h: (0, 0)),
            pl.BlockSpec((1, c1), lambda n, h: (0, 0)),
            pl.BlockSpec((1, c1), lambda n, h: (0, 0)),
            pl.BlockSpec((9 * red3, out3), lambda n, h: (0, 0)),
            pl.BlockSpec((1, out3), lambda n, h: (0, 0)),
            pl.BlockSpec((1, out3), lambda n, h: (0, 0)),
            pl.BlockSpec((25 * red5, out5), lambda n, h: (0, 0)),
            pl.BlockSpec((1, out5), lambda n, h: (0, 0)),
            pl.BlockSpec((1, out5), lambda n, h: (0, 0)),
            pl.BlockSpec((Cin, pool_out), lambda n, h: (0, 0)),
            pl.BlockSpec((1, pool_out), lambda n, h: (0, 0)),
            pl.BlockSpec((1, pool_out), lambda n, h: (0, 0)),
        ],
        out_specs=pl.BlockSpec((None, TH * W, ctot), lambda n, h: (n, h, 0)),
        scratch_shapes=[
            # tiny per-tile bf16 W-padded staging buffers (scale with TH, not H)
            pltpu.VMEM((TH + 2, W + 2, red3), compute_dtype),
            pltpu.VMEM((TH + 4, W + 4, red5), compute_dtype),
            pltpu.VMEM((TH + 2, W + 2, Cin), compute_dtype),
        ],
        compiler_params=pltpu.CompilerParams(
            dimension_semantics=("parallel", "parallel"),
            vmem_limit_bytes=48 * 1024 * 1024),
    )(x_pad, w1, s1, bi1, w3, s3, bi3, w5, s5, bi5, w4, s4, bi4)

    out = out.reshape(N, H, W, ctot)
    return jnp.transpose(out, (0, 3, 1, 2))                 # NHWC -> NCHW (torch.cat(dim=1))


# ----------------------------- parameter setup -----------------------------

def make_conv_block_params(key, cin, cout, k):
    ks = jax.random.split(key, 6)
    fan_in = cin * k * k
    w = jax.random.normal(ks[0], (k, k, cin, cout), jnp.float32) / np.sqrt(fan_in)
    conv_b = jax.random.normal(ks[1], (cout,), jnp.float32) * 0.05
    gamma = jax.random.uniform(ks[2], (cout,), jnp.float32, minval=0.5, maxval=1.5)
    beta = jax.random.normal(ks[3], (cout,), jnp.float32) * 0.05
    run_mean = jax.random.normal(ks[4], (cout,), jnp.float32) * 0.05
    run_var = jax.random.uniform(ks[5], (cout,), jnp.float32, minval=0.5, maxval=1.5)
    # Fold conv bias + inference-mode BatchNorm into per-channel scale / bias.
    scale = gamma / jnp.sqrt(run_var + EPS)
    bias = beta + (conv_b - run_mean) * scale
    return {"w": w, "scale": scale, "bias": bias}


def init_inception_params(key, in_channels, out_1x1, red_3x3, out_3x3,
                          red_5x5, out_5x5, out1x1_pool):
    keys = jax.random.split(key, 6)
    return {
        "b1": make_conv_block_params(keys[0], in_channels, out_1x1, 1),
        "b2_red": make_conv_block_params(keys[1], in_channels, red_3x3, 1),
        "b2": make_conv_block_params(keys[2], red_3x3, out_3x3, 3),
        "b3_red": make_conv_block_params(keys[3], in_channels, red_5x5, 1),
        "b3": make_conv_block_params(keys[4], red_5x5, out_5x5, 5),
        "b4": make_conv_block_params(keys[5], in_channels, out1x1_pool, 1),
    }


# ----------------------------- pure-JAX reference (mirrors bf16 MXU feed) -----------------------------

def _conv_bn_relu_ref(x, w, scale, bias, pad, dt):
    y = lax.conv_general_dilated(
        x.astype(dt), w.astype(dt), window_strides=(1, 1),
        padding=[(pad, pad), (pad, pad)],
        dimension_numbers=("NHWC", "HWIO", "NHWC"),
        preferred_element_type=jnp.float32)
    return jnp.maximum(y * scale + bias, 0.0)


def inception_ref(x_nchw, p, dt=jnp.bfloat16):
    x = jnp.transpose(x_nchw, (0, 2, 3, 1))
    b1 = _conv_bn_relu_ref(x, p["b1"]["w"], p["b1"]["scale"], p["b1"]["bias"], 0, dt)
    b2 = _conv_bn_relu_ref(x, p["b2_red"]["w"], p["b2_red"]["scale"], p["b2_red"]["bias"], 0, dt)
    b2 = _conv_bn_relu_ref(b2, p["b2"]["w"], p["b2"]["scale"], p["b2"]["bias"], 1, dt)
    b3 = _conv_bn_relu_ref(x, p["b3_red"]["w"], p["b3_red"]["scale"], p["b3_red"]["bias"], 0, dt)
    b3 = _conv_bn_relu_ref(b3, p["b3"]["w"], p["b3"]["scale"], p["b3"]["bias"], 2, dt)
    pooled = lax.reduce_window(x, -jnp.inf, lax.max,
                               (1, 3, 3, 1), (1, 1, 1, 1),
                               [(0, 0), (1, 1), (1, 1), (0, 0)])
    b4 = _conv_bn_relu_ref(pooled, p["b4"]["w"], p["b4"]["scale"], p["b4"]["bias"], 0, dt)
    out = jnp.concatenate([b1, b2, b3, b4], axis=-1)
    return jnp.transpose(out, (0, 3, 1, 2))


# ----------------------------- main -----------------------------

if __name__ == "__main__":
    key = jax.random.PRNGKey(0)
    kx, kp = jax.random.split(key)

    N, C, H, W = 2, 4, 16, 16
    x = jax.random.normal(kx, (N, C, H, W), jnp.float32)

    params = init_inception_params(
        kp, in_channels=C, out_1x1=8, red_3x3=4, out_3x3=8,
        red_5x5=4, out_5x5=8, out1x1_pool=8)

    # tiled path (exercises per-tile halo masking across an interior tile boundary)
    fwd_tiled = jax.jit(lambda xx: inception_block(xx, params, tile_h=8))
    # auto-tile path (TH*W >= 256 -> whole image per step at this size)
    fwd_auto = jax.jit(lambda xx: inception_block(xx, params))

    out_t = jax.block_until_ready(fwd_tiled(x))
    out_a = jax.block_until_ready(fwd_auto(x))
    ref = jax.block_until_ready(inception_ref(x, params, jnp.bfloat16))

    assert out_t.shape == (N, 8 + 8 + 8 + 8, H, W), out_t.shape
    np.testing.assert_allclose(np.asarray(out_t), np.asarray(ref), atol=2e-2, rtol=2e-2)
    np.testing.assert_allclose(np.asarray(out_a), np.asarray(ref), atol=2e-2, rtol=2e-2)

    print("KERNEL_OK")
</pallas_src>

<mosaic_0001>
module attributes {stable_mosaic.version = 11 : i64} {
  func.func @_inception_kernel(%arg0: i32, %arg1: i32, %arg2: memref<1x20x16x4xbf16, #tpu.memory_space<vmem>>, %arg3: memref<4x16xbf16, #tpu.memory_space<vmem>>, %arg4: memref<1x16xf32, #tpu.memory_space<vmem>>, %arg5: memref<1x16xf32, #tpu.memory_space<vmem>>, %arg6: memref<36x8xbf16, #tpu.memory_space<vmem>>, %arg7: memref<1x8xf32, #tpu.memory_space<vmem>>, %arg8: memref<1x8xf32, #tpu.memory_space<vmem>>, %arg9: memref<100x8xbf16, #tpu.memory_space<vmem>>, %arg10: memref<1x8xf32, #tpu.memory_space<vmem>>, %arg11: memref<1x8xf32, #tpu.memory_space<vmem>>, %arg12: memref<4x8xbf16, #tpu.memory_space<vmem>>, %arg13: memref<1x8xf32, #tpu.memory_space<vmem>>, %arg14: memref<1x8xf32, #tpu.memory_space<vmem>>, %arg15: memref<1x128x32xf32, #tpu.memory_space<vmem>>, %arg16: memref<10x18x4xbf16, #tpu.memory_space<vmem>>, %arg17: memref<12x20x4xbf16, #tpu.memory_space<vmem>>, %arg18: memref<10x18x4xbf16, #tpu.memory_space<vmem>>) attributes {dimension_semantics = [#tpu.dimension_semantics<parallel>, #tpu.dimension_semantics<parallel>], iteration_bounds = array<i64: 2, 2>, scalar_prefetch = 0 : i64, scratch_operands = 3 : i64, tpu.core_type = #tpu.core_type<tc>, window_params = [{transform_indices = @transform_0, window_bounds = array<i64: 1, 20, 16, 4>}, {pipeline_mode = #tpu.pipeline_mode<synchronous>, transform_indices = @transform_1, window_bounds = array<i64: 4, 16>}, {pipeline_mode = #tpu.pipeline_mode<synchronous>, transform_indices = @transform_2, window_bounds = array<i64: 1, 16>}, {pipeline_mode = #tpu.pipeline_mode<synchronous>, transform_indices = @transform_3, window_bounds = array<i64: 1, 16>}, {pipeline_mode = #tpu.pipeline_mode<synchronous>, transform_indices = @transform_4, window_bounds = array<i64: 36, 8>}, {pipeline_mode = #tpu.pipeline_mode<synchronous>, transform_indices = @transform_5, window_bounds = array<i64: 1, 8>}, {pipeline_mode = #tpu.pipeline_mode<synchronous>, transform_indices = @transform_6, window_bounds = array<i64: 1, 8>}, {pipeline_mode = #tpu.pipeline_mode<synchronous>, transform_indices = @transform_7, window_bounds = array<i64: 100, 8>}, {pipeline_mode = #tpu.pipeline_mode<synchronous>, transform_indices = @transform_8, window_bounds = array<i64: 1, 8>}, {pipeline_mode = #tpu.pipeline_mode<synchronous>, transform_indices = @transform_9, window_bounds = array<i64: 1, 8>}, {pipeline_mode = #tpu.pipeline_mode<synchronous>, transform_indices = @transform_10, window_bounds = array<i64: 4, 8>}, {pipeline_mode = #tpu.pipeline_mode<synchronous>, transform_indices = @transform_11, window_bounds = array<i64: 1, 8>}, {pipeline_mode = #tpu.pipeline_mode<synchronous>, transform_indices = @transform_12, window_bounds = array<i64: 1, 8>}, {transform_indices = @transform_13, window_bounds = array<i64: 1, 128, 32>}]} {
    %c8_i32 = arith.constant 8 : i32
    %0 = arith.muli %arg1, %c8_i32 : i32
    %1 = tpu.assume_multiple %0, 8 : i32
    %c0 = arith.constant 0 : index
    %2 = arith.index_cast %1 : i32 to index
    %c0_0 = arith.constant 0 : index
    %c0_1 = arith.constant 0 : index
    %3 = vector.load %arg2[%c0, %2, %c0_0, %c0_1] : memref<1x20x16x4xbf16, #tpu.memory_space<vmem>>, vector<1x12x16x4xbf16>
    %4 = vector.shape_cast %3 : vector<1x12x16x4xbf16> to vector<12x16x4xbf16>
    %5 = vector.shape_cast %4 : vector<12x16x4xbf16> to vector<192x4xbf16>
    %c0_2 = arith.constant 0 : index
    %c0_3 = arith.constant 0 : index
    %6 = vector.load %arg3[%c0_2, %c0_3] : memref<4x16xbf16, #tpu.memory_space<vmem>>, vector<4x16xbf16>
    %cst = arith.constant dense<0.000000e+00> : vector<192x16xf32>
    %7 = tpu.matmul %5, %6, %cst {dimension_numbers = #tpu.dot_dimension_numbers<[1], [0], [0], [1], [0, 0, 1, 1], [], []>} : vector<192x4xbf16>, vector<4x16xbf16>, vector<192x16xf32> -> vector<192x16xf32>
    %c0_4 = arith.constant 0 : index
    %c0_5 = arith.constant 0 : index
    %8 = vector.load %arg4[%c0_4, %c0_5] : memref<1x16xf32, #tpu.memory_space<vmem>>, vector<1x16xf32>
    %9 = vector.broadcast %8 : vector<1x16xf32> to vector<192x16xf32>
    %10 = arith.mulf %7, %9 : vector<192x16xf32>
    %c0_6 = arith.constant 0 : index
    %c0_7 = arith.constant 0 : index
    %11 = vector.load %arg5[%c0_6, %c0_7] : memref<1x16xf32, #tpu.memory_space<vmem>>, vector<1x16xf32>
    %12 = vector.broadcast %11 : vector<1x16xf32> to vector<192x16xf32>
    %13 = arith.addf %10, %12 : vector<192x16xf32>
    %cst_8 = arith.constant 0.000000e+00 : f32
    %14 = vector.broadcast %cst_8 : f32 to vector<192x16xf32>
    %15 = arith.maximumf %13, %14 : vector<192x16xf32>
    %16 = vector.extract_strided_slice %15 {offsets = [32, 0], sizes = [128, 8], strides = [1, 1]} : vector<192x16xf32> to vector<128x8xf32>
    %17 = vector.extract_strided_slice %15 {offsets = [16, 8], sizes = [160, 4], strides = [1, 1]} : vector<192x16xf32> to vector<160x4xf32>
    %18 = vector.shape_cast %17 : vector<160x4xf32> to vector<10x16x4xf32>
    %19 = tpu.iota {dimensions = array<i32: 0>} : vector<10x16x4xi32>
    %c1_i32 = arith.constant 1 : i32
    %20 = arith.subi %1, %c1_i32 : i32
    %21 = vector.broadcast %20 : i32 to vector<10x16x4xi32>
    %22 = arith.addi %19, %21 : vector<10x16x4xi32>
    %c0_i32 = arith.constant 0 : i32
    %23 = vector.broadcast %c0_i32 : i32 to vector<10x16x4xi32>
    %24 = arith.cmpi sge, %22, %23 : vector<10x16x4xi32>
    %c16_i32 = arith.constant 16 : i32
    %25 = vector.broadcast %c16_i32 : i32 to vector<10x16x4xi32>
    %26 = arith.cmpi slt, %22, %25 : vector<10x16x4xi32>
    %27 = arith.andi %24, %26 : vector<10x16x4xi1>
    %cst_9 = arith.constant 0.000000e+00 : f32
    %28 = vector.broadcast %cst_9 : f32 to vector<10x16x4xf32>
    %29 = arith.select %27, %18, %28 : vector<10x16x4xi1>, vector<10x16x4xf32>
    %30 = arith.truncf %29 : vector<10x16x4xf32> to vector<10x16x4xbf16>
    %31 = vector.extract_strided_slice %15 {offsets = [0, 12], sizes = [192, 4], strides = [1, 1]} : vector<192x16xf32> to vector<192x4xf32>
    %32 = vector.shape_cast %31 : vector<192x4xf32> to vector<12x16x4xf32>
    %33 = tpu.iota {dimensions = array<i32: 0>} : vector<12x16x4xi32>
    %c2_i32 = arith.constant 2 : i32
    %34 = arith.subi %1, %c2_i32 : i32
    %35 = vector.broadcast %34 : i32 to vector<12x16x4xi32>
    %36 = arith.addi %33, %35 : vector<12x16x4xi32>
    %c0_i32_10 = arith.constant 0 : i32
    %37 = vector.broadcast %c0_i32_10 : i32 to vector<12x16x4xi32>
    %38 = arith.cmpi sge, %36, %37 : vector<12x16x4xi32>
    %c16_i32_11 = arith.constant 16 : i32
    %39 = vector.broadcast %c16_i32_11 : i32 to vector<12x16x4xi32>
    %40 = arith.cmpi slt, %36, %39 : vector<12x16x4xi32>
    %41 = arith.andi %38, %40 : vector<12x16x4xi1>
    %cst_12 = arith.constant 0.000000e+00 : f32
    %42 = vector.broadcast %cst_12 : f32 to vector<12x16x4xf32>
    %43 = arith.select %41, %32, %42 : vector<12x16x4xi1>, vector<12x16x4xf32>
    %44 = arith.truncf %43 : vector<12x16x4xf32> to vector<12x16x4xbf16>
    %cst_13 = arith.constant 0.000000e+00 : bf16
    %45 = vector.broadcast %cst_13 : bf16 to vector<10x1x4xbf16>
    %c0_14 = arith.constant 0 : index
    %c0_15 = arith.constant 0 : index
    %c0_16 = arith.constant 0 : index
    %46 = vector.load %arg16[%c0_14, %c0_15, %c0_16] : memref<10x18x4xbf16, #tpu.memory_space<vmem>>, vector<10x1x4xbf16>
    tpu.vector_store %arg16[%c0_14, %c0_15, %c0_16], %45 {strides = array<i32>} : memref<10x18x4xbf16, #tpu.memory_space<vmem>>, vector<10x1x4xbf16>,
    %cst_17 = arith.constant 0.000000e+00 : bf16
    %47 = vector.broadcast %cst_17 : bf16 to vector<10x1x4xbf16>
    %c0_18 = arith.constant 0 : index
    %c17 = arith.constant 17 : index
    %c0_19 = arith.constant 0 : index
    %48 = vector.load %arg16[%c0_18, %c17, %c0_19] : memref<10x18x4xbf16, #tpu.memory_space<vmem>>, vector<10x1x4xbf16>
    tpu.vector_store %arg16[%c0_18, %c17, %c0_19], %47 {strides = array<i32>} : memref<10x18x4xbf16, #tpu.memory_space<vmem>>, vector<10x1x4xbf16>,
    %c0_20 = arith.constant 0 : index
    %c1 = arith.constant 1 : index
    %c0_21 = arith.constant 0 : index
    %49 = vector.load %arg16[%c0_20, %c1, %c0_21] : memref<10x18x4xbf16, #tpu.memory_space<vmem>>, vector<10x16x4xbf16>
    tpu.vector_store %arg16[%c0_20, %c1, %c0_21], %30 {strides = array<i32>} : memref<10x18x4xbf16, #tpu.memory_space<vmem>>, vector<10x16x4xbf16>,
    %c0_22 = arith.constant 0 : index
    %c0_23 = arith.constant 0 : index
    %c0_24 = arith.constant 0 : index
    %50 = vector.load %arg16[%c0_22, %c0_23, %c0_24] : memref<10x18x4xbf16, #tpu.memory_space<vmem>>, vector<8x16x4xbf16>
    %51 = vector.shape_cast %50 : vector<8x16x4xbf16> to vector<128x4xbf16>
    %c0_25 = arith.constant 0 : index
    %c1_26 = arith.constant 1 : index
    %c0_27 = arith.constant 0 : index
    %52 = vector.load %arg16[%c0_25, %c1_26, %c0_27] : memref<10x18x4xbf16, #tpu.memory_space<vmem>>, vector<8x16x4xbf16>
    %53 = vector.shape_cast %52 : vector<8x16x4xbf16> to vector<128x4xbf16>
    %c0_28 = arith.constant 0 : index
    %c2 = arith.constant 2 : index
    %c0_29 = arith.constant 0 : index
    %54 = vector.load %arg16[%c0_28, %c2, %c0_29] : memref<10x18x4xbf16, #tpu.memory_space<vmem>>, vector<8x16x4xbf16>
    %55 = vector.shape_cast %54 : vector<8x16x4xbf16> to vector<128x4xbf16>
    %c1_30 = arith.constant 1 : index
    %c0_31 = arith.constant 0 : index
    %c0_32 = arith.constant 0 : index
    %56 = vector.load %arg16[%c1_30, %c0_31, %c0_32] : memref<10x18x4xbf16, #tpu.memory_space<vmem>>, vector<8x16x4xbf16>
    %57 = vector.shape_cast %56 : vector<8x16x4xbf16> to vector<128x4xbf16>
    %c1_33 = arith.constant 1 : index
    %c1_34 = arith.constant 1 : index
    %c0_35 = arith.constant 0 : index
    %58 = vector.load %arg16[%c1_33, %c1_34, %c0_35] : memref<10x18x4xbf16, #tpu.memory_space<vmem>>, vector<8x16x4xbf16>
    %59 = vector.shape_cast %58 : vector<8x16x4xbf16> to vector<128x4xbf16>
    %c1_36 = arith.constant 1 : index
    %c2_37 = arith.constant 2 : index
    %c0_38 = arith.constant 0 : index
    %60 = vector.load %arg16[%c1_36, %c2_37, %c0_38] : memref<10x18x4xbf16, #tpu.memory_space<vmem>>, vector<8x16x4xbf16>
    %61 = vector.shape_cast %60 : vector<8x16x4xbf16> to vector<128x4xbf16>
    %c2_39 = arith.constant 2 : index
    %c0_40 = arith.constant 0 : index
    %c0_41 = arith.constant 0 : index
    %62 = vector.load %arg16[%c2_39, %c0_40, %c0_41] : memref<10x18x4xbf16, #tpu.memory_space<vmem>>, vector<8x16x4xbf16>
    %63 = vector.shape_cast %62 : vector<8x16x4xbf16> to vector<128x4xbf16>
    %c2_42 = arith.constant 2 : index
    %c1_43 = arith.constant 1 : index
    %c0_44 = arith.constant 0 : index
    %64 = vector.load %arg16[%c2_42, %c1_43, %c0_44] : memref<10x18x4xbf16, #tpu.memory_space<vmem>>, vector<8x16x4xbf16>
    %65 = vector.shape_cast %64 : vector<8x16x4xbf16> to vector<128x4xbf16>
    %c2_45 = arith.constant 2 : index
    %c2_46 = arith.constant 2 : index
    %c0_47 = arith.constant 0 : index
    %66 = vector.load %arg16[%c2_45, %c2_46, %c0_47] : memref<10x18x4xbf16, #tpu.memory_space<vmem>>, vector<8x16x4xbf16>
    %67 = vector.shape_cast %66 : vector<8x16x4xbf16> to vector<128x4xbf16>
    %68 = tpu.concatenate %51, %53, %55, %57, %59, %61, %63, %65, %67 in 1 : vector<128x4xbf16>, vector<128x4xbf16>, vector<128x4xbf16>, vector<128x4xbf16>, vector<128x4xbf16>, vector<128x4xbf16>, vector<128x4xbf16>, vector<128x4xbf16>, vector<128x4xbf16> -> vector<128x36xbf16>
    %c0_48 = arith.constant 0 : index
    %c0_49 = arith.constant 0 : index
    %69 = vector.load %arg6[%c0_48, %c0_49] : memref<36x8xbf16, #tpu.memory_space<vmem>>, vector<36x8xbf16>
    %cst_50 = arith.constant dense<0.000000e+00> : vector<128x8xf32>
    %70 = tpu.matmul %68, %69, %cst_50 {dimension_numbers = #tpu.dot_dimension_numbers<[1], [0], [0], [1], [0, 0, 1, 1], [], []>} : vector<128x36xbf16>, vector<36x8xbf16>, vector<128x8xf32> -> vector<128x8xf32>
    %c0_51 = arith.constant 0 : index
    %c0_52 = arith.constant 0 : index
    %71 = vector.load %arg7[%c0_51, %c0_52] : memref<1x8xf32, #tpu.memory_space<vmem>>, vector<1x8xf32>
    %72 = vector.broadcast %71 : vector<1x8xf32> to vector<128x8xf32>
    %73 = arith.mulf %70, %72 : vector<128x8xf32>
    %c0_53 = arith.constant 0 : index
    %c0_54 = arith.constant 0 : index
    %74 = vector.load %arg8[%c0_53, %c0_54] : memref<1x8xf32, #tpu.memory_space<vmem>>, vector<1x8xf32>
    %75 = vector.broadcast %74 : vector<1x8xf32> to vector<128x8xf32>
    %76 = arith.addf %73, %75 : vector<128x8xf32>
    %cst_55 = arith.constant 0.000000e+00 : f32
    %77 = vector.broadcast %cst_55 : f32 to vector<128x8xf32>
    %78 = arith.maximumf %76, %77 : vector<128x8xf32>
    %cst_56 = arith.constant 0.000000e+00 : bf16
    %79 = vector.broadcast %cst_56 : bf16 to vector<12x2x4xbf16>
    %c0_57 = arith.constant 0 : index
    %c0_58 = arith.constant 0 : index
    %c0_59 = arith.constant 0 : index
    %80 = vector.load %arg17[%c0_57, %c0_58, %c0_59] : memref<12x20x4xbf16, #tpu.memory_space<vmem>>, vector<12x2x4xbf16>
    tpu.vector_store %arg17[%c0_57, %c0_58, %c0_59], %79 {strides = array<i32>} : memref<12x20x4xbf16, #tpu.memory_space<vmem>>, vector<12x2x4xbf16>,
    %cst_60 = arith.constant 0.000000e+00 : bf16
    %81 = vector.broadcast %cst_60 : bf16 to vector<12x2x4xbf16>
    %c0_61 = arith.constant 0 : index
    %c18 = arith.constant 18 : index
    %c0_62 = arith.constant 0 : index
    %82 = vector.load %arg17[%c0_61, %c18, %c0_62] : memref<12x20x4xbf16, #tpu.memory_space<vmem>>, vector<12x2x4xbf16>
    tpu.vector_store %arg17[%c0_61, %c18, %c0_62], %81 {strides = array<i32>} : memref<12x20x4xbf16, #tpu.memory_space<vmem>>, vector<12x2x4xbf16>,
    %c0_63 = arith.constant 0 : index
    %c2_64 = arith.constant 2 : index
    %c0_65 = arith.constant 0 : index
    %83 = vector.load %arg17[%c0_63, %c2_64, %c0_65] : memref<12x20x4xbf16, #tpu.memory_space<vmem>>, vector<12x16x4xbf16>
    tpu.vector_store %arg17[%c0_63, %c2_64, %c0_65], %44 {strides = array<i32>} : memref<12x20x4xbf16, #tpu.memory_space<vmem>>, vector<12x16x4xbf16>,
    %c0_66 = arith.constant 0 : index
    %c0_67 = arith.constant 0 : index
    %c0_68 = arith.constant 0 : index
    %84 = vector.load %arg17[%c0_66, %c0_67, %c0_68] : memref<12x20x4xbf16, #tpu.memory_space<vmem>>, vector<8x16x4xbf16>
    %85 = vector.shape_cast %84 : vector<8x16x4xbf16> to vector<128x4xbf16>
    %c0_69 = arith.constant 0 : index
    %c1_70 = arith.constant 1 : index
    %c0_71 = arith.constant 0 : index
    %86 = vector.load %arg17[%c0_69, %c1_70, %c0_71] : memref<12x20x4xbf16, #tpu.memory_space<vmem>>, vector<8x16x4xbf16>
    %87 = vector.shape_cast %86 : vector<8x16x4xbf16> to vector<128x4xbf16>
    %c0_72 = arith.constant 0 : index
    %c2_73 = arith.constant 2 : index
    %c0_74 = arith.constant 0 : index
    %88 = vector.load %arg17[%c0_72, %c2_73, %c0_74] : memref<12x20x4xbf16, #tpu.memory_space<vmem>>, vector<8x16x4xbf16>
    %89 = vector.shape_cast %88 : vector<8x16x4xbf16> to vector<128x4xbf16>
    %c0_75 = arith.constant 0 : index
    %c3 = arith.constant 3 : index
    %c0_76 = arith.constant 0 : index
    %90 = vector.load %arg17[%c0_75, %c3, %c0_76] : memref<12x20x4xbf16, #tpu.memory_space<vmem>>, vector<8x16x4xbf16>
    %91 = vector.shape_cast %90 : vector<8x16x4xbf16> to vector<128x4xbf16>
    %c0_77 = arith.constant 0 : index
    %c4 = arith.constant 4 : index
    %c0_78 = arith.constant 0 : index
    %92 = vector.load %arg17[%c0_77, %c4, %c0_78] : memref<12x20x4xbf16, #tpu.memory_space<vmem>>, vector<8x16x4xbf16>
    %93 = vector.shape_cast %92 : vector<8x16x4xbf16> to vector<128x4xbf16>
    %c1_79 = arith.constant 1 : index
    %c0_80 = arith.constant 0 : index
    %c0_81 = arith.constant 0 : index
    %94 = vector.load %arg17[%c1_79, %c0_80, %c0_81] : memref<12x20x4xbf16, #tpu.memory_space<vmem>>, vector<8x16x4xbf16>
    %95 = vector.shape_cast %94 : vector<8x16x4xbf16> to vector<128x4xbf16>
    %c1_82 = arith.constant 1 : index
    %c1_83 = arith.constant 1 : index
    %c0_84 = arith.constant 0 : index
    %96 = vector.load %arg17[%c1_82, %c1_83, %c0_84] : memref<12x20x4xbf16, #tpu.memory_space<vmem>>, vector<8x16x4xbf16>
    %97 = vector.shape_cast %96 : vector<8x16x4xbf16> to vector<128x4xbf16>
    %c1_85 = arith.constant 1 : index
    %c2_86 = arith.constant 2 : index
    %c0_87 = arith.constant 0 : index
    %98 = vector.load %arg17[%c1_85, %c2_86, %c0_87] : memref<12x20x4xbf16, #tpu.memory_space<vmem>>, vector<8x16x4xbf16>
    %99 = vector.shape_cast %98 : vector<8x16x4xbf16> to vector<128x4xbf16>
    %c1_88 = arith.constant 1 : index
    %c3_89 = arith.constant 3 : index
    %c0_90 = arith.constant 0 : index
    %100 = vector.load %arg17[%c1_88, %c3_89, %c0_90] : memref<12x20x4xbf16, #tpu.memory_space<vmem>>, vector<8x16x4xbf16>
    %101 = vector.shape_cast %100 : vector<8x16x4xbf16> to vector<128x4xbf16>
    %c1_91 = arith.constant 1 : index
    %c4_92 = arith.constant 4 : index
    %c0_93 = arith.constant 0 : index
    %102 = vector.load %arg17[%c1_91, %c4_92, %c0_93] : memref<12x20x4xbf16, #tpu.memory_space<vmem>>, vector<8x16x4xbf16>
    %103 = vector.shape_cast %102 : vector<8x16x4xbf16> to vector<128x4xbf16>
    %c2_94 = arith.constant 2 : index
    %c0_95 = arith.constant 0 : index
    %c0_96 = arith.constant 0 : index
    %104 = vector.load %arg17[%c2_94, %c0_95, %c0_96] : memref<12x20x4xbf16, #tpu.memory_space<vmem>>, vector<8x16x4xbf16>
    %105 = vector.shape_cast %104 : vector<8x16x4xbf16> to vector<128x4xbf16>
    %c2_97 = arith.constant 2 : index
    %c1_98 = arith.constant 1 : index
    %c0_99 = arith.constant 0 : index
    %106 = vector.load %arg17[%c2_97, %c1_98, %c0_99] : memref<12x20x4xbf16, #tpu.memory_space<vmem>>, vector<8x16x4xbf16>
    %107 = vector.shape_cast %106 : vector<8x16x4xbf16> to vector<128x4xbf16>
    %c2_100 = arith.constant 2 : index
    %c2_101 = arith.constant 2 : index
    %c0_102 = arith.constant 0 : index
    %108 = vector.load %arg17[%c2_100, %c2_101, %c0_102] : memref<12x20x4xbf16, #tpu.memory_space<vmem>>, vector<8x16x4xbf16>
    %109 = vector.shape_cast %108 : vector<8x16x4xbf16> to vector<128x4xbf16>
    %c2_103 = arith.constant 2 : index
    %c3_104 = arith.constant 3 : index
    %c0_105 = arith.constant 0 : index
    %110 = vector.load %arg17[%c2_103, %c3_104, %c0_105] : memref<12x20x4xbf16, #tpu.memory_space<vmem>>, vector<8x16x4xbf16>
    %111 = vector.shape_cast %110 : vector<8x16x4xbf16> to vector<128x4xbf16>
    %c2_106 = arith.constant 2 : index
    %c4_107 = arith.constant 4 : index
    %c0_108 = arith.constant 0 : index
    %112 = vector.load %arg17[%c2_106, %c4_107, %c0_108] : memref<12x20x4xbf16, #tpu.memory_space<vmem>>, vector<8x16x4xbf16>
    %113 = vector.shape_cast %112 : vector<8x16x4xbf16> to vector<128x4xbf16>
    %c3_109 = arith.constant 3 : index
    %c0_110 = arith.constant 0 : index
    %c0_111 = arith.constant 0 : index
    %114 = vector.load %arg17[%c3_109, %c0_110, %c0_111] : memref<12x20x4xbf16, #tpu.memory_space<vmem>>, vector<8x16x4xbf16>
    %115 = vector.shape_cast %114 : vector<8x16x4xbf16> to vector<128x4xbf16>
    %c3_112 = arith.constant 3 : index
    %c1_113 = arith.constant 1 : index
    %c0_114 = arith.constant 0 : index
    %116 = vector.load %arg17[%c3_112, %c1_113, %c0_114] : memref<12x20x4xbf16, #tpu.memory_space<vmem>>, vector<8x16x4xbf16>
    %117 = vector.shape_cast %116 : vector<8x16x4xbf16> to vector<128x4xbf16>
    %c3_115 = arith.constant 3 : index
    %c2_116 = arith.constant 2 : index
    %c0_117 = arith.constant 0 : index
    %118 = vector.load %arg17[%c3_115, %c2_116, %c0_117] : memref<12x20x4xbf16, #tpu.memory_space<vmem>>, vector<8x16x4xbf16>
    %119 = vector.shape_cast %118 : vector<8x16x4xbf16> to vector<128x4xbf16>
    %c3_118 = arith.constant 3 : index
    %c3_119 = arith.constant 3 : index
    %c0_120 = arith.constant 0 : index
    %120 = vector.load %arg17[%c3_118, %c3_119, %c0_120] : memref<12x20x4xbf16, #tpu.memory_space<vmem>>, vector<8x16x4xbf16>
    %121 = vector.shape_cast %120 : vector<8x16x4xbf16> to vector<128x4xbf16>
    %c3_121 = arith.constant 3 : index
    %c4_122 = arith.constant 4 : index
    %c0_123 = arith.constant 0 : index
    %122 = vector.load %arg17[%c3_121, %c4_122, %c0_123] : memref<12x20x4xbf16, #tpu.memory_space<vmem>>, vector<8x16x4xbf16>
    %123 = vector.shape_cast %122 : vector<8x16x4xbf16> to vector<128x4xbf16>
    %c4_124 = arith.constant 4 : index
    %c0_125 = arith.constant 0 : index
    %c0_126 = arith.constant 0 : index
    %124 = vector.load %arg17[%c4_124, %c0_125, %c0_126] : memref<12x20x4xbf16, #tpu.memory_space<vmem>>, vector<8x16x4xbf16>
    %125 = vector.shape_cast %124 : vector<8x16x4xbf16> to vector<128x4xbf16>
    %c4_127 = arith.constant 4 : index
    %c1_128 = arith.constant 1 : index
    %c0_129 = arith.constant 0 : index
    %126 = vector.load %arg17[%c4_127, %c1_128, %c0_129] : memref<12x20x4xbf16, #tpu.memory_space<vmem>>, vector<8x16x4xbf16>
    %127 = vector.shape_cast %126 : vector<8x16x4xbf16> to vector<128x4xbf16>
    %c4_130 = arith.constant 4 : index
    %c2_131 = arith.constant 2 : index
    %c0_132 = arith.constant 0 : index
    %128 = vector.load %arg17[%c4_130, %c2_131, %c0_132] : memref<12x20x4xbf16, #tpu.memory_space<vmem>>, vector<8x16x4xbf16>
    %129 = vector.shape_cast %128 : vector<8x16x4xbf16> to vector<128x4xbf16>
    %c4_133 = arith.constant 4 : index
    %c3_134 = arith.constant 3 : index
    %c0_135 = arith.constant 0 : index
    %130 = vector.load %arg17[%c4_133, %c3_134, %c0_135] : memref<12x20x4xbf16, #tpu.memory_space<vmem>>, vector<8x16x4xbf16>
    %131 = vector.shape_cast %130 : vector<8x16x4xbf16> to vector<128x4xbf16>
    %c4_136 = arith.constant 4 : index
    %c4_137 = arith.constant 4 : index
    %c0_138 = arith.constant 0 : index
    %132 = vector.load %arg17[%c4_136, %c4_137, %c0_138] : memref<12x20x4xbf16, #tpu.memory_space<vmem>>, vector<8x16x4xbf16>
    %133 = vector.shape_cast %132 : vector<8x16x4xbf16> to vector<128x4xbf16>
    %134 = tpu.concatenate %85, %87, %89, %91, %93, %95, %97, %99, %101, %103, %105, %107, %109, %111, %113, %115 in 1 : vector<128x4xbf16>, vector<128x4xbf16>, vector<128x4xbf16>, vector<128x4xbf16>, vector<128x4xbf16>, vector<128x4xbf16>, vector<128x4xbf16>, vector<128x4xbf16>, vector<128x4xbf16>, vector<128x4xbf16>, vector<128x4xbf16>, vector<128x4xbf16>, vector<128x4xbf16>, vector<128x4xbf16>, vector<128x4xbf16>, vector<128x4xbf16> -> vector<128x64xbf16>
    %135 = tpu.concatenate %117, %119, %121, %123, %125, %127, %129, %131, %133 in 1 : vector<128x4xbf16>, vector<128x4xbf16>, vector<128x4xbf16>, vector<128x4xbf16>, vector<128x4xbf16>, vector<128x4xbf16>, vector<128x4xbf16>, vector<128x4xbf16>, vector<128x4xbf16> -> vector<128x36xbf16>
    %136 = tpu.concatenate %134, %135 in 1 : vector<128x64xbf16>, vector<128x36xbf16> -> vector<128x100xbf16>
    %c0_139 = arith.constant 0 : index
    %c0_140 = arith.constant 0 : index
    %137 = vector.load %arg9[%c0_139, %c0_140] : memref<100x8xbf16, #tpu.memory_space<vmem>>, vector<100x8xbf16>
    %cst_141 = arith.constant dense<0.000000e+00> : vector<128x8xf32>
    %138 = tpu.matmul %136, %137, %cst_141 {dimension_numbers = #tpu.dot_dimension_numbers<[1], [0], [0], [1], [0, 0, 1, 1], [], []>} : vector<128x100xbf16>, vector<100x8xbf16>, vector<128x8xf32> -> vector<128x8xf32>
    %c0_142 = arith.constant 0 : index
    %c0_143 = arith.constant 0 : index
    %139 = vector.load %arg10[%c0_142, %c0_143] : memref<1x8xf32, #tpu.memory_space<vmem>>, vector<1x8xf32>
    %140 = vector.broadcast %139 : vector<1x8xf32> to vector<128x8xf32>
    %141 = arith.mulf %138, %140 : vector<128x8xf32>
    %c0_144 = arith.constant 0 : index
    %c0_145 = arith.constant 0 : index
    %142 = vector.load %arg11[%c0_144, %c0_145] : memref<1x8xf32, #tpu.memory_space<vmem>>, vector<1x8xf32>
    %143 = vector.broadcast %142 : vector<1x8xf32> to vector<128x8xf32>
    %144 = arith.addf %141, %143 : vector<128x8xf32>
    %cst_146 = arith.constant 0.000000e+00 : f32
    %145 = vector.broadcast %cst_146 : f32 to vector<128x8xf32>
    %146 = arith.maximumf %144, %145 : vector<128x8xf32>
    %c1_i32_147 = arith.constant 1 : i32
    %147 = arith.addi %1, %c1_i32_147 : i32
    %c0_148 = arith.constant 0 : index
    %148 = arith.index_cast %147 : i32 to index
    %c0_149 = arith.constant 0 : index
    %c0_150 = arith.constant 0 : index
    %149 = vector.load %arg2[%c0_148, %148, %c0_149, %c0_150] : memref<1x20x16x4xbf16, #tpu.memory_space<vmem>>, vector<1x10x16x4xbf16>
    %150 = vector.shape_cast %149 : vector<1x10x16x4xbf16> to vector<10x16x4xbf16>
    %151 = tpu.iota {dimensions = array<i32: 0>} : vector<10x16x4xi32>
    %c1_i32_151 = arith.constant 1 : i32
    %152 = arith.subi %1, %c1_i32_151 : i32
    %153 = vector.broadcast %152 : i32 to vector<10x16x4xi32>
    %154 = arith.addi %151, %153 : vector<10x16x4xi32>
    %c0_i32_152 = arith.constant 0 : i32
    %155 = vector.broadcast %c0_i32_152 : i32 to vector<10x16x4xi32>
    %156 = arith.cmpi sge, %154, %155 : vector<10x16x4xi32>
    %c16_i32_153 = arith.constant 16 : i32
    %157 = vector.broadcast %c16_i32_153 : i32 to vector<10x16x4xi32>
    %158 = arith.cmpi slt, %154, %157 : vector<10x16x4xi32>
    %159 = arith.andi %156, %158 : vector<10x16x4xi1>
    %cst_154 = arith.constant -1.000000e+30 : f32
    %160 = arith.truncf %cst_154 : f32 to bf16
    %161 = vector.broadcast %160 : bf16 to vector<10x16x4xbf16>
    %162 = arith.select %159, %150, %161 : vector<10x16x4xi1>, vector<10x16x4xbf16>
    %cst_155 = arith.constant -1.000260e+30 : bf16
    %163 = vector.broadcast %cst_155 : bf16 to vector<10x1x4xbf16>
    %c0_156 = arith.constant 0 : index
    %c0_157 = arith.constant 0 : index
    %c0_158 = arith.constant 0 : index
    %164 = vector.load %arg18[%c0_156, %c0_157, %c0_158] : memref<10x18x4xbf16, #tpu.memory_space<vmem>>, vector<10x1x4xbf16>
    tpu.vector_store %arg18[%c0_156, %c0_157, %c0_158], %163 {strides = array<i32>} : memref<10x18x4xbf16, #tpu.memory_space<vmem>>, vector<10x1x4xbf16>,
    %cst_159 = arith.constant -1.000260e+30 : bf16
    %165 = vector.broadcast %cst_159 : bf16 to vector<10x1x4xbf16>
    %c0_160 = arith.constant 0 : index
    %c17_161 = arith.constant 17 : index
    %c0_162 = arith.constant 0 : index
    %166 = vector.load %arg18[%c0_160, %c17_161, %c0_162] : memref<10x18x4xbf16, #tpu.memory_space<vmem>>, vector<10x1x4xbf16>
    tpu.vector_store %arg18[%c0_160, %c17_161, %c0_162], %165 {strides = array<i32>} : memref<10x18x4xbf16, #tpu.memory_space<vmem>>, vector<10x1x4xbf16>,
    %c0_163 = arith.constant 0 : index
    %c1_164 = arith.constant 1 : index
    %c0_165 = arith.constant 0 : index
    %167 = vector.load %arg18[%c0_163, %c1_164, %c0_165] : memref<10x18x4xbf16, #tpu.memory_space<vmem>>, vector<10x16x4xbf16>
    tpu.vector_store %arg18[%c0_163, %c1_164, %c0_165], %162 {strides = array<i32>} : memref<10x18x4xbf16, #tpu.memory_space<vmem>>, vector<10x16x4xbf16>,
    %c0_166 = arith.constant 0 : index
    %c0_167 = arith.constant 0 : index
    %c0_168 = arith.constant 0 : index
    %168 = vector.load %arg18[%c0_166, %c0_167, %c0_168] : memref<10x18x4xbf16, #tpu.memory_space<vmem>>, vector<8x16x4xbf16>
    %c0_169 = arith.constant 0 : index
    %c1_170 = arith.constant 1 : index
    %c0_171 = arith.constant 0 : index
    %169 = vector.load %arg18[%c0_169, %c1_170, %c0_171] : memref<10x18x4xbf16, #tpu.memory_space<vmem>>, vector<8x16x4xbf16>
    %170 = arith.maximumf %168, %169 : vector<8x16x4xbf16>
    %c0_172 = arith.constant 0 : index
    %c2_173 = arith.constant 2 : index
    %c0_174 = arith.constant 0 : index
    %171 = vector.load %arg18[%c0_172, %c2_173, %c0_174] : memref<10x18x4xbf16, #tpu.memory_space<vmem>>, vector<8x16x4xbf16>
    %172 = arith.maximumf %170, %171 : vector<8x16x4xbf16>
    %c1_175 = arith.constant 1 : index
    %c0_176 = arith.constant 0 : index
    %c0_177 = arith.constant 0 : index
    %173 = vector.load %arg18[%c1_175, %c0_176, %c0_177] : memref<10x18x4xbf16, #tpu.memory_space<vmem>>, vector<8x16x4xbf16>
    %174 = arith.maximumf %172, %173 : vector<8x16x4xbf16>
    %c1_178 = arith.constant 1 : index
    %c1_179 = arith.constant 1 : index
    %c0_180 = arith.constant 0 : index
    %175 = vector.load %arg18[%c1_178, %c1_179, %c0_180] : memref<10x18x4xbf16, #tpu.memory_space<vmem>>, vector<8x16x4xbf16>
    %176 = arith.maximumf %174, %175 : vector<8x16x4xbf16>
    %c1_181 = arith.constant 1 : index
    %c2_182 = arith.constant 2 : index
    %c0_183 = arith.constant 0 : index
    %177 = vector.load %arg18[%c1_181, %c2_182, %c0_183] : memref<10x18x4xbf16, #tpu.memory_space<vmem>>, vector<8x16x4xbf16>
    %178 = arith.maximumf %176, %177 : vector<8x16x4xbf16>
    %c2_184 = arith.constant 2 : index
    %c0_185 = arith.constant 0 : index
    %c0_186 = arith.constant 0 : index
    %179 = vector.load %arg18[%c2_184, %c0_185, %c0_186] : memref<10x18x4xbf16, #tpu.memory_space<vmem>>, vector<8x16x4xbf16>
    %180 = arith.maximumf %178, %179 : vector<8x16x4xbf16>
    %c2_187 = arith.constant 2 : index
    %c1_188 = arith.constant 1 : index
    %c0_189 = arith.constant 0 : index
    %181 = vector.load %arg18[%c2_187, %c1_188, %c0_189] : memref<10x18x4xbf16, #tpu.memory_space<vmem>>, vector<8x16x4xbf16>
    %182 = arith.maximumf %180, %181 : vector<8x16x4xbf16>
    %c2_190 = arith.constant 2 : index
    %c2_191 = arith.constant 2 : index
    %c0_192 = arith.constant 0 : index
    %183 = vector.load %arg18[%c2_190, %c2_191, %c0_192] : memref<10x18x4xbf16, #tpu.memory_space<vmem>>, vector<8x16x4xbf16>
    %184 = arith.maximumf %182, %183 : vector<8x16x4xbf16>
    %185 = vector.shape_cast %184 : vector<8x16x4xbf16> to vector<128x4xbf16>
    %c0_193 = arith.constant 0 : index
    %c0_194 = arith.constant 0 : index
    %186 = vector.load %arg12[%c0_193, %c0_194] : memref<4x8xbf16, #tpu.memory_space<vmem>>, vector<4x8xbf16>
    %cst_195 = arith.constant dense<0.000000e+00> : vector<128x8xf32>
    %187 = tpu.matmul %185, %186, %cst_195 {dimension_numbers = #tpu.dot_dimension_numbers<[1], [0], [0], [1], [0, 0, 1, 1], [], []>} : vector<128x4xbf16>, vector<4x8xbf16>, vector<128x8xf32> -> vector<128x8xf32>
    %c0_196 = arith.constant 0 : index
    %c0_197 = arith.constant 0 : index
    %188 = vector.load %arg13[%c0_196, %c0_197] : memref<1x8xf32, #tpu.memory_space<vmem>>, vector<1x8xf32>
    %189 = vector.broadcast %188 : vector<1x8xf32> to vector<128x8xf32>
    %190 = arith.mulf %187, %189 : vector<128x8xf32>
    %c0_198 = arith.constant 0 : index
    %c0_199 = arith.constant 0 : index
    %191 = vector.load %arg14[%c0_198, %c0_199] : memref<1x8xf32, #tpu.memory_space<vmem>>, vector<1x8xf32>
    %192 = vector.broadcast %191 : vector<1x8xf32> to vector<128x8xf32>
    %193 = arith.addf %190, %192 : vector<128x8xf32>
    %cst_200 = arith.constant 0.000000e+00 : f32
    %194 = vector.broadcast %cst_200 : f32 to vector<128x8xf32>
    %195 = arith.maximumf %193, %194 : vector<128x8xf32>
    %196 = tpu.concatenate %16, %78, %146, %195 in 1 : vector<128x8xf32>, vector<128x8xf32>, vector<128x8xf32>, vector<128x8xf32> -> vector<128x32xf32>
    %c0_201 = arith.constant 0 : index
    %c0_202 = arith.constant 0 : index
    %c0_203 = arith.constant 0 : index
    %197 = vector.load %arg15[%c0_201, %c0_202, %c0_203] : memref<1x128x32xf32, #tpu.memory_space<vmem>>, vector<1x128x32xf32>
    %198 = vector.shape_cast %197 : vector<1x128x32xf32> to vector<128x32xf32>
    %199 = vector.shape_cast %196 : vector<128x32xf32> to vector<1x128x32xf32>
    tpu.vector_store %arg15[%c0_201, %c0_202, %c0_203], %199 {strides = array<i32>} : memref<1x128x32xf32, #tpu.memory_space<vmem>>, vector<1x128x32xf32>,
    return
  }
  func.func @transform_0(%arg0: i32, %arg1: i32) -> (i32, i32, i32, i32) {
    %c0_i32 = arith.constant 0 : i32
    %c0_i32_0 = arith.constant 0 : i32
    %c0_i32_1 = arith.constant 0 : i32
    %c0_i32_2 = arith.constant 0 : i32
    return %arg0, %c0_i32, %c0_i32_0, %c0_i32_1 : i32, i32, i32, i32
  }
  func.func @transform_1(%arg0: i32, %arg1: i32) -> (i32, i32) {
    %c0_i32 = arith.constant 0 : i32
    %c0_i32_0 = arith.constant 0 : i32
    %c0_i32_1 = arith.constant 0 : i32
    return %c0_i32, %c0_i32_0 : i32, i32
  }
  func.func @transform_2(%arg0: i32, %arg1: i32) -> (i32, i32) {
    %c0_i32 = arith.constant 0 : i32
    %c0_i32_0 = arith.constant 0 : i32
    %c0_i32_1 = arith.constant 0 : i32
    return %c0_i32, %c0_i32_0 : i32, i32
  }
  func.func @transform_3(%arg0: i32, %arg1: i32) -> (i32, i32) {
    %c0_i32 = arith.constant 0 : i32
    %c0_i32_0 = arith.constant 0 : i32
    %c0_i32_1 = arith.constant 0 : i32
    return %c0_i32, %c0_i32_0 : i32, i32
  }
  func.func @transform_4(%arg0: i32, %arg1: i32) -> (i32, i32) {
    %c0_i32 = arith.constant 0 : i32
    %c0_i32_0 = arith.constant 0 : i32
    %c0_i32_1 = arith.constant 0 : i32
    return %c0_i32, %c0_i32_0 : i32, i32
  }
  func.func @transform_5(%arg0: i32, %arg1: i32) -> (i32, i32) {
    %c0_i32 = arith.constant 0 : i32
    %c0_i32_0 = arith.constant 0 : i32
    %c0_i32_1 = arith.constant 0 : i32
    return %c0_i32, %c0_i32_0 : i32, i32
  }
  func.func @transform_6(%arg0: i32, %arg1: i32) -> (i32, i32) {
    %c0_i32 = arith.constant 0 : i32
    %c0_i32_0 = arith.constant 0 : i32
    %c0_i32_1 = arith.constant 0 : i32
    return %c0_i32, %c0_i32_0 : i32, i32
  }
  func.func @transform_7(%arg0: i32, %arg1: i32) -> (i32, i32) {
    %c0_i32 = arith.constant 0 : i32
    %c0_i32_0 = arith.constant 0 : i32
    %c0_i32_1 = arith.constant 0 : i32
    return %c0_i32, %c0_i32_0 : i32, i32
  }
  func.func @transform_8(%arg0: i32, %arg1: i32) -> (i32, i32) {
    %c0_i32 = arith.constant 0 : i32
    %c0_i32_0 = arith.constant 0 : i32
    %c0_i32_1 = arith.constant 0 : i32
    return %c0_i32, %c0_i32_0 : i32, i32
  }
  func.func @transform_9(%arg0: i32, %arg1: i32) -> (i32, i32) {
    %c0_i32 = arith.constant 0 : i32
    %c0_i32_0 = arith.constant 0 : i32
    %c0_i32_1 = arith.constant 0 : i32
    return %c0_i32, %c0_i32_0 : i32, i32
  }
  func.func @transform_10(%arg0: i32, %arg1: i32) -> (i32, i32) {
    %c0_i32 = arith.constant 0 : i32
    %c0_i32_0 = arith.constant 0 : i32
    %c0_i32_1 = arith.constant 0 : i32
    return %c0_i32, %c0_i32_0 : i32, i32
  }
  func.func @transform_11(%arg0: i32, %arg1: i32) -> (i32, i32) {
    %c0_i32 = arith.constant 0 : i32
    %c0_i32_0 = arith.constant 0 : i32
    %c0_i32_1 = arith.constant 0 : i32
    return %c0_i32, %c0_i32_0 : i32, i32
  }
  func.func @transform_12(%arg0: i32, %arg1: i32) -> (i32, i32) {
    %c0_i32 = arith.constant 0 : i32
    %c0_i32_0 = arith.constant 0 : i32
    %c0_i32_1 = arith.constant 0 : i32
    return %c0_i32, %c0_i32_0 : i32, i32
  }
  func.func @transform_13(%arg0: i32, %arg1: i32) -> (i32, i32, i32) {
    %c0_i32 = arith.constant 0 : i32
    %c0_i32_0 = arith.constant 0 : i32
    return %arg0, %arg1, %c0_i32 : i32, i32, i32
  }
}

</mosaic_0001>

<bundles_post_ra>
// kernel: _lambda_.1
= control target key start
LH: loop header
LB: loop body
LE: loop exit
PB: predicated region body
PF: predicated region fallthrough
CT: control target
= control target key end

     0   :  { %s16018_s0 = inlined_call_operand.vmem [shape: bf16[2,20,16,4], index: 0, kind: input, shape index: {}]   ;;  %s16019_s1 = inlined_call_operand.vmem [shape: bf16[4,16], index: 1, kind: input, shape index: {}]   ;;  %s16020_s2 = inlined_call_operand.vmem [shape: f32[1,16], index: 2, kind: input, shape index: {}]   ;;  %s16021_s3 = inlined_call_operand.vmem [shape: f32[1,16], index: 3, kind: input, shape index: {}]   ;;  %s16022_s4 = inlined_call_operand.vmem [shape: bf16[36,8], index: 4, kind: input, shape index: {}]   ;;  %s16023_s5 = inlined_call_operand.vmem [shape: f32[1,8], index: 5, kind: input, shape index: {}]   ;;  %s16024_s6 = inlined_call_operand.vmem [shape: f32[1,8], index: 6, kind: input, shape index: {}]   ;;  %s16025_s7 = inlined_call_operand.vmem [shape: bf16[100,8], index: 7, kind: input, shape index: {}]   ;;  %s16026_s8 = inlined_call_operand.vmem [shape: f32[1,8], index: 8, kind: input, shape index: {}]   ;;  %s16027_s9 = inlined_call_operand.vmem [shape: f32[1,8], index: 9, kind: input, shape index: {}]   ;;  %s16028_s10 = inlined_call_operand.vmem [shape: bf16[4,8], index: 10, kind: input, shape index: {}]   ;;  %s16029_s11 = inlined_call_operand.vmem [shape: f32[1,8], index: 11, kind: input, shape index: {}]   ;;  %s16030_s12 = inlined_call_operand.vmem [shape: f32[1,8], index: 12, kind: input, shape index: {}]   ;;  %s16031_s13 = inlined_call_operand.hbm [shape: f32[2,256,32], index: 13, kind: output, shape index: {}]  }
   0x1   :  { %16124 = sst [smem:[#allocation63_spill]] %s16018_s0 }
   0x2   :  { %16125 = sst [smem:[#allocation64_spill]] %s16019_s1 }
   0x3   :  { %18 = vsyncpa [#allocation6], 0 }
   0x4   :  { %20 = vsyncpa [#allocation6 + $0x1], 0  ;;  %s10524_s25 = smov 0   ;;  %s10526_s26 = smov 0  }
   0x5   :  { %s10528_s27 = smov 0   ;;  %s10530_s28 = smov 0  }
   0x6   :  { %s10532_s29 = smov 0   ;;  %s10534_s30 = smov 0  }
   0x7   :  { %s10536_s14 = smov 0   ;;  %s10538_s15 = smov 0  }
   0x8 LB: > { %16126 = sst [smem:[#allocation8_spill]] %s10404_s25  ;;  %s9566_s16 = sadd.s32 4294967295, %s10432_s15   ;;  %s10432_s15 = sphi %s10538_s15, %s26_s15   ;;  %s10428_s14 = sphi %s10536_s14, %s16459_s14   ;;  %s10424_s30 = sphi %s10534_s30, %s16458_s30   ;;  %s10420_s29 = sphi %s10532_s29, %s16457_s29   ;;  %s10416_s28 = sphi %s10530_s28, %s16456_s28   ;;  %s10412_s27 = sphi %s10528_s27, %s16462_s27   ;;  %s10408_s26 = sphi %s10526_s26, %s16461_s26   ;;  %s10404_s25 = sphi %s10524_s25, %s16460_s25  }
   0x9   : > { %16127 = sst [smem:[#allocation9_spill]] %s10424_s30  ;;  %s9567_s17 = sadd.s32 4294967294, %s10432_s15  }
   0xa   : > { %16128 = sst [smem:[#allocation10_spill]] %s10428_s14  ;;  %s35_s18 = sadd.s32 1, %s10424_s30 }
   0xb   : > { %p36_p0 = scmp.ge.s32.totalorder %s35_s18, 2  ;;  %s38_s19 = sadd.s32 1, %s10428_s14 }
   0xc   : > { %p335_p1 = scmp.ne.s32.totalorder %s10412_s27, %s10408_s26  ;;  %p336_p2 = scmp.eq.s32.totalorder %s9566_s16, 3 }
   0xd   : > { %s16464_s18 = smov (%p36_p0, %s35_s18), 0  ;;  %s16466_s19 = smov (!%p36_p0, %s38_s19), %s10428_s14 }
   0xe   : > { %16129 = sst [smem:[#allocation11_spill]] %s16464_s18  ;;  %s321_s20 = ssub.s32 %s10424_s30, %s16464_s18 }
   0xf   : > { %p10575_p3 = por %p336_p2, %p335_p1  ;;  %p40_p4 = scmp.ge.s32.totalorder %s16466_s19, 2 }
  0x10   : > { %p341_p5 = scmp.ne.s32.totalorder %s10408_s26, %s10404_s25  ;;  %p342_p6 = scmp.eq.s32.totalorder %s9567_s17, 3 }
  0x11   : > { %p9570_p7 = scmp.ge.s32.totalorder %s10432_s15, 1  ;;  %s16468_s19 = smov (%p40_p4, %s16466_s19), 0 }
  0x12   : > { %16131 = sst [smem:[#allocation12_spill]] %s16468_s19  ;;  %p10584_p8 = por %p342_p6, %p341_p5 }
  0x13   : > { %p404_p9 = scmp.lt.s32.totalorder %s10432_s15, 5  ;;  %s320_s23 = ssub.s32 %s10428_s14, %s16468_s19 }
  0x14   : > { %s325_s24 = sadd.s32 1, %s10412_s27  ;;  %s322_s16 = sor.u32 %s321_s20, %s320_s23 }
  0x15   : > { %p405_p10 = pnand %p9570_p7, %p404_p9  ;;  %p323_p11 = scmp.eq.s32.totalorder %s322_s16, 0 }
  0x17   : > { %s10593_s18 = scalar_select %p323_p11, %s10412_s27, %s325_s24  }
  0x18   : > { %408 = sbr.rel (%p405_p10) target bundleno = 1744 (0x6d0), region = 72 }
  0x1d   : > { %s16133_s1 = sld [smem:[#allocation64_spill]]  ;;  %vm16037_vm0 = vcmask 1041408   ;;  %p448_p12 = scmp.lt.s32.totalorder %s10420_s29, 1  ;;  %vm16039_vm1 = vcmask 31744   ;;  %vm16038_vm4 = vcmask 24576   ;;  %vm1240_vm12 = vcmask 27648  }
  0x1e   : > { %s10083_s23 = sshll.u32 %s10416_s28, 6  ;;  %s16134_s0 = sld [smem:[#allocation63_spill]]  ;;  %vm946_vm5 = vsmask.f32 7938  ;;  %vm914_vm7 = vsmask.f32 256 }
  0x1f   : > { %s449_s17 = scalar_select %p448_p12, %s10420_s29, 1  ;;  %vm10640_vm8 = vmand %vm16038_vm4, %vm914_vm7  ;;  %v7738_v20 = vld [vmem:[#allocation4 + $0x6c] sm:$0x1]  ;;  %v7768_v23 = vld [vmem:[#allocation4 + $0x74] sm:$0x1] }
  0x20   : > { %s9573_s25 = sshll.u32 %s10416_s28, 3  ;;  %vm10650_vm9 = vmand %vm16038_vm4, %vm946_vm5  ;;  %v7739_v22 = vsel %vm10640_vm8, 4048220490, %v7738_v20  ;;  %vm978_vm10 = vsmask.f32 4368  ;;  %s10434_s24 = smov 116  }
  0x21   : > { %s10228_s20 = smul.u32 160, %s449_s17  ;;  %s9636_s30 = sadd.s32 4294967295, %s9573_s25  ;;  %7740 = vst [vmem:[#allocation4 + $0x6c] sm:$0x1] %v7739_v22  ;;  %v7769_v26 = vsel %vm10650_vm9, 4048220490, %v7768_v23  ;;  %vm10660_vm11 = vmor %vm914_vm7, %vm978_vm10 }
  0x22   : > { %v10628_v11 = vstv %s9636_s30  ;;  %7770 = vst [vmem:[#allocation4 + $0x74] sm:$0x1] %v7769_v26  ;;  %vm10670_vm13 = vmand %vm1240_vm12, %vm946_vm5  ;;  %v10683_v42 = vld [vmem:[%s16020_s2] ss:$0 sm:$0xff]  ;;  %v7711_v46 = vld [vmem:[#allocation4] sm:$0x1] }
  0x23   : > { %v484_v0 = vld [vmem:[%s16133_s1] sm:$0x3]  ;;  %v745_v12 = vadd.s32 9, %v10628_v11  ;;  %vm746_vm14 = vcmp.ge.s32.totalorder %v10628_v11, 0  ;;  %vm756_vm15 = vcmp.lt.s32.totalorder %v10628_v11, 16  ;;  %v738_v14 = vadd.s32 2, %v10628_v11 }
  0x24   : > { %v584_v1 = vsel %vm16037_vm0, %v484_v0, 0  ;;  %s452_s19 = scalar_lea.vmem %s16134_s0, %s10228_s20  ;;  %v7712_v49 = vsel %vm10640_vm8, 4048220490, %v7711_v46  ;;  %v7741_v50 = vld [vmem:[#allocation4 + $0x8] sm:$0x1]  ;;  %s16110_s16 = smov 8  }
  0x25   : > { %593 = vmatpush.bf16.msra.mxu0 %v584_v1  ;;  %10227 = vmatpush.bf16.msra.mxu3 %v584_v1  ;;  %s10605_s14 = scalar_lea.vmem %s452_s19, %s10083_s23  ;;  %vm755_vm2 = vcmp.ge.s32.totalorder %v745_v12, 0  ;;  %vm765_vm3 = vcmp.lt.s32.totalorder %v745_v12, 16  ;;  %s9637_s19 = sadd.s32 4294967294, %s9573_s25  ;;  %7713 = vst [vmem:[#allocation4] sm:$0x1] %v7712_v49 }
  0x26   : > { %v10084_v2 = vld [vmem:[%s10605_s14] sm:$0xff]  ;;  %v10094_v3 = vld [vmem:[%s10605_s14 + $0x50] sm:$0xff]  ;;  %v10085_v4 = vld [vmem:[%s10605_s14 + $0x8] sm:$0xff]  ;;  %v10698_v53 = vstv %s9637_s19  ;;  %v7742_v54 = vsel %vm10650_vm9, 4048220490, %v7741_v50  ;;  %s10435_s25 = smov 120  }
  0x27   : > { %v10095_v5 = vld [vmem:[%s10605_s14 + $0x58] sm:$0xff]  ;;  %v10086_v6 = vld [vmem:[%s10605_s14 + $0x10] sm:$0xff]  ;;  %v10088_v8 = vld [vmem:[%s10605_s14 + $0x20] sm:$0xff]  ;;  %7743 = vst [vmem:[#allocation4 + $0x8] sm:$0x1] %v7742_v54  ;;  %vm841_vm5 = vcmp.lt.s32.totalorder %v10698_v53, 16 }
  0x28   : > { %9624 = vmatmul.msk.bf16.vlgmr.msra.gmra.mxu0 %vm16039_vm1, %v10084_v2  ;;  %9634 = vmatmul.msk.bf16.vlgmr.msra.gmra.mxu3 %vm16039_vm1, %v10094_v3  ;;  %v10087_v7 = vld [vmem:[%s10605_s14 + $0x18] sm:$0xff]  ;;  %v10089_v9 = vld [vmem:[%s10605_s14 + $0x28] sm:$0xff]  ;;  %v10090_v10 = vld [vmem:[%s10605_s14 + $0x30] sm:$0xff]  ;;  %v827_v0 = vadd.s32 10, %v10698_v53  ;;  %s16081_s23 = smov 24   ;;  %s16112_s30 = smov 4  }
  0x29   : > { %v10091_v13 = vld [vmem:[%s10605_s14 + $0x38] sm:$0xff]  ;;  %vm10632_vm6 = vmand %vm755_vm2, %vm765_vm3  ;;  %v10066_v15 = vld [vmem:[%s10605_s14 + $0x50] sm:$0xf]  ;;  %vm829_vm3 = vcmp.ge.s32.totalorder %v10698_v53, 0  ;;  %s16106_s19 = smov 12   ;;  %s16042_s17 = smov 28  }
  0x2a   : > { %v10067_v16 = vld [vmem:[%s10605_s14 + $0x54] sm:$0xf]  ;;  %v7709_v18 = vsel %vm10632_vm6, %v10066_v15, -1.00492276e+30  ;;  %v8038_v40 = vld [vmem:[#allocation4 + $0x74] sm:$0x1]  ;;  %vm10687_vm2 = vmand %vm746_vm14, %vm756_vm15 }
  0x2b   : > { %v7710_v19 = vsel %vm10632_vm6, %v10067_v16, -1.00492276e+30  ;;  %v7925_v24 = vshrl.u32 %v7709_v18, 16  ;;  %v7928_v25 = vshll.u32 %v7709_v18, 16  ;;  %v8034_v38 = vld [vmem:[#allocation4 + $0x6c] sm:$0xf]  ;;  %vm10714_vm7 = vmand %vm829_vm3, %vm841_vm5 }
  0x2c   : > { %v7933_v27 = vshrl.u32 %v7710_v19, 16  ;;  %v7936_v28 = vshll.u32 %v7710_v19, 16  ;;  %v10048_v41 = vld [vmem:[%s10605_s14 + $0x8] sm:$0xf]  ;;  %v10049_v45 = vld [vmem:[%s10605_s14 + $0xc] sm:$0xf] }
  0x2d   : > { %v7927_v29 = vrot.slane %v7925_v24, 7  ;;  %v7691_v47 = vsel %vm10687_vm2, %v10048_v41, -1.00492276e+30  ;;  %v7692_v48 = vsel %vm10687_vm2, %v10049_v45, -1.00492276e+30  ;;  %v10092_v58 = vld [vmem:[%s10605_s14 + $0x40] sm:$0xff] }
  0x2e   : > { %v7935_v30 = vrot.slane %v7933_v27, 7  ;;  %v7772_v51 = vshrl.u32 %v7691_v47, 16  ;;  %v7775_v52 = vshll.u32 %v7691_v47, 16  ;;  %v7780_v55 = vshrl.u32 %v7692_v48, 16  ;;  %v10705_v57 = vld [vmem:[%s16021_s3] ss:$0 sm:$0xff] }
  0x2f   : > { %v7931_v31 = vrot.slane %v7927_v29, 4  ;;  %v7930_v32 = vor.u32 %v7928_v25, %v7927_v29  ;;  %v7783_v56 = vshll.u32 %v7692_v48, 16  ;;  %vm839_vm10 = vcmp.ge.s32.totalorder %v827_v0, 0  ;;  %v7975_v12 = vld [vmem:[#allocation4 + $0x8] sm:$0x1]  ;;  %s16104_s20 = smov 20  }
  0x30   : > { %v7938_v33 = vor.u32 %v7936_v28, %v7935_v30  ;;  %v7940_v35 = vrot.slane %v7935_v30, 4  ;;  %v7774_v59 = vrot.slane %v7772_v51, 7  ;;  %v7782_v61 = vrot.slane %v7780_v55, 7  ;;  %v10050_v22 = vld [vmem:[%s10605_s14 + $0x10] sm:$0xf]  ;;  %v10093_v55 = vld [vmem:[%s10605_s14 + $0x48] sm:$0xff] }
  0x31   : > { %v8035_v39 = vsel %vm10670_vm13, %v7930_v32, %v8034_v38  ;;  %vm851_vm14 = vcmp.lt.s32.totalorder %v827_v0, 16  ;;  %vm2939_vm5 = vcmask 1040384   ;;  %v10051_v26 = vld [vmem:[%s10605_s14 + $0x14] sm:$0xf]  ;;  %v818_v30 = vadd.s32 1, %v10698_v53 }
  0x32   : > { %v7939_v36 = vsel %vm10660_vm11, %v7931_v31, %v7938_v33  ;;  %8036 = vst [vmem:[#allocation4 + $0x6c] sm:$0xf] %v8035_v39  ;;  %v8039_v43 = vsel %vm10640_vm8, %v7940_v35, %v8038_v40  ;;  %v7778_v63 = vrot.slane %v7774_v59, 4  ;;  %v7777_v1 = vor.u32 %v7775_v52, %v7774_v59  ;;  %v7714_v27 = vld [vmem:[#allocation4 + $0xc] sm:$0x1]  ;;  %vm10739_vm4 = vmand %vm839_vm10, %vm851_vm14 }
  0x33   : > { %8037 = vst.msk [vmem:[#allocation4 + $0x70] sm:$0xf] %vm1240_vm12, %v7939_v36  ;;  %v7785_v2 = vor.u32 %v7783_v56, %v7782_v61  ;;  %v7715_v36 = vsel %vm10640_vm8, 4048220490, %v7714_v27  ;;  %v7744_v38 = vld [vmem:[#allocation4 + $0x14] sm:$0x1] }
  0x34   : > { %8040 = vst [vmem:[#allocation4 + $0x74] sm:$0x1] %v8039_v43  ;;  %vm2940_vm10 = vcmask 1044484   ;;  %v7745_v40 = vsel %vm10650_vm9, 4048220490, %v7744_v38  ;;  %vm830_vm14 = vcmp.ge.s32.totalorder %v818_v30, 0 }
  0x35   : > { %7716 = vst [vmem:[#allocation4 + $0xc] sm:$0x1] %v7715_v36 }
  0x36   : > { %7746 = vst [vmem:[#allocation4 + $0x14] sm:$0x1] %v7745_v40 }
  0x38   : > { %9625 = vmatmul.msk.bf16.gmra.mxu0 %vm16039_vm1, %v10085_v4  ;;  %9635 = vmatmul.msk.bf16.gmra.mxu3 %vm16039_vm1, %v10095_v5  ;;  %v7787_v4 = vrot.slane %v7782_v61, 4 }
  0x3a   : > { %v7976_v18 = vsel %vm10640_vm8, %v7787_v4, %v7975_v12 }
  0x3b   : > { %7977 = vst [vmem:[#allocation4 + $0x8] sm:$0x1] %v7976_v18 }
  0x48   : > { %9626 = vmatmul.msk.bf16.gmra.mxu0 %vm16039_vm1, %v10086_v6  ;;  %v7786_v6 = vsel %vm10660_vm11, %v7778_v63, %v7785_v2 }
  0x49   : > { %7974 = vst.msk [vmem:[#allocation4 + $0x4] sm:$0xf] %vm1240_vm12, %v7786_v6 }
  0x58   : > { %9627 = vmatmul.msk.bf16.gmra.mxu0 %vm16039_vm1, %v10087_v7 }
  0x68   : > { %9628 = vmatmul.msk.bf16.gmra.mxu0 %vm16039_vm1, %v10088_v8  ;;  %v7971_v8 = vld [vmem:[#allocation4] sm:$0xf] }
  0x78   : > { %9629 = vmatmul.msk.bf16.gmra.mxu0 %vm16039_vm1, %v10089_v9 }
  0x88   : > { %9630 = vmatmul.msk.bf16.gmra.mxu0 %vm16039_vm1, %v10090_v10  ;;  %v7972_v10 = vsel %vm10670_vm13, %v7777_v1, %v7971_v8 }
  0x89   : > { %7973 = vst [vmem:[#allocation4] sm:$0xf] %v7972_v10 }
  0x98   : > { %9631 = vmatmul.msk.bf16.gmra.mxu0 %vm16039_vm1, %v10091_v13  ;;  %v737_v13 = vadd.s32 1, %v10628_v11 }
  0x9a   : > { %vm747_vm15 = vcmp.ge.s32.totalorder %v737_v13, 0  ;;  %vm757_vm3 = vcmp.lt.s32.totalorder %v737_v13, 16  ;;  %v7978_v13 = vld [vmem:[#allocation4 + $0xc] sm:$0xf] }
  0x9b   : > { %vm10732_vm0 = vmand %vm747_vm15, %vm757_vm3  ;;  %vm842_vm15 = vcmp.lt.s32.totalorder %v818_v30, 16 }
  0x9c   : > { %v7693_v31 = vsel %vm10732_vm0, %v10050_v22, -1.00492276e+30  ;;  %v7694_v32 = vsel %vm10732_vm0, %v10051_v26, -1.00492276e+30  ;;  %vm10766_vm3 = vmor %vm2939_vm5, %vm2940_vm10  ;;  %vm748_vm5 = vcmp.ge.s32.totalorder %v738_v14, 0  ;;  %vm758_vm10 = vcmp.lt.s32.totalorder %v738_v14, 16 }
  0x9d   : > { %v7789_v39 = vshrl.u32 %v7693_v31, 16  ;;  %v7792_v41 = vshll.u32 %v7693_v31, 16  ;;  %v7797_v51 = vshrl.u32 %v7694_v32, 16  ;;  %v7800_v56 = vshll.u32 %v7694_v32, 16 }
  0x9f   : > { %v7791_v47 = vrot.slane %v7789_v39, 7 }
  0xa1   : > { %v7795_v2 = vrot.slane %v7791_v47, 4 }
  0xa5   : > { %v595_v60 = vpop.f32.mrf.mxu0 }
  0xa6   : > { %v659_v62 = vmul.f32 %v10683_v42, %v595_v60 }
  0xa8   : > { %v687_v3 = vadd.f32 %v10705_v57, %v659_v62  ;;  %9632 = vmatmul.msk.bf16.gmra.mxu0 %vm16039_vm1, %v10092_v58  ;;  %v7794_v62 = vor.u32 %v7792_v41, %v7791_v47 }
  0xaa   : > { %v711_v7 = vmax.f32 %v687_v3, 0.0  ;;  %v7799_v3 = vrot.slane %v7797_v51, 7  ;;  %v7979_v31 = vsel %vm10670_vm13, %v7794_v62, %v7978_v13  ;;  %v10052_v51 = vld [vmem:[%s10605_s14 + $0x18] sm:$0xf] }
  0xab   : > { %v645_v9 = vpop.f32.mrf.mxu3  ;;  %7980 = vst [vmem:[#allocation4 + $0xc] sm:$0xf] %v7979_v31 }
  0xac   : > { %v679_v15 = vmul.f32 %v10683_v42, %v645_v9  ;;  %v865_v16 = vsel %vm10714_vm7, %v711_v7, 0.0  ;;  %v7802_v10 = vor.u32 %v7800_v56, %v7799_v3  ;;  %v7804_v12 = vrot.slane %v7799_v3, 4 }
  0xad   : > { %v597_v19 = vpop.f32.mrf.mxu0  ;;  %v889_v20 = vpack.c.bf16 %v865_v16, %v865_v16 }
  0xae   : > { %v707_v23 = vadd.f32 %v10705_v57, %v679_v15  ;;  %v660_v24 = vmul.f32 %v10683_v42, %v597_v19  ;;  %v7982_v19 = vld [vmem:[#allocation4 + $0x14] sm:$0x1]  ;;  %v7803_v26 = vsel %vm10660_vm11, %v7795_v2, %v7802_v10 }
  0xaf   : > { %v2942_v28 = vrot.slane %v889_v20, 7  ;;  %v828_v20 = vadd.s32 11, %v10698_v53  ;;  %7981 = vst.msk [vmem:[#allocation4 + $0x10] sm:$0xf] %vm1240_vm12, %v7803_v26 }
  0xb0   : > { %v731_v33 = vmax.f32 %v707_v23, 0.0  ;;  %v688_v35 = vadd.f32 %v10705_v57, %v660_v24 }
  0xb1   : > { %3002 = vrot.lane.b32.xlu1 %v2942_v28, %s10434_s24  ;;  %v2943_v59 = vrot.slane %v2942_v28, 4 }
  0xb2   : > { %v794_v43 = vsel %vm10632_vm6, %v731_v33, 0.0  ;;  %v712_v45 = vmax.f32 %v688_v35, 0.0  ;;  %v885_v46 = vsel %vm10739_vm4, %v731_v33, 0.0  ;;  %v7983_v33 = vsel %vm10640_vm8, %v7804_v12, %v7982_v19 }
  0xb3   : > { %v814_v48 = vpack.c.bf16 %v794_v43, %v794_v43  ;;  %v647_v49 = vpop.f32.mrf.mxu3  ;;  %v909_v50 = vpack.c.bf16 %v885_v46, %v885_v46  ;;  %7984 = vst [vmem:[#allocation4 + $0x14] sm:$0x1] %v7983_v33  ;;  %v7717_v46 = vld [vmem:[#allocation4 + $0x18] sm:$0x1] }
  0xb4   : > { %v866_v52 = vsel %vm10714_vm7, %v712_v45, 0.0  ;;  %v680_v54 = vmul.f32 %v10683_v42, %v647_v49  ;;  %vm10780_vm7 = vmand %vm830_vm14, %vm842_vm15 }
  0xb5   : > { %v890_v58 = vpack.c.bf16 %v866_v52, %v866_v52  ;;  %v600_v60 = vpop.f32.mrf.mxu0  ;;  %v1134_v61 = vshrl.u32 %v814_v48, 16  ;;  %v2992_v4 = vrot.slane %v909_v50, 7  ;;  %v1137_v7 = vshll.u32 %v814_v48, 16  ;;  %vm10820_vm14 = vmand %vm748_vm5, %vm758_vm10 }
  0xb6   : > { %v708_v63 = vadd.f32 %v10705_v57, %v680_v54  ;;  %v661_v0 = vmul.f32 %v10683_v42, %v600_v60  ;;  %v7747_v60 = vld [vmem:[#allocation4 + $0x20] sm:$0x1] }
  0xb7   : > { %v2944_v5 = vrot.slane %v890_v58, 7  ;;  %v10770_v6 = vrot.slane %v1134_v61, 7  ;;  %v2993_v43 = vrot.slane %v2992_v4, 4  ;;  %v10053_v58 = vld [vmem:[%s10605_s14 + $0x1c] sm:$0xf] }
  0xb8   : > { %v732_v8 = vmax.f32 %v708_v63, 0.0  ;;  %v689_v9 = vadd.f32 %v10705_v57, %v661_v0  ;;  %9633 = vmatmul.msk.bf16.gmra.mxu0 %vm16039_vm1, %v10093_v55  ;;  %v7695_v0 = vsel %vm10820_vm14, %v10052_v51, -1.00492276e+30  ;;  %v7748_v12 = vsel %vm10650_vm9, 4048220490, %v7747_v60 }
  0xb9   : > { %3062 = vrot.lane.b32.xlu1 %v2992_v4, %s10434_s24  ;;  %v2945_v15 = vsel %vm10766_vm3, %v2943_v59, %v2944_v5  ;;  %v1139_v16 = vor.u32 %v1137_v7, %v10770_v6  ;;  %v2946_v50 = vrot.slane %v2944_v5, 4  ;;  %v7718_v59 = vsel %vm10640_vm8, 4048220490, %v7717_v46  ;;  %7749 = vst [vmem:[#allocation4 + $0x20] sm:$0x1] %v7748_v12 }
  0xba   : > { %v795_v22 = vsel %vm10632_vm6, %v732_v8, 0.0  ;;  %v886_v23 = vsel %vm10739_vm4, %v732_v8, 0.0  ;;  %v713_v24 = vmax.f32 %v689_v9, 0.0  ;;  %3004 = vrot.lane.b32.xlu2 %v2945_v15, %s10434_s24  ;;  %vm840_vm4 = vcmp.ge.s32.totalorder %v828_v20, 0  ;;  %7719 = vst [vmem:[#allocation4 + $0x18] sm:$0x1] %v7718_v59 }
  0xbb   : > { %v815_v27 = vpack.c.bf16 %v795_v22, %v795_v22  ;;  %v910_v28 = vpack.c.bf16 %v886_v23, %v886_v23  ;;  %1204 = vrot.lane.b32.xlu0 %v1139_v16, %s10435_s25  ;;  %v650_v30 = vpop.f32.mrf.mxu3  ;;  %vm852_vm6 = vcmp.lt.s32.totalorder %v828_v20, 16  ;;  %v1140_v2 = vrot.slane %v10770_v6, 4  ;;  %v10054_v4 = vld [vmem:[%s10605_s14 + $0x20] sm:$0xf] }
  0xbc   : > { %v867_v29 = vsel %vm10780_vm7, %v713_v24, 0.0  ;;  %v681_v32 = vmul.f32 %v10683_v42, %v650_v30  ;;  %v776_v38 = vsel %vm10687_vm2, %v713_v24, 0.0  ;;  %vm10834_vm15 = vmand %vm840_vm4, %vm852_vm6  ;;  %v819_v7 = vadd.s32 2, %v10698_v53 }
  0xbd   : > { %v1142_v35 = vshrl.u32 %v815_v27, 16  ;;  %v10802_v36 = vrot.slane %v910_v28, 7  ;;  %v602_v39 = vpop.f32.mrf.mxu0  ;;  %v891_v41 = vpack.c.bf16 %v867_v29, %v867_v29  ;;  %v10808_v47 = vpack.c.bf16 %v776_v38, %v776_v38 }
  0xbe   : > { %v662_v40 = vmul.f32 %v10683_v42, %v602_v39  ;;  %v709_v45 = vadd.f32 %v10705_v57, %v681_v32  ;;  %v1145_v54 = vshll.u32 %v815_v27, 16  ;;  %v7696_v6 = vsel %vm10820_vm14, %v10053_v58, -1.00492276e+30 }
  0xbf   : > { %v10811_v49 = vrot.slane %v891_v41, 7  ;;  %v1144_v52 = vrot.slane %v1142_v35, 7  ;;  %v2995_v55 = vsel %vm10766_vm3, %v2993_v43, %v10802_v36  ;;  %v981_v5 = vshrl.u32 %v10808_v47, 16 }
  0xc0   : > { %v690_v48 = vadd.f32 %v10705_v57, %v662_v40  ;;  %v733_v62 = vmax.f32 %v709_v45, 0.0  ;;  %v7806_v16 = vshrl.u32 %v7695_v0, 16  ;;  %v7809_v19 = vshll.u32 %v7695_v0, 16  ;;  %v7989_v51 = vld [vmem:[#allocation4 + $0x20] sm:$0x1] }
  0xc1   : > { %3008 = vrot.lane.b32.xlu1 %v10811_v49, %s10434_s24  ;;  %v1147_v9 = vor.u32 %v1145_v54, %v1144_v52  ;;  %v1149_v18 = vrot.slane %v1144_v52, 4  ;;  %v2996_v22 = vrot.slane %v10802_v36, 4  ;;  %v7814_v28 = vshrl.u32 %v7696_v6, 16  ;;  %v7985_v36 = vld [vmem:[#allocation4 + $0x18] sm:$0xf] }
  0xc2   : > { %3064 = vrot.lane.b32.xlu2 %v2995_v55, %s10434_s24  ;;  %v714_v61 = vmax.f32 %v690_v48, 0.0  ;;  %v887_v23 = vsel %vm10834_vm15, %v733_v62, 0.0  ;;  %v7808_v27 = vrot.slane %v7806_v16, 7  ;;  %v984_v14 = vshll.u32 %v10808_v47, 16  ;;  %v7750_v0 = vld [vmem:[#allocation4 + $0x2c] sm:$0x1] }
  0xc3   : > { %3006 = vrot.lane.b32.xlu0 %v2946_v50, %s10434_s24  ;;  %v652_v63 = vpop.f32.mrf.mxu3  ;;  %v1148_v31 = vsel %vm10660_vm11, %v1140_v2, %v1147_v9  ;;  %v7817_v29 = vshll.u32 %v7696_v6, 16  ;;  %v911_v32 = vpack.c.bf16 %v887_v23, %v887_v23  ;;  %v10861_v33 = vrot.slane %v981_v5, 7  ;;  %v10055_v5 = vld [vmem:[%s10605_s14 + $0x24] sm:$0xf] }
  0xc4   : > { %v682_v3 = vmul.f32 %v10683_v42, %v652_v63  ;;  %v868_v8 = vsel %vm10780_vm7, %v714_v61, 0.0  ;;  %v777_v20 = vsel %vm10687_vm2, %v714_v61, 0.0  ;;  %v7811_v35 = vor.u32 %v7809_v19, %v7808_v27  ;;  %v7720_v63 = vld [vmem:[#allocation4 + $0x24] sm:$0x1] }
  0xc5   : > { %v605_v10 = vpop.f32.mrf.mxu0  ;;  %v892_v30 = vpack.c.bf16 %v868_v8, %v868_v8  ;;  %v10857_v44 = vpack.c.bf16 %v777_v20, %v777_v20  ;;  %v7812_v39 = vrot.slane %v7808_v27, 4  ;;  %v7816_v40 = vrot.slane %v7814_v28, 7 }
  0xc6   : > { %v663_v13 = vmul.f32 %v10683_v42, %v605_v10  ;;  %v710_v15 = vadd.f32 %v10705_v57, %v682_v3  ;;  %vm831_vm2 = vcmp.ge.s32.totalorder %v819_v7, 0  ;;  %v2948_v41 = vrot.slane %v10811_v49, 4 }
  0xc7   : > { %v7986_v45 = vsel %vm10670_vm13, %v7811_v35, %v7985_v36  ;;  %vm843_vm7 = vcmp.lt.s32.totalorder %v819_v7, 16  ;;  %v10871_v46 = vrot.slane %v892_v30, 7  ;;  %v7819_v48 = vor.u32 %v7817_v29, %v7816_v40 }
  0xc8   : > { %v691_v24 = vadd.f32 %v10705_v57, %v663_v13  ;;  %v734_v26 = vmax.f32 %v710_v15, 0.0  ;;  %v7821_v50 = vrot.slane %v7816_v40, 4  ;;  %7987 = vst [vmem:[#allocation4 + $0x18] sm:$0xf] %v7986_v45  ;;  %vm10873_vm4 = vmand %vm831_vm2, %vm843_vm7  ;;  %v2997_v49 = vrot.slane %v911_v32, 7 }
  0xc9   : > { %1206 = vrot.lane.b32.xlu1 %v1148_v31, %s10435_s25  ;;  %v989_v55 = vshrl.u32 %v10857_v44, 16  ;;  %v739_v58 = vadd.s32 3, %v10628_v11  ;;  %v7820_v60 = vsel %vm10660_vm11, %v7812_v39, %v7819_v48  ;;  %v986_v2 = vor.u32 %v984_v14, %v10861_v33 }
  0xca   : > { %1208 = vrot.lane.b32.xlu2 %v1149_v18, %s10435_s25  ;;  %v10864_v38 = vmax.f32 %v691_v24, 0.0  ;;  %v888_v43 = vsel %vm10834_vm15, %v734_v26, 0.0  ;;  %v7990_v61 = vsel %vm10640_vm8, %v7821_v50, %v7989_v51  ;;  %7988 = vst.msk [vmem:[#allocation4 + $0x1c] sm:$0xf] %vm1240_vm12, %v7820_v60  ;;  %v2950_v8 = vsel %vm10766_vm3, %v2948_v41, %v10871_v46 }
  0xcb   : > { %3066 = vrot.lane.b32.xlu0 %v2996_v22, %s10434_s24  ;;  %v912_v59 = vpack.c.bf16 %v888_v43, %v888_v43  ;;  %7991 = vst [vmem:[#allocation4 + $0x20] sm:$0x1] %v7990_v61  ;;  %vm749_vm6 = vcmp.ge.s32.totalorder %v739_v58, 0  ;;  %vm759_vm5 = vcmp.lt.s32.totalorder %v739_v58, 16  ;;  %v7721_v12 = vsel %vm10640_vm8, 4048220490, %v7720_v63 }
  0xcc   : > { %16161 = vst [vmem:[#allocation13_spill] sm:$0xff] %v10864_v38  ;;  %v869_v62 = vsel %vm10873_vm4, %v10864_v38, 0.0  ;;  %v778_v7 = vsel %vm10732_vm0, %v10864_v38, 0.0  ;;  %vm10902_vm10 = vmand %vm749_vm6, %vm759_vm5  ;;  %v7751_v13 = vsel %vm10650_vm9, 4048220490, %v7750_v0  ;;  %v2998_v16 = vrot.slane %v2997_v49, 4 }
  0xcd   : > { %v607_v47 = vpop.f32.mrf.mxu0  ;;  %v893_v10 = vpack.c.bf16 %v869_v62, %v869_v62  ;;  %v10910_v15 = vrot.slane %v912_v59, 7  ;;  %v7697_v19 = vsel %vm10902_vm10, %v10054_v4, -1.00492276e+30  ;;  %v7698_v20 = vsel %vm10902_vm10, %v10055_v5, -1.00492276e+30 }
  0xce   : > { %v664_v54 = vmul.f32 %v10683_v42, %v607_v47  ;;  %7722 = vst [vmem:[#allocation4 + $0x24] sm:$0x1] %v7721_v12  ;;  %v7823_v22 = vshrl.u32 %v7697_v19, 16  ;;  %v10920_v23 = vpack.c.bf16 %v778_v7, %v778_v7  ;;  %v991_v24 = vrot.slane %v989_v55, 7  ;;  %v10056_v4 = vld [vmem:[%s10605_s14 + $0x28] sm:$0xf] }
  0xcf   : > { %7752 = vst [vmem:[#allocation4 + $0x2c] sm:$0x1] %v7751_v13  ;;  %v7826_v27 = vshll.u32 %v7697_v19, 16  ;;  %v7831_v28 = vshrl.u32 %v7698_v20, 16  ;;  %v2952_v31 = vrot.slane %v893_v10, 7  ;;  %v7834_v29 = vshll.u32 %v7698_v20, 16 }
  0xd0   : > { %v692_v3 = vadd.f32 %v10705_v57, %v664_v54  ;;  %v7825_v14 = vrot.slane %v7823_v22, 7  ;;  %v3000_v32 = vsel %vm10766_vm3, %v2998_v16, %v10910_v15  ;;  %v992_v40 = vshll.u32 %v10857_v44, 16  ;;  %v10057_v7 = vld [vmem:[%s10605_s14 + $0x2c] sm:$0xf]  ;;  %v7723_v13 = vld [vmem:[#allocation4 + $0x30] sm:$0x1] }
  0xd1   : > { %3068 = vrot.lane.b32.xlu1 %v2997_v49, %s10434_s24  ;;  %v7833_v39 = vrot.slane %v7831_v28, 7  ;;  %v996_v41 = vrot.slane %v991_v24, 4  ;;  %v2951_v25 = vrot.slane %v10871_v46, 4  ;;  %v2953_v51 = vrot.slane %v2952_v31, 4 }
  0xd2   : > { %3010 = vrot.lane.b32.xlu2 %v2950_v8, %s10434_s24  ;;  %v10900_v9 = vmax.f32 %v692_v3, 0.0  ;;  %v7828_v43 = vor.u32 %v7826_v27, %v7825_v14  ;;  %v7829_v45 = vrot.slane %v7825_v14, 4  ;;  %v998_v52 = vshrl.u32 %v10920_v23, 16 }
  0xd3   : > { %1150 = vrot.lane.b32.xlu0 %v986_v2, %s10435_s25  ;;  %v7836_v48 = vor.u32 %v7834_v29, %v7833_v39  ;;  %v7838_v50 = vrot.slane %v7833_v39, 4  ;;  %v820_v49 = vadd.s32 3, %v10698_v53  ;;  %v740_v58 = vadd.s32 4, %v10628_v11 }
  0xd4   : > { %16164 = vst [vmem:[#allocation14_spill] sm:$0xff] %v10900_v9  ;;  %v870_v18 = vsel %vm10873_vm4, %v10900_v9, 0.0  ;;  %v779_v30 = vsel %vm10732_vm0, %v10900_v9, 0.0  ;;  %v987_v59 = vrot.slane %v10861_v33, 4  ;;  %v1001_v60 = vshll.u32 %v10920_v23, 16 }
  0xd5   : > { %v610_v26 = vpop.f32.mrf.mxu0  ;;  %v894_v36 = vpack.c.bf16 %v870_v18, %v870_v18  ;;  %v10930_v47 = vpack.c.bf16 %v779_v30, %v779_v30  ;;  %v7837_v46 = vsel %vm10660_vm11, %v7829_v45, %v7836_v48  ;;  %v7992_v55 = vld [vmem:[#allocation4 + $0x24] sm:$0xf]  ;;  %v994_v63 = vor.u32 %v992_v40, %v991_v24 }
  0xd6   : > { %v665_v35 = vmul.f32 %v10683_v42, %v610_v26  ;;  %v7993_v61 = vsel %vm10670_vm13, %v7828_v43, %v7992_v55  ;;  %7995 = vst.msk [vmem:[#allocation4 + $0x28] sm:$0xf] %vm1240_vm12, %v7837_v46  ;;  %v7996_v62 = vld [vmem:[#allocation4 + $0x2c] sm:$0x1]  ;;  %vm750_vm0 = vcmp.ge.s32.totalorder %v740_v58, 0  ;;  %v10954_v5 = vrot.slane %v998_v52, 7 }
  0xd7   : > { %v10939_v54 = vrot.slane %v894_v36, 7  ;;  %v1006_v2 = vshrl.u32 %v10930_v47, 16  ;;  %7994 = vst [vmem:[#allocation4 + $0x24] sm:$0xf] %v7993_v61  ;;  %v7997_v3 = vsel %vm10640_vm8, %v7838_v50, %v7996_v62  ;;  %vm760_vm15 = vcmp.lt.s32.totalorder %v740_v58, 16 }
  0xd8   : > { %v693_v44 = vadd.f32 %v10705_v57, %v665_v35  ;;  %7998 = vst [vmem:[#allocation4 + $0x2c] sm:$0x1] %v7997_v3  ;;  %vm832_vm2 = vcmp.ge.s32.totalorder %v820_v49, 0  ;;  %vm844_vm7 = vcmp.lt.s32.totalorder %v820_v49, 16  ;;  %vm10962_vm4 = vmand %vm750_vm0, %vm760_vm15  ;;  %v7724_v18 = vsel %vm10640_vm8, 4048220490, %v7723_v13 }
  0xd9   : > { %1154 = vrot.lane.b32.xlu1 %v996_v41, %s10435_s25  ;;  %v2955_v10 = vsel %vm10766_vm3, %v2953_v51, %v10939_v54  ;;  %v7699_v19 = vsel %vm10962_vm4, %v10056_v4, -1.00492276e+30  ;;  %v7700_v20 = vsel %vm10962_vm4, %v10057_v7, -1.00492276e+30  ;;  %v995_v23 = vsel %vm10660_vm11, %v987_v59, %v994_v63  ;;  %7725 = vst [vmem:[#allocation4 + $0x30] sm:$0x1] %v7724_v18  ;;  %vm10984_vm6 = vmand %vm832_vm2, %vm844_vm7 }
  0xda   : > { %3070 = vrot.lane.b32.xlu2 %v3000_v32, %s10434_s24  ;;  %v10957_v8 = vmax.f32 %v693_v44, 0.0  ;;  %v1008_v24 = vrot.slane %v1006_v2, 7  ;;  %v7753_v26 = vld [vmem:[#allocation4 + $0x38] sm:$0x1]  ;;  %v7840_v14 = vshrl.u32 %v7699_v19, 16  ;;  %v7843_v29 = vshll.u32 %v7699_v19, 16 }
  0xdb   : > { %3012 = vrot.lane.b32.xlu0 %v2951_v25, %s10434_s24  ;;  %v7754_v30 = vsel %vm10650_vm9, 4048220490, %v7753_v26  ;;  %v7848_v32 = vshrl.u32 %v7700_v20, 16  ;;  %v1003_v45 = vor.u32 %v1001_v60, %v10954_v5  ;;  %v1009_v44 = vshll.u32 %v10930_v47, 16  ;;  %v10059_v13 = vld [vmem:[%s10605_s14 + $0x34] sm:$0xf] }
  0xdc   : > { %16167 = vst [vmem:[#allocation15_spill] sm:$0xff] %v10957_v8  ;;  %v780_v22 = vsel %vm10820_vm14, %v10957_v8, 0.0  ;;  %v7842_v36 = vrot.slane %v7840_v14, 7  ;;  %v871_v41 = vsel %vm10984_vm6, %v10957_v8, 0.0  ;;  %v1013_v25 = vrot.slane %v1008_v24, 4 }
  0xdd   : > { %v612_v0 = vpop.f32.mrf.mxu0  ;;  %7755 = vst [vmem:[#allocation4 + $0x38] sm:$0x1] %v7754_v30  ;;  %v10994_v39 = vpack.c.bf16 %v780_v22, %v780_v22  ;;  %v7850_v43 = vrot.slane %v7848_v32, 7  ;;  %v895_v49 = vpack.c.bf16 %v871_v41, %v871_v41  ;;  %v821_v58 = vadd.s32 4, %v10698_v53  ;;  %v7756_v18 = vld [vmem:[#allocation4 + $0x44] sm:$0x1] }
  0xde   : > { %v666_v33 = vmul.f32 %v10683_v42, %v612_v0  ;;  %v7845_v48 = vor.u32 %v7843_v29, %v7842_v36  ;;  %v7846_v50 = vrot.slane %v7842_v36, 4  ;;  %v3001_v59 = vrot.slane %v10910_v15, 4 }
  0xdf   : > { %v7855_v46 = vrot.slane %v7850_v43, 4  ;;  %v1015_v61 = vshrl.u32 %v10994_v39, 16  ;;  %v1004_v47 = vrot.slane %v10954_v5, 4  ;;  %v2956_v63 = vrot.slane %v10939_v54, 4 }
  0xe0   : > { %v694_v16 = vadd.f32 %v10705_v57, %v666_v33  ;;  %v7999_v55 = vld [vmem:[#allocation4 + $0x30] sm:$0xf]  ;;  %v741_v4 = vadd.s32 5, %v10628_v11  ;;  %v11022_v33 = vrot.slane %v895_v49, 7  ;;  %v1011_v54 = vor.u32 %v1009_v44, %v1008_v24 }
  0xe1   : > { %3014 = vrot.lane.b32.xlu1 %v2952_v31, %s10434_s24  ;;  %v7851_v31 = vshll.u32 %v7700_v20, 16  ;;  %v8000_v62 = vsel %vm10670_vm13, %v7845_v48, %v7999_v55  ;;  %vm845_vm5 = vcmp.lt.s32.totalorder %v821_v58, 16  ;;  %v1017_v7 = vrot.slane %v1015_v61, 7  ;;  %v7726_v20 = vld [vmem:[#allocation4 + $0x3c] sm:$0x1] }
  0xe2   : > { %3016 = vrot.lane.b32.xlu2 %v2955_v10, %s10434_s24  ;;  %v10980_v27 = vmax.f32 %v694_v16, 0.0  ;;  %8001 = vst [vmem:[#allocation4 + $0x30] sm:$0xf] %v8000_v62  ;;  %vm751_vm0 = vcmp.ge.s32.totalorder %v741_v4, 0  ;;  %v10058_v10 = vld [vmem:[%s10605_s14 + $0x30] sm:$0xf]  ;;  %v1012_v28 = vsel %vm10660_vm11, %v1004_v47, %v1011_v54 }
  0xe3   : > { %1152 = vrot.lane.b32.xlu0 %v995_v23, %s10435_s25  ;;  %v7853_v56 = vor.u32 %v7851_v31, %v7850_v43  ;;  %vm761_vm15 = vcmp.lt.s32.totalorder %v741_v4, 16  ;;  %v7727_v30 = vsel %vm10640_vm8, 4048220490, %v7726_v20  ;;  %v7757_v36 = vsel %vm10650_vm9, 4048220490, %v7756_v18 }
  0xe4   : > { %16170 = vst [vmem:[#allocation16_spill] sm:$0xff] %v10980_v27  ;;  %v781_v35 = vsel %vm10820_vm14, %v10980_v27, 0.0  ;;  %v8003_v0 = vld [vmem:[#allocation4 + $0x38] sm:$0x1]  ;;  %vm833_vm14 = vcmp.ge.s32.totalorder %v821_v58, 0  ;;  %v872_v16 = vsel %vm10984_vm6, %v10980_v27, 0.0  ;;  %vm11035_vm2 = vmand %vm751_vm0, %vm761_vm15 }
  0xe5   : > { %v615_v40 = vpop.f32.mrf.mxu0  ;;  %v11000_v51 = vpack.c.bf16 %v781_v35, %v781_v35  ;;  %v7854_v60 = vsel %vm10660_vm11, %v7846_v50, %v7853_v56  ;;  %v8004_v3 = vsel %vm10640_vm8, %v7855_v46, %v8003_v0  ;;  %v7701_v29 = vsel %vm11035_vm2, %v10058_v10, -1.00492276e+30  ;;  %7728 = vst [vmem:[#allocation4 + $0x3c] sm:$0x1] %v7727_v30  ;;  %vm11060_vm7 = vmand %vm833_vm14, %vm845_vm5 }
  0xe6   : > { %v667_v52 = vmul.f32 %v10683_v42, %v615_v40  ;;  %8002 = vst.msk [vmem:[#allocation4 + $0x34] sm:$0xf] %vm1240_vm12, %v7854_v60  ;;  %v7702_v32 = vsel %vm11035_vm2, %v10059_v13, -1.00492276e+30  ;;  %v896_v35 = vpack.c.bf16 %v872_v16, %v872_v16  ;;  %v7857_v40 = vshrl.u32 %v7701_v29, 16 }
  0xe7   : > { %v1023_v2 = vshrl.u32 %v11000_v51, 16  ;;  %8005 = vst [vmem:[#allocation4 + $0x38] sm:$0x1] %v8004_v3  ;;  %v1026_v24 = vshll.u32 %v11000_v51, 16  ;;  %v7868_v48 = vshll.u32 %v7702_v32, 16  ;;  %v1021_v50 = vrot.slane %v1017_v7, 4 }
  0xe8   : > { %v695_v15 = vadd.f32 %v10705_v57, %v667_v52  ;;  %7758 = vst [vmem:[#allocation4 + $0x44] sm:$0x1] %v7757_v36  ;;  %v1018_v52 = vshll.u32 %v10994_v39, 16  ;;  %v7859_v56 = vrot.slane %v7857_v40, 7  ;;  %v2958_v44 = vrot.slane %v11022_v33, 4 }
  0xe9   : > { %1156 = vrot.lane.b32.xlu1 %v1003_v45, %s10435_s25  ;;  %v11032_v23 = vrot.slane %v1023_v2, 7  ;;  %v7860_v45 = vshll.u32 %v7701_v29, 16  ;;  %v2959_v58 = vrot.slane %v896_v35, 7  ;;  %v822_v2 = vadd.s32 5, %v10698_v53  ;;  %v975_v35 = vld [vmem:[#allocation2 + $0x74] sm:$0x1] }
  0xea   : > { %1160 = vrot.lane.b32.xlu2 %v1013_v25, %s10435_s25  ;;  %v11030_v22 = vmax.f32 %v695_v15, 0.0  ;;  %v7865_v25 = vshrl.u32 %v7702_v32, 16  ;;  %v7863_v62 = vrot.slane %v7859_v56, 4  ;;  %v7729_v32 = vld [vmem:[#allocation4 + $0x48] sm:$0x1]  ;;  %v10436_v12 = vmov 0  }
  0xeb   : > { %3072 = vrot.lane.b32.xlu0 %v3001_v59, %s10434_s24  ;;  %v1028_v51 = vor.u32 %v1026_v24, %v11032_v23  ;;  %v7862_v60 = vor.u32 %v7860_v45, %v7859_v56  ;;  %v2960_v54 = vsel %vm10766_vm3, %v2958_v44, %v2959_v58  ;;  %vm846_vm6 = vcmp.lt.s32.totalorder %v822_v2, 16  ;;  %v10060_v40 = vld [vmem:[%s10605_s14 + $0x38] sm:$0xf]  ;;  %v10061_v45 = vld [vmem:[%s10605_s14 + $0x3c] sm:$0xf] }
  0xec   : > { %16173 = vst [vmem:[#allocation17_spill] sm:$0xff] %v11030_v22  ;;  %v782_v31 = vsel %vm10902_vm10, %v11030_v22, 0.0  ;;  %v7867_v55 = vrot.slane %v7865_v25, 7  ;;  %v873_v61 = vsel %vm11060_vm7, %v11030_v22, 0.0  ;;  %v8006_v15 = vld [vmem:[#allocation4 + $0x3c] sm:$0xf] }
  0xed   : > { %v617_v5 = vpop.f32.mrf.mxu0  ;;  %v11067_v49 = vpack.c.bf16 %v782_v31, %v782_v31  ;;  %v1029_v0 = vsel %vm10660_vm11, %v1021_v50, %v1028_v51  ;;  %v897_v6 = vpack.c.bf16 %v873_v61, %v873_v61  ;;  %v7759_v31 = vld [vmem:[#allocation4 + $0x50] sm:$0x1]  ;;  %v7730_v43 = vsel %vm10640_vm8, 4048220490, %v7729_v32 }
  0xee   : > { %v668_v19 = vmul.f32 %v10683_v42, %v617_v5  ;;  %v7870_v47 = vor.u32 %v7868_v48, %v7867_v55  ;;  %v7872_v39 = vrot.slane %v7867_v55, 4  ;;  %v1020_v5 = vor.u32 %v1018_v52, %v1017_v7  ;;  %7731 = vst [vmem:[#allocation4 + $0x48] sm:$0x1] %v7730_v43 }
  0xef   : > { %v1032_v3 = vshrl.u32 %v11067_v49, 16  ;;  %v8010_v13 = vld [vmem:[#allocation4 + $0x44] sm:$0x1]  ;;  %v11094_v7 = vrot.slane %v897_v6, 7  ;;  %v7760_v48 = vsel %vm10650_vm9, 4048220490, %v7759_v31 }
  0xf0   : > { %v696_v14 = vadd.f32 %v10705_v57, %v668_v19  ;;  %v7871_v4 = vsel %vm10660_vm11, %v7863_v62, %v7870_v47  ;;  %v8011_v16 = vsel %vm10640_vm8, %v7872_v39, %v8010_v13  ;;  %v1030_v19 = vrot.slane %v11032_v23, 4  ;;  %7761 = vst [vmem:[#allocation4 + $0x50] sm:$0x1] %v7760_v48  ;;  %v10062_v62 = vld [vmem:[%s10605_s14 + $0x40] sm:$0xf] }
  0xf1   : > { %3020 = vrot.lane.b32.xlu1 %v11022_v33, %s10434_s24  ;;  %v8007_v33 = vsel %vm10670_vm13, %v7862_v60, %v8006_v15  ;;  %8009 = vst.msk [vmem:[#allocation4 + $0x40] sm:$0xf] %vm1240_vm12, %v7871_v4  ;;  %v11096_v18 = vrot.slane %v1032_v3, 7  ;;  %v742_v23 = vadd.s32 6, %v10628_v11  ;;  %v2961_v51 = vrot.slane %v2959_v58, 4 }
  0xf2   : > { %1158 = vrot.lane.b32.xlu2 %v1012_v28, %s10435_s25  ;;  %v11056_v41 = vmax.f32 %v696_v14, 0.0  ;;  %8008 = vst [vmem:[#allocation4 + $0x3c] sm:$0xf] %v8007_v33  ;;  %v976_v44 = vsel %vm10650_vm9, 0, %v975_v35  ;;  %v2963_v3 = vrot.slane %v11094_v7, 4 }
  0xf3   : > { %3018 = vrot.lane.b32.xlu0 %v2956_v63, %s10434_s24  ;;  %8012 = vst [vmem:[#allocation4 + $0x44] sm:$0x1] %v8011_v16  ;;  %vm752_vm14 = vcmp.ge.s32.totalorder %v742_v23, 0  ;;  %vm762_vm5 = vcmp.lt.s32.totalorder %v742_v23, 16  ;;  %v1038_v55 = vrot.slane %v11096_v18, 4 }
  0xf4   : > { %16176 = vst [vmem:[#allocation18_spill] sm:$0xff] %v11056_v41  ;;  %v783_v46 = vsel %vm10902_vm10, %v11056_v41, 0.0  ;;  %vm834_vm10 = vcmp.ge.s32.totalorder %v822_v2, 0  ;;  %v874_v30 = vsel %vm11060_vm7, %v11056_v41, 0.0  ;;  %vm11115_vm0 = vmand %vm752_vm14, %vm762_vm5 }
  0xf5   : > { %v620_v59 = vpop.f32.mrf.mxu0  ;;  %v803_v63 = vpack.c.bf16 %v783_v46, %v783_v46  ;;  %v898_v52 = vpack.c.bf16 %v874_v30, %v874_v30  ;;  %v7703_v58 = vsel %vm11115_vm0, %v10060_v40, -1.00492276e+30  ;;  %vm11138_vm15 = vmand %vm834_vm10, %vm846_vm6  ;;  %977 = vst [vmem:[#allocation2 + $0x74] sm:$0x1] %v976_v44  ;;  %v11194_v44 = vld [vmem:[%s16020_s2] ss:$0 sm:$0xff] }
  0xf6   : > { %v669_v10 = vmul.f32 %v10683_v42, %v620_v59  ;;  %v7704_v59 = vsel %vm11115_vm0, %v10061_v45, -1.00492276e+30  ;;  %v7874_v47 = vshrl.u32 %v7703_v58, 16  ;;  %v7877_v39 = vshll.u32 %v7703_v58, 16 }
  0xf7   : > { %v1040_v20 = vshrl.u32 %v803_v63, 16  ;;  %v1043_v14 = vshll.u32 %v803_v63, 16  ;;  %v7882_v15 = vshrl.u32 %v7704_v59, 16  ;;  %v7885_v6 = vshll.u32 %v7704_v59, 16 }
  0xf8   : > { %v697_v24 = vadd.f32 %v10705_v57, %v669_v10  ;;  %v11147_v4 = vrot.slane %v898_v52, 7  ;;  %v7876_v33 = vrot.slane %v7874_v47, 7  ;;  %v11209_v47 = vld [vmem:[%s16021_s3] ss:$0 sm:$0xff] }
  0xf9   : > { %1164 = vrot.lane.b32.xlu1 %v1029_v0, %s10435_s25  ;;  %v11104_v36 = vrot.slane %v1040_v20, 7  ;;  %v1035_v0 = vshll.u32 %v11067_v49, 16  ;;  %v7884_v10 = vrot.slane %v7882_v15, 7  ;;  %v943_v20 = vld [vmem:[#allocation2 + $0x6c] sm:$0x1] }
  0xfa   : > { %3022 = vrot.lane.b32.xlu2 %v2960_v54, %s10434_s24  ;;  %v11113_v50 = vmax.f32 %v697_v24, 0.0  ;;  %v944_v40 = vsel %vm10640_vm8, 0, %v943_v20  ;;  %v7732_v15 = vld [vmem:[#allocation4 + $0x54] sm:$0x1] }
  0xfb   : > { %1162 = vrot.lane.b32.xlu0 %v1020_v5, %s10435_s25  ;;  %v1045_v60 = vor.u32 %v1043_v14, %v11104_v36  ;;  %v7887_v24 = vor.u32 %v7885_v6, %v7884_v10  ;;  %v7889_v30 = vrot.slane %v7884_v10, 4  ;;  %v2965_v14 = vsel %vm10766_vm3, %v2963_v3, %v11147_v4  ;;  %945 = vst [vmem:[#allocation2 + $0x6c] sm:$0x1] %v944_v40  ;;  %v7762_v6 = vld [vmem:[#allocation4 + $0x5c] sm:$0x1] }
  0xfc   : > { %16179 = vst [vmem:[#allocation19_spill] sm:$0xff] %v11113_v50  ;;  %v784_v61 = vsel %vm10962_vm4, %v11113_v50, 0.0  ;;  %v875_v5 = vsel %vm11138_vm15, %v11113_v50, 0.0  ;;  %v1037_v23 = vor.u32 %v1035_v0, %v11096_v18  ;;  %v8017_v18 = vld [vmem:[#allocation4 + $0x50] sm:$0x1]  ;;  %v2966_v3 = vrot.slane %v11147_v4, 4 }
  0xfd   : > { %v622_v28 = vpop.f32.mrf.mxu0  ;;  %v11149_v54 = vpack.c.bf16 %v784_v61, %v784_v61  ;;  %v1046_v13 = vsel %vm10660_vm11, %v1038_v55, %v1045_v60  ;;  %v899_v32 = vpack.c.bf16 %v875_v5, %v875_v5  ;;  %v8018_v43 = vsel %vm10640_vm8, %v7889_v30, %v8017_v18  ;;  %v10063_v0 = vld [vmem:[%s10605_s14 + $0x44] sm:$0xf] }
  0xfe   : > { %v670_v29 = vmul.f32 %v10683_v42, %v622_v28  ;;  %v8013_v28 = vld [vmem:[#allocation4 + $0x48] sm:$0xf]  ;;  %8019 = vst [vmem:[#allocation4 + $0x50] sm:$0x1] %v8018_v43  ;;  %v743_v60 = vadd.s32 7, %v10628_v11 }
  0xff   : > { %v1049_v31 = vshrl.u32 %v11149_v54, 16  ;;  %v7763_v20 = vsel %vm10650_vm9, 4048220490, %v7762_v6 }
 0x100   : > { %v698_v25 = vadd.f32 %v10705_v57, %v670_v29  ;;  %v823_v29 = vadd.s32 6, %v10698_v53  ;;  %7764 = vst [vmem:[#allocation4 + $0x5c] sm:$0x1] %v7763_v20  ;;  %v951_v20 = vld [vmem:[#allocation2 + $0x14] sm:$0x1] }
 0x101   : > { %3026 = vrot.lane.b32.xlu1 %v11094_v7, %s10434_s24  ;;  %v7880_v7 = vrot.slane %v7876_v33, 4  ;;  %v1051_v58 = vrot.slane %v1049_v31, 7 }
 0x102   : > { %1166 = vrot.lane.b32.xlu2 %v1030_v19, %s10435_s25  ;;  %v11124_v46 = vmax.f32 %v698_v25, 0.0  ;;  %v7879_v19 = vor.u32 %v7877_v39, %v7876_v33  ;;  %vm835_vm14 = vcmp.ge.s32.totalorder %v823_v29, 0  ;;  %vm847_vm5 = vcmp.lt.s32.totalorder %v823_v29, 16 }
 0x103   : > { %3024 = vrot.lane.b32.xlu0 %v2961_v51, %s10434_s24  ;;  %v7888_v35 = vsel %vm10660_vm11, %v7880_v7, %v7887_v24  ;;  %v1047_v51 = vrot.slane %v11104_v36, 4 }
 0x104   : > { %16182 = vst [vmem:[#allocation20_spill] sm:$0xff] %v11124_v46  ;;  %v785_v63 = vsel %vm10962_vm4, %v11124_v46, 0.0  ;;  %vm16185_vm4 = vcmask 24576   ;;  %v876_v48 = vsel %vm11138_vm15, %v11124_v46, 0.0  ;;  %vm11217_vm15 = vmand %vm835_vm14, %vm847_vm5  ;;  %vm2902_vm5 = vcmask 25601  }
 0x105   : > { %v625_v2 = vpop.f32.mrf.mxu0  ;;  %2890 = vst.msk [vmem:[#allocation3] sm:$0x1] %vm16185_vm4, %v10436_v12  ;;  %v11156_v49 = vpack.c.bf16 %v785_v63, %v785_v63  ;;  %vm16186_vm7 = vmmov %vm16185_vm4  ;;  %v900_v63 = vpack.c.bf16 %v876_v48, %v876_v48 }
 0x106   : > { %v671_v16 = vmul.f32 %v10683_v42, %v625_v2  ;;  %2891 = vst.msk [vmem:[#allocation3 + $0xc] sm:$0x1] %vm16186_vm7, %v10436_v12  ;;  %vm16187_vm10 = vmmov %vm16185_vm4  ;;  %v8014_v42 = vsel %vm10670_vm13, %v7879_v19, %v8013_v28  ;;  %v1052_v2 = vshll.u32 %v11149_v54, 16  ;;  %vm753_vm7 = vcmp.ge.s32.totalorder %v743_v60, 0 }
 0x107   : > { %2892 = vst.msk [vmem:[#allocation3 + $0x18] sm:$0x1] %vm16187_vm10, %v10436_v12  ;;  %vm16188_vm6 = vmmov %vm16185_vm4  ;;  %v1057_v25 = vshrl.u32 %v11156_v49, 16  ;;  %v1060_v61 = vshll.u32 %v11156_v49, 16  ;;  %vm763_vm10 = vcmp.lt.s32.totalorder %v743_v60, 16  ;;  %v1055_v54 = vrot.slane %v1051_v58, 4 }
 0x108   : > { %2893 = vst.msk [vmem:[#allocation3 + $0x24] sm:$0x1] %vm16188_vm6, %v10436_v12  ;;  %v699_v45 = vadd.f32 %v10705_v57, %v671_v16  ;;  %v2967_v57 = vrot.slane %v899_v32, 7  ;;  %vm16192_vm6 = vmmov %vm16185_vm4  ;;  %v7733_v49 = vsel %vm10640_vm8, 4048220490, %v7732_v15  ;;  %v11247_v28 = vrot.slane %v900_v63, 7 }
 0x109   : > { %1170 = vrot.lane.b32.xlu1 %v1046_v13, %s10435_s25  ;;  %8015 = vst [vmem:[#allocation4 + $0x48] sm:$0xf] %v8014_v42  ;;  %v11201_v36 = vrot.slane %v1057_v25, 7  ;;  %vm11230_vm14 = vmand %vm753_vm7, %vm763_vm10  ;;  %vm16041_vm7 = vcmask 27649  }
 0x10a   : > { %3028 = vrot.lane.b32.xlu2 %v2965_v14, %s10434_s24  ;;  %8016 = vst.msk [vmem:[#allocation4 + $0x4c] sm:$0xf] %vm1240_vm12, %v7888_v35  ;;  %v11199_v59 = vmax.f32 %v699_v45, 0.0  ;;  %v7705_v16 = vsel %vm11230_vm14, %v10062_v62, -1.00492276e+30  ;;  %v2968_v7 = vrot.slane %v2967_v57, 4  ;;  %v1054_v45 = vor.u32 %v1052_v2, %v1051_v58 }
 0x10b   : > { %1168 = vrot.lane.b32.xlu0 %v1037_v23, %s10435_s25  ;;  %2894 = vst.msk [vmem:[#allocation3 + $0x30] sm:$0x1] %vm16185_vm4, %v10436_v12  ;;  %v1062_v13 = vor.u32 %v1060_v61, %v11201_v36  ;;  %v7706_v19 = vsel %vm11230_vm14, %v10063_v0, -1.00492276e+30  ;;  %v7891_v42 = vshrl.u32 %v7705_v16, 16  ;;  %v7894_v29 = vshll.u32 %v7705_v16, 16 }
 0x10c   : > { %16189 = vst [vmem:[#allocation21_spill] sm:$0xff] %v11199_v59  ;;  %v786_v5 = vsel %vm11035_vm2, %v11199_v59, 0.0  ;;  %v877_v23 = vsel %vm11217_vm15, %v11199_v59, 0.0  ;;  %v7899_v35 = vshrl.u32 %v7706_v19, 16  ;;  %v7902_v26 = vshll.u32 %v7706_v19, 16 }
 0x10d   : > { %v627_v52 = vpop.f32.mrf.mxu0  ;;  %2895 = vst.msk [vmem:[#allocation3 + $0x3c] sm:$0x1] %vm16192_vm6, %v10436_v12  ;;  %v11253_v32 = vpack.c.bf16 %v786_v5, %v786_v5  ;;  %v1063_v40 = vsel %vm10660_vm11, %v1055_v54, %v1062_v13  ;;  %v7893_v25 = vrot.slane %v7891_v42, 7  ;;  %v2970_v43 = vsel %vm10766_vm3, %v2968_v7, %v11247_v28  ;;  %v8024_v54 = vld [vmem:[#allocation4 + $0x5c] sm:$0x1] }
 0x10e   : > { %v672_v55 = vmul.f32 %v11194_v44, %v627_v52  ;;  %7734 = vst [vmem:[#allocation4 + $0x54] sm:$0x1] %v7733_v49  ;;  %v7901_v48 = vrot.slane %v7899_v35, 7  ;;  %v1064_v42 = vrot.slane %v11201_v36, 4  ;;  %v916_v35 = vld [vmem:[#allocation2] sm:$0x1] }
 0x10f   : > { %v7897_v58 = vrot.slane %v7893_v25, 4  ;;  %2903 = vst.msk [vmem:[#allocation3 + $0x8] sm:$0x2] %vm2902_vm5, %v10436_v12  ;;  %v1066_v61 = vshrl.u32 %v11253_v32, 16 }
 0x110   : > { %v700_v39 = vadd.f32 %v11209_v47, %v672_v55  ;;  %v7896_v55 = vor.u32 %v7894_v29, %v7893_v25  ;;  %v7904_v60 = vor.u32 %v7902_v26, %v7901_v48  ;;  %v7906_v62 = vrot.slane %v7901_v48, 4  ;;  %v1310_v26 = vld [vmem:[#allocation2 + $0x74] sm:$0x1]  ;;  %2904 = vst.msk [vmem:[#allocation3 + $0x14] sm:$0x2] %vm2902_vm5, %v10436_v12 }
 0x111   : > { %3032 = vrot.lane.b32.xlu1 %v2967_v57, %s10434_s24  ;;  %v901_v57 = vpack.c.bf16 %v877_v23, %v877_v23  ;;  %v1068_v13 = vrot.slane %v1066_v61, 7  ;;  %v952_v23 = vsel %vm10650_vm9, 0, %v951_v20  ;;  %v2971_v29 = vrot.slane %v11247_v28, 4  ;;  %v948_v61 = vld [vmem:[#allocation2 + $0x8] sm:$0x1] }
 0x112   : > { %1172 = vrot.lane.b32.xlu2 %v1047_v51, %s10435_s25  ;;  %v11228_v4 = vmax.f32 %v700_v39, 0.0  ;;  %v824_v51 = vadd.s32 7, %v10698_v53  ;;  %v7905_v6 = vsel %vm10660_vm11, %v7897_v58, %v7904_v60  ;;  %v8025_v19 = vsel %vm10640_vm8, %v7906_v62, %v8024_v54  ;;  %953 = vst [vmem:[#allocation2 + $0x14] sm:$0x1] %v952_v23 }
 0x113   : > { %3030 = vrot.lane.b32.xlu0 %v2966_v3, %s10434_s24  ;;  %v2972_v33 = vrot.slane %v901_v57, 7  ;;  %8023 = vst.msk [vmem:[#allocation4 + $0x58] sm:$0xf] %vm1240_vm12, %v7905_v6  ;;  %v1072_v48 = vrot.slane %v1068_v13, 4  ;;  %v825_v58 = vadd.s32 8, %v10698_v53 }
 0x114   : > { %16193 = vst [vmem:[#allocation22_spill] sm:$0xff] %v11228_v4  ;;  %v3005_v24 = vpop.permute.xlu2 %3004  ;;  %v787_v30 = vsel %vm11035_vm2, %v11228_v4, 0.0  ;;  %vm16196_vm2 = vmmov %vm16185_vm4  ;;  %v878_v39 = vsel %vm11217_vm15, %v11228_v4, 0.0 }
 0x115   : > { %3112 = vst.msk [vmem:[#allocation3 + $0x4] sm:$0xf] %vm1240_vm12, %v3005_v24  ;;  %v630_v14 = vpop.f32.mrf.mxu0  ;;  %v11256_v18 = vpack.c.bf16 %v787_v30, %v787_v30  ;;  %vm16197_vm4 = vmmov %vm16196_vm2  ;;  %v8020_v0 = vld [vmem:[#allocation4 + $0x54] sm:$0xf]  ;;  %v902_v16 = vpack.c.bf16 %v878_v39, %v878_v39 }
 0x116   : > { %v673_v31 = vmul.f32 %v11194_v44, %v630_v14  ;;  %2896 = vst.msk [vmem:[#allocation3 + $0x48] sm:$0x1] %vm16196_vm2, %v10436_v12  ;;  %vm16198_vm10 = vmmov %vm16196_vm2  ;;  %v8021_v3 = vsel %vm10670_vm13, %v7896_v55, %v8020_v0 }
 0x117   : > { %2897 = vst.msk [vmem:[#allocation3 + $0x54] sm:$0x1] %vm16197_vm4, %v10436_v12  ;;  %v1074_v63 = vshrl.u32 %v11256_v18, 16  ;;  %vm16199_vm6 = vmmov %vm16196_vm2  ;;  %vm836_vm2 = vcmp.ge.s32.totalorder %v824_v51, 0  ;;  %vm848_vm4 = vcmp.lt.s32.totalorder %v824_v51, 16  ;;  %v1077_v30 = vshll.u32 %v11256_v18, 16 }
 0x118   : > { %v701_v52 = vadd.f32 %v11209_v47, %v673_v31  ;;  %2898 = vst.msk [vmem:[#allocation3 + $0x60] sm:$0x1] %vm16198_vm10, %v10436_v12  ;;  %vm16200_vm10 = vmmov %vm16199_vm6  ;;  %v1069_v18 = vshll.u32 %v11253_v32, 16  ;;  %v2973_v32 = vrot.slane %v2972_v33, 4 }
 0x119   : > { %1176 = vrot.lane.b32.xlu1 %v1063_v40, %s10435_s25  ;;  %2899 = vst.msk [vmem:[#allocation3 + $0x6c] sm:$0x1] %vm16199_vm6, %v10436_v12  ;;  %v11298_v24 = vrot.slane %v1074_v63, 7  ;;  %vm11304_vm15 = vmand %vm836_vm2, %vm848_vm4  ;;  %v917_v40 = vsel %vm10640_vm8, 0, %v916_v35  ;;  %v949_v63 = vsel %vm10650_vm9, 0, %v948_v61  ;;  %vm849_vm2 = vcmp.lt.s32.totalorder %v825_v58, 16 }
 0x11a   : > { %3034 = vrot.lane.b32.xlu2 %v2970_v43, %s10434_s24  ;;  %2900 = vst.msk [vmem:[#allocation3 + $0x78] sm:$0x1] %vm16200_vm10, %v10436_v12  ;;  %v11290_v2 = vmax.f32 %v701_v52, 0.0  ;;  %v11329_v52 = vrot.slane %v902_v16, 7  ;;  %v10065_v35 = vld [vmem:[%s10605_s14 + $0x4c] sm:$0xf] }
 0x11b   : > { %1174 = vrot.lane.b32.xlu0 %v1054_v45, %s10435_s25  ;;  %8022 = vst [vmem:[#allocation4 + $0x54] sm:$0xf] %v8021_v3  ;;  %v1079_v51 = vor.u32 %v1077_v30, %v11298_v24  ;;  %v1081_v54 = vrot.slane %v11298_v24, 4 }
 0x11c   : > { %v3065_v15 = vpop.permute.xlu2 %3064  ;;  %16201 = vst [vmem:[#allocation23_spill] sm:$0xff] %v11290_v2  ;;  %v788_v7 = vsel %vm11115_vm0, %v11290_v2, 0.0  ;;  %v879_v28 = vsel %vm11304_vm15, %v11290_v2, 0.0  ;;  %v11325_v25 = vld [vmem:[#allocation3 + $0x4] sm:$0xf] }
 0x11d   : > { %3142 = vst.msk [vmem:[#allocation3 + $0x7c] sm:$0xf] %vm1240_vm12, %v3065_v15  ;;  %v632_v5 = vpop.f32.mrf.mxu0  ;;  %v11316_v45 = vpack.c.bf16 %v788_v7, %v788_v7  ;;  %v903_v39 = vpack.c.bf16 %v879_v28, %v879_v28  ;;  %v3675_v0 = vrot.slane %v11325_v25, 6  ;;  %v1080_v3 = vsel %vm10660_vm11, %v1072_v48, %v1079_v51  ;;  %v1306_v7 = vld [vmem:[#allocation2 + $0x6c] sm:$0xf] }
 0x11e   : > { %v674_v49 = vmul.f32 %v11194_v44, %v632_v5  ;;  %8026 = vst [vmem:[#allocation4 + $0x5c] sm:$0x1] %v8025_v19  ;;  %v1071_v5 = vor.u32 %v1069_v18, %v1068_v13 }
 0x11f   : > { %918 = vst [vmem:[#allocation2] sm:$0x1] %v917_v40  ;;  %v1083_v6 = vshrl.u32 %v11316_v45, 16  ;;  %v11359_v19 = vrot.slane %v903_v39, 7  ;;  %v1086_v20 = vshll.u32 %v11316_v45, 16  ;;  %v11364_v13 = vrot.slane %v3675_v0, 4 }
 0x120   : > { %v702_v31 = vadd.f32 %v11209_v47, %v674_v49  ;;  %2901 = vst.msk [vmem:[#allocation3 + $0x84] sm:$0x1] %vm16199_vm6, %v10436_v12  ;;  %v2976_v49 = vrot.slane %v11329_v52, 4  ;;  %v7765_v40 = vld [vmem:[#allocation4 + $0x68] sm:$0x1] }
 0x121   : > { %3038 = vrot.lane.b32.xlu1 %v2972_v33, %s10434_s24  ;;  %v2975_v33 = vsel %vm10766_vm3, %v2973_v32, %v11329_v52  ;;  %950 = vst [vmem:[#allocation2 + $0x8] sm:$0x1] %v949_v63  ;;  %v11373_v30 = vrot.slane %v1083_v6, 7  ;;  %v7766_v63 = vsel %vm10650_vm9, 4048220490, %v7765_v40 }
 0x122   : > { %1178 = vrot.lane.b32.xlu2 %v1064_v42, %s10435_s25  ;;  %v11320_v36 = vmax.f32 %v702_v31, 0.0  ;;  %2905 = vst.msk [vmem:[#allocation3 + $0x20] sm:$0x2] %vm2902_vm5, %v10436_v12  ;;  %v744_v42 = vadd.s32 8, %v10628_v11  ;;  %v10064_v31 = vld [vmem:[%s10605_s14 + $0x48] sm:$0xf] }
 0x123   : > { %v3003_v43 = vpop.permute.xlu1 %3002  ;;  %3036 = vrot.lane.b32.xlu0 %v2971_v29, %s10434_s24  ;;  %2906 = vst.msk [vmem:[#allocation3 + $0x2c] sm:$0x2] %vm2902_vm5, %v10436_v12  ;;  %v1088_v10 = vor.u32 %v1086_v20, %v11373_v30  ;;  %s16102_s14 = smov 16  }
 0x124   : > { %16204 = vst [vmem:[#allocation24_spill] sm:$0xff] %v11320_v36  ;;  %v1209_v57 = vpop.permute.xlu2 %1208  ;;  %v789_v55 = vsel %vm11115_vm0, %v11320_v36, 0.0  ;;  %vm837_vm0 = vcmp.ge.s32.totalorder %v825_v58, 0  ;;  %v880_v24 = vsel %vm11304_vm15, %v11320_v36, 0.0  ;;  %vm754_vm4 = vcmp.ge.s32.totalorder %v744_v42, 0 }
 0x125   : > { %3111 = vst.msk [vmem:[#allocation3] sm:$0xe] %vm16041_vm7, %v3003_v43  ;;  %v1311_v60 = vsel %vm10640_vm8, %v1209_v57, %v1310_v26  ;;  %v635_v62 = vpop.f32.mrf.mxu0  ;;  %v11345_v15 = vpack.c.bf16 %v789_v55, %v789_v55  ;;  %v7735_v26 = vld [vmem:[#allocation4 + $0x60] sm:$0x1]  ;;  %vm764_vm10 = vcmp.lt.s32.totalorder %v744_v42, 16  ;;  %vm11405_vm6 = vmand %vm837_vm0, %vm849_vm2  ;;  %v3181_v58 = vshll.u32 %v11325_v25, 16 }
 0x126   : > { %1312 = vst [vmem:[#allocation2 + $0x74] sm:$0x1] %v1311_v60  ;;  %v675_v56 = vmul.f32 %v11194_v44, %v635_v62  ;;  %vm11385_vm15 = vmand %vm754_vm4, %vm764_vm10  ;;  %v7736_v48 = vsel %vm10640_vm8, 4048220490, %v7735_v26  ;;  %v904_v62 = vpack.c.bf16 %v880_v24, %v880_v24  ;;  %vm3671_vm0 = vcmask 1045508  }
 0x127   : > { %v1091_v23 = vshrl.u32 %v11345_v15, 16  ;;  %v1094_v11 = vshll.u32 %v11345_v15, 16  ;;  %v7707_v57 = vsel %vm11385_vm15, %v10064_v31, -1.00492276e+30  ;;  %v7708_v55 = vsel %vm11385_vm15, %v10065_v35, -1.00492276e+30 }
 0x128   : > { %v703_v16 = vadd.f32 %v11209_v47, %v675_v56  ;;  %7737 = vst [vmem:[#allocation4 + $0x60] sm:$0x1] %v7736_v48  ;;  %v7908_v56 = vshrl.u32 %v7707_v57, 16  ;;  %v7911_v6 = vshll.u32 %v7707_v57, 16  ;;  %v1089_v31 = vrot.slane %v11373_v30, 4 }
 0x129   : > { %1182 = vrot.lane.b32.xlu1 %v1080_v3, %s10435_s25  ;;  %v11401_v60 = vrot.slane %v1091_v23, 7  ;;  %7767 = vst [vmem:[#allocation4 + $0x68] sm:$0x1] %v7766_v63  ;;  %v7916_v3 = vshrl.u32 %v7708_v55, 16  ;;  %v11436_v40 = vrot.slane %v904_v62, 7  ;;  %v11460_v30 = vrot.slane %v3181_v58, 5 }
 0x12a   : > { %3040 = vrot.lane.b32.xlu2 %v2975_v33, %s10434_s24  ;;  %v11382_v28 = vmax.f32 %v703_v16, 0.0  ;;  %v2978_v33 = vrot.slane %v11359_v19, 4  ;;  %v16040_v16 = vrot.slane %v11325_v25, 5  ;;  %v7910_v23 = vrot.slane %v7908_v56, 7  ;;  %2907 = vst.msk [vmem:[#allocation3 + $0x38] sm:$0x2] %vm2902_vm5, %v10436_v12 }
 0x12b   : > { %v3063_v29 = vpop.permute.xlu1 %3062  ;;  %1180 = vrot.lane.b32.xlu0 %v1071_v5, %s10435_s25  ;;  %v7919_v5 = vshll.u32 %v7708_v55, 16  ;;  %v7918_v42 = vrot.slane %v7916_v3, 7  ;;  %2908 = vst.msk [vmem:[#allocation3 + $0x44] sm:$0x2] %vm2902_vm5, %v10436_v12  ;;  %vm16213_vm10 = vcmask 1041408  }
 0x12c   : > { %3141 = vst.msk [vmem:[#allocation3 + $0x78] sm:$0xe] %vm16041_vm7, %v3063_v29  ;;  %v3011_v18 = vpop.permute.xlu2 %3010  ;;  %v790_v61 = vsel %vm11230_vm14, %v11382_v28, 0.0  ;;  %v881_v24 = vsel %vm11405_vm6, %v11382_v28, 0.0  ;;  %v11452_v63 = vrot.slane %v16040_v16, 4 }
 0x12d   : > { %3115 = vst.msk [vmem:[#allocation3 + $0x10] sm:$0xf] %vm1240_vm12, %v3011_v18  ;;  %v1205_v14 = vpop.permute.xlu0 %1204  ;;  %v637_v32 = vpop.f32.mrf.mxu0  ;;  %v11425_v29 = vpack.c.bf16 %v790_v61, %v790_v61  ;;  %v905_v48 = vpack.c.bf16 %v881_v24, %v881_v24  ;;  %v7923_v57 = vrot.slane %v7918_v42, 4  ;;  %v3472_v24 = vrot.slane %v3181_v58, 6  ;;  %v937_v36 = vld [vmem:[#allocation2 + $0x54] sm:$0x1] }
 0x12e   : > { %16205 = vst [vmem:[#allocation25_spill] sm:$0xff] %v11382_v28  ;;  %v1307_v51 = vsel %vm10670_vm13, %v1205_v14, %v1306_v7  ;;  %v676_v52 = vmul.f32 %v11194_v44, %v637_v32  ;;  %v7913_v14 = vor.u32 %v7911_v6, %v7910_v23  ;;  %v2981_v58 = vrot.slane %v11436_v40, 4 }
 0x12f   : > { %1308 = vst [vmem:[#allocation2 + $0x6c] sm:$0xf] %v1307_v51  ;;  %v8027_v55 = vld [vmem:[#allocation4 + $0x60] sm:$0xf]  ;;  %v1100_v56 = vshrl.u32 %v11425_v29, 16 }
 0x130   : > { %v704_v15 = vadd.f32 %v11209_v47, %v676_v52  ;;  %2909 = vst.msk [vmem:[#allocation3 + $0x50] sm:$0x2] %vm2902_vm5, %v10436_v12  ;;  %v7921_v52 = vor.u32 %v7919_v5, %v7918_v42  ;;  %v8028_v62 = vsel %vm10670_vm13, %v7913_v14, %v8027_v55  ;;  %v8031_v20 = vld [vmem:[#allocation4 + $0x68] sm:$0x1]  ;;  %v11470_v42 = vrot.slane %v905_v48, 7 }
 0x131   : > { %3044 = vrot.lane.b32.xlu1 %v11359_v19, %s10434_s24  ;;  %v1096_v19 = vor.u32 %v1094_v11, %v11401_v60  ;;  %8029 = vst [vmem:[#allocation4 + $0x60] sm:$0xf] %v8028_v62  ;;  %v8032_v3 = vsel %vm10640_vm8, %v7923_v57, %v8031_v20  ;;  %v1103_v14 = vshll.u32 %v11425_v29, 16  ;;  %v3147_v48 = vld [vmem:[#allocation3] sm:$0xf] }
 0x132   : > { %1184 = vrot.lane.b32.xlu2 %v1081_v54, %s10435_s25  ;;  %v11418_v7 = vmax.f32 %v704_v15, 0.0  ;;  %v3185_v54 = vshrl.u32 %v11325_v25, 16  ;;  %8033 = vst [vmem:[#allocation4 + $0x68] sm:$0x1] %v8032_v3  ;;  %v919_v29 = vld [vmem:[#allocation2 + $0xc] sm:$0x1] }
 0x133   : > { %3042 = vrot.lane.b32.xlu0 %v2976_v49, %s10434_s24  ;;  %v3009_v35 = vpop.permute.xlu1 %3008  ;;  %v7914_v49 = vrot.slane %v7910_v23, 4  ;;  %v1097_v15 = vsel %vm10660_vm11, %v1089_v31, %v1096_v19  ;;  %v2980_v23 = vsel %vm10766_vm3, %v2978_v33, %v11436_v40  ;;  %v826_v31 = vadd.s32 9, %v10698_v53  ;;  %v3646_v33 = vld [vmem:[#allocation3] sm:$0xc]  ;;  %2910 = vst.msk [vmem:[#allocation3 + $0x5c] sm:$0x2] %vm2902_vm5, %v10436_v12 }
 0x134   : > { %16210 = vst [vmem:[#allocation26_spill] sm:$0xff] %v11418_v7  ;;  %v3071_v26 = vpop.permute.xlu2 %3070  ;;  %v791_v18 = vsel %vm11230_vm14, %v11418_v7, 0.0  ;;  %vm16211_vm14 = vcmask 24576   ;;  %v11465_v5 = vrot.slane %v3185_v54, 4  ;;  %v3471_v19 = vrot.slane %v3185_v54, 5 }
 0x135   : > { %3114 = vst.msk [vmem:[#allocation3 + $0xc] sm:$0xe] %vm16041_vm7, %v3009_v35  ;;  %v3007_v32 = vpop.permute.xlu0 %3006  ;;  %v11441_v11 = vpack.c.bf16 %v791_v18, %v791_v18  ;;  %v640_v51 = vpop.f32.mrf.mxu0  ;;  %v7922_v45 = vsel %vm10660_vm11, %v7914_v49, %v7921_v52  ;;  %v882_v35 = vsel %vm11405_vm6, %v11418_v7, 0.0  ;;  %v2983_v18 = vrot.slane %v11470_v42, 4  ;;  %v11498_v55 = vld [vmem:[#allocation3] sm:$0xe]  ;;  %vm11504_vm6 = vmor %vm16213_vm10, %vm3671_vm0 }
 0x136   : > { %3145 = vst.msk [vmem:[#allocation3 + $0x88] sm:$0xf] %vm1240_vm12, %v3071_v26  ;;  %v677_v61 = vmul.f32 %v11194_v44, %v640_v51  ;;  %v1098_v53 = vrot.slane %v11401_v60, 4  ;;  %v11484_v54 = vrot.slane %v1100_v56, 7  ;;  %v906_v51 = vpack.c.bf16 %v882_v35, %v882_v35 }
 0x137   : > { %3113 = vst.msk [vmem:[#allocation3 + $0x8] sm:$0x1] %vm16211_vm14, %v3007_v32  ;;  %v1108_v6 = vshrl.u32 %v11441_v11, 16  ;;  %v1111_v32 = vshll.u32 %v11441_v11, 16  ;;  %vm838_vm2 = vcmp.ge.s32.totalorder %v826_v31, 0  ;;  %vm850_vm4 = vcmp.lt.s32.totalorder %v826_v31, 16 }
 0x138   : > { %8030 = vst.msk [vmem:[#allocation4 + $0x64] sm:$0xf] %vm1240_vm12, %v7922_v45  ;;  %v705_v26 = vadd.f32 %v11209_v47, %v677_v61  ;;  %v9782_v57 = vrot.slane %v3646_v33, 10  ;;  %v3188_v11 = vor.u32 %v11465_v5, %v11460_v30  ;;  %v11511_v56 = vor.u32 %v3472_v24, %v3471_v19  ;;  %vm11518_vm1 = vmand %vm838_vm2, %vm850_vm4 }
 0x139   : > { %1188 = vrot.lane.b32.xlu1 %v1097_v15, %s10435_s25  ;;  %v11489_v40 = vrot.slane %v1108_v6, 7  ;;  %2911 = vst.msk [vmem:[#allocation3 + $0x68] sm:$0x2] %vm2902_vm5, %v10436_v12  ;;  %v954_v15 = vld [vmem:[#allocation2 + $0x20] sm:$0x1]  ;;  %v1106_v45 = vrot.slane %v11484_v54, 4  ;;  %v1105_v35 = vor.u32 %v1103_v14, %v11484_v54 }
 0x13a   : > { %3046 = vrot.lane.b32.xlu2 %v2980_v23, %s10434_s24  ;;  %v11496_v52 = vmax.f32 %v705_v26, 0.0  ;;  %2912 = vst.msk [vmem:[#allocation3 + $0x74] sm:$0x2] %vm2902_vm5, %v10436_v12  ;;  %v920_v6 = vsel %vm10640_vm8, 0, %v919_v29  ;;  %v3172_v3 = vshrl.u32 %v3147_v48, 16  ;;  %v3175_v5 = vshll.u32 %v3147_v48, 16 }
 0x13b   : > { %1186 = vrot.lane.b32.xlu0 %v1088_v10, %s10435_s25  ;;  %v1207_v39 = vpop.permute.xlu1 %1206  ;;  %v1254_v23 = vld [vmem:[#allocation2 + $0x14] sm:$0x1]  ;;  %v1113_v24 = vor.u32 %v1111_v32, %v11489_v40  ;;  %v11525_v19 = vrot.slane %v906_v51, 7  ;;  %2913 = vst.msk [vmem:[#allocation3 + $0x80] sm:$0x2] %vm2902_vm5, %v10436_v12  ;;  %v955_v31 = vsel %vm10650_vm9, 0, %v954_v15  ;;  %v11539_v33 = vsel %vm11504_vm6, %v9782_v57, %v3675_v0 }
 0x13c   : > { %v3017_v49 = vpop.permute.xlu2 %3016  ;;  %1309 = vst.msk [vmem:[#allocation2 + $0x70] sm:$0xf] %vm1240_vm12, %v1207_v39  ;;  %v1242_v26 = vld [vmem:[#allocation2] sm:$0xf]  ;;  %vm1564_vm0 = vcmask 1042432   ;;  %vm1565_vm2 = vcmask 1046532   ;;  %v6189_v15 = vunpack.c.l.b16 %v11539_v33 }
 0x13d   : > { %v3067_v60 = vpop.permute.xlu0 %3066  ;;  %3118 = vst.msk [vmem:[#allocation3 + $0x1c] sm:$0xf] %vm1240_vm12, %v3017_v49  ;;  %v642_v62 = vpop.f32.mrf.mxu0  ;;  %v11545_v39 = vrot.slane %v3188_v11, 4  ;;  %v3463_v49 = vshrl.u32 %v11498_v55, 16  ;;  %v3466_v32 = vshll.u32 %v11498_v55, 16  ;;  %v3177_v51 = vrot.slane %v3175_v5, 5 }
 0x13e   : > { %16212 = vst [vmem:[#allocation27_spill] sm:$0xff] %v11496_v52  ;;  %v11509_v61 = vld [vmem:[#allocation3 + $0x8] sm:$0x3]  ;;  %v678_v14 = vmul.f32 %v11194_v44, %v642_v62  ;;  %v792_v44 = vsel %vm11385_vm15, %v11496_v52, 0.0  ;;  %vm1338_vm4 = vsmask.f32 7440  ;;  %v1114_v11 = vsel %vm10660_vm11, %v1106_v45, %v1113_v24 }
 0x13f   : > { %3143 = vst.msk [vmem:[#allocation3 + $0x80] sm:$0x1] %vm16211_vm14, %v3067_v60  ;;  %v3678_v54 = vrot.slane %v11509_v61, 6  ;;  %v1115_v60 = vrot.slane %v11489_v40, 4  ;;  %v2985_v62 = vsel %vm10766_vm3, %v2983_v18, %v11525_v19  ;;  %vm3459_vm10 = vsmask.f32 2304 }
 0x140   : > { %2914 = vst.msk [vmem:[#allocation3 + $0x8c] sm:$0x2] %vm2902_vm5, %v10436_v12  ;;  %vm1337_vm5 = vsmask.f32 3328  ;;  %v706_v45 = vadd.f32 %v11209_v47, %v678_v14  ;;  %v3465_v18 = vrot.slane %v3463_v49, 5  ;;  %v3477_v33 = vshrl.u32 %v11509_v61, 16 }
 0x141   : > { %3050 = vrot.lane.b32.xlu1 %v11470_v42, %s10434_s24  ;;  %921 = vst [vmem:[#allocation2 + $0xc] sm:$0x1] %v920_v6  ;;  %v3163_v6 = vld [vmem:[#allocation3 + $0x8] sm:$0x1]  ;;  %vm3460_vm14 = vsmask.f32 6416 }
 0x142   : > { %1190 = vrot.lane.b32.xlu2 %v1098_v53, %s10435_s25  ;;  %v883_v53 = vsel %vm11518_vm1, %v11496_v52, 0.0  ;;  %956 = vst [vmem:[#allocation2 + $0x20] sm:$0x1] %v955_v31  ;;  %v3468_v31 = vrot.slane %v3466_v32, 6  ;;  %v3479_v16 = vrot.slane %v3477_v33, 5  ;;  %v3400_v49 = vrot.slane %v3163_v6, 5 }
 0x143   : > { %3048 = vrot.lane.b32.xlu0 %v2981_v58, %s10434_s24  ;;  %v3069_v12 = vpop.permute.xlu1 %3068  ;;  %v3174_v58 = vrot.slane %v3172_v3, 4  ;;  %v1943_v3 = vld [vmem:[#allocation2 + $0x6c] sm:$0xf]  ;;  %v907_v24 = vpack.c.bf16 %v883_v53, %v883_v53  ;;  %v11575_v42 = vld [vmem:[#allocation2 + $0x70] sm:$0xf]  ;;  %v11584_v53 = vmax.f32 %v706_v45, 0.0 }
 0x144   : > { %v1161_v48 = vpop.permute.xlu2 %1160  ;;  %3144 = vst.msk [vmem:[#allocation3 + $0x84] sm:$0xe] %vm16041_vm7, %v3069_v12  ;;  %v3480_v12 = vshll.u32 %v11509_v61, 16  ;;  %v2131_v47 = vshll.u32 %v11575_v42, 16  ;;  %v2135_v61 = vshrl.u32 %v11575_v42, 16  ;;  %vm11602_vm7 = vmor %vm1564_vm0, %vm1565_vm2  ;;  %vm16229_vm2 = vcmask 27649  }
 0x145   : > { %v1255_v29 = vsel %vm10640_vm8, %v1161_v48, %v1254_v23  ;;  %v1151_v57 = vpop.permute.xlu0 %1150  ;;  %v3679_v23 = vsel %vm11504_vm6, %v11364_v13, %v3678_v54  ;;  %v11579_v48 = vpack.c.bf16 %v792_v44, %v792_v44  ;;  %v3178_v0 = vor.u32 %v3177_v51, %v3174_v58  ;;  %v1247_v54 = vld [vmem:[#allocation2 + $0x8] sm:$0x1]  ;;  %16218 = vst [vmem:[#allocation28_spill] sm:$0xff] %v11584_v53  ;;  %vm11616_vm0 = vmor %vm1337_vm5, %vm1338_vm4 }
 0x146   : > { %1256 = vst [vmem:[#allocation2 + $0x14] sm:$0x1] %v1255_v29  ;;  %v1243_v5 = vsel %vm10670_vm13, %v1151_v57, %v1242_v26  ;;  %v3191_v29 = vshll.u32 %v3163_v6, 16  ;;  %v2122_v26 = vshrl.u32 %v1943_v3, 16  ;;  %v2125_v57 = vshll.u32 %v1943_v3, 16  ;;  %vm16233_vm5 = vmmov %vm16229_vm2 }
 0x147   : > { %1244 = vst [vmem:[#allocation2] sm:$0xf] %v1243_v5  ;;  %v3482_v13 = vrot.slane %v3480_v12, 6  ;;  %v6190_v14 = vunpack.c.l.b16 %v3679_v23  ;;  %v11588_v32 = vrot.slane %v907_v24, 7  ;;  %v3469_v44 = vor.u32 %v3468_v31, %v3465_v18  ;;  %v11592_v5 = vld [vmem:[#allocation2 + $0x74] sm:$0x1]  ;;  %vm16238_vm4 = vmmov %vm16229_vm2 }
 0x148   : > { %v11590_v58 = vrot.slane %v2131_v47, 5  ;;  %v2127_v23 = vrot.slane %v2125_v57, 5  ;;  %v2137_v45 = vrot.slane %v2135_v61, 4  ;;  %v884_v24 = vsel %vm11518_vm1, %v11584_v53, 0.0  ;;  %v957_v12 = vld [vmem:[#allocation2 + $0x2c] sm:$0x1] }
 0x149   : > { %1194 = vrot.lane.b32.xlu1 %v1114_v11, %s10435_s25  ;;  %v3193_v11 = vrot.slane %v3191_v29, 5  ;;  %v16219_v18 = vmov 0  ;;  %v3179_v31 = vrot.slane %v3178_v0, 4  ;;  %v3483_v33 = vor.u32 %v3482_v13, %v3479_v16  ;;  %v922_v47 = vld [vmem:[#allocation2 + $0x18] sm:$0x1] }
 0x14a   : > { %3052 = vrot.lane.b32.xlu2 %v2985_v62, %s10434_s24  ;;  %v2124_v62 = vrot.slane %v2122_v26, 4  ;;  %v16220_v18 = vsel %vm11602_vm7, 4294967295, %v16219_v18  ;;  %v6205_v29 = vpack.c.b16 %v6190_v14, %v6189_v15  ;;  %v793_v26 = vsel %vm11385_vm15, %v11584_v53, 0.0  ;;  %vm11630_vm15 = vmor %vm3459_vm10, %vm3460_vm14 }
 0x14b   : > { %1192 = vrot.lane.b32.xlu0 %v1105_v35, %s10435_s25  ;;  %v1155_v51 = vpop.permute.xlu1 %1154  ;;  %16221 = vst [vmem:[#allocation29_spill] sm:$0xff] %v16220_v18  ;;  %v3401_v20 = vsel %vm11602_vm7, %v11452_v63, %v3400_v49  ;;  %v3475_v57 = vrot.slane %v11511_v56, 4  ;;  %vm16222_vm1 = vcmask 24576   ;;  %v3470_v0 = vrot.slane %v3469_v44, 4  ;;  %vm16241_vm14 = vmmov %vm16229_vm2 }
 0x14c   : > { %v1159_v3 = vpop.permute.xlu2 %1158  ;;  %v1248_v6 = vsel %vm10640_vm8, %v1155_v51, %v1247_v54  ;;  %v2138_v15 = vor.u32 %v2137_v45, %v11590_v58  ;;  %v958_v43 = vsel %vm10650_vm9, 0, %v957_v12  ;;  %v923_v63 = vsel %vm10640_vm8, 0, %v922_v47  ;;  %v2152_v47 = vld [vmem:[#allocation2 + $0x6c] sm:$0xe]  ;;  %vm16239_vm10 = vmmov %vm16222_vm1 }
 0x14d   : > { %1253 = vst.msk [vmem:[#allocation2 + $0x10] sm:$0xf] %vm1240_vm12, %v1159_v3  ;;  %v3013_v35 = vpop.permute.xlu0 %3012  ;;  %v3194_v13 = vsel %vm11616_vm0, %v11545_v39, %v3193_v11  ;;  %v1117_v14 = vshrl.u32 %v11579_v48, 16  ;;  %v2128_v49 = vor.u32 %v2127_v23, %v2124_v62  ;;  %v908_v61 = vpack.c.bf16 %v884_v24, %v884_v24 }
 0x14e   : > { %1249 = vst [vmem:[#allocation2 + $0x8] sm:$0x1] %v1248_v6  ;;  %v11635_v44 = vpack.c.bf16 %v793_v26, %v793_v26  ;;  %v2986_v51 = vrot.slane %v11525_v19, 4  ;;  %v3484_v3 = vsel %vm11630_vm15, %v3475_v57, %v3483_v33  ;;  %v2141_v39 = vshll.u32 %v11592_v5, 16 }
 0x14f   : > { %3116 = vst.msk [vmem:[#allocation3 + $0x14] sm:$0x1] %vm16222_vm1, %v3013_v35  ;;  %v2988_v11 = vrot.slane %v11588_v32, 4  ;;  %v16227_v62 = vrot.slane %v11325_v25, 5  ;;  %v16228_v23 = vrot.slane %v11498_v55, 9  ;;  %v6110_v45 = vunpack.c.l.b16 %v3401_v20 }
 0x150   : > { %959 = vst [vmem:[#allocation2 + $0x2c] sm:$0x1] %v958_v43  ;;  %v3184_v6 = vsel %vm11616_vm0, %v3179_v31, %v11460_v30  ;;  %v11656_v35 = vunpack.c.l.b16 %v3194_v13  ;;  %v3474_v40 = vsel %vm11630_vm15, %v3470_v0, %v11511_v56  ;;  %v1120_v25 = vshll.u32 %v11579_v48, 16  ;;  %v11675_v43 = vld [vmem:[#allocation3 + $0x10] sm:$0xf] }
 0x151   : > { %924 = vst [vmem:[#allocation2 + $0x18] sm:$0x1] %v923_v63  ;;  %6213 = vrot.lane.b32.xlu1 %v6205_v29, %s16102_s14  ;;  %v3398_v19 = vsel %vm11602_vm7, %v16228_v23, %v16227_v62  ;;  %v6150_v33 = vunpack.c.l.b16 %v3484_v3  ;;  %v11662_v12 = vrot.slane %v1117_v14, 7  ;;  %v2129_v29 = vrot.slane %v2128_v49, 4  ;;  %v3364_v49 = vld [vmem:[#allocation3 + $0xc] sm:$0xe] }
 0x152   : > { %1196 = vrot.lane.b32.xlu2 %v1115_v60, %s10435_s25  ;;  %v2139_v60 = vrot.slane %v2138_v15, 4  ;;  %v11664_v26 = vrot.slane %v908_v61, 7  ;;  %v6109_v31 = vunpack.c.l.b16 %v3398_v19  ;;  %v11667_v20 = vunpack.c.l.b16 %v3184_v6  ;;  %v3647_v61 = vld [vmem:[#allocation3 + $0xc] sm:$0xc]  ;;  %v1250_v3 = vld [vmem:[#allocation2 + $0xc] sm:$0xf] }
 0x153   : > { %3054 = vrot.lane.b32.xlu0 %v2986_v51, %s10434_s24  ;;  %v3015_v55 = vpop.permute.xlu1 %3014  ;;  %v2143_v57 = vrot.slane %v2141_v39, 5  ;;  %v1125_v56 = vshrl.u32 %v11635_v44, 16  ;;  %v6149_v48 = vunpack.c.l.b16 %v3474_v40  ;;  %v2134_v0 = vsel %vm11616_vm0, %v2129_v29, %v11590_v58  ;;  %v10119_v51 = vld [vmem:[#allocation2 + $0x6c] sm:$0xff]  ;;  %v1261_v39 = vld [vmem:[#allocation2 + $0x20] sm:$0x1] }
 0x154   : > { %v3023_v24 = vpop.permute.xlu2 %3022  ;;  %3117 = vst.msk [vmem:[#allocation3 + $0x18] sm:$0xe] %vm16229_vm2, %v3015_v55  ;;  %v2228_v15 = vrot.slane %v11575_v42, 5  ;;  %v6125_v63 = vpack.c.b16 %v6110_v45, %v6109_v31  ;;  %v11683_v58 = vor.u32 %v1120_v25, %v11662_v12  ;;  %v11688_v42 = vsel %vm10766_vm3, %v2988_v11, %v11664_v26  ;;  %v925_v23 = vld [vmem:[#allocation2 + $0x24] sm:$0x1]  ;;  %vm16230_vm3 = vmmov %vm16222_vm1 }
 0x155   : > { %v1153_v30 = vpop.permute.xlu0 %1152  ;;  %3121 = vst.msk [vmem:[#allocation3 + $0x28] sm:$0xf] %vm1240_vm12, %v3023_v24  ;;  %v2144_v14 = vsel %vm11616_vm0, %v2139_v60, %v2143_v57  ;;  %v6165_v62 = vpack.c.b16 %v6150_v33, %v6149_v48  ;;  %v11691_v19 = vunpack.c.l.b16 %v2134_v0  ;;  %v11693_v45 = vrot.slane %v1125_v56, 7 }
 0x156   : > { %1246 = vst.msk [vmem:[#allocation2 + $0x4] sm:$0xf] %vm1240_vm12, %v1153_v30  ;;  %v1128_v6 = vshll.u32 %v11635_v44, 16  ;;  %v9661_v40 = vrot.slane %v2152_v47, 9  ;;  %v11696_v60 = vld [vmem:[#allocation3 + $0x14] sm:$0x1]  ;;  %v11701_v1 = vunpack.c.l.b16 %v2144_v14 }
 0x157   : > { %v2230_v11 = vrot.slane %v2228_v15, 4  ;;  %v2231_v25 = vrot.slane %v11592_v5, 5  ;;  %v9775_v55 = vrot.slane %v3364_v49, 9  ;;  %v11704_v24 = vld [vmem:[#allocation3 + $0x14] sm:$0x3]  ;;  %v9783_v29 = vrot.slane %v3647_v61, 10 }
 0x158   : > { %v2229_v33 = vsel %vm11602_vm7, %v9661_v40, %v2228_v15  ;;  %v3407_v57 = vrot.slane %v11696_v60, 5  ;;  %v3205_v5 = vshll.u32 %v11675_v43, 16  ;;  %v3209_v56 = vshrl.u32 %v11675_v43, 16  ;;  %v960_v15 = vld [vmem:[#allocation2 + $0x38] sm:$0x1] }
 0x159   : > { %3056 = vrot.lane.b32.xlu1 %v11588_v32, %s10434_s24  ;;  %v3404_v32 = vrot.slane %v11675_v43, 5  ;;  %v3486_v47 = vshrl.u32 %v3364_v49, 16  ;;  %v3489_v14 = vshll.u32 %v3364_v49, 16  ;;  %v3500_v61 = vshrl.u32 %v11704_v24, 16 }
 0x15a   : > { %2519 = vrot.lane.b32.xlu2 %v10119_v51, %s16081_s23  ;;  %v1130_v51 = vor.u32 %v1128_v6, %v11693_v45  ;;  %v2232_v40 = vsel %vm11602_vm7, %v2230_v11, %v2231_v25  ;;  %v961_v44 = vsel %vm10650_vm9, 0, %v960_v15  ;;  %v3682_v49 = vrot.slane %v11675_v43, 6  ;;  %v3149_v6 = vld [vmem:[#allocation3 + $0xc] sm:$0xf] }
 0x15b   : > { %6133 = vrot.lane.b32.xlu0 %v6125_v63, %s16110_s16  ;;  %v1157_v30 = vpop.permute.xlu1 %1156  ;;  %v3405_v11 = vsel %vm11602_vm7, %v9775_v55, %v3404_v32  ;;  %v3406_v25 = vrot.slane %v3404_v32, 4  ;;  %v3495_v15 = vrot.slane %v3205_v5, 6  ;;  %v2576_v13 = vunpack.c.l.b16 %v2232_v40  ;;  %962 = vst [vmem:[#allocation2 + $0x38] sm:$0x1] %v961_v44 }
 0x15c   : > { %v1167_v31 = vpop.permute.xlu2 %1166  ;;  %v1251_v48 = vsel %vm10670_vm13, %v1157_v30, %v1250_v3  ;;  %v3503_v3 = vshll.u32 %v11704_v24, 16  ;;  %v2575_v30 = vunpack.c.l.b16 %v2229_v33  ;;  %v11737_v33 = vld [vmem:[#allocation2] sm:$0xe]  ;;  %v3488_v43 = vrot.slane %v3486_v47, 5 }
 0x15d   : > { %v1262_v0 = vsel %vm10640_vm8, %v1167_v31, %v1261_v39  ;;  %v3073_v63 = vpop.permute.xlu0 %3072  ;;  %1252 = vst [vmem:[#allocation2 + $0xc] sm:$0xf] %v1251_v48  ;;  %v926_v31 = vsel %vm10640_vm8, 0, %v925_v23  ;;  %v3494_v48 = vrot.slane %v3209_v56, 5  ;;  %v3491_v39 = vrot.slane %v3489_v14, 6 }
 0x15e   : > { %1263 = vst [vmem:[#allocation2 + $0x20] sm:$0x1] %v1262_v0  ;;  %v11735_v0 = vsel %vm11504_vm6, %v9783_v29, %v3682_v49  ;;  %v16231_v23 = vpack.c.b16 %v11656_v35, %v11667_v20  ;;  %v3408_v55 = vsel %vm11602_vm7, %v3406_v25, %v3407_v57  ;;  %v3685_v32 = vrot.slane %v11704_v24, 6  ;;  %v11749_v47 = vld [vmem:[#allocation2 + $0x4] sm:$0xf] }
 0x15f   : > { %3146 = vst.msk [vmem:[#allocation3 + $0x8c] sm:$0x1] %vm16230_vm3, %v3073_v63  ;;  %v3502_v44 = vrot.slane %v3500_v61, 5  ;;  %v3505_v29 = vrot.slane %v3503_v3, 6  ;;  %v3196_v63 = vshrl.u32 %v3149_v6, 16  ;;  %v3199_v14 = vshll.u32 %v3149_v6, 16  ;;  %vm16245_vm3 = vmmov %vm16222_vm1 }
 0x160   : > { %927 = vst [vmem:[#allocation2 + $0x24] sm:$0x1] %v926_v31  ;;  %v11751_v35 = vrot.slane %v3205_v5, 5  ;;  %v3211_v20 = vrot.slane %v3209_v56, 4  ;;  %v6111_v57 = vunpack.c.l.b16 %v3405_v11  ;;  %v3684_v61 = vrot.slane %v3682_v49, 4 }
 0x161   : > { %6093 = vrot.lane.b32.xlu1 %v16231_v23, %s16112_s30  ;;  %v16232_v23 = vrot.slane %v11662_v12, 4  ;;  %v11759_v3 = vor.u32 %v3495_v15, %v3494_v48  ;;  %v11762_v31 = vpack.c.b16 %v2576_v13, %v2575_v30  ;;  %v6112_v5 = vunpack.c.l.b16 %v3408_v55  ;;  %v11765_v6 = vld [vmem:[#allocation2 + $0x8] sm:$0x1]  ;;  %v1313_v12 = vld [vmem:[#allocation2] sm:$0xf] }
 0x162   : > { %6173 = vrot.lane.b32.xlu2 %v6165_v62, %s16106_s19  ;;  %v3492_v25 = vor.u32 %v3491_v39, %v3488_v43  ;;  %v11770_v34 = vsel %vm11504_vm6, %v3684_v61, %v3685_v32  ;;  %v1569_v49 = vrot.slane %v11749_v47, 5  ;;  %v3506_v11 = vor.u32 %v3505_v29, %v3502_v44  ;;  %v10130_v15 = vld [vmem:[#allocation3 + $0xc] sm:$0xff] }
 0x163   : > { %1198 = vrot.lane.b32.xlu0 %v11683_v58, %s10435_s25  ;;  %v3021_v40 = vpop.permute.xlu1 %3020  ;;  %v11757_v24 = vsel %vm10660_vm11, %v16232_v23, %v1130_v51  ;;  %v9638_v51 = vrot.slane %v11737_v33, 9  ;;  %vm16234_vm11 = vmmov %vm16222_vm1  ;;  %v3198_v13 = vrot.slane %v3196_v63, 4  ;;  %v3201_v30 = vrot.slane %v3199_v14, 5  ;;  %v1268_v33 = vld [vmem:[#allocation2 + $0x2c] sm:$0x1] }
 0x164   : > { %v3029_v62 = vpop.permute.xlu2 %3028  ;;  %3120 = vst.msk [vmem:[#allocation3 + $0x24] sm:$0xe] %vm16233_vm5, %v3021_v40  ;;  %v3212_v48 = vor.u32 %v3211_v20, %v11751_v35  ;;  %v3215_v39 = vshll.u32 %v11696_v60, 16  ;;  %v1572_v43 = vrot.slane %v11765_v6, 5  ;;  %v3498_v55 = vrot.slane %v11759_v3, 4  ;;  %vm16248_vm5 = vmmov %vm16229_vm2 }
 0x165   : > { %v3019_v58 = vpop.permute.xlu0 %3018  ;;  %3124 = vst.msk [vmem:[#allocation3 + $0x34] sm:$0xf] %vm1240_vm12, %v3029_v62  ;;  %v1341_v32 = vshrl.u32 %v1313_v12, 16  ;;  %v1350_v40 = vshll.u32 %v11749_v47, 16  ;;  %v11780_v62 = vpack.c.b16 %v6112_v5, %v6111_v57  ;;  %v6192_v44 = vunpack.c.l.b16 %v11770_v34  ;;  %v11784_v14 = vld [vmem:[#allocation3 + $0x1c] sm:$0xf] }
 0x166   : > { %3119 = vst.msk [vmem:[#allocation3 + $0x20] sm:$0x1] %vm16234_vm11, %v3019_v58  ;;  %v3493_v63 = vrot.slane %v3492_v25, 4  ;;  %v16235_v60 = vpack.c.b16 %v11701_v1, %v11691_v19  ;;  %v1571_v20 = vrot.slane %v1569_v49, 4  ;;  %v11794_v23 = vsel %vm11630_vm15, %v3498_v55, %v3506_v11  ;;  %v11797_v58 = vld [vmem:[#allocation3 + $0x18] sm:$0xe]  ;;  %vm16249_vm11 = vmmov %vm16222_vm1 }
 0x167   : > { %v1344_v57 = vshll.u32 %v1313_v12, 16  ;;  %v1354_v61 = vshrl.u32 %v11749_v47, 16  ;;  %v1257_v5 = vld [vmem:[#allocation2 + $0x18] sm:$0xf]  ;;  %v3202_v25 = vor.u32 %v3201_v30, %v3198_v13  ;;  %v3213_v19 = vrot.slane %v3212_v48, 4 }
 0x168   : > { %v3217_v1 = vrot.slane %v3215_v39, 5  ;;  %v11800_v34 = vrot.slane %v1350_v40, 5  ;;  %v1343_v29 = vrot.slane %v1341_v32, 4  ;;  %v3229_v11 = vshll.u32 %v11784_v14, 16  ;;  %v963_v30 = vld [vmem:[#allocation2 + $0x44] sm:$0x1] }
 0x169   : > { %2559 = vrot.lane.b32.xlu1 %v16235_v60, %s16042_s17  ;;  %v1356_v56 = vrot.slane %v1354_v61, 4  ;;  %v3233_v12 = vshrl.u32 %v11784_v14, 16  ;;  %v11809_v13 = vsel %vm11602_vm7, %v9638_v51, %v1569_v49  ;;  %v3509_v48 = vshrl.u32 %v11797_v58, 16  ;;  %v928_v61 = vld [vmem:[#allocation2 + $0x30] sm:$0x1]  ;;  %s16062_s17 = smov 32  }
 0x16a   : > { %3058 = vrot.lane.b32.xlu2 %v11688_v42, %s10434_s24  ;;  %v3512_v39 = vshll.u32 %v11797_v58, 16  ;;  %v3497_v32 = vsel %vm11630_vm15, %v3493_v63, %v11759_v3  ;;  %v1346_v40 = vrot.slane %v1344_v57, 5  ;;  %v6152_v51 = vunpack.c.l.b16 %v11794_v23 }
 0x16b   : > { %6261 = vrot.lane.b32.xlu0 %v10130_v15, %s16104_s20  ;;  %v1165_v42 = vpop.permute.xlu1 %1164  ;;  %v3203_v49 = vrot.slane %v3202_v25, 4  ;;  %v1360_v3 = vshll.u32 %v11765_v6, 16  ;;  %v3518_v63 = vrot.slane %v3229_v11, 6  ;;  %v3511_v23 = vrot.slane %v3509_v48, 5 }
 0x16c   : > { %v1173_v60 = vpop.permute.xlu2 %1172  ;;  %1260 = vst.msk [vmem:[#allocation2 + $0x1c] sm:$0xf] %vm1240_vm12, %v1165_v42  ;;  %v1357_v42 = vor.u32 %v1356_v56, %v11800_v34  ;;  %v3514_v25 = vrot.slane %v3512_v39, 6  ;;  %v3517_v56 = vrot.slane %v3233_v12, 5  ;;  %v16236_v6 = vrot.slane %v11693_v45, 4 }
 0x16d   : > { %v1269_v47 = vsel %vm10640_vm8, %v1173_v60, %v1268_v33  ;;  %v1163_v15 = vpop.permute.xlu0 %1162  ;;  %v964_v33 = vsel %vm10650_vm9, 0, %v963_v30  ;;  %v929_v60 = vsel %vm10640_vm8, 0, %v928_v61  ;;  %v6151_v30 = vunpack.c.l.b16 %v3497_v32  ;;  %v11849_v61 = vld [vmem:[#allocation3 + $0x20] sm:$0x1] }
 0x16e   : > { %1270 = vst [vmem:[#allocation2 + $0x2c] sm:$0x1] %v1269_v47  ;;  %v1258_v55 = vsel %vm10670_vm13, %v1163_v15, %v1257_v5  ;;  %v11824_v47 = vld [vmem:[#allocation3 + $0x20] sm:$0x3]  ;;  %v1573_v5 = vsel %vm11602_vm7, %v1571_v20, %v1572_v43  ;;  %v16237_v43 = vunpack.c.l.b16 %v11735_v0  ;;  %v3218_v48 = vsel %vm11616_vm0, %v3213_v19, %v3217_v1  ;;  %v1315_v1 = vld [vmem:[#allocation2 + $0xc] sm:$0xf] }
 0x16f   : > { %1259 = vst [vmem:[#allocation2 + $0x18] sm:$0xf] %v1258_v55  ;;  %v3523_v57 = vshrl.u32 %v11824_v47, 16  ;;  %v3526_v15 = vshll.u32 %v11824_v47, 16  ;;  %v1347_v39 = vor.u32 %v1346_v40, %v1343_v29  ;;  %v1358_v55 = vrot.slane %v1357_v42, 4 }
 0x170   : > { %965 = vst [vmem:[#allocation2 + $0x44] sm:$0x1] %v964_v33  ;;  %v6206_v20 = vpack.c.b16 %v6192_v44, %v16237_v43  ;;  %v2305_v32 = vunpack.c.l.b16 %v11809_v13  ;;  %v11852_v19 = vpack.c.b16 %v6152_v51, %v6151_v30  ;;  %v3411_v29 = vrot.slane %v11784_v14, 5 }
 0x171   : > { %930 = vst [vmem:[#allocation2 + $0x30] sm:$0x1] %v929_v60  ;;  %1200 = vrot.lane.b32.xlu1 %v11757_v24, %s10435_s25  ;;  %v3208_v24 = vsel %vm11616_vm0, %v3203_v49, %v11751_v35  ;;  %v3525_v33 = vrot.slane %v3523_v57, 5  ;;  %v3528_v45 = vrot.slane %v3526_v15, 6  ;;  %v2306_v60 = vunpack.c.l.b16 %v1573_v5  ;;  %v11860_v57 = vld [vmem:[#allocation2 + $0x10] sm:$0xf] }
 0x172   : > { %1202 = vrot.lane.b32.xlu2 %v16236_v6, %s10435_s25  ;;  %v11856_v40 = vunpack.c.l.b16 %v3218_v48  ;;  %v1362_v35 = vrot.slane %v1360_v3, 5  ;;  %v3515_v49 = vor.u32 %v3514_v25, %v3511_v23  ;;  %v11858_v42 = vor.u32 %v3518_v63, %v3517_v56  ;;  %v3648_v23 = vld [vmem:[#allocation3 + $0x18] sm:$0xc]  ;;  %s10445_s25 = smov 36  }
 0x173   : > { %2599 = vrot.lane.b32.xlu0 %v11762_v31, %s16062_s17  ;;  %v3027_v0 = vpop.permute.xlu1 %3026  ;;  %v11863_v13 = vunpack.c.l.b16 %v3208_v24  ;;  %v1348_v51 = vrot.slane %v1347_v39, 4  ;;  %v9776_v5 = vrot.slane %v11797_v58, 9  ;;  %v3414_v15 = vrot.slane %v11849_v61, 5 }
 0x174   : > { %v3035_v44 = vpop.permute.xlu2 %3034  ;;  %3123 = vst.msk [vmem:[#allocation3 + $0x30] sm:$0xe] %vm16238_vm4, %v3027_v0  ;;  %v1363_v6 = vsel %vm11616_vm0, %v1358_v55, %v1362_v35  ;;  %v3529_v3 = vor.u32 %v3528_v45, %v3525_v33  ;;  %v1365_v63 = vshrl.u32 %v1315_v1, 16  ;;  %v1368_v25 = vshll.u32 %v1315_v1, 16  ;;  %v1275_v55 = vld [vmem:[#allocation2 + $0x38] sm:$0x1]  ;;  %vm16251_vm4 = vmmov %vm16222_vm1 }
 0x175   : > { %v3025_v31 = vpop.permute.xlu0 %3024  ;;  %3127 = vst.msk [vmem:[#allocation3 + $0x40] sm:$0xf] %vm1240_vm12, %v3035_v44  ;;  %v3413_v56 = vrot.slane %v3411_v29, 4  ;;  %v3689_v43 = vrot.slane %v11784_v14, 6  ;;  %v1374_v30 = vshll.u32 %v11860_v57, 16  ;;  %v1378_v48 = vshrl.u32 %v11860_v57, 16 }
 0x176   : > { %3122 = vst.msk [vmem:[#allocation3 + $0x2c] sm:$0x1] %vm16239_vm10, %v3025_v31  ;;  %v2321_v39 = vpack.c.b16 %v2306_v60, %v2305_v32  ;;  %v6086_v58 = vpack.c.b16 %v11856_v40, %v11863_v13  ;;  %v3516_v24 = vrot.slane %v3515_v49, 4  ;;  %v3521_v0 = vrot.slane %v11858_v42, 4  ;;  %v1264_v1 = vld [vmem:[#allocation2 + $0x24] sm:$0xf]  ;;  %vm16253_vm10 = vmmov %vm16222_vm1 }
 0x177   : > { %v1353_v33 = vsel %vm11616_vm0, %v1348_v51, %v11800_v34  ;;  %v3415_v45 = vsel %vm11602_vm7, %v3413_v56, %v3414_v15  ;;  %v9784_v44 = vrot.slane %v3648_v23, 10  ;;  %v3692_v32 = vrot.slane %v11824_v47, 6  ;;  %v11896_v56 = vld [vmem:[#allocation2 + $0x10] sm:$0xf] }
 0x178   : > { %v16240_v60 = vrot.slane %v11664_v26, 4  ;;  %v11888_v31 = vunpack.c.l.b16 %v1363_v6  ;;  %v1370_v35 = vrot.slane %v1368_v25, 5  ;;  %v3412_v51 = vsel %vm11602_vm7, %v9776_v5, %v3411_v29  ;;  %v1840_v29 = vld [vmem:[#allocation2 + $0xc] sm:$0xe]  ;;  %v966_v5 = vld [vmem:[#allocation2 + $0x50] sm:$0x1] }
 0x179   : > { %6135 = vrot.lane.b32.xlu1 %v11780_v62, %s16110_s16  ;;  %v3530_v62 = vsel %vm11630_vm15, %v3521_v0, %v3529_v3  ;;  %v3691_v15 = vrot.slane %v3689_v43, 4  ;;  %v11894_v23 = vrot.slane %v1374_v30, 5  ;;  %v1380_v47 = vrot.slane %v1378_v48, 4 }
 0x17a   : > { %6215 = vrot.lane.b32.xlu2 %v6206_v20, %s16102_s14  ;;  %v1367_v20 = vrot.slane %v1365_v63, 4  ;;  %v11901_v3 = vunpack.c.l.b16 %v1353_v33  ;;  %v3520_v63 = vsel %vm11630_vm15, %v3516_v24, %v11858_v42  ;;  %v6114_v25 = vunpack.c.l.b16 %v3415_v45  ;;  %v11916_v33 = vld [vmem:[#allocation2 + $0x14] sm:$0x1] }
 0x17b   : > { %3060 = vrot.lane.b32.xlu0 %v16240_v60, %s10434_s24  ;;  %v1171_v49 = vpop.permute.xlu1 %1170  ;;  %v6154_v48 = vunpack.c.l.b16 %v3530_v62  ;;  %v11910_v0 = vsel %vm11504_vm6, %v9784_v44, %v3689_v43  ;;  %v931_v60 = vld [vmem:[#allocation2 + $0x3c] sm:$0x1]  ;;  %v6113_v42 = vunpack.c.l.b16 %v3412_v51  ;;  %v1874_v45 = vrot.slane %v11896_v56, 5  ;;  %v3151_v62 = vld [vmem:[#allocation3 + $0x18] sm:$0xf]  ;;  %s16252_s24 = smov 28  }
 0x17c   : > { %v1179_v34 = vpop.permute.xlu2 %1178  ;;  %1267 = vst.msk [vmem:[#allocation2 + $0x28] sm:$0xf] %vm1240_vm12, %v1171_v49  ;;  %v1371_v24 = vor.u32 %v1370_v35, %v1367_v20  ;;  %v10131_v49 = vld [vmem:[#allocation3 + $0x18] sm:$0xff]  ;;  %v6153_v44 = vunpack.c.l.b16 %v3520_v63 }
 0x17d   : > { %v1276_v26 = vsel %vm10640_vm8, %v1179_v34, %v1275_v55  ;;  %v1169_v6 = vpop.permute.xlu0 %1168  ;;  %v11914_v55 = vsel %vm11504_vm6, %v3691_v15, %v3692_v32  ;;  %v1381_v32 = vor.u32 %v1380_v47, %v11894_v23  ;;  %v9646_v34 = vrot.slane %v1840_v29, 9  ;;  %v11928_v35 = vld [vmem:[#allocation2 + $0x14] sm:$0x1] }
 0x17e   : > { %1277 = vst [vmem:[#allocation2 + $0x38] sm:$0x1] %v1276_v26  ;;  %v1265_v30 = vsel %vm10670_vm13, %v1169_v6, %v1264_v1  ;;  %v967_v1 = vsel %vm10650_vm9, 0, %v966_v5  ;;  %v11924_v15 = vpack.c.b16 %v6114_v25, %v6113_v42  ;;  %v1533_v26 = vld [vmem:[#allocation2 + $0xc] sm:$0xe]  ;;  %v932_v6 = vsel %vm10640_vm8, 0, %v931_v60 }
 0x17f   : > { %1266 = vst [vmem:[#allocation2 + $0x24] sm:$0xf] %v1265_v30  ;;  %v11934_v63 = vpack.c.b16 %v6154_v48, %v6153_v44  ;;  %v1384_v47 = vshll.u32 %v11916_v33, 16  ;;  %v3220_v25 = vshrl.u32 %v3151_v62, 16  ;;  %v3223_v29 = vshll.u32 %v3151_v62, 16 }
 0x180   : > { %968 = vst [vmem:[#allocation2 + $0x50] sm:$0x1] %v967_v1  ;;  %v1372_v5 = vrot.slane %v1371_v24, 4  ;;  %v1876_v30 = vrot.slane %v1874_v45, 4  ;;  %v11941_v42 = vrot.slane %v3229_v11, 5  ;;  %v3235_v60 = vrot.slane %v3233_v12, 4 }
 0x181   : > { %6263 = vrot.lane.b32.xlu1 %v10131_v49, %s16104_s20  ;;  %933 = vst [vmem:[#allocation2 + $0x3c] sm:$0x1] %v932_v6  ;;  %v1382_v49 = vrot.slane %v1381_v32, 4  ;;  %v11947_v44 = vsel %vm11602_vm7, %v9646_v34, %v1874_v45  ;;  %v1877_v62 = vrot.slane %v11928_v35, 5  ;;  %v3649_v24 = vld [vmem:[#allocation3 + $0x24] sm:$0xc] }
 0x182   : > { %2329 = vrot.lane.b32.xlu2 %v2321_v39, %s16110_s16  ;;  %v1624_v39 = vld [vmem:[#allocation2 + $0xc] sm:$0xf]  ;;  %v9639_v6 = vrot.slane %v1533_v26, 9  ;;  %v3222_v20 = vrot.slane %v3220_v25, 4  ;;  %v3225_v14 = vrot.slane %v3223_v29, 5  ;;  %v3239_v12 = vshll.u32 %v11849_v61, 16 }
 0x183   : > { %6175 = vrot.lane.b32.xlu0 %v11852_v19, %s16106_s19  ;;  %v3033_v48 = vpop.permute.xlu1 %3032  ;;  %v1576_v19 = vrot.slane %v11860_v57, 5  ;;  %v1386_v32 = vrot.slane %v1384_v47, 5  ;;  %v1649_v51 = vshrl.u32 %v1624_v39, 16  ;;  %v1652_v43 = vshll.u32 %v1624_v39, 16  ;;  %v11963_v25 = vld [vmem:[#allocation3 + $0x28] sm:$0xf] }
 0x184   : > { %v3041_v1 = vpop.permute.xlu2 %3040  ;;  %3126 = vst.msk [vmem:[#allocation3 + $0x3c] sm:$0xe] %vm16241_vm14, %v3033_v48  ;;  %v1658_v45 = vshll.u32 %v11896_v56, 16  ;;  %v1377_v57 = vsel %vm11616_vm0, %v1372_v5, %v11894_v23  ;;  %v1878_v34 = vsel %vm11602_vm7, %v1876_v30, %v1877_v62  ;;  %v2433_v26 = vunpack.c.l.b16 %v11947_v44  ;;  %v10104_v47 = vld [vmem:[#allocation2 + $0xc] sm:$0xff]  ;;  %vm16254_vm14 = vmmov %vm16229_vm2 }
 0x185   : > { %v3031_v11 = vpop.permute.xlu0 %3030  ;;  %3130 = vst.msk [vmem:[#allocation3 + $0x4c] sm:$0xf] %vm1240_vm12, %v3041_v1  ;;  %v3236_v61 = vor.u32 %v3235_v60, %v11941_v42  ;;  %v1387_v29 = vsel %vm11616_vm0, %v1382_v49, %v1386_v32  ;;  %v1578_v39 = vrot.slane %v1576_v19, 4  ;;  %v1579_v48 = vrot.slane %v11916_v33, 5  ;;  %v11976_v60 = vld [vmem:[#allocation3 + $0x2c] sm:$0x3] }
 0x186   : > { %3125 = vst.msk [vmem:[#allocation3 + $0x38] sm:$0x1] %vm16222_vm1, %v3031_v11  ;;  %v9785_v1 = vrot.slane %v3649_v24, 10  ;;  %v1282_v11 = vld [vmem:[#allocation2 + $0x44] sm:$0x1]  ;;  %v1577_v23 = vsel %vm11602_vm7, %v9639_v6, %v1576_v19  ;;  %v3226_v5 = vor.u32 %v3225_v14, %v3222_v20  ;;  %v3241_v30 = vrot.slane %v3239_v12, 5 }
 0x187   : > { %v1662_v44 = vshrl.u32 %v11896_v56, 16  ;;  %v3696_v33 = vrot.slane %v11963_v25, 6  ;;  %v1651_v49 = vrot.slane %v1649_v51, 4  ;;  %v1654_v62 = vrot.slane %v1652_v43, 5  ;;  %v1271_v56 = vld [vmem:[#allocation2 + $0x30] sm:$0xf] }
 0x188   : > { %v11979_v24 = vrot.slane %v1658_v45, 5  ;;  %v16242_v20 = vpack.c.b16 %v11888_v31, %v11901_v3  ;;  %v11985_v19 = vunpack.c.l.b16 %v1377_v57  ;;  %v2434_v6 = vunpack.c.l.b16 %v1878_v34  ;;  %v1319_v17 = vld [vmem:[#allocation2 + $0x24] sm:$0xf] }
 0x189   : > { %2377 = vrot.lane.b32.xlu1 %v10104_v47, %s16106_s19  ;;  %v3237_v14 = vrot.slane %v3236_v61, 4  ;;  %v1664_v40 = vrot.slane %v1662_v44, 4  ;;  %v11987_v12 = vunpack.c.l.b16 %v1387_v29  ;;  %v1580_v43 = vsel %vm11602_vm7, %v1578_v39, %v1579_v48  ;;  %v969_v61 = vld [vmem:[#allocation2 + $0x5c] sm:$0x1] }
 0x18a   : > { %6095 = vrot.lane.b32.xlu2 %v6086_v58, %s16112_s30  ;;  %v2307_v51 = vunpack.c.l.b16 %v1577_v23  ;;  %v11993_v32 = vsel %vm11504_vm6, %v9785_v1, %v3696_v33  ;;  %v3227_v45 = vrot.slane %v3226_v5, 4  ;;  %v3699_v34 = vrot.slane %v11976_v60, 6  ;;  %v934_v1 = vld [vmem:[#allocation2 + $0x48] sm:$0x1]  ;;  %v12008_v23 = vld [vmem:[#allocation2 + $0x20] sm:$0x1] }
 0x18b   : > { %2289 = vrot.lane.b32.xlu0 %v16242_v20, %s16112_s30  ;;  %v1177_v13 = vpop.permute.xlu1 %1176  ;;  %v3242_v57 = vsel %vm11616_vm0, %v3237_v14, %v3241_v30  ;;  %v1655_v29 = vor.u32 %v1654_v62, %v1651_v49  ;;  %v1665_v39 = vor.u32 %v1664_v40, %v11979_v24  ;;  %v970_v48 = vsel %vm10650_vm9, 0, %v969_v61  ;;  %v12017_v62 = vld [vmem:[#allocation2 + $0x1c] sm:$0xf] }
 0x18c   : > { %v1185_v58 = vpop.permute.xlu2 %1184  ;;  %1274 = vst.msk [vmem:[#allocation2 + $0x34] sm:$0xf] %vm1240_vm12, %v1177_v13  ;;  %v16243_v5 = vunpack.c.l.b16 %v11910_v0  ;;  %v16244_v30 = vunpack.c.l.b16 %v11914_v55  ;;  %v2308_v20 = vunpack.c.l.b16 %v1580_v43  ;;  %v935_v49 = vsel %vm10640_vm8, 0, %v934_v1  ;;  %v3153_v0 = vld [vmem:[#allocation3 + $0x24] sm:$0xf] }
 0x18d   : > { %v1283_v31 = vsel %vm10640_vm8, %v1185_v58, %v1282_v11  ;;  %v1175_v3 = vpop.permute.xlu0 %1174  ;;  %v12006_v11 = vld [vmem:[#allocation2 + $0x20] sm:$0x1]  ;;  %v2282_v14 = vpack.c.b16 %v11987_v12, %v11985_v19  ;;  %v2449_v40 = vpack.c.b16 %v2434_v6, %v2433_v26  ;;  %v3698_v13 = vrot.slane %v3696_v33, 4  ;;  %971 = vst [vmem:[#allocation2 + $0x5c] sm:$0x1] %v970_v48 }
 0x18e   : > { %1284 = vst [vmem:[#allocation2 + $0x44] sm:$0x1] %v1283_v31  ;;  %v1272_v47 = vsel %vm10670_vm13, %v1175_v3, %v1271_v56  ;;  %v6207_v44 = vpack.c.b16 %v16244_v30, %v16243_v5  ;;  %v1668_v56 = vshll.u32 %v11928_v35, 16  ;;  %v1583_v58 = vrot.slane %v12017_v62, 5  ;;  %v1534_v3 = vld [vmem:[#allocation2 + $0x18] sm:$0xe] }
 0x18f   : > { %1273 = vst [vmem:[#allocation2 + $0x30] sm:$0xf] %v1272_v47  ;;  %v2322_v31 = vpack.c.b16 %v2308_v20, %v2307_v51  ;;  %v3232_v55 = vsel %vm11616_vm0, %v3227_v45, %v11941_v42  ;;  %v12025_v35 = vunpack.c.l.b16 %v3242_v57  ;;  %v12028_v61 = vld [vmem:[#allocation2 + $0x1c] sm:$0xf]  ;;  %v12036_v26 = vsel %vm11504_vm6, %v3698_v13, %v3699_v34  ;;  %v2145_v19 = vld [vmem:[#allocation2 + $0x18] sm:$0xe] }
 0x190   : > { %936 = vst [vmem:[#allocation2 + $0x48] sm:$0x1] %v935_v49  ;;  %v1656_v33 = vrot.slane %v1655_v29, 4  ;;  %v1666_v42 = vrot.slane %v1665_v39, 4  ;;  %v2179_v6 = vrot.slane %v12028_v61, 5  ;;  %v1670_v12 = vrot.slane %v1668_v56, 5 }
 0x191   : > { %6177 = vrot.lane.b32.xlu1 %v11934_v63, %s16106_s19  ;;  %v1586_v51 = vrot.slane %v12006_v11, 5  ;;  %v2182_v45 = vrot.slane %v12008_v23, 5  ;;  %v12042_v63 = vld [vmem:[#allocation3 + $0x24] sm:$0xe]  ;;  %v3244_v57 = vshrl.u32 %v3153_v0, 16  ;;  %v9640_v48 = vrot.slane %v1534_v3, 9 }
 0x192   : > { %6137 = vrot.lane.b32.xlu2 %v11924_v15, %s16110_s16  ;;  %v1585_v34 = vrot.slane %v1583_v58, 4  ;;  %v9654_v1 = vrot.slane %v2145_v19, 9  ;;  %v3418_v29 = vrot.slane %v11963_v25, 5  ;;  %v12046_v5 = vunpack.c.l.b16 %v3232_v55  ;;  %v3166_v20 = vld [vmem:[#allocation3 + $0x2c] sm:$0x1] }
 0x193   : > { %6217 = vrot.lane.b32.xlu0 %v6207_v44, %s16102_s14  ;;  %v3039_v15 = vpop.permute.xlu1 %3038  ;;  %v6196_v30 = vunpack.c.l.b16 %v12036_v26  ;;  %v2181_v44 = vrot.slane %v2179_v6, 4  ;;  %v3247_v56 = vshll.u32 %v3153_v0, 16  ;;  %v1661_v49 = vsel %vm11616_vm0, %v1656_v33, %v11979_v24 }
 0x194   : > { %v3047_v47 = vpop.permute.xlu2 %3046  ;;  %3129 = vst.msk [vmem:[#allocation3 + $0x48] sm:$0xe] %vm16229_vm2, %v3039_v15  ;;  %v1671_v13 = vsel %vm11616_vm0, %v1666_v42, %v1670_v12  ;;  %v9777_v3 = vrot.slane %v12042_v63, 9  ;;  %v3253_v19 = vshll.u32 %v11963_v25, 16  ;;  %v3421_v55 = vrot.slane %v3166_v20, 5 }
 0x195   : > { %v3037_v39 = vpop.permute.xlu0 %3036  ;;  %3133 = vst.msk [vmem:[#allocation3 + $0x58] sm:$0xf] %vm1240_vm12, %v3047_v47  ;;  %v3246_v26 = vrot.slane %v3244_v57, 4  ;;  %v3249_v15 = vrot.slane %v3247_v56, 5  ;;  %v3257_v0 = vshrl.u32 %v11963_v25, 16  ;;  %v1584_v24 = vsel %vm11602_vm7, %v9640_v48, %v1583_v58 }
 0x196   : > { %3128 = vst.msk [vmem:[#allocation3 + $0x44] sm:$0x1] %vm16245_vm3, %v3037_v39  ;;  %v1587_v33 = vsel %vm11602_vm7, %v1585_v34, %v1586_v51  ;;  %v3420_v42 = vrot.slane %v3418_v29, 4  ;;  %v2180_v12 = vsel %vm11602_vm7, %v9654_v1, %v2179_v6  ;;  %v2183_v39 = vsel %vm11602_vm7, %v2181_v44, %v2182_v45  ;;  %v1289_v25 = vld [vmem:[#allocation2 + $0x50] sm:$0x1] }
 0x197   : > { %v12069_v57 = vrot.slane %v3253_v19, 5  ;;  %v3259_v56 = vrot.slane %v3257_v0, 4  ;;  %v12073_v47 = vunpack.c.l.b16 %v1661_v49  ;;  %v12075_v58 = vunpack.c.l.b16 %v1671_v13  ;;  %v1278_v6 = vld [vmem:[#allocation2 + $0x3c] sm:$0xf] }
 0x198   : > { %v3532_v51 = vshrl.u32 %v12042_v63, 16  ;;  %v3535_v48 = vshll.u32 %v12042_v63, 16  ;;  %v3419_v45 = vsel %vm11602_vm7, %v9777_v3, %v3418_v29  ;;  %v3250_v34 = vor.u32 %v3249_v15, %v3246_v26 }
 0x199   : > { %2291 = vrot.lane.b32.xlu1 %v2282_v14, %s16112_s30  ;;  %v3422_v14 = vsel %vm11602_vm7, %v3420_v42, %v3421_v55  ;;  %v2309_v49 = vunpack.c.l.b16 %v1584_v24  ;;  %v2310_v13 = vunpack.c.l.b16 %v1587_v33  ;;  %v2561_v43 = vunpack.c.l.b16 %v2180_v12  ;;  %v1626_v24 = vld [vmem:[#allocation2 + $0x18] sm:$0xf]  ;;  %v10132_v33 = vld [vmem:[#allocation3 + $0x24] sm:$0xff] }
 0x19a   : > { %2457 = vrot.lane.b32.xlu2 %v2449_v40, %s16104_s20  ;;  %v3263_v40 = vshll.u32 %v3166_v20, 16  ;;  %v2562_v52 = vunpack.c.l.b16 %v2183_v39  ;;  %v3260_v46 = vor.u32 %v3259_v56, %v12069_v57  ;;  %v3540_v29 = vrot.slane %v3257_v0, 5  ;;  %v10112_v0 = vld [vmem:[#allocation2 + $0x18] sm:$0xff] }
 0x19b   : > { %2331 = vrot.lane.b32.xlu0 %v2322_v31, %s16110_s16  ;;  %v1183_v1 = vpop.permute.xlu1 %1182  ;;  %v3541_v3 = vrot.slane %v3253_v19, 6  ;;  %v6116_v55 = vunpack.c.l.b16 %v3422_v14  ;;  %v3534_v26 = vrot.slane %v3532_v51, 5  ;;  %v3537_v15 = vrot.slane %v3535_v48, 6  ;;  %v1841_v51 = vld [vmem:[#allocation2 + $0x18] sm:$0xe] }
 0x19c   : > { %v1191_v44 = vpop.permute.xlu2 %1190  ;;  %1281 = vst.msk [vmem:[#allocation2 + $0x40] sm:$0xf] %vm1240_vm12, %v1183_v1  ;;  %v16246_v42 = vunpack.c.l.b16 %v11993_v32  ;;  %v6115_v39 = vunpack.c.l.b16 %v3419_v45  ;;  %v3265_v56 = vrot.slane %v3263_v40, 5  ;;  %v2409_v19 = vpack.c.b16 %v12075_v58, %v12073_v47  ;;  %v1627_v45 = vld [vmem:[#allocation2 + $0x1c] sm:$0xf] }
 0x19d   : > { %v1290_v31 = vsel %vm10640_vm8, %v1191_v44, %v1289_v25  ;;  %v1181_v63 = vpop.permute.xlu0 %1180  ;;  %v12092_v25 = vrot.slane %v3250_v34, 4  ;;  %v3546_v1 = vshrl.u32 %v11976_v60, 16  ;;  %v938_v48 = vsel %vm10640_vm8, 0, %v937_v36  ;;  %v1317_v44 = vld [vmem:[#allocation2 + $0x18] sm:$0xf] }
 0x19e   : > { %1291 = vst [vmem:[#allocation2 + $0x50] sm:$0x1] %v1290_v31  ;;  %v1279_v20 = vsel %vm10670_vm13, %v1181_v63, %v1278_v6  ;;  %v6208_v12 = vpack.c.b16 %v6196_v30, %v16246_v42  ;;  %v3549_v6 = vshll.u32 %v11976_v60, 16  ;;  %v12100_v14 = vpack.c.b16 %v2310_v13, %v2309_v49 }
 0x19f   : > { %1280 = vst [vmem:[#allocation2 + $0x3c] sm:$0xf] %v1279_v20  ;;  %v3261_v32 = vrot.slane %v3260_v46, 4  ;;  %v12102_v30 = vor.u32 %v3541_v3, %v3540_v29  ;;  %v1673_v34 = vshrl.u32 %v1626_v24, 16  ;;  %v12106_v47 = vpack.c.b16 %v2562_v52, %v2561_v43  ;;  %v12120_v52 = vld [vmem:[#allocation2 + $0x20] sm:$0x1] }
 0x1a0   : > { %939 = vst [vmem:[#allocation2 + $0x54] sm:$0x1] %v938_v48  ;;  %v12108_v58 = vpack.c.b16 %v6116_v55, %v6115_v39  ;;  %v3538_v60 = vor.u32 %v3537_v15, %v3534_v26  ;;  %v1676_v40 = vshll.u32 %v1626_v24, 16  ;;  %v16247_v46 = vpack.c.b16 %v12025_v35, %v12046_v5  ;;  %v1929_v35 = vld [vmem:[#allocation2 + $0x18] sm:$0xf] }
 0x1a1   : > { %2505 = vrot.lane.b32.xlu1 %v10112_v0, %s16081_s23  ;;  %v3256_v36 = vsel %vm11616_vm0, %v12092_v25, %v12069_v57  ;;  %v3266_v49 = vsel %vm11616_vm0, %v3261_v32, %v3265_v56  ;;  %v9647_v43 = vrot.slane %v1841_v51, 9  ;;  %v1675_v13 = vrot.slane %v1673_v34, 4  ;;  %v10105_v32 = vld [vmem:[#allocation2 + $0x18] sm:$0xff]  ;;  %v12203_v25 = vld [vmem:[#allocation2 + $0x28] sm:$0xf] }
 0x1a2   : > { %6265 = vrot.lane.b32.xlu2 %v10132_v33, %s16104_s20  ;;  %v3548_v29 = vrot.slane %v3546_v1, 5  ;;  %v3551_v3 = vrot.slane %v3549_v6, 6  ;;  %v1678_v20 = vrot.slane %v1676_v40, 5  ;;  %v1682_v55 = vshll.u32 %v1627_v45, 16 }
 0x1a3   : > { %6097 = vrot.lane.b32.xlu0 %v16247_v46, %s16112_s30  ;;  %v3045_v31 = vpop.permute.xlu1 %3044  ;;  %v3544_v26 = vrot.slane %v12102_v30, 4  ;;  %v1686_v15 = vshrl.u32 %v1627_v45, 16  ;;  %v1389_v24 = vshrl.u32 %v1317_v44, 16  ;;  %v1392_v33 = vshll.u32 %v1317_v44, 16  ;;  %v12506_v4 = vld [vmem:[#allocation2 + $0x40] sm:$0xf] }
 0x1a4   : > { %v3053_v63 = vpop.permute.xlu2 %3052  ;;  %3132 = vst.msk [vmem:[#allocation3 + $0x54] sm:$0xe] %vm16248_vm5, %v3045_v31  ;;  %v12125_v42 = vunpack.c.l.b16 %v3266_v49  ;;  %v12127_v39 = vrot.slane %v3538_v60, 4  ;;  %v1881_v56 = vrot.slane %v1627_v45, 5  ;;  %v12129_v0 = vrot.slane %v1682_v55, 5 }
 0x1a5   : > { %v3043_v5 = vpop.permute.xlu0 %3042  ;;  %3136 = vst.msk [vmem:[#allocation3 + $0x64] sm:$0xf] %vm1240_vm12, %v3053_v63  ;;  %v1679_v1 = vor.u32 %v1678_v20, %v1675_v13  ;;  %v1688_v6 = vrot.slane %v1686_v15, 4  ;;  %v1391_v51 = vrot.slane %v1389_v24, 4  ;;  %v1394_v48 = vrot.slane %v1392_v33, 5 }
 0x1a6   : > { %3131 = vst.msk [vmem:[#allocation3 + $0x50] sm:$0x1] %vm16249_vm11, %v3043_v5  ;;  %v3552_v34 = vor.u32 %v3551_v3, %v3548_v29  ;;  %v1884_v40 = vrot.slane %v12120_v52, 5  ;;  %v1398_v44 = vshll.u32 %v12017_v62, 16  ;;  %v1402_v46 = vshrl.u32 %v12017_v62, 16 }
 0x1a7   : > { %v12137_v60 = vsel %vm11602_vm7, %v9647_v43, %v1881_v56  ;;  %v1689_v45 = vor.u32 %v1688_v6, %v12129_v0  ;;  %v1954_v49 = vshrl.u32 %v1929_v35, 16  ;;  %v1957_v31 = vshll.u32 %v1929_v35, 16  ;;  %v1296_v13 = vld [vmem:[#allocation2 + $0x5c] sm:$0x1]  ;;  %v1285_v62 = vld [vmem:[#allocation2 + $0x48] sm:$0xf] }
 0x1a8   : > { %v1692_v63 = vshll.u32 %v12120_v52, 16  ;;  %v1395_v29 = vor.u32 %v1394_v48, %v1391_v51  ;;  %v12143_v3 = vrot.slane %v1398_v44, 5  ;;  %v1404_v20 = vrot.slane %v1402_v46, 4  ;;  %v12161_v44 = vld [vmem:[#allocation3 + $0x30] sm:$0xe] }
 0x1a9   : > { %6219 = vrot.lane.b32.xlu1 %v6208_v12, %s16102_s14  ;;  %v1883_v43 = vrot.slane %v1881_v56, 4  ;;  %v1680_v55 = vrot.slane %v1679_v1, 4  ;;  %v1690_v5 = vrot.slane %v1689_v45, 4  ;;  %v1956_v15 = vrot.slane %v1954_v49, 4 }
 0x1aa   : > { %2379 = vrot.lane.b32.xlu2 %v10105_v32, %s16106_s19  ;;  %v1405_v12 = vor.u32 %v1404_v20, %v12143_v3  ;;  %v1959_v33 = vrot.slane %v1957_v31, 5  ;;  %v1963_v6 = vshll.u32 %v12028_v61, 16  ;;  %v1967_v52 = vshrl.u32 %v12028_v61, 16  ;;  %v12159_v32 = vld [vmem:[#allocation3 + $0x34] sm:$0xf] }
 0x1ab   : > { %2417 = vrot.lane.b32.xlu0 %v2409_v19, %s16102_s14  ;;  %v1189_v24 = vpop.permute.xlu1 %1188  ;;  %v3543_v56 = vsel %vm11630_vm15, %v12127_v39, %v12102_v30  ;;  %v3553_v1 = vsel %vm11630_vm15, %v3544_v26, %v3552_v34  ;;  %v2435_v48 = vunpack.c.l.b16 %v12137_v60  ;;  %v1694_v46 = vrot.slane %v1692_v63, 5  ;;  %v972_v60 = vld [vmem:[#allocation2 + $0x68] sm:$0x1] }
 0x1ac   : > { %v1197_v35 = vpop.permute.xlu2 %1196  ;;  %1288 = vst.msk [vmem:[#allocation2 + $0x4c] sm:$0xf] %vm1240_vm12, %v1189_v24  ;;  %v1396_v45 = vrot.slane %v1395_v29, 4  ;;  %v1408_v49 = vshll.u32 %v12006_v11, 16  ;;  %v1885_v30 = vsel %vm11602_vm7, %v1883_v43, %v1884_v40  ;;  %v1960_v39 = vor.u32 %v1959_v33, %v1956_v15  ;;  %v12174_v29 = vld [vmem:[#allocation3 + $0x38] sm:$0x1] }
 0x1ad   : > { %v1297_v51 = vsel %vm10640_vm8, %v1197_v35, %v1296_v13  ;;  %v1187_v19 = vpop.permute.xlu0 %1186  ;;  %v1965_v26 = vrot.slane %v1963_v6, 5  ;;  %v1969_v34 = vrot.slane %v1967_v52, 4  ;;  %v1685_v31 = vsel %vm11616_vm0, %v1680_v55, %v12129_v0 }
 0x1ae   : > { %1298 = vst [vmem:[#allocation2 + $0x5c] sm:$0x1] %v1297_v51  ;;  %v1286_v61 = vsel %vm10670_vm13, %v1187_v19, %v1285_v62  ;;  %v1695_v13 = vsel %vm11616_vm0, %v1690_v5, %v1694_v46  ;;  %v1406_v20 = vrot.slane %v1405_v12, 4  ;;  %v1973_v63 = vshll.u32 %v12008_v23, 16 }
 0x1af   : > { %1287 = vst [vmem:[#allocation2 + $0x48] sm:$0xf] %v1286_v61  ;;  %v1961_v11 = vrot.slane %v1960_v39, 4  ;;  %v1970_v62 = vor.u32 %v1969_v34, %v1965_v26  ;;  %v9778_v40 = vrot.slane %v12161_v44, 9  ;;  %v3425_v43 = vrot.slane %v12159_v32, 5 }
 0x1b0   : > { %v6156_v0 = vunpack.c.l.b16 %v3553_v1  ;;  %v2436_v55 = vunpack.c.l.b16 %v1885_v30  ;;  %v1410_v5 = vrot.slane %v1408_v49, 5  ;;  %v973_v23 = vsel %vm10650_vm9, 0, %v972_v60  ;;  %vm16250_vm9 = vmmov %vm16229_vm2  ;;  %v940_v49 = vld [vmem:[#allocation2 + $0x60] sm:$0x1]  ;;  %v1931_v30 = vld [vmem:[#allocation2 + $0x24] sm:$0xf] }
 0x1b1   : > { %2333 = vrot.lane.b32.xlu1 %v12100_v14, %s16110_s16  ;;  %v6075_v15 = vunpack.c.l.b16 %v3256_v36  ;;  %v12191_v24 = vunpack.c.l.b16 %v1685_v31  ;;  %v1401_v14 = vsel %vm11616_vm0, %v1396_v45, %v12143_v3  ;;  %974 = vst [vmem:[#allocation2 + $0x68] sm:$0x1] %v973_v23  ;;  %v6155_v12 = vunpack.c.l.b16 %v3543_v56  ;;  %v12205_v36 = vld [vmem:[#allocation2 + $0x2c] sm:$0x1]  ;;  %v1842_v56 = vld [vmem:[#allocation2 + $0x24] sm:$0xe] }
 0x1b2   : > { %2585 = vrot.lane.b32.xlu2 %v12106_v47, %s16062_s17  ;;  %v3428_v47 = vrot.slane %v12174_v29, 5  ;;  %v1411_v33 = vsel %vm11616_vm0, %v1406_v20, %v1410_v5  ;;  %v1975_v57 = vrot.slane %v1973_v63, 5  ;;  %v1966_v6 = vsel %vm11616_vm0, %v1961_v11, %v1965_v26  ;;  %v3650_v31 = vld [vmem:[#allocation3 + $0x30] sm:$0xc]  ;;  %v12231_v11 = vld [vmem:[#allocation3 + $0x38] sm:$0x3] }
 0x1b3   : > { %6139 = vrot.lane.b32.xlu0 %v12108_v58, %s16110_s16  ;;  %v3051_v21 = vpop.permute.xlu1 %3050  ;;  %v12199_v58 = vunpack.c.l.b16 %v1695_v13  ;;  %v1971_v52 = vrot.slane %v1970_v62, 4  ;;  %v12212_v51 = vsel %vm11602_vm7, %v9778_v40, %v3425_v43  ;;  %v3427_v19 = vrot.slane %v3425_v43, 4  ;;  %v12225_v13 = vld [vmem:[#allocation2 + $0x28] sm:$0xf]  ;;  %v1292_v40 = vld [vmem:[#allocation2 + $0x54] sm:$0xf] }
 0x1b4   : > { %v12197_v35 = vpop.permute.xlu2 %2519  ;;  %3135 = vst.msk [vmem:[#allocation3 + $0x60] sm:$0xe] %vm16250_vm9, %v3051_v21  ;;  %v6088_v1 = vpack.c.b16 %v12125_v42, %v6075_v15  ;;  %v6168_v61 = vpack.c.b16 %v6156_v0, %v6155_v12  ;;  %v2450_v46 = vpack.c.b16 %v2436_v55, %v2435_v48  ;;  %v12216_v45 = vunpack.c.l.b16 %v1401_v14  ;;  %v12233_v62 = vld [vmem:[#allocation2 + $0x28] sm:$0xf]  ;;  %v1535_v23 = vld [vmem:[#allocation2 + $0x24] sm:$0xe] }
 0x1b5   : > { %v3049_v3 = vpop.permute.xlu0 %3048  ;;  %v2410_v39 = vpack.c.b16 %v12199_v58, %v12191_v24  ;;  %v12220_v26 = vunpack.c.l.b16 %v1411_v33  ;;  %v3429_v34 = vsel %vm11602_vm7, %v3427_v19, %v3428_v47  ;;  %v1888_v60 = vrot.slane %v12203_v25, 5  ;;  %v1946_v19 = vld [vmem:[#allocation2 + $0x2c] sm:$0x1] }
 0x1b6   : > { %3134 = vst.msk [vmem:[#allocation3 + $0x5c] sm:$0x1] %vm16251_vm4, %v3049_v3  ;;  %v12227_v42 = vunpack.c.l.b16 %v1966_v6  ;;  %v6117_v48 = vunpack.c.l.b16 %v12212_v51  ;;  %v9648_v20 = vrot.slane %v1842_v56, 9  ;;  %v1891_v63 = vrot.slane %v12205_v36, 5 }
 0x1b7   : > { %v1976_v43 = vsel %vm11616_vm0, %v1971_v52, %v1975_v57  ;;  %v3703_v0 = vrot.slane %v12159_v32, 6  ;;  %v941_v55 = vsel %vm10640_vm8, 0, %v940_v49  ;;  %v1978_v5 = vshrl.u32 %v1931_v30, 16  ;;  %v2146_v57 = vld [vmem:[#allocation2 + $0x24] sm:$0xe] }
 0x1b8   : > { %v6118_v15 = vunpack.c.l.b16 %v3429_v34  ;;  %v9786_v24 = vrot.slane %v3650_v31, 10  ;;  %942 = vst [vmem:[#allocation2 + $0x60] sm:$0x1] %v941_v55  ;;  %v1981_v14 = vshll.u32 %v1931_v30, 16  ;;  %v1987_v47 = vshll.u32 %v12225_v13, 16 }
 0x1b9   : > { %6099 = vrot.lane.b32.xlu1 %v6088_v1, %s16112_s30  ;;  %v1890_v21 = vrot.slane %v1888_v60, 4  ;;  %v3706_v12 = vrot.slane %v12231_v11, 6  ;;  %v1980_v58 = vrot.slane %v1978_v5, 4  ;;  %v1991_v33 = vshrl.u32 %v12225_v13, 16 }
 0x1ba   : > { %6179 = vrot.lane.b32.xlu2 %v6168_v61, %s16106_s19  ;;  %v2522_v52 = vunpack.c.l.b16 %v1976_v43  ;;  %v12250_v51 = vsel %vm11602_vm7, %v9648_v20, %v1888_v60  ;;  %v1983_v56 = vrot.slane %v1981_v14, 5  ;;  %v12252_v1 = vrot.slane %v1987_v47, 5 }
 0x1bb   : > { %2459 = vrot.lane.b32.xlu0 %v2450_v46, %s16104_s20  ;;  %v1195_v3 = vpop.permute.xlu1 %1194  ;;  %v3705_v46 = vrot.slane %v3703_v0, 4  ;;  %v1993_v49 = vrot.slane %v1991_v33, 4  ;;  %v9641_v30 = vrot.slane %v1535_v23, 9  ;;  %v1590_v34 = vrot.slane %v12233_v62, 5 }
 0x1bc   : > { %v12246_v6 = vpop.permute.xlu2 %6173  ;;  %1295 = vst.msk [vmem:[#allocation2 + $0x58] sm:$0xf] %vm1240_vm12, %v1195_v3  ;;  %v12260_v43 = vsel %vm11504_vm6, %v9786_v24, %v3703_v0  ;;  %v1984_v60 = vor.u32 %v1983_v56, %v1980_v58  ;;  %v9655_v20 = vrot.slane %v2146_v57, 9  ;;  %v12264_v55 = vsel %vm11602_vm7, %v1890_v21, %v1891_v63  ;;  %v12275_v58 = vld [vmem:[#allocation2 + $0x2c] sm:$0x1] }
 0x1bd   : > { %v1193_v61 = vpop.permute.xlu0 %1192  ;;  %v12268_v5 = vsel %vm11504_vm6, %v3705_v46, %v3706_v12  ;;  %v1997_v23 = vshll.u32 %v1946_v19, 16  ;;  %v2186_v14 = vrot.slane %v12225_v13, 5  ;;  %v6129_v47 = vpack.c.b16 %v6118_v15, %v6117_v48  ;;  %v3155_v13 = vld [vmem:[#allocation3 + $0x30] sm:$0xf] }
 0x1be   : > { %v1293_v31 = vsel %vm10670_vm13, %v1193_v61, %v1292_v40  ;;  %v2283_v40 = vpack.c.b16 %v12220_v26, %v12216_v45  ;;  %v2437_v0 = vunpack.c.l.b16 %v12250_v51  ;;  %v1994_v24 = vor.u32 %v1993_v49, %v12252_v1 }
 0x1bf   : > { %1294 = vst [vmem:[#allocation2 + $0x54] sm:$0xf] %v1293_v31  ;;  %v2537_v63 = vpack.c.b16 %v2522_v52, %v12227_v42  ;;  %v6197_v21 = vunpack.c.l.b16 %v12260_v43  ;;  %v12281_v12 = vsel %vm11602_vm7, %v9641_v30, %v1590_v34  ;;  %v1592_v33 = vrot.slane %v1590_v34, 4 }
 0x1c0   : > { %v2438_v45 = vunpack.c.l.b16 %v12264_v55  ;;  %v6198_v26 = vunpack.c.l.b16 %v12268_v5  ;;  %v1985_v48 = vrot.slane %v1984_v60, 4  ;;  %v12289_v42 = vsel %vm11602_vm7, %v9655_v20, %v2186_v14 }
 0x1c1   : > { %2419 = vrot.lane.b32.xlu1 %v2410_v39, %s16102_s14  ;;  %v1999_v15 = vrot.slane %v1997_v23, 5  ;;  %v1593_v57 = vrot.slane %v12275_v58, 5  ;;  %v2188_v3 = vrot.slane %v2186_v14, 4  ;;  %v2189_v52 = vrot.slane %v1946_v19, 5 }
 0x1c2   : > { %2293 = vrot.lane.b32.xlu2 %v2283_v40, %s16112_s30  ;;  %v1995_v56 = vrot.slane %v1994_v24, 4  ;;  %v2311_v61 = vunpack.c.l.b16 %v12281_v12  ;;  %v3268_v46 = vshrl.u32 %v3155_v13, 16  ;;  %v3271_v49 = vshll.u32 %v3155_v13, 16 }
 0x1c3   : > { %2545 = vrot.lane.b32.xlu0 %v2537_v63, %s16252_s24  ;;  %v12293_v51 = vpop.permute.xlu1 %6213  ;;  %v1594_v34 = vsel %vm11602_vm7, %v1592_v33, %v1593_v57  ;;  %v2563_v31 = vunpack.c.l.b16 %v12289_v42  ;;  %v3277_v43 = vshll.u32 %v12159_v32, 16  ;;  %v3281_v19 = vshrl.u32 %v12159_v32, 16  ;;  %v10113_v63 = vld [vmem:[#allocation2 + $0x24] sm:$0xff] }
 0x1c4   : > { %v3059_v39 = vpop.permute.xlu2 %3058  ;;  %v1990_v60 = vsel %vm11616_vm0, %v1985_v48, %v12252_v1  ;;  %v3270_v20 = vrot.slane %v3268_v46, 4  ;;  %v3273_v55 = vrot.slane %v3271_v49, 5  ;;  %v3555_v5 = vshrl.u32 %v12161_v44, 16  ;;  %v10133_v42 = vld [vmem:[#allocation3 + $0x30] sm:$0xff]  ;;  %v2147_v49 = vld [vmem:[#allocation2 + $0x30] sm:$0xe] }
 0x1c5   : > { %3139 = vst.msk [vmem:[#allocation3 + $0x70] sm:$0xf] %vm1240_vm12, %v3059_v39  ;;  %v3055_v30 = vpop.permute.xlu0 %3054  ;;  %v2190_v23 = vsel %vm11602_vm7, %v2188_v3, %v2189_v52  ;;  %v12309_v14 = vrot.slane %v3277_v43, 5  ;;  %v3283_v40 = vrot.slane %v3281_v19, 4  ;;  %v3558_v24 = vshll.u32 %v12161_v44, 16 }
 0x1c6   : > { %3137 = vst.msk [vmem:[#allocation3 + $0x68] sm:$0x1] %vm16253_vm10, %v3055_v30  ;;  %v3274_v32 = vor.u32 %v3273_v55, %v3270_v20  ;;  %v3287_v12 = vshll.u32 %v12174_v29, 16  ;;  %v3563_v33 = vrot.slane %v3281_v19, 5  ;;  %v3564_v13 = vrot.slane %v3277_v43, 6 }
 0x1c7   : > { %v3557_v1 = vrot.slane %v3555_v5, 5  ;;  %v3560_v48 = vrot.slane %v3558_v24, 6  ;;  %v3569_v57 = vshrl.u32 %v12231_v11, 16  ;;  %v3572_v39 = vshll.u32 %v12231_v11, 16  ;;  %v1303_v3 = vld [vmem:[#allocation2 + $0x68] sm:$0x1] }
 0x1c8   : > { %v2000_v44 = vsel %vm11616_vm0, %v1995_v56, %v1999_v15  ;;  %v2312_v52 = vunpack.c.l.b16 %v1594_v34  ;;  %v2564_v46 = vunpack.c.l.b16 %v2190_v23  ;;  %v3284_v29 = vor.u32 %v3283_v40, %v12309_v14  ;;  %v12321_v11 = vld [vmem:[#allocation2 + $0x34] sm:$0xf]  ;;  %v1628_v56 = vld [vmem:[#allocation2 + $0x24] sm:$0xf] }
 0x1c9   : > { %6141 = vrot.lane.b32.xlu1 %v6129_v47, %s16110_s16  ;;  %v2451_v30 = vpack.c.b16 %v2438_v45, %v2437_v0  ;;  %v6209_v43 = vpack.c.b16 %v6198_v26, %v6197_v21  ;;  %v3571_v19 = vrot.slane %v3569_v57, 5  ;;  %v3574_v20 = vrot.slane %v3572_v39, 6 }
 0x1ca   : > { %2507 = vrot.lane.b32.xlu2 %v10113_v63, %s16081_s23  ;;  %v12323_v5 = vunpack.c.l.b16 %v1990_v60  ;;  %v3275_v24 = vrot.slane %v3274_v32, 4  ;;  %v3289_v63 = vrot.slane %v3287_v12, 5  ;;  %v12325_v15 = vor.u32 %v3564_v13, %v3563_v33 }
 0x1cb   : > { %6267 = vrot.lane.b32.xlu0 %v10133_v42, %s16104_s20  ;;  %v3057_v47 = vpop.permute.xlu1 %3056  ;;  %v12332_v21 = vunpack.c.l.b16 %v2000_v44  ;;  %v3561_v45 = vor.u32 %v3560_v48, %v3557_v1  ;;  %v9656_v26 = vrot.slane %v2147_v49, 9  ;;  %v2324_v23 = vpack.c.b16 %v2312_v52, %v2311_v61  ;;  %v10106_v48 = vld [vmem:[#allocation2 + $0x24] sm:$0xff] }
 0x1cc   : > { %v1203_v55 = vpop.permute.xlu2 %1202  ;;  %3138 = vst.msk [vmem:[#allocation3 + $0x6c] sm:$0xe] %vm16254_vm14, %v3057_v47  ;;  %v12334_v60 = vpack.c.b16 %v2564_v46, %v2563_v31  ;;  %v3285_v40 = vrot.slane %v3284_v29, 4  ;;  %v2193_v32 = vrot.slane %v12321_v11, 5  ;;  %v3575_v12 = vor.u32 %v3574_v20, %v3571_v19  ;;  %v12352_v46 = vld [vmem:[#allocation2 + $0x38] sm:$0x1] }
 0x1cd   : > { %v1304_v34 = vsel %vm10640_vm8, %v1203_v55, %v1303_v3  ;;  %v12330_v0 = vpop.permute.xlu0 %6133  ;;  %v1697_v33 = vshrl.u32 %v1628_v56, 16  ;;  %v1700_v13 = vshll.u32 %v1628_v56, 16  ;;  %v1706_v42 = vshll.u32 %v12203_v25, 16  ;;  %v1299_v20 = vld [vmem:[#allocation2 + $0x60] sm:$0xf]  ;;  %vm16258_vm8 = vmmov %vm16222_vm1 }
 0x1ce   : > { %1305 = vst [vmem:[#allocation2 + $0x68] sm:$0x1] %v1304_v34  ;;  %v2538_v57 = vpack.c.b16 %v12332_v21, %v12323_v5  ;;  %v3280_v1 = vsel %vm11616_vm0, %v3275_v24, %v12309_v14  ;;  %v3290_v61 = vsel %vm11616_vm0, %v3285_v40, %v3289_v63  ;;  %v3567_v31 = vrot.slane %v12325_v15, 4 }
 0x1cf   : > { %v3562_v39 = vrot.slane %v3561_v45, 4  ;;  %v12348_v3 = vsel %vm11602_vm7, %v9656_v26, %v2193_v32  ;;  %v1699_v44 = vrot.slane %v1697_v33, 4  ;;  %v1702_v52 = vrot.slane %v1700_v13, 5 }
 0x1d0   : > { %v2195_v14 = vrot.slane %v2193_v32, 4  ;;  %v12354_v29 = vrot.slane %v1706_v42, 5  ;;  %v1710_v49 = vshrl.u32 %v12203_v25, 16  ;;  %v1413_v19 = vshrl.u32 %v1319_v17, 16 }
 0x1d1   : > { %2461 = vrot.lane.b32.xlu1 %v2451_v30, %s16104_s20  ;;  %v12358_v47 = vunpack.c.l.b16 %v3280_v1  ;;  %v12360_v55 = vunpack.c.l.b16 %v3290_v61  ;;  %v3576_v30 = vsel %vm11630_vm15, %v3567_v31, %v3575_v12  ;;  %v1416_v5 = vshll.u32 %v1319_v17, 16  ;;  %v12378_v17 = vld [vmem:[#allocation3 + $0x40] sm:$0xf] }
 0x1d2   : > { %6221 = vrot.lane.b32.xlu2 %v6209_v43, %s16102_s14  ;;  %v1703_v63 = vor.u32 %v1702_v52, %v1699_v44  ;;  %v1712_v56 = vrot.slane %v1710_v49, 4  ;;  %v1415_v34 = vrot.slane %v1413_v19, 4  ;;  %v1422_v25 = vshll.u32 %v12233_v62, 16 }
 0x1d3   : > { %2381 = vrot.lane.b32.xlu0 %v10106_v48, %s16106_s19  ;;  %v12364_v43 = vpop.permute.xlu1 %6093  ;;  %v3566_v45 = vsel %vm11630_vm15, %v3562_v39, %v12325_v15  ;;  %v2196_v26 = vrot.slane %v12352_v46, 5  ;;  %v1418_v40 = vrot.slane %v1416_v5, 5  ;;  %v1426_v32 = vshrl.u32 %v12233_v62, 16  ;;  %v12381_v48 = vld [vmem:[#allocation3 + $0x3c] sm:$0xe] }
 0x1d4   : > { %v12366_v24 = vpop.permute.xlu2 %6215  ;;  %v2565_v33 = vunpack.c.l.b16 %v12348_v3  ;;  %v1713_v13 = vor.u32 %v1712_v56, %v12354_v29  ;;  %v1424_v42 = vrot.slane %v1422_v25, 5  ;;  %v6158_v1 = vunpack.c.l.b16 %v3576_v30 }
 0x1d5   : > { %16255 = vst [vmem:[#allocation30_spill] sm:$0xff] %v12366_v24  ;;  %v1199_v21 = vpop.permute.xlu0 %1198  ;;  %v1716_v61 = vshll.u32 %v12205_v36, 16  ;;  %v1419_v15 = vor.u32 %v1418_v40, %v1415_v34  ;;  %v1428_v31 = vrot.slane %v1426_v32, 4  ;;  %v6089_v62 = vpack.c.b16 %v12360_v55, %v12358_v47  ;;  %v12394_v47 = vld [vmem:[#allocation3 + $0x44] sm:$0x3] }
 0x1d6   : > { %v1300_v12 = vsel %vm10670_vm13, %v1199_v21, %v1299_v20  ;;  %v6157_v37 = vunpack.c.l.b16 %v3566_v45  ;;  %v12387_v39 = vsel %vm11602_vm7, %v2195_v14, %v2196_v26  ;;  %v1704_v44 = vrot.slane %v1703_v63, 4 }
 0x1d7   : > { %1301 = vst [vmem:[#allocation2 + $0x60] sm:$0xf] %v1300_v12  ;;  %v1714_v52 = vrot.slane %v1713_v13, 4  ;;  %v1429_v49 = vor.u32 %v1428_v31, %v1424_v42  ;;  %v16048_v19 = vshll.u32 %v12378_v17, 16  ;;  %v16047_v20 = vshrl.u32 %v12378_v17, 16 }
 0x1d8   : > { %v1420_v36 = vrot.slane %v1419_v15, 4  ;;  %v1432_v30 = vshll.u32 %v12275_v58, 16  ;;  %v3578_v55 = vshrl.u32 %v12381_v48, 16  ;;  %v3581_v14 = vshll.u32 %v12381_v48, 16  ;;  %v12418_v13 = vld [vmem:[#allocation3 + $0x44] sm:$0x1] }
 0x1d9   : > { %2547 = vrot.lane.b32.xlu1 %v2538_v57, %s16252_s24  ;;  %v6169_v5 = vpack.c.b16 %v6158_v1, %v6157_v37  ;;  %v2566_v63 = vunpack.c.l.b16 %v12387_v39  ;;  %v1718_v56 = vrot.slane %v1716_v61, 5  ;;  %v3586_v57 = vrot.slane %v16047_v20, 5  ;;  %v1321_v37 = vld [vmem:[#allocation2 + $0x30] sm:$0xf] }
 0x1da   : > { %2335 = vrot.lane.b32.xlu2 %v2324_v23, %s16110_s16  ;;  %v1430_v58 = vrot.slane %v1429_v49, 4  ;;  %v3580_v25 = vrot.slane %v3578_v55, 5  ;;  %v3583_v21 = vrot.slane %v3581_v14, 6  ;;  %v3587_v45 = vrot.slane %v16048_v19, 6  ;;  %v10107_v55 = vld [vmem:[#allocation2 + $0x30] sm:$0xff] }
 0x1db   : > { %2587 = vrot.lane.b32.xlu0 %v12334_v60, %s16062_s17  ;;  %v12403_v23 = vpop.permute.xlu1 %2559  ;;  %v1709_v60 = vsel %vm11616_vm0, %v1704_v44, %v12354_v29  ;;  %v1719_v40 = vsel %vm11616_vm0, %v1714_v52, %v1718_v56  ;;  %v3592_v32 = vshrl.u32 %v12394_v47, 16  ;;  %v3595_v12 = vshll.u32 %v12394_v47, 16  ;;  %v12424_v52 = vld [vmem:[#allocation2 + $0x34] sm:$0xf] }
 0x1dc   : > { %v12405_v34 = vpop.permute.xlu2 %2329  ;;  %v1425_v1 = vsel %vm11616_vm0, %v1420_v36, %v1424_v42  ;;  %v1434_v61 = vrot.slane %v1432_v30, 5  ;;  %v3584_v15 = vor.u32 %v3583_v21, %v3580_v25  ;;  %v3588_v31 = vor.u32 %v3587_v45, %v3586_v57 }
 0x1dd   : > { %v12409_v26 = vpop.permute.xlu0 %6261  ;;  %v3594_v39 = vrot.slane %v3592_v32, 5  ;;  %v3597_v49 = vrot.slane %v3595_v12, 6  ;;  %v9779_v29 = vrot.slane %v12381_v48, 9  ;;  %v3432_v44 = vrot.slane %v12378_v17, 5 }
 0x1de   : > { %v2397_v14 = vunpack.c.l.b16 %v1709_v60  ;;  %v1435_v56 = vsel %vm11616_vm0, %v1430_v58, %v1434_v61  ;;  %v3585_v20 = vrot.slane %v3584_v15, 4  ;;  %v3435_v42 = vrot.slane %v12418_v13, 5  ;;  %v12437_v61 = vld [vmem:[#allocation2 + $0x34] sm:$0xf] }
 0x1df   : > { %v2271_v36 = vunpack.c.l.b16 %v1425_v1  ;;  %v3590_v30 = vrot.slane %v3588_v31, 4  ;;  %v3598_v57 = vor.u32 %v3597_v49, %v3594_v39  ;;  %v1437_v25 = vshrl.u32 %v1321_v37, 16  ;;  %v1843_v49 = vld [vmem:[#allocation2 + $0x30] sm:$0xe] }
 0x1e0   : > { %v2398_v48 = vunpack.c.l.b16 %v1719_v40  ;;  %v3434_v21 = vrot.slane %v3432_v44, 4  ;;  %v1440_v45 = vshll.u32 %v1321_v37, 16  ;;  %v1446_v32 = vshll.u32 %v12424_v52, 16 }
 0x1e1   : > { %2383 = vrot.lane.b32.xlu1 %v10107_v55, %s16106_s19  ;;  %v2272_v60 = vunpack.c.l.b16 %v1435_v56  ;;  %v3599_v58 = vsel %vm11630_vm15, %v3590_v30, %v3598_v57  ;;  %v3433_v12 = vsel %vm11602_vm7, %v9779_v29, %v3432_v44  ;;  %v1439_v1 = vrot.slane %v1437_v25, 4  ;;  %v12450_v56 = vld [vmem:[#allocation2 + $0x38] sm:$0x1] }
 0x1e2   : > { %6101 = vrot.lane.b32.xlu2 %v6089_v62, %s16112_s30  ;;  %v2579_v62 = vpack.c.b16 %v2566_v63, %v2565_v33  ;;  %v3589_v40 = vsel %vm11630_vm15, %v3585_v20, %v3588_v31  ;;  %v1442_v37 = vrot.slane %v1440_v45, 5  ;;  %v2411_v44 = vpack.c.b16 %v2398_v48, %v2397_v14  ;;  %v3651_v31 = vld [vmem:[#allocation3 + $0x3c] sm:$0xc] }
 0x1e3   : > { %6181 = vrot.lane.b32.xlu0 %v6169_v5, %s16106_s19  ;;  %v1201_v15 = vpop.permute.xlu1 %1200  ;;  %v3436_v5 = vsel %vm11602_vm7, %v3434_v21, %v3435_v42  ;;  %v2284_v55 = vpack.c.b16 %v2272_v60, %v2271_v36  ;;  %v1448_v30 = vrot.slane %v1446_v32, 5  ;;  %v1450_v3 = vshrl.u32 %v12424_v52, 16  ;;  %v1933_v42 = vld [vmem:[#allocation2 + $0x30] sm:$0xf] }
 0x1e4   : > { %v12439_v39 = vpop.permute.xlu2 %6095  ;;  %1302 = vst.msk [vmem:[#allocation2 + $0x64] sm:$0xf] %vm1240_vm12, %v1201_v15  ;;  %v6160_v33 = vunpack.c.l.b16 %v3599_v58  ;;  %v6119_v63 = vunpack.c.l.b16 %v3433_v12  ;;  %v1443_v57 = vor.u32 %v1442_v37, %v1439_v1  ;;  %v1895_v20 = vrot.slane %v12437_v61, 5  ;;  %v12454_v15 = vld [vmem:[#allocation2 + $0x38] sm:$0x1] }
 0x1e5   : > { %v12448_v29 = vpop.permute.xlu0 %2599  ;;  %v6159_v25 = vunpack.c.l.b16 %v3589_v40  ;;  %v6120_v21 = vunpack.c.l.b16 %v3436_v5  ;;  %v1452_v45 = vrot.slane %v1450_v3, 4  ;;  %v9649_v19 = vrot.slane %v1843_v49, 9 }
 0x1e6   : > { %v1444_v14 = vrot.slane %v1443_v57, 4  ;;  %v1456_v36 = vshll.u32 %v12450_v56, 16  ;;  %v1897_v48 = vrot.slane %v1895_v20, 4  ;;  %v3710_v32 = vrot.slane %v12378_v17, 6 }
 0x1e7   : > { %v1453_v60 = vor.u32 %v1452_v45, %v1448_v30  ;;  %v9787_v58 = vrot.slane %v3651_v31, 10  ;;  %v3713_v12 = vrot.slane %v12394_v47, 6  ;;  %v2002_v1 = vshrl.u32 %v1933_v42, 16 }
 0x1e8   : > { %v6170_v40 = vpack.c.b16 %v6160_v33, %v6159_v25  ;;  %v1898_v5 = vrot.slane %v12454_v15, 5  ;;  %v6130_v37 = vpack.c.b16 %v6120_v21, %v6119_v63  ;;  %v1449_v49 = vsel %vm11616_vm0, %v1444_v14, %v1448_v30 }
 0x1e9   : > { %2589 = vrot.lane.b32.xlu1 %v2579_v62, %s16062_s17  ;;  %v1896_v3 = vsel %vm11602_vm7, %v9649_v19, %v1895_v20  ;;  %v3712_v57 = vrot.slane %v3710_v32, 4  ;;  %v2005_v33 = vshll.u32 %v1933_v42, 16  ;;  %v2011_v25 = vshll.u32 %v12321_v11, 16 }
 0x1ea   : > { %2421 = vrot.lane.b32.xlu2 %v2411_v44, %s16102_s14  ;;  %v1899_v62 = vsel %vm11602_vm7, %v1897_v48, %v1898_v5  ;;  %v2004_v44 = vrot.slane %v2002_v1, 4  ;;  %v1454_v21 = vrot.slane %v1453_v60, 4  ;;  %v1458_v45 = vrot.slane %v1456_v36, 5  ;;  %v12481_v60 = vld [vmem:[#allocation3 + $0x4c] sm:$0xf] }
 0x1eb   : > { %2295 = vrot.lane.b32.xlu0 %v2284_v55, %s16112_s30  ;;  %v12467_v31 = vpop.permute.xlu1 %6135  ;;  %v1536_v55 = vld [vmem:[#allocation2 + $0x30] sm:$0xe]  ;;  %v3711_v30 = vsel %vm11504_vm6, %v9787_v58, %v3710_v32  ;;  %v3714_v19 = vsel %vm11504_vm6, %v3712_v57, %v3713_v12  ;;  %v2439_v20 = vunpack.c.l.b16 %v1896_v3  ;;  %v2007_v14 = vrot.slane %v2005_v33, 5  ;;  %v3157_v36 = vld [vmem:[#allocation3 + $0x3c] sm:$0xf] }
 0x1ec   : > { %16256 = vst [vmem:[#allocation31_spill] sm:$0xff] %v12467_v31  ;;  %v12469_v47 = vpop.permute.xlu2 %6137  ;;  %v2013_v59 = vrot.slane %v2011_v25, 5  ;;  %v2015_v48 = vshrl.u32 %v12321_v11, 16  ;;  %v2273_v42 = vunpack.c.l.b16 %v1449_v49  ;;  %v2440_v1 = vunpack.c.l.b16 %v1899_v62  ;;  %v12483_v12 = vld [vmem:[#allocation3 + $0x50] sm:$0x3]  ;;  %v10114_v3 = vld [vmem:[#allocation2 + $0x30] sm:$0xff] }
 0x1ed   : > { %16257 = vst [vmem:[#allocation32_spill] sm:$0xff] %v12469_v47  ;;  %v3061_v63 = vpop.permute.xlu0 %3060  ;;  %v9642_v5 = vrot.slane %v1536_v55, 9  ;;  %v1597_v41 = vrot.slane %v12424_v52, 5  ;;  %v6199_v8 = vunpack.c.l.b16 %v3711_v30  ;;  %v6200_v32 = vunpack.c.l.b16 %v3714_v19  ;;  %v3652_v57 = vld [vmem:[#allocation3 + $0x48] sm:$0xc] }
 0x1ee   : > { %3140 = vst.msk [vmem:[#allocation3 + $0x74] sm:$0x1] %vm16258_vm8, %v3061_v63  ;;  %v2008_v58 = vor.u32 %v2007_v14, %v2004_v44  ;;  %v2017_v53 = vrot.slane %v2015_v48, 4  ;;  %v1459_v33 = vsel %vm11616_vm0, %v1454_v21, %v1458_v45  ;;  %v2021_v11 = vshll.u32 %v12352_v46, 16 }
 0x1ef   : > { %v1599_v49 = vrot.slane %v1597_v41, 4  ;;  %v1600_v62 = vrot.slane %v12450_v56, 5  ;;  %v1598_v44 = vsel %vm11602_vm7, %v9642_v5, %v1597_v41  ;;  %v3717_v55 = vrot.slane %v12481_v60, 6 }
 0x1f0   : > { %v2009_v52 = vrot.slane %v2008_v58, 4  ;;  %v2018_v25 = vor.u32 %v2017_v53, %v2013_v59  ;;  %v9788_v63 = vrot.slane %v3652_v57, 10  ;;  %v3720_v21 = vrot.slane %v12483_v12, 6 }
 0x1f1   : > { %6183 = vrot.lane.b32.xlu1 %v6170_v40, %s16106_s19  ;;  %v3292_v46 = vshrl.u32 %v3157_v36, 16  ;;  %v3295_v45 = vshll.u32 %v3157_v36, 16  ;;  %v2274_v40 = vunpack.c.l.b16 %v1459_v33  ;;  %v6210_v19 = vpack.c.b16 %v6200_v32, %v6199_v8  ;;  %v1537_v33 = vld [vmem:[#allocation2 + $0x3c] sm:$0xe] }
 0x1f2   : > { %6143 = vrot.lane.b32.xlu2 %v6130_v37, %s16110_s16  ;;  %v2452_v37 = vpack.c.b16 %v2440_v1, %v2439_v20  ;;  %v1601_v53 = vsel %vm11602_vm7, %v1599_v49, %v1600_v62  ;;  %v2014_v14 = vsel %vm11616_vm0, %v2009_v52, %v2013_v59  ;;  %v2019_v48 = vrot.slane %v2018_v25, 4  ;;  %v12514_v49 = vld [vmem:[#allocation2 + $0x44] sm:$0x1] }
 0x1f3   : > { %2509 = vrot.lane.b32.xlu0 %v10114_v3, %s16081_s23  ;;  %v12496_v30 = vpop.permute.xlu1 %6263  ;;  %v3719_v5 = vrot.slane %v3717_v55, 4  ;;  %v3294_v58 = vrot.slane %v3292_v46, 4  ;;  %v2285_v57 = vpack.c.b16 %v2274_v40, %v2273_v42  ;;  %v2023_v36 = vrot.slane %v2021_v11, 5  ;;  %v2148_v46 = vld [vmem:[#allocation2 + $0x3c] sm:$0xe] }
 0x1f4   : > { %16259 = vst [vmem:[#allocation33_spill] sm:$0xff] %v12496_v30  ;;  %v12498_v56 = vpop.permute.xlu2 %2457  ;;  %v2313_v3 = vunpack.c.l.b16 %v1598_v44  ;;  %v3297_v28 = vrot.slane %v3295_v45, 5  ;;  %v2314_v20 = vunpack.c.l.b16 %v1601_v53  ;;  %v3718_v8 = vsel %vm11504_vm6, %v9788_v63, %v3717_v55  ;;  %v12519_v44 = vld [vmem:[#allocation2 + $0x40] sm:$0xf] }
 0x1f5   : > { %v12502_v41 = vpop.permute.xlu0 %6175  ;;  %v3721_v1 = vsel %vm11504_vm6, %v3719_v5, %v3720_v21  ;;  %v16261_v32 = vshll.u32 %v12378_v17, 16  ;;  %v2525_v62 = vunpack.c.l.b16 %v2014_v14  ;;  %v16262_v11 = vshrl.u32 %v12378_v17, 16 }
 0x1f6   : > { %16260 = vst [vmem:[#allocation34_spill] sm:$0xff] %v12502_v41  ;;  %v3298_v42 = vor.u32 %v3297_v28, %v3294_v58  ;;  %v3311_v25 = vshll.u32 %v12418_v13, 16  ;;  %v2024_v55 = vsel %vm11616_vm0, %v2019_v48, %v2023_v36  ;;  %v6202_v63 = vunpack.c.l.b16 %v3721_v1  ;;  %v1630_v1 = vld [vmem:[#allocation2 + $0x30] sm:$0xf] }
 0x1f7   : > { %v3303_v59 = vrot.slane %v16261_v32, 5  ;;  %v3307_v52 = vrot.slane %v16262_v11, 4  ;;  %v9643_v21 = vrot.slane %v1537_v33, 9  ;;  %v1604_v45 = vrot.slane %v12506_v4, 5  ;;  %v12537_v33 = vld [vmem:[#allocation2 + $0x44] sm:$0x1] }
 0x1f8   : > { %v3299_v28 = vrot.slane %v3298_v42, 4  ;;  %v3313_v17 = vrot.slane %v3311_v25, 5  ;;  %v1607_v53 = vrot.slane %v12514_v49, 5  ;;  %v9657_v48 = vrot.slane %v2148_v46, 9 }
 0x1f9   : > { %2297 = vrot.lane.b32.xlu1 %v2285_v57, %s16112_s30  ;;  %v3308_v40 = vor.u32 %v3307_v52, %v3303_v59  ;;  %v12530_v13 = vsel %vm11602_vm7, %v9643_v21, %v1604_v45  ;;  %v1606_v14 = vrot.slane %v1604_v45, 4  ;;  %v2200_v5 = vrot.slane %v12519_v44, 5  ;;  %v3159_v45 = vld [vmem:[#allocation3 + $0x48] sm:$0xf] }
 0x1fa   : > { %2463 = vrot.lane.b32.xlu2 %v2452_v37, %s16104_s20  ;;  %v2526_v37 = vunpack.c.l.b16 %v2024_v55  ;;  %v6201_v36 = vunpack.c.l.b16 %v3718_v8  ;;  %v3304_v42 = vsel %vm11616_vm0, %v3299_v28, %v3303_v59  ;;  %v1721_v59 = vshrl.u32 %v1630_v1, 16  ;;  %v10115_v28 = vld [vmem:[#allocation2 + $0x3c] sm:$0xff] }
 0x1fb   : > { %6223 = vrot.lane.b32.xlu0 %v6210_v19, %s16102_s14  ;;  %v12533_v58 = vpop.permute.xlu1 %2377  ;;  %v2325_v19 = vpack.c.b16 %v2314_v20, %v2313_v3  ;;  %v3309_v11 = vrot.slane %v3308_v40, 4  ;;  %v12545_v52 = vsel %vm11602_vm7, %v1606_v14, %v1607_v53  ;;  %v12550_v8 = vsel %vm11602_vm7, %v9657_v48, %v2200_v5  ;;  %v12562_v21 = vld [vmem:[#allocation3 + $0x48] sm:$0xe] }
 0x1fc   : > { %v12535_v57 = vpop.permute.xlu2 %6265  ;;  %v2539_v25 = vpack.c.b16 %v2526_v37, %v2525_v62  ;;  %v6211_v46 = vpack.c.b16 %v6202_v63, %v6201_v36  ;;  %v2202_v3 = vrot.slane %v2200_v5, 4  ;;  %v2203_v20 = vrot.slane %v12537_v33, 5 }
 0x1fd   : > { %16263 = vst [vmem:[#allocation35_spill] sm:$0xff] %v12535_v57  ;;  %v12539_v32 = vpop.permute.xlu0 %2289  ;;  %v3314_v55 = vsel %vm11616_vm0, %v3309_v11, %v3313_v17  ;;  %v6079_v40 = vunpack.c.l.b16 %v3304_v42  ;;  %v2316_v53 = vunpack.c.l.b16 %v12545_v52  ;;  %v1724_v62 = vshll.u32 %v1630_v1, 16 }
 0x1fe   : > { %v1730_v63 = vshll.u32 %v12437_v61, 16  ;;  %v2567_v14 = vunpack.c.l.b16 %v12550_v8  ;;  %v1723_v37 = vrot.slane %v1721_v59, 4  ;;  %v1734_v48 = vshrl.u32 %v12437_v61, 16  ;;  %v12567_v8 = vld [vmem:[#allocation3 + $0x50] sm:$0x1] }
 0x1ff   : > { %v1740_v36 = vshll.u32 %v12454_v15, 16  ;;  %v6080_v17 = vunpack.c.l.b16 %v3314_v55  ;;  %v1726_v5 = vrot.slane %v1724_v62, 5  ;;  %v3316_v42 = vshrl.u32 %v3159_v45, 16 }
 0x200   : > { %v1732_v11 = vrot.slane %v1730_v63, 5  ;;  %v2204_v1 = vsel %vm11602_vm7, %v2202_v3, %v2203_v20  ;;  %v1736_v52 = vrot.slane %v1734_v48, 4  ;;  %v3319_v61 = vshll.u32 %v3159_v45, 16 }
 0x201   : > { %2511 = vrot.lane.b32.xlu1 %v10115_v28, %s16081_s23  ;;  %v3325_v15 = vshll.u32 %v12481_v60, 16  ;;  %v1727_v55 = vor.u32 %v1726_v5, %v1723_v37  ;;  %v1742_v28 = vrot.slane %v1740_v36, 5  ;;  %v3318_v62 = vrot.slane %v3316_v42, 4  ;;  %v10108_v5 = vld [vmem:[#allocation2 + $0x3c] sm:$0xff] }
 0x202   : > { %2549 = vrot.lane.b32.xlu2 %v2539_v25, %s16252_s24  ;;  %v3329_v63 = vshrl.u32 %v12481_v60, 16  ;;  %v3321_v27 = vrot.slane %v3319_v61, 5  ;;  %v3601_v20 = vshrl.u32 %v12562_v21, 16  ;;  %v3335_v38 = vshll.u32 %v12567_v8, 16 }
 0x203   : > { %2337 = vrot.lane.b32.xlu0 %v2325_v19, %s16110_s16  ;;  %v12570_v59 = vpop.permute.xlu1 %6177  ;;  %v1737_v19 = vor.u32 %v1736_v52, %v1732_v11  ;;  %v3327_v3 = vrot.slane %v3325_v15, 5  ;;  %v1728_v48 = vrot.slane %v1727_v55, 4  ;;  %v3604_v7 = vshll.u32 %v12562_v21, 16 }
 0x204   : > { %16264 = vst [vmem:[#allocation36_spill] sm:$0xff] %v12570_v59  ;;  %v12572_v25 = vpop.permute.xlu2 %2379  ;;  %v3331_v45 = vrot.slane %v3329_v63, 4  ;;  %v3322_v22 = vor.u32 %v3321_v27, %v3318_v62  ;;  %v3603_v37 = vrot.slane %v3601_v20, 5  ;;  %v3609_v36 = vrot.slane %v3329_v63, 5 }
 0x205   : > { %v12575_v50 = vpop.permute.xlu0 %6217  ;;  %v1738_v2 = vrot.slane %v1737_v19, 4  ;;  %v1733_v42 = vsel %vm11616_vm0, %v1728_v48, %v1732_v11  ;;  %v3606_v52 = vrot.slane %v3604_v7, 6  ;;  %v3610_v61 = vrot.slane %v3325_v15, 6  ;;  %v1632_v48 = vld [vmem:[#allocation2 + $0x3c] sm:$0xf] }
 0x206   : > { %16265 = vst [vmem:[#allocation37_spill] sm:$0xff] %v12575_v50  ;;  %v3332_v9 = vor.u32 %v3331_v45, %v3327_v3  ;;  %v6090_v30 = vpack.c.b16 %v6080_v17, %v6079_v40  ;;  %v2568_v24 = vunpack.c.l.b16 %v2204_v1  ;;  %v3323_v57 = vrot.slane %v3322_v22, 4 }
 0x207   : > { %v3615_v55 = vshrl.u32 %v12483_v12, 16  ;;  %v1743_v27 = vsel %vm11616_vm0, %v1738_v2, %v1742_v28  ;;  %v3337_v62 = vrot.slane %v3335_v38, 5  ;;  %v3607_v63 = vor.u32 %v3606_v52, %v3603_v37 }
 0x208   : > { %v2399_v11 = vunpack.c.l.b16 %v1733_v42  ;;  %v3611_v19 = vor.u32 %v3610_v61, %v3609_v36  ;;  %v3618_v40 = vshll.u32 %v12483_v12, 16  ;;  %v3333_v15 = vrot.slane %v3332_v9, 4 }
 0x209   : > { %6225 = vrot.lane.b32.xlu1 %v6211_v46, %s16102_s14  ;;  %v3617_v7 = vrot.slane %v3615_v55, 5  ;;  %v16266_v46 = vunpack.c.l.b16 %v12530_v13  ;;  %v2580_v2 = vpack.c.b16 %v2568_v24, %v2567_v14  ;;  %v2400_v38 = vunpack.c.l.b16 %v1743_v27  ;;  %v12603_v13 = vld [vmem:[#allocation2 + $0x40] sm:$0xf]  ;;  %v12608_v55 = vld [vmem:[#allocation2 + $0x44] sm:$0x1] }
 0x20a   : > { %2385 = vrot.lane.b32.xlu2 %v10108_v5, %s16106_s19  ;;  %v3620_v28 = vrot.slane %v3618_v40, 6  ;;  %v3338_v12 = vsel %vm11616_vm0, %v3333_v15, %v3337_v62  ;;  %v3608_v45 = vrot.slane %v3607_v63, 4  ;;  %v3439_v37 = vrot.slane %v12481_v60, 5  ;;  %v1323_v27 = vld [vmem:[#allocation2 + $0x3c] sm:$0xf] }
 0x20b   : > { %6103 = vrot.lane.b32.xlu0 %v6090_v30, %s16112_s30  ;;  %v12589_v17 = vpop.permute.xlu1 %2291  ;;  %v2326_v1 = vpack.c.b16 %v2316_v53, %v16266_v46  ;;  %v3328_v30 = vsel %vm11616_vm0, %v3323_v57, %v3327_v3  ;;  %v3442_v36 = vrot.slane %v12567_v8, 5  ;;  %v2412_v9 = vpack.c.b16 %v2400_v38, %v2399_v11 }
 0x20c   : > { %v12591_v22 = vpop.permute.xlu2 %2585  ;;  %v3613_v53 = vrot.slane %v3611_v19, 4  ;;  %v3621_v5 = vor.u32 %v3620_v28, %v3617_v7  ;;  %v9780_v24 = vrot.slane %v12562_v21, 9  ;;  %v6081_v14 = vunpack.c.l.b16 %v3328_v30 }
 0x20d   : > { %v12595_v20 = vpop.permute.xlu0 %2331  ;;  %v3441_v42 = vrot.slane %v3439_v37, 4  ;;  %v1745_v57 = vshrl.u32 %v1632_v48, 16  ;;  %v1748_v3 = vshll.u32 %v1632_v48, 16  ;;  %v6082_v52 = vunpack.c.l.b16 %v3338_v12 }
 0x20e   : > { %v3622_v61 = vsel %vm11630_vm15, %v3613_v53, %v3621_v5  ;;  %v1754_v60 = vshll.u32 %v12603_v13, 16  ;;  %v1758_v8 = vshrl.u32 %v12603_v13, 16  ;;  %v3612_v21 = vsel %vm11630_vm15, %v3608_v45, %v3611_v19 }
 0x20f   : > { %v3443_v62 = vsel %vm11602_vm7, %v3441_v42, %v3442_v36  ;;  %v1747_v63 = vrot.slane %v1745_v57, 4  ;;  %v1750_v11 = vrot.slane %v1748_v3, 5  ;;  %v6162_v7 = vunpack.c.l.b16 %v3622_v61  ;;  %v1844_v42 = vld [vmem:[#allocation2 + $0x3c] sm:$0xe] }
 0x210   : > { %v3440_v40 = vsel %vm11602_vm7, %v9780_v24, %v3439_v37  ;;  %v1756_v46 = vrot.slane %v1754_v60, 5  ;;  %v1760_v15 = vrot.slane %v1758_v8, 4  ;;  %v1764_v19 = vshll.u32 %v12608_v55, 16 }
 0x211   : > { %2339 = vrot.lane.b32.xlu1 %v2326_v1, %s16110_s16  ;;  %v1461_v30 = vshrl.u32 %v1323_v27, 16  ;;  %v1464_v28 = vshll.u32 %v1323_v27, 16  ;;  %v6091_v12 = vpack.c.b16 %v6082_v52, %v6081_v14  ;;  %v6122_v45 = vunpack.c.l.b16 %v3443_v62  ;;  %v10096_v62 = vld [vmem:[#allocation2] sm:$0xff] }
 0x212   : > { %2591 = vrot.lane.b32.xlu2 %v2580_v2, %s16062_s17  ;;  %v1751_v2 = vor.u32 %v1750_v11, %v1747_v63  ;;  %v1761_v36 = vor.u32 %v1760_v15, %v1756_v46  ;;  %v6161_v53 = vunpack.c.l.b16 %v3612_v21  ;;  %vm2625_vm12 = vcmask 64512   ;;  %v10097_v63 = vld [vmem:[#allocation2 + $0xc] sm:$0xff]  ;;  %s16279_s17 = smov 32  }
 0x213   : > { %2423 = vrot.lane.b32.xlu0 %v2412_v9, %s16102_s14  ;;  %v12621_v38 = vpop.permute.xlu1 %2505  ;;  %v1470_v9 = vshll.u32 %v12506_v4, 16  ;;  %v1463_v5 = vrot.slane %v1461_v30, 4  ;;  %v1466_v24 = vrot.slane %v1464_v28, 5  ;;  %v6121_v57 = vunpack.c.l.b16 %v3440_v40  ;;  %v12643_v28 = vld [vmem:[#allocation3 + $0x58] sm:$0xf] }
 0x214   : > { %v12623_v1 = vpop.permute.xlu2 %6179  ;;  %v1752_v37 = vrot.slane %v1751_v2, 4  ;;  %v1762_v3 = vrot.slane %v1761_v36, 4  ;;  %v1474_v60 = vshrl.u32 %v12506_v4, 16  ;;  %v6171_v8 = vpack.c.b16 %v6162_v7, %v6161_v53  ;;  %v3170_v53 = vld [vmem:[#allocation3 + $0x5c] sm:$0x1] }
 0x215   : > { %16267 = vst [vmem:[#allocation38_spill] sm:$0xff] %v12623_v1  ;;  %v12626_v48 = vpop.permute.xlu0 %6097  ;;  %v1472_v61 = vrot.slane %v1470_v9, 5  ;;  %v1766_v14 = vrot.slane %v1764_v19, 5  ;;  %v1467_v52 = vor.u32 %v1466_v24, %v1463_v5  ;;  %v6131_v11 = vpack.c.b16 %v6122_v45, %v6121_v57 }
 0x216   : > { %v1757_v27 = vsel %vm11616_vm0, %v1752_v37, %v1756_v46  ;;  %v1476_v21 = vrot.slane %v1474_v60, 4  ;;  %v1480_v15 = vshll.u32 %v12514_v49, 16  ;;  %v9650_v2 = vrot.slane %v1844_v42, 9 }
 0x217   : > { %vm2642_vm13 = vcmask 97280   ;;  %v1767_v4 = vsel %vm11616_vm0, %v1762_v3, %v1766_v14  ;;  %v1468_v7 = vrot.slane %v1467_v52, 4  ;;  %v1902_v40 = vrot.slane %v12603_v13, 5 }
 0x218   : > { %vm16268_vm1 = vcmask 31744   ;;  %v2401_v49 = vunpack.c.l.b16 %v1757_v27  ;;  %v1477_v30 = vor.u32 %v1476_v21, %v1472_v61  ;;  %v2402_v5 = vunpack.c.l.b16 %v1767_v4  ;;  %v1935_v27 = vld [vmem:[#allocation2 + $0x3c] sm:$0xf] }
 0x219   : > { %6105 = vrot.lane.b32.xlu1 %v6091_v12, %s16112_s30  ;;  %v2603_v46 = vsel %vm16268_vm1, %v10096_v62, %v12539_v32  ;;  %vm16269_vm2 = vmmov %vm16268_vm1  ;;  %v12645_v12 = vld [vmem:[#allocation3 + $0x54] sm:$0xe]  ;;  %v1473_v13 = vsel %vm11616_vm0, %v1468_v7, %v1472_v61  ;;  %v1903_v32 = vsel %vm11602_vm7, %v9650_v2, %v1902_v40  ;;  %v1904_v9 = vrot.slane %v1902_v40, 4  ;;  %v10098_v2 = vld [vmem:[#allocation2 + $0x18] sm:$0xff] }
 0x21a   : > { %6185 = vrot.lane.b32.xlu2 %v6171_v8, %s16106_s19  ;;  %v2606_v19 = vsel %vm16269_vm2, %v10097_v63, %v12589_v17  ;;  %v1905_v17 = vrot.slane %v12608_v55, 5  ;;  %v1478_v24 = vrot.slane %v1477_v30, 4  ;;  %v1482_v42 = vrot.slane %v1480_v15, 5  ;;  %v2748_v30 = vld [vmem:[%s16022_s4 + $0x10] sm:$0x3]  ;;  %vm16271_vm5 = vmmov %vm16268_vm1 }
 0x21b   : > { %6145 = vrot.lane.b32.xlu0 %v6131_v11, %s16110_s16  ;;  %v12647_v45 = vpop.permute.xlu1 %6219  ;;  %v2441_v57 = vunpack.c.l.b16 %v1903_v32  ;;  %v2275_v3 = vunpack.c.l.b16 %v1473_v13  ;;  %v9781_v8 = vrot.slane %v12645_v12, 9  ;;  %v3446_v61 = vrot.slane %v12643_v28, 5  ;;  %vm16290_vm2 = vmmov %vm16268_vm1 }
 0x21c   : > { %16270 = vst [vmem:[#allocation39_spill] sm:$0xff] %v12647_v45  ;;  %v2294_v36 = vpop.permute.xlu2 %2293  ;;  %v1906_v60 = vsel %vm11602_vm7, %v1904_v9, %v1905_v17  ;;  %vm2659_vm3 = vcmask 130048   ;;  %v1483_v14 = vsel %vm11616_vm0, %v1478_v24, %v1482_v42  ;;  %v3449_v52 = vrot.slane %v3170_v53, 5 }
 0x21d   : > { %v2418_v37 = vpop.permute.xlu0 %2417  ;;  %v2442_v55 = vunpack.c.l.b16 %v1906_v60  ;;  %v2627_v62 = vsel %vm2625_vm12, %v2603_v46, %v12405_v34  ;;  %v2413_v63 = vpack.c.b16 %v2402_v5, %v2401_v49  ;;  %v2276_v11 = vunpack.c.l.b16 %v1483_v14 }
 0x21e   : > { %v3448_v21 = vrot.slane %v3446_v61, 4  ;;  %v12664_v15 = vsel %vm2625_vm12, %v2606_v19, %v12595_v20  ;;  %v3359_v7 = vshll.u32 %v3170_v53, 16  ;;  %v2026_v40 = vshrl.u32 %v1935_v27, 16 }
 0x21f   : > { %v2453_v4 = vpack.c.b16 %v2442_v55, %v2441_v57  ;;  %v2286_v13 = vpack.c.b16 %v2276_v11, %v2275_v3  ;;  %v3447_v34 = vsel %vm11602_vm7, %v9781_v8, %v3446_v61  ;;  %v2029_v49 = vshll.u32 %v1935_v27, 16  ;;  %v12687_v57 = vld [vmem:[#allocation2 + $0x4c] sm:$0xf] }
 0x220   : > { %v3450_v46 = vsel %vm11602_vm7, %v3448_v21, %v3449_v52  ;;  %v12675_v20 = vsel %vm16271_vm5, %v10098_v2, %v2294_v36  ;;  %v2644_v19 = vsel %vm2642_vm13, %v2627_v62, %v12533_v58  ;;  %v2028_v32 = vrot.slane %v2026_v40, 4  ;;  %v1845_v58 = vld [vmem:[#allocation2 + $0x48] sm:$0xe]  ;;  %vm16311_vm5 = vmmov %vm16268_vm1 }
 0x221   : > { %2425 = vrot.lane.b32.xlu1 %v2413_v63, %s16102_s14  ;;  %v2035_v9 = vshll.u32 %v12519_v44, 16  ;;  %vm2676_vm11 = vcmask 162816   ;;  %v6124_v5 = vunpack.c.l.b16 %v3450_v46  ;;  %v2031_v24 = vrot.slane %v2029_v49, 5  ;;  %v1645_v63 = vld [vmem:[#allocation2 + $0x50] sm:$0x1] }
 0x222   : > { %2299 = vrot.lane.b32.xlu2 %v2286_v13, %s16112_s30  ;;  %v2039_v36 = vshrl.u32 %v12519_v44, 16  ;;  %v2758_v42 = vunpack.c.l.b16 %v2748_v30  ;;  %v2661_v3 = vsel %vm2659_vm3, %v2644_v19, %v2418_v37  ;;  %v12692_v8 = vrot.slane %v3359_v7, 5  ;;  %v3458_v30 = vld [vmem:[#allocation3 + $0x5c] sm:$0x3]  ;;  %v3653_v13 = vld [vmem:[#allocation3 + $0x54] sm:$0xc] }
 0x223   : > { %2465 = vrot.lane.b32.xlu0 %v2453_v4, %s16104_s20  ;;  %v12682_v17 = vpop.permute.xlu1 %2333  ;;  %v6123_v61 = vunpack.c.l.b16 %v3447_v34  ;;  %v2037_v27 = vrot.slane %v2035_v9, 5  ;;  %v2032_v14 = vor.u32 %v2031_v24, %v2028_v32  ;;  %v2045_v52 = vshll.u32 %v12537_v33, 16  ;;  %v10121_v33 = vld [vmem:[%s16022_s4 + $0x8] sm:$0xff] }
 0x224   : > { %v12684_v53 = vpop.permute.xlu2 %2507  ;;  %v2041_v55 = vrot.slane %v2039_v36, 4  ;;  %v2761_v62 = vpack.c.b16 %v2758_v42, %v2758_v42  ;;  %v3624_v44 = vshrl.u32 %v12645_v12, 16  ;;  %v3627_v11 = vshll.u32 %v12645_v12, 16  ;;  %v10116_v19 = vld [vmem:[#allocation2 + $0x48] sm:$0xff] }
 0x225   : > { %v12690_v60 = vpop.permute.xlu0 %6139  ;;  %v9651_v21 = vrot.slane %v1845_v58, 9  ;;  %v1909_v2 = vrot.slane %v12687_v57, 5  ;;  %v6132_v37 = vpack.c.b16 %v6124_v5, %v6123_v61  ;;  %v2033_v4 = vrot.slane %v2032_v14, 4 }
 0x226   : > { %16272 = vst [vmem:[#allocation40_spill] sm:$0xff] %v12690_v60  ;;  %v2042_v40 = vor.u32 %v2041_v55, %v2037_v27  ;;  %vm16273_vm9 = vcmask 1041408   ;;  %v1782_v34 = vshrl.u32 %v12687_v57, 16  ;;  %v1912_v49 = vrot.slane %v1645_v63, 5 }
 0x227   : > { %v2782_v7 = vsel %vm16273_vm9, %v2761_v62, 0  ;;  %v1910_v12 = vsel %vm11602_vm7, %v9651_v21, %v1909_v2  ;;  %v1911_v46 = vrot.slane %v1909_v2, 4  ;;  %v2038_v32 = vsel %vm11616_vm0, %v2033_v4, %v2037_v27  ;;  %vm16312_vm9 = vmmov %vm16268_vm1 }
 0x228   : > { %2789 = vmatpush.bf16.msra.mxu1 %v2782_v7  ;;  %v2043_v9 = vrot.slane %v2042_v40, 4  ;;  %v2047_v5 = vrot.slane %v2045_v52, 5  ;;  %v1788_v24 = vshll.u32 %v1645_v63, 16  ;;  %v2527_v36 = vunpack.c.l.b16 %v2038_v32  ;;  %v10120_v7 = vld [vmem:[%s16022_s4] sm:$0xff] }
 0x229   : > { %6147 = vrot.lane.b32.xlu1 %v6132_v37, %s16110_s16  ;;  %v1913_v42 = vsel %vm11602_vm7, %v1911_v46, %v1912_v49  ;;  %v3638_v58 = vshrl.u32 %v3458_v30, 16  ;;  %v9789_v61 = vrot.slane %v3653_v13, 10  ;;  %v2443_v21 = vunpack.c.l.b16 %v1910_v12  ;;  %v1937_v13 = vld [vmem:[#allocation2 + $0x48] sm:$0xf] }
 0x22a   : > { %2513 = vrot.lane.b32.xlu2 %v10116_v19, %s16081_s23  ;;  %v2048_v14 = vsel %vm11616_vm0, %v2043_v9, %v2047_v5  ;;  %v2444_v27 = vunpack.c.l.b16 %v1913_v42  ;;  %v3724_v52 = vrot.slane %v12643_v28, 6  ;;  %v2678_v63 = vsel %vm2676_vm11, %v2661_v3, %v12498_v56  ;;  %v12731_v56 = vld [vmem:[#allocation2 + $0x4c] sm:$0xf]  ;;  %v12739_v9 = vld [vmem:[#allocation2 + $0x50] sm:$0x1] }
 0x22b   : > { %v12713_v55 = vpop.permute.xlu1 %6099  ;;  %v12720_v2 = vrot.slane %v3624_v44, 5  ;;  %v2528_v37 = vunpack.c.l.b16 %v2048_v14  ;;  %v3727_v40 = vrot.slane %v3458_v30, 6  ;;  %v12727_v46 = vrot.slane %v3627_v11, 6 }
 0x22c   : > { %16274 = vst [vmem:[#allocation41_spill] sm:$0xff] %v12713_v55  ;;  %v12715_v62 = vpop.permute.xlu2 %6221  ;;  %2790 = vmatpush.bf16.msra.mxu1 %v10121_v33  ;;  %v3641_v12 = vshll.u32 %v3458_v30, 16  ;;  %v3725_v49 = vsel %vm11504_vm6, %v9789_v61, %v3724_v52  ;;  %v3726_v19 = vrot.slane %v3724_v52, 4  ;;  %v12733_v44 = vrot.slane %v1782_v34, 4 }
 0x22d   : > { %16275 = vst [vmem:[#allocation42_spill] sm:$0xff] %v12715_v62  ;;  %v12722_v4 = vpop.permute.xlu0 %2459  ;;  %v2540_v3 = vpack.c.b16 %v2528_v37, %v2527_v36  ;;  %v12735_v32 = vrot.slane %v1788_v24, 5  ;;  %v12737_v33 = vrot.slane %v3638_v58, 5  ;;  %v2454_v5 = vpack.c.b16 %v2444_v27, %v2443_v21  ;;  %v12745_v24 = vld [vmem:[#allocation2 + $0x4c] sm:$0xf] }
 0x22e   : > { %v3728_v11 = vsel %vm11504_vm6, %v3726_v19, %v3727_v40  ;;  %v6203_v30 = vunpack.c.l.b16 %v3725_v49  ;;  %vm2693_vm4 = vcmask 195584   ;;  %v2050_v61 = vshrl.u32 %v1937_v13, 16  ;;  %v1538_v27 = vld [vmem:[#allocation2 + $0x48] sm:$0xe]  ;;  %v12752_v49 = vld [vmem:[#allocation2 + $0x50] sm:$0x1] }
 0x22f   : > { %2551 = vrot.lane.b32.xlu0 %v2540_v3, %s16252_s24  ;;  %v6204_v42 = vunpack.c.l.b16 %v3728_v11  ;;  %v2053_v36 = vshll.u32 %v1937_v13, 16  ;;  %v2059_v34 = vshll.u32 %v12731_v56, 16  ;;  %v12748_v58 = vrot.slane %v3641_v12, 6  ;;  %v10109_v62 = vld [vmem:[#allocation2 + $0x48] sm:$0xff] }
 0x230   : > { %2791 = vmatpush.bf16.msra.mxu1 %v10120_v7  ;;  %vm2710_vm10 = vcmask 228352   ;;  %v2063_v14 = vshrl.u32 %v12731_v56, 16  ;;  %v2069_v21 = vshll.u32 %v12739_v9, 16  ;;  %v2052_v37 = vrot.slane %v2050_v61, 4 }
 0x231   : > { %2467 = vrot.lane.b32.xlu1 %v2454_v5, %s16104_s20  ;;  %v6212_v52 = vpack.c.b16 %v6204_v42, %v6203_v30  ;;  %v2055_v40 = vrot.slane %v2053_v36, 5  ;;  %v2061_v7 = vrot.slane %v2059_v34, 5  ;;  %v2646_v13 = vsel %vm2642_vm13, %v12664_v15, %v12572_v25  ;;  %v2149_v36 = vld [vmem:[#allocation2 + $0x48] sm:$0xe] }
 0x232   : > { %v2695_v12 = vsel %vm2693_vm4, %v2678_v63, %v12621_v38  ;;  %vm2727_vm14 = vcmask 261120   ;;  %v2065_v5 = vrot.slane %v2063_v14, 4  ;;  %vm2764_vm8 = vcmask 293888  }
 0x233   : > { %v2420_v19 = vpop.permute.xlu1 %2419  ;;  %6227 = vrot.lane.b32.xlu2 %v6212_v52, %s16102_s14  ;;  %v2056_v30 = vor.u32 %v2055_v40, %v2052_v37  ;;  %v9644_v42 = vrot.slane %v1538_v27, 9  ;;  %v1611_v61 = vrot.slane %v12745_v24, 5  ;;  %v2071_v15 = vrot.slane %v2069_v21, 5 }
 0x234   : > { %v12757_v3 = vpop.permute.xlu2 %2335  ;;  %v2066_v25 = vor.u32 %v2065_v5, %v2061_v7  ;;  %v1614_v50 = vrot.slane %v12752_v49, 5  ;;  %v9658_v40 = vrot.slane %v2149_v36, 9  ;;  %v1498_v5 = vshrl.u32 %v12745_v24, 16 }
 0x235   : > { %v2546_v11 = vpop.permute.xlu0 %2545  ;;  %v2057_v63 = vrot.slane %v2056_v30, 4  ;;  %v1612_v14 = vsel %vm11602_vm7, %v9644_v42, %v1611_v61  ;;  %v1613_v52 = vrot.slane %v1611_v61, 4  ;;  %v3161_v30 = vld [vmem:[#allocation3 + $0x54] sm:$0xf] }
 0x236   : > { %v2712_v34 = vsel %vm2710_vm10, %v2695_v12, %v2546_v11  ;;  %v2067_v27 = vrot.slane %v2066_v25, 4  ;;  %v2317_v37 = vunpack.c.l.b16 %v1612_v14  ;;  %v2207_v12 = vrot.slane %v12731_v56, 5 }
 0x237   : > { %v2729_v38 = vsel %vm2727_vm14, %v2712_v34, %v12591_v22  ;;  %2387 = vrot.lane.b32.xlu0 %v10109_v62, %s16106_s19  ;;  %v2062_v21 = vsel %vm11616_vm0, %v2057_v63, %v2061_v7  ;;  %v1504_v22 = vshll.u32 %v12752_v49, 16  ;;  %v1615_v11 = vsel %vm11602_vm7, %v1613_v52, %v1614_v50 }
 0x238   : > { %9766 = vmatmul.msk.bf16.vlgmr.msra.gmra.mxu1 %vm2764_vm8, %v2729_v38  ;;  %v2072_v42 = vsel %vm11616_vm0, %v2067_v27, %v2071_v15  ;;  %v2529_v61 = vunpack.c.l.b16 %v2062_v21  ;;  %v2318_v36 = vunpack.c.l.b16 %v1615_v11  ;;  %v2208_v56 = vsel %vm11602_vm7, %v9658_v40, %v2207_v12 }
 0x239   : > { %v2530_v62 = vunpack.c.l.b16 %v2072_v42  ;;  %v2209_v34 = vrot.slane %v2207_v12, 4  ;;  %v2210_v7 = vrot.slane %v12739_v9, 5  ;;  %v2569_v25 = vunpack.c.l.b16 %v2208_v56  ;;  %v12793_v12 = vld [vmem:[#allocation2 + $0x58] sm:$0xf]  ;;  %v2150_v42 = vld [vmem:[#allocation2 + $0x54] sm:$0xe] }
 0x23a   : > { %v2327_v38 = vpack.c.b16 %v2318_v36, %v2317_v37  ;;  %v3340_v49 = vshrl.u32 %v3161_v30, 16  ;;  %v3343_v14 = vshll.u32 %v3161_v30, 16  ;;  %v3349_v50 = vshll.u32 %v12643_v28, 16 }
 0x23b   : > { %v12783_v63 = vpop.permute.xlu1 %6141  ;;  %v2541_v52 = vpack.c.b16 %v2530_v62, %v2529_v61  ;;  %v12786_v45 = vrot.slane %v1498_v5, 4  ;;  %v2211_v15 = vsel %vm11602_vm7, %v2209_v34, %v2210_v7  ;;  %v3353_v40 = vshrl.u32 %v12643_v28, 16  ;;  %v12799_v5 = vld [vmem:[#allocation2 + $0x5c] sm:$0x1]  ;;  %v1634_v62 = vld [vmem:[#allocation2 + $0x48] sm:$0xf] }
 0x23c   : > { %16276 = vst [vmem:[#allocation43_spill] sm:$0xff] %v12783_v63  ;;  %v2663_v9 = vsel %vm2659_vm3, %v2646_v13, %v2420_v19  ;;  %2341 = vrot.lane.b32.xlu2 %v2327_v38, %s16110_s16  ;;  %v2570_v37 = vunpack.c.l.b16 %v2211_v15  ;;  %v12797_v21 = vpop.permute.xlu2 %6101  ;;  %v3342_v11 = vrot.slane %v3340_v49, 4  ;;  %v3345_v30 = vrot.slane %v3343_v14, 5 }
 0x23d   : > { %v12790_v27 = vpop.permute.xlu0 %6267  ;;  %16278 = vst [vmem:[#allocation45_spill] sm:$0xff] %v12797_v21  ;;  %2553 = vrot.lane.b32.xlu1 %v2541_v52, %s16252_s24  ;;  %v3351_v61 = vrot.slane %v3349_v50, 5  ;;  %v3355_v36 = vrot.slane %v3353_v40, 4  ;;  %v3630_v28 = vor.u32 %v12727_v46, %v12720_v2  ;;  %v3632_v56 = vrot.slane %v3353_v40, 5 }
 0x23e   : > { %16277 = vst [vmem:[#allocation44_spill] sm:$0xff] %v12790_v27  ;;  %v2581_v13 = vpack.c.b16 %v2570_v37, %v2569_v25  ;;  %v3346_v19 = vor.u32 %v3345_v30, %v3342_v11  ;;  %v3633_v34 = vrot.slane %v3349_v50, 6  ;;  %v3644_v7 = vor.u32 %v12748_v58, %v12737_v33 }
 0x23f   : > { %v3356_v38 = vor.u32 %v3355_v36, %v3351_v61  ;;  %v3631_v49 = vrot.slane %v3630_v28, 4  ;;  %v9659_v14 = vrot.slane %v2150_v42, 9  ;;  %v2214_v15 = vrot.slane %v12793_v12, 5  ;;  %v10110_v28 = vld [vmem:[#allocation2 + $0x54] sm:$0xff] }
 0x240   : > { %2593 = vrot.lane.b32.xlu0 %v2581_v13, %s16279_s17  ;;  %v3347_v52 = vrot.slane %v3346_v19, 4  ;;  %v3634_v27 = vor.u32 %v3633_v34, %v3632_v56  ;;  %v2217_v63 = vrot.slane %v12799_v5, 5  ;;  %v1769_v2 = vshrl.u32 %v1634_v62, 16  ;;  %v1325_v13 = vld [vmem:[#allocation2 + $0x48] sm:$0xf] }
 0x241   : > { %v3357_v46 = vrot.slane %v3356_v38, 4  ;;  %v2215_v25 = vsel %vm11602_vm7, %v9659_v14, %v2214_v15  ;;  %v2216_v50 = vrot.slane %v2214_v15, 4  ;;  %v1772_v40 = vshll.u32 %v1634_v62, 16  ;;  %v1327_v14 = vld [vmem:[#allocation2 + $0x54] sm:$0xf] }
 0x242   : > { %v3352_v33 = vsel %vm11616_vm0, %v3347_v52, %v3351_v61  ;;  %v3635_v58 = vsel %vm11630_vm15, %v3631_v49, %v3634_v27  ;;  %v3636_v37 = vrot.slane %v3634_v27, 4  ;;  %v2571_v30 = vunpack.c.l.b16 %v2215_v25 }
 0x243   : > { %v12815_v11 = vpop.permute.xlu1 %2461  ;;  %v2680_v42 = vsel %vm2676_vm11, %v2663_v9, %v12722_v4  ;;  %v12819_v36 = vrot.slane %v1504_v22, 5  ;;  %v3362_v56 = vsel %vm11616_vm0, %v3357_v46, %v12692_v8  ;;  %v2218_v61 = vsel %vm11602_vm7, %v2216_v50, %v2217_v63 }
 0x244   : > { %v6083_v27 = vunpack.c.l.b16 %v3352_v33  ;;  %v6084_v19 = vunpack.c.l.b16 %v3362_v56  ;;  %v3645_v34 = vsel %vm11630_vm15, %v3636_v37, %v3644_v7  ;;  %v2572_v38 = vunpack.c.l.b16 %v2218_v61  ;;  %v12831_v15 = vpop.permute.xlu2 %2421  ;;  %v12835_v37 = vld [vmem:[#allocation2 + $0x58] sm:$0xf] }
 0x245   : > { %v12824_v62 = vpop.permute.xlu0 %2381  ;;  %2389 = vrot.lane.b32.xlu1 %v10110_v28, %s16106_s19  ;;  %v6163_v4 = vunpack.c.l.b16 %v3635_v58  ;;  %v6164_v22 = vunpack.c.l.b16 %v3645_v34  ;;  %v1771_v9 = vrot.slane %v1769_v2, 4  ;;  %v1774_v49 = vrot.slane %v1772_v40, 5 }
 0x246   : > { %v6092_v8 = vpack.c.b16 %v6084_v19, %v6083_v27  ;;  %v2582_v52 = vpack.c.b16 %v2572_v38, %v2571_v30  ;;  %v1778_v63 = vshll.u32 %v12687_v57, 16  ;;  %v1485_v46 = vshrl.u32 %v1325_v13, 16 }
 0x247   : > { %v6172_v25 = vpack.c.b16 %v6164_v22, %v6163_v4  ;;  %v1775_v50 = vor.u32 %v1774_v49, %v1771_v9  ;;  %v1488_v33 = vshll.u32 %v1325_v13, 16  ;;  %v1494_v7 = vshll.u32 %v12745_v24, 16  ;;  %v12848_v9 = vld [vmem:[#allocation2 + $0x5c] sm:$0x1]  ;;  %v1846_v49 = vld [vmem:[#allocation2 + $0x54] sm:$0xe] }
 0x248   : > { %6107 = vrot.lane.b32.xlu2 %v6092_v8, %s16112_s30  ;;  %v1780_v58 = vrot.slane %v1778_v63, 5  ;;  %v1487_v2 = vrot.slane %v1485_v46, 4  ;;  %v2697_v40 = vsel %vm2693_vm4, %v2680_v42, %v12684_v53  ;;  %v1509_v28 = vshrl.u32 %v1327_v14, 16 }
 0x249   : > { %6187 = vrot.lane.b32.xlu0 %v6172_v25, %s16106_s19  ;;  %v1776_v30 = vrot.slane %v1775_v50, 4  ;;  %v1490_v57 = vrot.slane %v1488_v33, 5  ;;  %v1496_v56 = vrot.slane %v1494_v7, 5  ;;  %v1512_v61 = vshll.u32 %v1327_v14, 16 }
 0x24a   : > { %v1785_v13 = vor.u32 %v12733_v44, %v1780_v58  ;;  %v1511_v24 = vrot.slane %v1509_v28, 4  ;;  %v1518_v19 = vshll.u32 %v12835_v37, 16  ;;  %v1522_v34 = vshrl.u32 %v12835_v37, 16 }
 0x24b   : > { %v2548_v27 = vpop.permute.xlu1 %2547  ;;  %v1781_v38 = vsel %vm11616_vm0, %v1776_v30, %v1780_v58  ;;  %v1491_v4 = vor.u32 %v1490_v57, %v1487_v2  ;;  %v1501_v53 = vor.u32 %v12786_v45, %v1496_v56  ;;  %v1514_v63 = vrot.slane %v1512_v61, 5  ;;  %v12857_v2 = vld [vmem:[#allocation2 + $0x58] sm:$0xf]  ;;  %v12864_v61 = vld [vmem:[#allocation2 + $0x5c] sm:$0x1] }
 0x24c   : > { %v2714_v42 = vsel %vm2710_vm10, %v2697_v40, %v2548_v27  ;;  %v1786_v14 = vrot.slane %v1785_v13, 4  ;;  %v2403_v44 = vunpack.c.l.b16 %v1781_v38  ;;  %v1520_v50 = vrot.slane %v1518_v19, 5  ;;  %v1939_v13 = vld [vmem:[#allocation2 + $0x54] sm:$0xf]  ;;  %v12869_v19 = vpop.permute.xlu2 %6143 }
 0x24d   : > { %v2588_v22 = vpop.permute.xlu0 %2587  ;;  %2595 = vrot.lane.b32.xlu1 %v2582_v52, %s16279_s17  ;;  %v1492_v46 = vrot.slane %v1491_v4, 4  ;;  %v1502_v25 = vrot.slane %v1501_v53, 4  ;;  %v1524_v33 = vrot.slane %v1522_v34, 4  ;;  %v1515_v7 = vor.u32 %v1514_v63, %v1511_v24  ;;  %16280 = vst [vmem:[#allocation46_spill] sm:$0xff] %v12869_v19 }
 0x24e   : > { %v2731_v8 = vsel %vm2727_vm14, %v2714_v42, %v2588_v22  ;;  %v1791_v45 = vsel %vm11616_vm0, %v1786_v14, %v12735_v32  ;;  %v1528_v58 = vshll.u32 %v12848_v9, 16  ;;  %v9652_v40 = vrot.slane %v1846_v49, 9 }
 0x24f   : > { %9767 = vmatmul.msk.bf16.gmra.mxu1 %vm2764_vm8, %v2731_v8  ;;  %v2404_v28 = vunpack.c.l.b16 %v1791_v45  ;;  %v1497_v52 = vsel %vm11616_vm0, %v1492_v46, %v1496_v56  ;;  %v1507_v30 = vsel %vm11616_vm0, %v1502_v25, %v12819_v36  ;;  %v1525_v57 = vor.u32 %v1524_v33, %v1520_v50  ;;  %v1539_v46 = vld [vmem:[#allocation2 + $0x54] sm:$0xe] }
 0x250   : > { %v2631_v32 = vsel %vm2625_vm12, %v12675_v20, %v12682_v17  ;;  %v2277_v27 = vunpack.c.l.b16 %v1497_v52  ;;  %v2278_v24 = vunpack.c.l.b16 %v1507_v30  ;;  %v1516_v34 = vrot.slane %v1515_v7, 4  ;;  %v1636_v52 = vld [vmem:[#allocation2 + $0x54] sm:$0xf] }
 0x251   : > { %v2414_v38 = vpack.c.b16 %v2404_v28, %v2403_v44  ;;  %v1526_v4 = vrot.slane %v1525_v57, 4  ;;  %v1530_v56 = vrot.slane %v1528_v58, 5  ;;  %v1916_v53 = vrot.slane %v12857_v2, 5 }
 0x252   : > { %v2287_v42 = vpack.c.b16 %v2278_v24, %v2277_v27  ;;  %v1521_v36 = vsel %vm11616_vm0, %v1516_v34, %v1520_v50  ;;  %v1919_v22 = vrot.slane %v12864_v61, 5  ;;  %v2074_v14 = vshrl.u32 %v1939_v13, 16 }
 0x253   : > { %v12875_v49 = vpop.permute.xlu1 %2383  ;;  %2427 = vrot.lane.b32.xlu2 %v2414_v38, %s16102_s14  ;;  %v1531_v20 = vsel %vm11616_vm0, %v1526_v4, %v1530_v56  ;;  %v2279_v17 = vunpack.c.l.b16 %v1521_v36  ;;  %v1917_v44 = vsel %vm11602_vm7, %v9652_v40, %v1916_v53  ;;  %v1918_v8 = vrot.slane %v1916_v53, 4 }
 0x254   : > { %v2648_v25 = vsel %vm2642_vm13, %v2631_v32, %v12824_v62  ;;  %2301 = vrot.lane.b32.xlu0 %v2287_v42, %s16112_s30  ;;  %v2280_v50 = vunpack.c.l.b16 %v1531_v20  ;;  %v2445_v33 = vunpack.c.l.b16 %v1917_v44  ;;  %v2076_v45 = vrot.slane %v2074_v14, 4  ;;  %v12897_v14 = vpop.permute.xlu2 %2463 }
 0x255   : > { %v12882_v63 = vpop.permute.xlu0 %6181  ;;  %v1920_v7 = vsel %vm11602_vm7, %v1918_v8, %v1919_v22  ;;  %v2077_v58 = vshll.u32 %v1939_v13, 16  ;;  %v2083_v28 = vshll.u32 %v12793_v12, 16  ;;  %v2087_v40 = vshrl.u32 %v12793_v12, 16 }
 0x256   : > { %16281 = vst [vmem:[#allocation47_spill] sm:$0xff] %v12882_v63  ;;  %v2288_v30 = vpack.c.b16 %v2280_v50, %v2279_v17  ;;  %v2446_v57 = vunpack.c.l.b16 %v1920_v7  ;;  %v2093_v27 = vshll.u32 %v12799_v5, 16  ;;  %v9645_v24 = vrot.slane %v1539_v46, 9  ;;  %v10117_v5 = vld [vmem:[#allocation2 + $0x54] sm:$0xff]  ;;  %v10099_v63 = vld [vmem:[#allocation2 + $0x24] sm:$0xff] }
 0x257   : > { %v2079_v62 = vrot.slane %v2077_v58, 5  ;;  %v2085_v32 = vrot.slane %v2083_v28, 5  ;;  %v2089_v34 = vrot.slane %v2087_v40, 4  ;;  %v1618_v38 = vrot.slane %v12835_v37, 5  ;;  %v1638_v40 = vld [vmem:[#allocation2 + $0x60] sm:$0xf] }
 0x258   : > { %2303 = vrot.lane.b32.xlu1 %v2288_v30, %s16112_s30  ;;  %v2455_v4 = vpack.c.b16 %v2446_v57, %v2445_v33  ;;  %v2095_v56 = vrot.slane %v2093_v27, 5  ;;  %v1621_v13 = vrot.slane %v12848_v9, 5  ;;  %v1793_v53 = vshrl.u32 %v1636_v52, 16  ;;  %v12913_v27 = vld [vmem:[#allocation2 + $0x64] sm:$0xf] }
 0x259   : > { %v2080_v42 = vor.u32 %v2079_v62, %v2076_v45  ;;  %v2090_v12 = vor.u32 %v2089_v34, %v2085_v32  ;;  %v1619_v36 = vsel %vm11602_vm7, %v9645_v24, %v1618_v38  ;;  %v1620_v22 = vrot.slane %v1618_v38, 4  ;;  %v10118_v62 = vld [vmem:[#allocation2 + $0x60] sm:$0xff] }
 0x25a   : > { %v2319_v20 = vunpack.c.l.b16 %v1619_v36  ;;  %v1795_v37 = vrot.slane %v1793_v53, 4  ;;  %v1796_v44 = vshll.u32 %v1636_v52, 16  ;;  %v1802_v8 = vshll.u32 %v12857_v2, 16 }
 0x25b   : > { %v12899_v17 = vpop.permute.xlu1 %2589  ;;  %2469 = vrot.lane.b32.xlu2 %v2455_v4, %s16104_s20  ;;  %v2081_v9 = vrot.slane %v2080_v42, 4  ;;  %v2091_v46 = vrot.slane %v2090_v12, 4  ;;  %v1622_v50 = vsel %vm11602_vm7, %v1620_v22, %v1621_v13  ;;  %v1806_v45 = vshrl.u32 %v12857_v2, 16  ;;  %v12918_v42 = vld [vmem:[#allocation2 + $0x68] sm:$0x1] }
 0x25c   : > { %2515 = vrot.lane.b32.xlu0 %v10117_v5, %s16081_s23  ;;  %v2320_v7 = vunpack.c.l.b16 %v1622_v50  ;;  %v1798_v58 = vrot.slane %v1796_v44, 5  ;;  %v1804_v28 = vrot.slane %v1802_v8, 5  ;;  %v2665_v24 = vsel %vm2659_vm3, %v2648_v25, %v12831_v15  ;;  %v12928_v50 = vld [vmem:[#allocation2 + $0x64] sm:$0xf] }
 0x25d   : > { %v12905_v33 = vpop.permute.xlu0 %2295  ;;  %v2086_v52 = vsel %vm11616_vm0, %v2081_v9, %v2085_v32  ;;  %v2096_v30 = vsel %vm11616_vm0, %v2091_v46, %v2095_v56  ;;  %v1808_v57 = vrot.slane %v1806_v45, 4  ;;  %v1812_v53 = vshll.u32 %v12864_v61, 16 }
 0x25e   : > { %v2531_v2 = vunpack.c.l.b16 %v2086_v52  ;;  %v2532_v34 = vunpack.c.l.b16 %v2096_v30  ;;  %v1799_v38 = vor.u32 %v1798_v58, %v1795_v37  ;;  %v2328_v4 = vpack.c.b16 %v2320_v7, %v2319_v20  ;;  %v2151_v37 = vld [vmem:[#allocation2 + $0x60] sm:$0xe] }
 0x25f   : > { %v1809_v13 = vor.u32 %v1808_v57, %v1804_v28  ;;  %v1817_v32 = vshrl.u32 %v1638_v40, 16  ;;  %v1820_v36 = vshll.u32 %v1638_v40, 16  ;;  %v1826_v22 = vshll.u32 %v12913_v27, 16  ;;  %v1847_v30 = vld [vmem:[#allocation2 + $0x60] sm:$0xe]  ;;  %v2550_v57 = vpop.permute.xlu2 %2549 }
 0x260   : > { %2517 = vrot.lane.b32.xlu1 %v10118_v62, %s16081_s23  ;;  %v2542_v56 = vpack.c.b16 %v2532_v34, %v2531_v2  ;;  %v1800_v12 = vrot.slane %v1799_v38, 4  ;;  %v1814_v15 = vrot.slane %v1812_v53, 5  ;;  %v1830_v44 = vshrl.u32 %v12913_v27, 16 }
 0x261   : > { %v1810_v5 = vrot.slane %v1809_v13, 4  ;;  %v1819_v25 = vrot.slane %v1817_v32, 4  ;;  %v1822_v8 = vrot.slane %v1820_v36, 5  ;;  %v1828_v9 = vrot.slane %v1826_v22, 5 }
 0x262   : > { %v1805_v20 = vsel %vm11616_vm0, %v1800_v12, %v1804_v28  ;;  %v1836_v46 = vshll.u32 %v12918_v42, 16  ;;  %v2682_v40 = vsel %vm2676_vm11, %v2665_v24, %v12815_v11  ;;  %v1832_v52 = vrot.slane %v1830_v44, 4  ;;  %v12935_v28 = vld [vmem:[#allocation2 + $0x68] sm:$0x1]  ;;  %v1941_v12 = vld [vmem:[#allocation2 + $0x60] sm:$0xf] }
 0x263   : > { %v12925_v61 = vpop.permute.xlu1 %6183  ;;  %2555 = vrot.lane.b32.xlu2 %v2542_v56, %s16252_s24  ;;  %v1815_v45 = vsel %vm11616_vm0, %v1810_v5, %v1814_v15  ;;  %v2405_v7 = vunpack.c.l.b16 %v1805_v20  ;;  %v1823_v34 = vor.u32 %v1822_v8, %v1819_v25  ;;  %v9660_v38 = vrot.slane %v2151_v37, 9  ;;  %v10134_v11 = vld [vmem:[#allocation3 + $0x3c] sm:$0xff] }
 0x264   : > { %16282 = vst [vmem:[#allocation48_spill] sm:$0xff] %v12925_v61  ;;  %2343 = vrot.lane.b32.xlu0 %v2328_v4, %s16110_s16  ;;  %v2406_v62 = vunpack.c.l.b16 %v1815_v45  ;;  %v1833_v13 = vor.u32 %v1832_v52, %v1828_v9  ;;  %v1838_v53 = vrot.slane %v1836_v46, 5  ;;  %v2221_v56 = vrot.slane %v12928_v50, 5  ;;  %v10111_v46 = vld [vmem:[#allocation2 + $0x60] sm:$0xff] }
 0x265   : > { %v2510_v58 = vpop.permute.xlu0 %2509  ;;  %v1824_v24 = vrot.slane %v1823_v34, 4  ;;  %v2224_v4 = vrot.slane %v12935_v28, 5  ;;  %v9653_v22 = vrot.slane %v1847_v30, 9  ;;  %v1923_v44 = vrot.slane %v12913_v27, 5 }
 0x266   : > { %v2699_v2 = vsel %vm2693_vm4, %v2682_v40, %v2510_v58  ;;  %v1834_v5 = vrot.slane %v1833_v13, 4  ;;  %v2222_v15 = vsel %vm11602_vm7, %v9660_v38, %v2221_v56  ;;  %v2223_v25 = vrot.slane %v2221_v56, 4 }
 0x267   : > { %v2716_v32 = vsel %vm2710_vm10, %v2699_v2, %v2550_v57  ;;  %v2415_v37 = vpack.c.b16 %v2406_v62, %v2405_v7  ;;  %v1829_v20 = vsel %vm11616_vm0, %v1824_v24, %v1828_v9  ;;  %v2573_v8 = vunpack.c.l.b16 %v2222_v15  ;;  %v12960_v9 = vld [vmem:[#allocation3 + $0x28] sm:$0xf]  ;;  %v12971_v15 = vld [vmem:[#allocation3 + $0x2c] sm:$0x1] }
 0x268   : > { %v2733_v36 = vsel %vm2727_vm14, %v2716_v32, %v12899_v17  ;;  %6269 = vrot.lane.b32.xlu1 %v10134_v11, %s16104_s20  ;;  %v2098_v17 = vshrl.u32 %v1941_v12, 16  ;;  %v1839_v45 = vsel %vm11616_vm0, %v1834_v5, %v1838_v53  ;;  %v2225_v58 = vsel %vm11602_vm7, %v2223_v25, %v2224_v4  ;;  %v3734_v32 = vld [vmem:[#allocation3 + $0x24] sm:$0xf] }
 0x269   : > { %9768 = vmatmul.msk.bf16.gmra.mxu1 %vm2764_vm8, %v2733_v36  ;;  %v1924_v40 = vsel %vm11602_vm7, %v9653_v22, %v1923_v44  ;;  %v1926_v27 = vrot.slane %v12918_v42, 5  ;;  %v2407_v52 = vunpack.c.l.b16 %v1829_v20  ;;  %v2408_v30 = vunpack.c.l.b16 %v1839_v45 }
 0x26a   : > { %v2574_v7 = vunpack.c.l.b16 %v2225_v58  ;;  %v1925_v57 = vrot.slane %v1923_v44, 4  ;;  %v2447_v2 = vunpack.c.l.b16 %v1924_v40  ;;  %v2100_v38 = vrot.slane %v2098_v17, 4  ;;  %v12975_v58 = vld [vmem:[#allocation3 + $0x10] sm:$0xf] }
 0x26b   : > { %v12958_v62 = vpop.permute.xlu1 %2297  ;;  %2391 = vrot.lane.b32.xlu2 %v10111_v46, %s16106_s19  ;;  %v2101_v13 = vshll.u32 %v1941_v12, 16  ;;  %v2107_v53 = vshll.u32 %v12928_v50, 16  ;;  %v2416_v42 = vpack.c.b16 %v2408_v30, %v2407_v52  ;;  %v2111_v24 = vshrl.u32 %v12928_v50, 16 }
 0x26c   : > { %2429 = vrot.lane.b32.xlu0 %v2415_v37, %s16102_s14  ;;  %v2583_v56 = vpack.c.b16 %v2574_v7, %v2573_v8  ;;  %v1927_v11 = vsel %vm11602_vm7, %v1925_v57, %v1926_v27  ;;  %v2117_v5 = vshll.u32 %v12935_v28, 16  ;;  %v3803_v25 = vshrl.u32 %v3734_v32, 16  ;;  %v3730_v37 = vld [vmem:[#allocation3 + $0xc] sm:$0xf] }
 0x26d   : > { %v12963_v34 = vpop.permute.xlu0 %6223  ;;  %v2448_v36 = vunpack.c.l.b16 %v1927_v11  ;;  %v2103_v4 = vrot.slane %v2101_v13, 5  ;;  %v2109_v22 = vrot.slane %v2107_v53, 5  ;;  %v2113_v12 = vrot.slane %v2111_v24, 4 }
 0x26e   : > { %16283 = vst [vmem:[#allocation49_spill] sm:$0xff] %v12963_v34  ;;  %v3806_v44 = vshll.u32 %v3734_v32, 16  ;;  %v16065_v20 = vshll.u32 %v12960_v9, 16  ;;  %v2119_v46 = vrot.slane %v2117_v5, 5  ;;  %v16066_v45 = vshrl.u32 %v12960_v9, 16 }
 0x26f   : > { %v2456_v17 = vpack.c.b16 %v2448_v36, %v2447_v2  ;;  %v2104_v8 = vor.u32 %v2103_v4, %v2100_v38  ;;  %v2114_v50 = vor.u32 %v2113_v12, %v2109_v22  ;;  %v3805_v40 = vrot.slane %v3803_v25, 4  ;;  %v12991_v4 = vld [vmem:[#allocation3 + $0x14] sm:$0x1]  ;;  %v3740_v12 = vld [vmem:[#allocation3 + $0x48] sm:$0xf] }
 0x270   : > { %2431 = vrot.lane.b32.xlu1 %v2416_v42, %s16102_s14  ;;  %v3808_v28 = vrot.slane %v3806_v44, 5  ;;  %v3814_v27 = vrot.slane %v16065_v20, 5  ;;  %v3818_v30 = vrot.slane %v16066_v45, 4  ;;  %v3822_v7 = vshll.u32 %v12971_v15, 16 }
 0x271   : > { %v2105_v52 = vrot.slane %v2104_v8, 4  ;;  %v3755_v57 = vshrl.u32 %v3730_v37, 16  ;;  %v2115_v2 = vrot.slane %v2114_v50, 4  ;;  %v3758_v53 = vshll.u32 %v3730_v37, 16 }
 0x272   : > { %v3809_v13 = vor.u32 %v3808_v28, %v3805_v40  ;;  %v16064_v32 = vshll.u32 %v12975_v58, 16  ;;  %v3819_v24 = vor.u32 %v3818_v30, %v3814_v27  ;;  %v3824_v36 = vrot.slane %v3822_v7, 5  ;;  %v10137_v40 = vld [vmem:[#allocation3 + $0x60] sm:$0xff] }
 0x273   : > { %v12983_v38 = vpop.permute.xlu1 %2511  ;;  %2597 = vrot.lane.b32.xlu2 %v2583_v56, %s16279_s17  ;;  %v2110_v42 = vsel %vm11616_vm0, %v2105_v52, %v2109_v22  ;;  %v3757_v5 = vrot.slane %v3755_v57, 4  ;;  %v2120_v25 = vsel %vm11616_vm0, %v2115_v2, %v2119_v46  ;;  %v3760_v50 = vrot.slane %v3758_v53, 5  ;;  %v13004_v46 = vpop.permute.xlu2 %2385  ;;  %v13008_v53 = vld [vmem:[#allocation3 + $0x50] sm:$0x1] }
 0x274   : > { %2471 = vrot.lane.b32.xlu0 %v2456_v17, %s16104_s20  ;;  %v2533_v44 = vunpack.c.l.b16 %v2110_v42  ;;  %v3810_v37 = vrot.slane %v3809_v13, 4  ;;  %v2534_v8 = vunpack.c.l.b16 %v2120_v25  ;;  %v3820_v56 = vrot.slane %v3819_v24, 4  ;;  %v13002_v17 = vld [vmem:[#allocation3 + $0x4c] sm:$0xf]  ;;  %v3736_v42 = vld [vmem:[#allocation3 + $0x30] sm:$0xf] }
 0x275   : > { %v12989_v11 = vpop.permute.xlu0 %2337  ;;  %v3766_v22 = vrot.slane %v16064_v32, 5  ;;  %v16067_v52 = vshrl.u32 %v12975_v58, 16  ;;  %v3774_v30 = vshll.u32 %v12991_v4, 16  ;;  %v3875_v7 = vshrl.u32 %v3740_v12, 16  ;;  %v10135_v32 = vld [vmem:[#allocation3 + $0x48] sm:$0xff] }
 0x276   : > { %v3815_v28 = vsel %vm11616_vm0, %v3810_v37, %v3814_v27  ;;  %v2543_v57 = vpack.c.b16 %v2534_v8, %v2533_v44  ;;  %v3825_v2 = vsel %vm11616_vm0, %v3820_v56, %v3824_v36  ;;  %v3761_v13 = vor.u32 %v3760_v50, %v3757_v5 }
 0x277   : > { %v6281_v27 = vunpack.c.l.b16 %v3815_v28  ;;  %v6282_v24 = vunpack.c.l.b16 %v3825_v2  ;;  %v3770_v25 = vrot.slane %v16067_v52, 4  ;;  %v3877_v37 = vrot.slane %v3875_v7, 4 }
 0x278   : > { %6275 = vrot.lane.b32.xlu1 %v10137_v40, %s16104_s20  ;;  %v3762_v20 = vrot.slane %v3761_v13, 4  ;;  %v3878_v45 = vshll.u32 %v3740_v12, 16  ;;  %v16068_v44 = vshll.u32 %v13002_v17, 16  ;;  %v16069_v8 = vshrl.u32 %v13002_v17, 16 }
 0x279   : > { %v3771_v36 = vor.u32 %v3770_v25, %v3766_v22  ;;  %v3776_v5 = vrot.slane %v3774_v30, 5  ;;  %v3894_v50 = vshll.u32 %v13008_v53, 16  ;;  %v3827_v40 = vshrl.u32 %v3736_v42, 16  ;;  %v13027_v30 = vld [vmem:[#allocation3 + $0x34] sm:$0xf] }
 0x27a   : > { %v3767_v28 = vsel %vm11616_vm0, %v3762_v20, %v3766_v22  ;;  %v3880_v2 = vrot.slane %v3878_v45, 5  ;;  %v3886_v12 = vrot.slane %v16068_v44, 5  ;;  %v3890_v13 = vrot.slane %v16069_v8, 4  ;;  %v13030_v20 = vld [vmem:[#allocation3 + $0x38] sm:$0x1] }
 0x27b   : > { %v13015_v56 = vpop.permute.xlu1 %6225  ;;  %6271 = vrot.lane.b32.xlu2 %v10135_v32, %s16104_s20  ;;  %v6295_v25 = vpack.c.b16 %v6282_v24, %v6281_v27  ;;  %v3772_v52 = vrot.slane %v3771_v36, 4  ;;  %v3896_v61 = vrot.slane %v3894_v50, 5  ;;  %v3732_v22 = vld [vmem:[#allocation3 + $0x18] sm:$0xf]  ;;  %v3829_v44 = vrot.slane %v3827_v40, 4 }
 0x27c   : > { %16284 = vst [vmem:[#allocation50_spill] sm:$0xff] %v13015_v56  ;;  %2557 = vrot.lane.b32.xlu0 %v2543_v57, %s16252_s24  ;;  %v6277_v56 = vunpack.c.l.b16 %v3767_v28  ;;  %v3881_v32 = vor.u32 %v3880_v2, %v3877_v37  ;;  %v3891_v34 = vor.u32 %v3890_v13, %v3886_v12  ;;  %v3830_v19 = vshll.u32 %v3736_v42, 16  ;;  %v13040_v50 = vld [vmem:[#allocation3 + $0x1c] sm:$0xf]  ;;  %v13042_v42 = vpop.permute.xlu2 %2591  ;;  %v13050_v28 = vld [vmem:[#allocation3 + $0x20] sm:$0x1] }
 0x27d   : > { %v13021_v7 = vpop.permute.xlu0 %6103  ;;  %v3777_v45 = vsel %vm11616_vm0, %v3772_v52, %v3776_v5  ;;  %v16070_v8 = vshll.u32 %v13027_v30, 16  ;;  %v16071_v27 = vshrl.u32 %v13027_v30, 16  ;;  %v3846_v36 = vshll.u32 %v13030_v20, 16  ;;  %v10136_v13 = vld [vmem:[#allocation3 + $0x54] sm:$0xff] }
 0x27e   : > { %16285 = vst [vmem:[#allocation51_spill] sm:$0xff] %v13021_v7  ;;  %v6278_v7 = vunpack.c.l.b16 %v3777_v45  ;;  %v3882_v21 = vrot.slane %v3881_v32, 4  ;;  %v3892_v57 = vrot.slane %v3891_v34, 4  ;;  %v3832_v24 = vrot.slane %v3830_v19, 5 }
 0x27f   : > { %v3838_v37 = vrot.slane %v16070_v8, 5  ;;  %v3779_v52 = vshrl.u32 %v3732_v22, 16  ;;  %v3842_v19 = vrot.slane %v16071_v27, 4  ;;  %v2612_v2 = vsel %vm16268_vm1, %v10099_v63, %v12905_v33 }
 0x280   : > { %6305 = vrot.lane.b32.xlu1 %v6295_v25, %s16081_s23  ;;  %v6293_v5 = vpack.c.b16 %v6278_v7, %v6277_v56  ;;  %v3887_v40 = vsel %vm11616_vm0, %v3882_v21, %v3886_v12  ;;  %v3897_v34 = vsel %vm11616_vm0, %v3892_v57, %v3896_v61  ;;  %v3833_v32 = vor.u32 %v3832_v24, %v3829_v44 }
 0x281   : > { %v6288_v25 = vunpack.c.l.b16 %v3897_v34  ;;  %v3848_v45 = vrot.slane %v3846_v36, 5  ;;  %v3843_v21 = vor.u32 %v3842_v19, %v3838_v37  ;;  %v3781_v56 = vrot.slane %v3779_v52, 4 }
 0x282   : > { %v3782_v7 = vshll.u32 %v3732_v22, 16  ;;  %v16072_v61 = vshll.u32 %v13040_v50, 16  ;;  %v6287_v57 = vunpack.c.l.b16 %v3887_v40  ;;  %v3834_v27 = vrot.slane %v3833_v32, 4  ;;  %v3742_v40 = vld [vmem:[#allocation3 + $0x54] sm:$0xf] }
 0x283   : > { %v13054_v8 = vpop.permute.xlu1 %2339  ;;  %6301 = vrot.lane.b32.xlu2 %v6293_v5, %s16081_s23  ;;  %v16073_v63 = vshrl.u32 %v13040_v50, 16  ;;  %v3798_v33 = vshll.u32 %v13050_v28, 16  ;;  %v3844_v44 = vrot.slane %v3843_v21, 4  ;;  %v13065_v5 = vld [vmem:[#allocation3 + $0xc] sm:$0xe]  ;;  %v13073_v19 = vsel %vm2625_vm12, %v2612_v2, %v12757_v3 }
 0x284   : > { %6273 = vrot.lane.b32.xlu0 %v10136_v13, %s16104_s20  ;;  %v3784_v24 = vrot.slane %v3782_v7, 5  ;;  %v3790_v36 = vrot.slane %v16072_v61, 5  ;;  %v6298_v22 = vpack.c.b16 %v6288_v25, %v6287_v57  ;;  %v3839_v52 = vsel %vm11616_vm0, %v3834_v27, %v3838_v37  ;;  %v13077_v7 = vld [vmem:[#allocation3 + $0x58] sm:$0xf] }
 0x285   : > { %v13058_v12 = vpop.permute.xlu0 %2423  ;;  %v3794_v34 = vrot.slane %v16073_v63, 4  ;;  %v3849_v13 = vsel %vm11616_vm0, %v3844_v44, %v3848_v45  ;;  %v3800_v21 = vrot.slane %v3798_v33, 5  ;;  %v6283_v25 = vunpack.c.l.b16 %v3839_v52  ;;  %v13086_v44 = vpop.permute.xlu2 %6185 }
 0x286   : > { %v3785_v32 = vor.u32 %v3784_v24, %v3781_v56  ;;  %v6284_v57 = vunpack.c.l.b16 %v3849_v13  ;;  %v9790_v37 = vrot.slane %v13065_v5, 9  ;;  %v3980_v63 = vrot.slane %v12975_v58, 5  ;;  %16287 = vst [vmem:[#allocation53_spill] sm:$0xff] %v13086_v44  ;;  %v3738_v13 = vld [vmem:[#allocation3 + $0x3c] sm:$0xf] }
 0x287   : > { %v3795_v27 = vor.u32 %v3794_v34, %v3790_v36  ;;  %v3983_v3 = vrot.slane %v12991_v4, 5  ;;  %v3899_v2 = vshrl.u32 %v3742_v40, 16  ;;  %v3902_v45 = vshll.u32 %v3742_v40, 16  ;;  %v13092_v34 = vld [vmem:[#allocation3 + $0x5c] sm:$0x1] }
 0x288   : > { %6311 = vrot.lane.b32.xlu1 %v6298_v22, %s16081_s23  ;;  %v3786_v61 = vrot.slane %v3785_v32, 4  ;;  %v6296_v1 = vpack.c.b16 %v6284_v57, %v6283_v25  ;;  %v3981_v22 = vsel %vm11602_vm7, %v9790_v37, %v3980_v63  ;;  %v3982_v52 = vrot.slane %v3980_v63, 4 }
 0x289   : > { %v3796_v60 = vrot.slane %v3795_v27, 4  ;;  %v3901_v4 = vrot.slane %v3899_v2, 4  ;;  %v6317_v25 = vunpack.c.l.b16 %v3981_v22  ;;  %v3904_v57 = vrot.slane %v3902_v45, 5  ;;  %v13097_v27 = vld [vmem:[#allocation3 + $0x40] sm:$0xf] }
 0x28a   : > { %v3791_v24 = vsel %vm11616_vm0, %v3786_v61, %v3790_v36  ;;  %v3984_v61 = vsel %vm11602_vm7, %v3982_v52, %v3983_v3  ;;  %v16288_v63 = vshll.u32 %v13077_v7, 16  ;;  %v16074_v37 = vshrl.u32 %v13077_v7, 16  ;;  %v13112_v52 = vld [vmem:[#allocation3 + $0x30] sm:$0xe] }
 0x28b   : > { %v13084_v33 = vpop.permute.xlu1 %6105  ;;  %6307 = vrot.lane.b32.xlu2 %v6296_v1, %s16081_s23  ;;  %v3801_v40 = vsel %vm11616_vm0, %v3796_v60, %v3800_v21  ;;  %v6279_v32 = vunpack.c.l.b16 %v3791_v24  ;;  %v6318_v1 = vunpack.c.l.b16 %v3984_v61  ;;  %v3905_v44 = vor.u32 %v3904_v57, %v3901_v4  ;;  %v13107_v21 = vld [vmem:[#allocation3 + $0x44] sm:$0x1]  ;;  %v10100_v61 = vld [vmem:[#allocation2 + $0x30] sm:$0xff] }
 0x28c   : > { %16286 = vst [vmem:[#allocation52_spill] sm:$0xff] %v13084_v33  ;;  %v6280_v56 = vunpack.c.l.b16 %v3801_v40  ;;  %v3910_v36 = vrot.slane %v16288_v63, 5  ;;  %v3918_v60 = vshll.u32 %v13092_v34, 16  ;;  %v3851_v45 = vshrl.u32 %v3738_v13, 16 }
 0x28d   : > { %v13104_v2 = vpop.permute.xlu0 %6145  ;;  %v3914_v22 = vrot.slane %v16074_v37, 4  ;;  %v3854_v40 = vshll.u32 %v3738_v13, 16  ;;  %v16075_v3 = vshll.u32 %v13097_v27, 16  ;;  %v6333_v63 = vpack.c.b16 %v6318_v1, %v6317_v25 }
 0x28e   : > { %16289 = vst [vmem:[#allocation54_spill] sm:$0xff] %v13104_v2  ;;  %v6294_v24 = vpack.c.b16 %v6280_v56, %v6279_v32  ;;  %v3906_v33 = vrot.slane %v3905_v44, 4  ;;  %v3920_v55 = vrot.slane %v3918_v60, 5  ;;  %v3853_v2 = vrot.slane %v3851_v45, 4 }
 0x28f   : > { %v3915_v4 = vor.u32 %v3914_v22, %v3910_v36  ;;  %v3856_v57 = vrot.slane %v3854_v40, 5  ;;  %v3862_v56 = vrot.slane %v16075_v3, 5  ;;  %v16076_v32 = vshrl.u32 %v13097_v27, 16  ;;  %v13129_v40 = vld [vmem:[#allocation3 + $0x18] sm:$0xe]  ;;  %v13136_v3 = vpop.permute.xlu2 %2299 }
 0x290   : > { %6303 = vrot.lane.b32.xlu0 %v6294_v24, %s16081_s23  ;;  %6341 = vrot.lane.b32.xlu1 %v6333_v63, %s16252_s24  ;;  %v3911_v13 = vsel %vm11616_vm0, %v3906_v33, %v3910_v36  ;;  %v3870_v25 = vshll.u32 %v13107_v21, 16  ;;  %v9793_v44 = vrot.slane %v13112_v52, 9  ;;  %v2615_v60 = vsel %vm16290_vm2, %v10100_v61, %v12958_v62  ;;  %vm16313_vm2 = vmmov %vm16268_vm1 }
 0x291   : > { %v3916_v45 = vrot.slane %v3915_v4, 4  ;;  %v3857_v24 = vor.u32 %v3856_v57, %v3853_v2  ;;  %v3866_v22 = vrot.slane %v16076_v32, 4  ;;  %v2650_v33 = vsel %vm2642_vm13, %v13073_v19, %v12875_v49 }
 0x292   : > { %v6289_v36 = vunpack.c.l.b16 %v3911_v13  ;;  %v4001_v63 = vrot.slane %v13027_v30, 5  ;;  %v4004_v37 = vrot.slane %v13030_v20, 5  ;;  %v3872_v4 = vrot.slane %v3870_v25, 5 }
 0x293   : > { %v13123_v1 = vpop.permute.xlu1 %2425  ;;  %v3921_v62 = vsel %vm11616_vm0, %v3916_v45, %v3920_v55  ;;  %v3858_v2 = vrot.slane %v3857_v24, 4  ;;  %v3867_v61 = vor.u32 %v3866_v22, %v3862_v56  ;;  %v9791_v49 = vrot.slane %v13129_v40, 9  ;;  %v3744_v55 = vld [vmem:[#allocation3 + $0x60] sm:$0xf] }
 0x294   : > { %v6290_v57 = vunpack.c.l.b16 %v3921_v62  ;;  %v4002_v32 = vsel %vm11602_vm7, %v9793_v44, %v4001_v63  ;;  %v4003_v59 = vrot.slane %v4001_v63, 4  ;;  %v2667_v19 = vsel %vm2659_vm3, %v2650_v33, %v13058_v12  ;;  %v13153_v63 = vld [vmem:[#allocation3 + $0x64] sm:$0xf] }
 0x295   : > { %v3863_v20 = vsel %vm11616_vm0, %v3858_v2, %v3862_v56  ;;  %v3868_v13 = vrot.slane %v3867_v61, 4  ;;  %v3987_v47 = vrot.slane %v13040_v50, 5  ;;  %v13148_v45 = vpop.permute.xlu0 %2465  ;;  %v6323_v44 = vunpack.c.l.b16 %v4002_v32  ;;  %v13160_v61 = vld [vmem:[#allocation3 + $0x68] sm:$0x1] }
 0x296   : > { %v6299_v25 = vpack.c.b16 %v6290_v57, %v6289_v36  ;;  %v4005_v24 = vsel %vm11602_vm7, %v4003_v59, %v4004_v37  ;;  %v3990_v22 = vrot.slane %v13050_v28, 5  ;;  %v6285_v33 = vunpack.c.l.b16 %v3863_v20  ;;  %v13166_v20 = vld [vmem:[#allocation3 + $0x54] sm:$0xe] }
 0x297   : > { %v3873_v12 = vsel %vm11616_vm0, %v3868_v13, %v3872_v4  ;;  %v6324_v56 = vunpack.c.l.b16 %v4005_v24  ;;  %v3989_v62 = vrot.slane %v3987_v47, 4  ;;  %v3988_v36 = vsel %vm11602_vm7, %v9791_v49, %v3987_v47 }
 0x298   : > { %6313 = vrot.lane.b32.xlu2 %v6299_v25, %s16081_s23  ;;  %v6286_v2 = vunpack.c.l.b16 %v3873_v12  ;;  %v3923_v59 = vshrl.u32 %v3744_v55, 16  ;;  %v3926_v37 = vshll.u32 %v3744_v55, 16  ;;  %v16077_v57 = vshll.u32 %v13153_v63, 16 }
 0x299   : > { %v6336_v32 = vpack.c.b16 %v6324_v56, %v6323_v44  ;;  %v3991_v28 = vsel %vm11602_vm7, %v3989_v62, %v3990_v22  ;;  %v16078_v4 = vshrl.u32 %v13153_v63, 16  ;;  %v6319_v47 = vunpack.c.l.b16 %v3988_v36  ;;  %v13176_v22 = vld [vmem:[#allocation3 + $0x3c] sm:$0xe]  ;;  %v13184_v36 = vpop.permute.xlu2 %2513 }
 0x29a   : > { %v6297_v13 = vpack.c.b16 %v6286_v2, %v6285_v33  ;;  %v6320_v25 = vunpack.c.l.b16 %v3991_v28  ;;  %v3925_v24 = vrot.slane %v3923_v59, 4  ;;  %v3928_v12 = vrot.slane %v3926_v37, 5 }
 0x29b   : > { %v13168_v41 = vpop.permute.xlu1 %6147  ;;  %6347 = vrot.lane.b32.xlu1 %v6336_v32, %s16252_s24  ;;  %v3934_v49 = vrot.slane %v16077_v57, 5  ;;  %v3938_v55 = vrot.slane %v16078_v4, 4  ;;  %v3942_v44 = vshll.u32 %v13160_v61, 16  ;;  %v2635_v33 = vsel %vm2625_vm12, %v2615_v60, %v12989_v11 }
 0x29c   : > { %16291 = vst [vmem:[#allocation55_spill] sm:$0xff] %v13168_v41  ;;  %v2684_v56 = vsel %vm2676_vm11, %v2667_v19, %v12897_v14  ;;  %6309 = vrot.lane.b32.xlu0 %v6297_v13, %s16081_s23  ;;  %v3929_v62 = vor.u32 %v3928_v12, %v3925_v24  ;;  %v9796_v2 = vrot.slane %v13166_v20, 9  ;;  %v6334_v59 = vpack.c.b16 %v6320_v25, %v6319_v47  ;;  %v13193_v12 = vld [vmem:[#allocation3 + $0x24] sm:$0xe] }
 0x29d   : > { %v3939_v37 = vor.u32 %v3938_v55, %v3934_v49  ;;  %v3944_v32 = vrot.slane %v3942_v44, 5  ;;  %v4022_v28 = vrot.slane %v13077_v7, 5  ;;  %v4025_v4 = vrot.slane %v13092_v34, 5 }
 0x29e   : > { %v3930_v57 = vrot.slane %v3929_v62, 4  ;;  %v9794_v11 = vrot.slane %v13176_v22, 9  ;;  %v4008_v60 = vrot.slane %v13097_v27, 5  ;;  %v4011_v24 = vrot.slane %v13107_v21, 5 }
 0x29f   : > { %v3940_v14 = vrot.slane %v3939_v37, 4  ;;  %v4023_v19 = vsel %vm11602_vm7, %v9796_v2, %v4022_v28  ;;  %v4024_v13 = vrot.slane %v4022_v28, 4  ;;  %v2652_v34 = vsel %vm2642_vm13, %v2635_v33, %v13004_v46 }
 0x2a0   : > { %6343 = vrot.lane.b32.xlu2 %v6334_v59, %s16252_s24  ;;  %v3935_v47 = vsel %vm11616_vm0, %v3930_v57, %v3934_v49  ;;  %v4009_v55 = vsel %vm11602_vm7, %v9794_v11, %v4008_v60  ;;  %v4010_v44 = vrot.slane %v4008_v60, 4  ;;  %v6329_v37 = vunpack.c.l.b16 %v4023_v19 }
 0x2a1   : > { %v2552_v25 = vpop.permute.xlu0 %2551  ;;  %v3945_v62 = vsel %vm11616_vm0, %v3940_v14, %v3944_v32  ;;  %v6291_v2 = vunpack.c.l.b16 %v3935_v47  ;;  %v4026_v21 = vsel %vm11602_vm7, %v4024_v13, %v4025_v4  ;;  %v9792_v49 = vrot.slane %v13193_v12, 9  ;;  %v13213_v4 = vld [vmem:[#allocation3 + $0x20] sm:$0x3] }
 0x2a2   : > { %v6292_v28 = vunpack.c.l.b16 %v3945_v62  ;;  %v6330_v59 = vunpack.c.l.b16 %v4026_v21  ;;  %v4012_v57 = vsel %vm11602_vm7, %v4010_v44, %v4011_v24  ;;  %v6325_v46 = vunpack.c.l.b16 %v4009_v55  ;;  %v13221_v62 = vld [vmem:[#allocation3 + $0x60] sm:$0xe]  ;;  %v13228_v21 = vpop.permute.xlu2 %6227 }
 0x2a3   : > { %v6326_v33 = vunpack.c.l.b16 %v4012_v57  ;;  %v3994_v11 = vrot.slane %v12960_v9, 5  ;;  %v3997_v60 = vrot.slane %v12971_v15, 5  ;;  %v2701_v14 = vsel %vm2693_vm4, %v2684_v56, %v12983_v38  ;;  %v13216_v13 = vpop.permute.xlu1 %2467  ;;  %16292 = vst [vmem:[#allocation56_spill] sm:$0xff] %v13228_v21  ;;  %v13328_v21 = vld [vmem:[#allocation3 + $0x68] sm:$0x3] }
 0x2a4   : > { %v6300_v41 = vpack.c.b16 %v6292_v28, %v6291_v2  ;;  %v6339_v32 = vpack.c.b16 %v6330_v59, %v6329_v37  ;;  %v4066_v19 = vshrl.u32 %v13129_v40, 16  ;;  %v2718_v44 = vsel %vm2710_vm10, %v2701_v14, %v2552_v25 }
 0x2a5   : > { %v6337_v24 = vpack.c.b16 %v6326_v33, %v6325_v46  ;;  %v3995_v47 = vsel %vm11602_vm7, %v9792_v49, %v3994_v11  ;;  %v3996_v55 = vrot.slane %v3994_v11, 4  ;;  %v2735_v38 = vsel %vm2727_vm14, %v2718_v44, %v13042_v42  ;;  %v13238_v49 = vld [vmem:[#allocation3 + $0x48] sm:$0xe] }
 0x2a6   : > { %6315 = vrot.lane.b32.xlu0 %v6300_v41, %s16081_s23  ;;  %6353 = vrot.lane.b32.xlu1 %v6339_v32, %s16252_s24  ;;  %v6321_v15 = vunpack.c.l.b16 %v3995_v47  ;;  %v4068_v56 = vrot.slane %v4066_v19, 5  ;;  %v4069_v2 = vshll.u32 %v13129_v40, 16  ;;  %v16293_v25 = vshrl.u32 %v13040_v50, 16  ;;  %s10446_s23 = smov 40  }
 0x2a7   : > { %v3998_v37 = vsel %vm11602_vm7, %v3996_v55, %v3997_v60  ;;  %9769 = vmatmul.msk.bf16.gmra.mxu1 %vm2764_vm8, %v2735_v38  ;;  %v16294_v41 = vshll.u32 %v13040_v50, 16  ;;  %v4080_v57 = vshrl.u32 %v13213_v4, 16  ;;  %v4083_v33 = vshll.u32 %v13213_v4, 16 }
 0x2a8   : > { %v4074_v28 = vrot.slane %v16293_v25, 5  ;;  %6349 = vrot.lane.b32.xlu2 %v6337_v24, %s16252_s24  ;;  %v6322_v40 = vunpack.c.l.b16 %v3998_v37  ;;  %v4071_v46 = vrot.slane %v4069_v2, 6  ;;  %v9797_v11 = vrot.slane %v13221_v62, 9 }
 0x2a9   : > { %v4075_v59 = vrot.slane %v16294_v41, 6  ;;  %v13240_v42 = vpop.permute.xlu0 %2387  ;;  %v4082_v32 = vrot.slane %v4080_v57, 5  ;;  %v4029_v14 = vrot.slane %v13153_v63, 5  ;;  %v4032_v19 = vrot.slane %v13160_v61, 5 }
 0x2aa   : > { %v2669_v47 = vsel %vm2659_vm3, %v2652_v34, %v13123_v1  ;;  %v4072_v55 = vor.u32 %v4071_v46, %v4068_v56  ;;  %v4085_v44 = vrot.slane %v4083_v33, 6  ;;  %v9795_v38 = vrot.slane %v13238_v49, 9  ;;  %v13267_v33 = vld [vmem:[#allocation3 + $0x44] sm:$0x3] }
 0x2ab   : > { %v4076_v60 = vor.u32 %v4075_v59, %v4074_v28  ;;  %v6335_v24 = vpack.c.b16 %v6322_v40, %v6321_v15  ;;  %v4030_v2 = vsel %vm11602_vm7, %v9797_v11, %v4029_v14  ;;  %v4031_v37 = vrot.slane %v4029_v14, 4 }
 0x2ac   : > { %v4015_v25 = vrot.slane %v13002_v17, 5  ;;  %v4073_v28 = vrot.slane %v4072_v55, 4  ;;  %v4086_v59 = vor.u32 %v4085_v44, %v4082_v32  ;;  %v4018_v57 = vrot.slane %v13008_v53, 5 }
 0x2ad   : > { %v4078_v41 = vrot.slane %v4076_v60, 4  ;;  %v13256_v61 = vsel %vm2676_vm11, %v2669_v47, %v13148_v45  ;;  %v4033_v1 = vsel %vm11602_vm7, %v4031_v37, %v4032_v19  ;;  %v6331_v53 = vunpack.c.l.b16 %v4030_v2 }
 0x2ae   : > { %v4016_v34 = vsel %vm11602_vm7, %v9795_v38, %v4015_v25  ;;  %v4017_v15 = vrot.slane %v4015_v25, 4  ;;  %6345 = vrot.lane.b32.xlu0 %v6335_v24, %s16252_s24  ;;  %v4077_v56 = vsel %vm11630_vm15, %v4073_v28, %v4076_v60  ;;  %v6332_v46 = vunpack.c.l.b16 %v4033_v1  ;;  %v13277_v24 = vpop.permute.xlu2 %2341 }
 0x2af   : > { %v4087_v40 = vsel %vm11630_vm15, %v4078_v41, %v4086_v59  ;;  %v13269_v45 = vpop.permute.xlu1 %2553  ;;  %v6359_v11 = vunpack.c.l.b16 %v4077_v56  ;;  %v6327_v19 = vunpack.c.l.b16 %v4016_v34  ;;  %v4135_v44 = vshrl.u32 %v13176_v22, 16 }
 0x2b0   : > { %v6360_v32 = vunpack.c.l.b16 %v4087_v40  ;;  %v4019_v14 = vsel %vm11602_vm7, %v4017_v15, %v4018_v57  ;;  %v6340_v47 = vpack.c.b16 %v6332_v46, %v6331_v53  ;;  %v4138_v60 = vshll.u32 %v13176_v22, 16  ;;  %v13286_v15 = vld [vmem:[#allocation3 + $0x2c] sm:$0x3] }
 0x2b1   : > { %v6328_v55 = vunpack.c.l.b16 %v4019_v14  ;;  %v16295_v37 = vshrl.u32 %v13097_v27, 16  ;;  %v16296_v28 = vshll.u32 %v13097_v27, 16  ;;  %v4149_v59 = vshrl.u32 %v13267_v33, 16 }
 0x2b2   : > { %v13275_v38 = vpop.permute.xlu0 %2593  ;;  %v6374_v2 = vpack.c.b16 %v6360_v32, %v6359_v11  ;;  %6355 = vrot.lane.b32.xlu2 %v6340_v47, %s16252_s24  ;;  %v4137_v1 = vrot.slane %v4135_v44, 5  ;;  %v4140_v34 = vrot.slane %v4138_v60, 6  ;;  %v4152_v22 = vshll.u32 %v13267_v33, 16 }
 0x2b3   : > { %v4143_v25 = vrot.slane %v16295_v37, 5  ;;  %v4144_v41 = vrot.slane %v16296_v28, 6  ;;  %v6338_v57 = vpack.c.b16 %v6328_v55, %v6327_v19  ;;  %v4151_v40 = vrot.slane %v4149_v59, 5 }
 0x2b4   : > { %6383 = vrot.lane.b32.xlu1 %v6374_v2, %s16279_s17  ;;  %v4089_v53 = vshrl.u32 %v13193_v12, 16  ;;  %v4092_v46 = vshll.u32 %v13193_v12, 16  ;;  %v4141_v11 = vor.u32 %v4140_v34, %v4137_v1  ;;  %v4154_v32 = vrot.slane %v4152_v22, 6 }
 0x2b5   : > { %v4145_v56 = vor.u32 %v4144_v41, %v4143_v25  ;;  %v16297_v14 = vshrl.u32 %v12960_v9, 16  ;;  %v16298_v19 = vshll.u32 %v12960_v9, 16  ;;  %v4103_v28 = vshrl.u32 %v13286_v15, 16 }
 0x2b6   : > { %v4091_v60 = vrot.slane %v4089_v53, 5  ;;  %v4094_v37 = vrot.slane %v4092_v46, 6  ;;  %6351 = vrot.lane.b32.xlu0 %v6338_v57, %s16252_s24  ;;  %v4142_v2 = vrot.slane %v4141_v11, 4  ;;  %v4155_v25 = vor.u32 %v4154_v32, %v4151_v40  ;;  %v13304_v57 = vld [vmem:[#allocation3 + $0x14] sm:$0x3] }
 0x2b7   : > { %v4097_v47 = vrot.slane %v16297_v14, 5  ;;  %v4098_v55 = vrot.slane %v16298_v19, 6  ;;  %v4147_v44 = vrot.slane %v4145_v56, 4  ;;  %v4106_v12 = vshll.u32 %v13286_v15, 16  ;;  %v13306_v40 = vpop.permute.xlu1 %2389 }
 0x2b8   : > { %v4095_v59 = vor.u32 %v4094_v37, %v4091_v60  ;;  %v4105_v1 = vrot.slane %v4103_v28, 5  ;;  %v4043_v34 = vshrl.u32 %v13065_v5, 16  ;;  %v4046_v22 = vshll.u32 %v13065_v5, 16 }
 0x2b9   : > { %v4099_v41 = vor.u32 %v4098_v55, %v4097_v47  ;;  %v4146_v9 = vsel %vm11630_vm15, %v4142_v2, %v4145_v56  ;;  %v4156_v53 = vsel %vm11630_vm15, %v4147_v44, %v4155_v25  ;;  %v4108_v14 = vrot.slane %v4106_v12, 6  ;;  %v13314_v44 = vpop.permute.xlu2 %6107 }
 0x2ba   : > { %v6365_v11 = vunpack.c.l.b16 %v4146_v9  ;;  %v6366_v32 = vunpack.c.l.b16 %v4156_v53  ;;  %v4096_v47 = vrot.slane %v4095_v59, 4  ;;  %v4045_v19 = vrot.slane %v4043_v34, 5  ;;  %16302 = vst [vmem:[#allocation58_spill] sm:$0xff] %v13314_v44 }
 0x2bb   : > { %v4101_v46 = vrot.slane %v4099_v41, 4  ;;  %v4109_v55 = vor.u32 %v4108_v14, %v4105_v1  ;;  %v4048_v60 = vrot.slane %v4046_v22, 6  ;;  %v16299_v5 = vshrl.u32 %v12975_v58, 16  ;;  %v13312_v2 = vpop.permute.xlu0 %6187 }
 0x2bc   : > { %v16300_v56 = vshll.u32 %v12975_v58, 16  ;;  %16301 = vst [vmem:[#allocation57_spill] sm:$0xff] %v13312_v2  ;;  %v6377_v25 = vpack.c.b16 %v6366_v32, %v6365_v11  ;;  %v4100_v12 = vsel %vm11630_vm15, %v4096_v47, %v4099_v41  ;;  %v4057_v9 = vshrl.u32 %v13304_v57, 16 }
 0x2bd   : > { %v4051_v37 = vrot.slane %v16299_v5, 5  ;;  %v4060_v59 = vshll.u32 %v13304_v57, 16  ;;  %v4110_v1 = vsel %vm11630_vm15, %v4101_v46, %v4109_v55  ;;  %v6361_v34 = vunpack.c.l.b16 %v4100_v12 }
 0x2be   : > { %v4052_v28 = vrot.slane %v16300_v56, 6  ;;  %v4049_v22 = vor.u32 %v4048_v60, %v4045_v19  ;;  %6389 = vrot.lane.b32.xlu1 %v6377_v25, %s16279_s17  ;;  %v6362_v14 = vunpack.c.l.b16 %v4110_v1  ;;  %v4059_v5 = vrot.slane %v4057_v9, 5 }
 0x2bf   : > { %v4062_v56 = vrot.slane %v4060_v59, 6  ;;  %v2703_v11 = vsel %vm2693_vm4, %v13256_v61, %v13184_v36  ;;  %v4204_v46 = vshrl.u32 %v13221_v62, 16  ;;  %v16303_v61 = vshrl.u32 %v13153_v63, 16 }
 0x2c0   : > { %v4053_v53 = vor.u32 %v4052_v28, %v4051_v37  ;;  %v4050_v41 = vrot.slane %v4049_v22, 4  ;;  %v2720_v47 = vsel %vm2710_vm10, %v2703_v11, %v13269_v45  ;;  %v6375_v19 = vpack.c.b16 %v6362_v14, %v6361_v34 }
 0x2c1   : > { %v4063_v55 = vor.u32 %v4062_v56, %v4059_v5  ;;  %v2737_v60 = vsel %vm2727_vm14, %v2720_v47, %v13275_v38  ;;  %v4207_v37 = vshll.u32 %v13221_v62, 16  ;;  %v4206_v36 = vrot.slane %v4204_v46, 5  ;;  %v13349_v5 = vpop.permute.xlu1 %2595 }
 0x2c2   : > { %v4055_v32 = vrot.slane %v4053_v53, 4  ;;  %v4054_v28 = vsel %vm11630_vm15, %v4050_v41, %v4053_v53  ;;  %9770 = vmatmul.msk.bf16.gmra.mxu1 %vm2764_vm8, %v2737_v60  ;;  %v4212_v45 = vrot.slane %v16303_v61, 5  ;;  %v16304_v25 = vshll.u32 %v13153_v63, 16  ;;  %6385 = vrot.lane.b32.xlu2 %v6375_v19, %s16279_s17  ;;  %v13346_v53 = vld [vmem:[#allocation3 + $0x50] sm:$0x3] }
 0x2c3   : > { %v6357_v38 = vunpack.c.l.b16 %v4054_v28  ;;  %v4209_v59 = vrot.slane %v4207_v37, 6  ;;  %v4218_v62 = vshrl.u32 %v13328_v21, 16  ;;  %v4221_v22 = vshll.u32 %v13328_v21, 16  ;;  %v13356_v28 = vpop.permute.xlu2 %2427 }
 0x2c4   : > { %v4213_v12 = vrot.slane %v16304_v25, 6  ;;  %v4064_v9 = vsel %vm11630_vm15, %v4055_v32, %v4063_v55  ;;  %v4158_v14 = vshrl.u32 %v13238_v49, 16  ;;  %v4161_v41 = vshll.u32 %v13238_v49, 16 }
 0x2c5   : > { %v6358_v1 = vunpack.c.l.b16 %v4064_v9  ;;  %v4210_v56 = vor.u32 %v4209_v59, %v4206_v36  ;;  %v4220_v11 = vrot.slane %v4218_v62, 5  ;;  %v16305_v32 = vshrl.u32 %v13002_v17, 16 }
 0x2c6   : > { %v4214_v34 = vor.u32 %v4213_v12, %v4212_v45  ;;  %v4223_v55 = vrot.slane %v4221_v22, 6  ;;  %v4160_v60 = vrot.slane %v4158_v14, 5  ;;  %v13354_v37 = vpop.permute.xlu0 %2301  ;;  %v4163_v45 = vrot.slane %v4161_v41, 6 }
 0x2c7   : > { %v4166_v47 = vrot.slane %v16305_v32, 5  ;;  %v6373_v46 = vpack.c.b16 %v6358_v1, %v6357_v38  ;;  %v4211_v61 = vrot.slane %v4210_v56, 4  ;;  %v16306_v25 = vshll.u32 %v13002_v17, 16  ;;  %v13367_v56 = vld [vmem:[#allocation3 + $0x38] sm:$0x3] }
 0x2c8   : > { %v4216_v19 = vrot.slane %v4214_v34, 4  ;;  %v4172_v36 = vshrl.u32 %v13346_v53, 16  ;;  %v4224_v49 = vor.u32 %v4223_v55, %v4220_v11  ;;  %v4175_v9 = vshll.u32 %v13346_v53, 16 }
 0x2c9   : > { %v4167_v12 = vrot.slane %v16306_v25, 6  ;;  %6381 = vrot.lane.b32.xlu0 %v6373_v46, %s16279_s17  ;;  %v4112_v38 = vshrl.u32 %v13112_v52, 16  ;;  %v4115_v59 = vshll.u32 %v13112_v52, 16  ;;  %v4215_v62 = vsel %vm11630_vm15, %v4211_v61, %v4214_v34 }
 0x2ca   : > { %v4164_v1 = vor.u32 %v4163_v45, %v4160_v60  ;;  %v4174_v14 = vrot.slane %v4172_v36, 5  ;;  %v4225_v41 = vsel %vm11630_vm15, %v4216_v19, %v4224_v49  ;;  %v6371_v32 = vunpack.c.l.b16 %v4215_v62  ;;  %v13376_v61 = vpop.permute.xlu1 %2303  ;;  %v4228_v49 = vld [vmem:[#allocation3 + $0x24] sm:$0xc] }
 0x2cb   : > { %v4168_v22 = vor.u32 %v4167_v12, %v4166_v47  ;;  %v4177_v46 = vrot.slane %v4175_v9, 6  ;;  %v4114_v11 = vrot.slane %v4112_v38, 5  ;;  %v6372_v55 = vunpack.c.l.b16 %v4225_v41 }
 0x2cc   : > { %v4165_v25 = vrot.slane %v4164_v1, 4  ;;  %v4117_v44 = vrot.slane %v4115_v59, 6  ;;  %v16307_v52 = vshrl.u32 %v13027_v30, 16  ;;  %v16308_v34 = vshll.u32 %v13027_v30, 16 }
 0x2cd   : > { %v4170_v2 = vrot.slane %v4168_v22, 4  ;;  %v4178_v31 = vor.u32 %v4177_v46, %v4174_v14  ;;  %v4126_v60 = vshrl.u32 %v13367_v56, 16  ;;  %v6380_v45 = vpack.c.b16 %v6372_v55, %v6371_v32  ;;  %v4226_v46 = vld [vmem:[#allocation3 + $0xc] sm:$0xc] }
 0x2ce   : > { %v4120_v18 = vrot.slane %v16307_v52, 5  ;;  %v4121_v47 = vrot.slane %v16308_v34, 6  ;;  %v4169_v19 = vsel %vm11630_vm15, %v4165_v25, %v4168_v22  ;;  %v4118_v12 = vor.u32 %v4117_v44, %v4114_v11  ;;  %v13383_v62 = vpop.permute.xlu0 %2515  ;;  %v13386_v44 = vpop.permute.xlu2 %2469 }
 0x2cf   : > { %v4129_v36 = vshll.u32 %v13367_v56, 16  ;;  %v4179_v9 = vsel %vm11630_vm15, %v4170_v2, %v4178_v31  ;;  %v4128_v59 = vrot.slane %v4126_v60, 5  ;;  %6395 = vrot.lane.b32.xlu1 %v6380_v45, %s16279_s17  ;;  %v6367_v1 = vunpack.c.l.b16 %v4169_v19 }
 0x2d0   : > { %v4122_v38 = vor.u32 %v4121_v47, %v4120_v18  ;;  %v6368_v14 = vunpack.c.l.b16 %v4179_v9  ;;  %v4119_v41 = vrot.slane %v4118_v12, 4  ;;  %v9800_v22 = vrot.slane %v4228_v49, 10  ;;  %v10330_v18 = vld [vmem:[#allocation3 + $0x28] sm:$0xf] }
 0x2d1   : > { %v4131_v32 = vrot.slane %v4129_v36, 6  ;;  %v4266_v2 = vrot.slane %v10330_v18, 6  ;;  %v4269_v52 = vrot.slane %v13286_v15, 6  ;;  %v9798_v34 = vrot.slane %v4226_v46, 10 }
 0x2d2   : > { %v4124_v55 = vrot.slane %v4122_v38, 4  ;;  %v6378_v11 = vpack.c.b16 %v6368_v14, %v6367_v1  ;;  %v4123_v25 = vsel %vm11630_vm15, %v4119_v41, %v4122_v38  ;;  %v4252_v19 = vrot.slane %v12975_v58, 6  ;;  %v13402_v1 = vld [vmem:[#allocation3 + $0x5c] sm:$0x3] }
 0x2d3   : > { %v4132_v31 = vor.u32 %v4131_v32, %v4128_v59  ;;  %v4267_v60 = vsel %vm11504_vm6, %v9800_v22, %v4266_v2  ;;  %v4268_v45 = vrot.slane %v4266_v2, 4  ;;  %v6363_v12 = vunpack.c.l.b16 %v4123_v25 }
 0x2d4   : > { %6391 = vrot.lane.b32.xlu2 %v6378_v11, %s16279_s17  ;;  %v6401_v49 = vunpack.c.l.b16 %v4267_v60  ;;  %v4255_v9 = vrot.slane %v13304_v57, 6  ;;  %v4253_v38 = vsel %vm11504_vm6, %v9798_v34, %v4252_v19  ;;  %v4254_v59 = vrot.slane %v4252_v19, 4  ;;  %v10101_v57 = vld [vmem:[#allocation2 + $0x3c] sm:$0xff] }
 0x2d5   : > { %v4133_v47 = vsel %vm11630_vm15, %v4124_v55, %v4132_v31  ;;  %v4270_v15 = vsel %vm11504_vm6, %v4268_v45, %v4269_v52  ;;  %v4181_v14 = vshrl.u32 %v13166_v20, 16  ;;  %v6397_v46 = vunpack.c.l.b16 %v4253_v38  ;;  %v13406_v55 = vpop.permute.xlu1 %2517  ;;  %v4231_v45 = vld [vmem:[#allocation3 + $0x48] sm:$0xc] }
 0x2d6   : > { %v6364_v36 = vunpack.c.l.b16 %v4133_v47  ;;  %v6402_v32 = vunpack.c.l.b16 %v4270_v15  ;;  %v4184_v58 = vshll.u32 %v13166_v20, 16  ;;  %v13408_v22 = vpop.permute.xlu0 %2343  ;;  %v4256_v11 = vsel %vm11504_vm6, %v4254_v59, %v4255_v9  ;;  %v4229_v9 = vld [vmem:[#allocation3 + $0x30] sm:$0xc] }
 0x2d7   : > { %v4183_v25 = vrot.slane %v4181_v14, 5  ;;  %v16309_v31 = vshrl.u32 %v13077_v7, 16  ;;  %v16310_v2 = vshll.u32 %v13077_v7, 16  ;;  %v6398_v47 = vunpack.c.l.b16 %v4256_v11 }
 0x2d8   : > { %v6376_v41 = vpack.c.b16 %v6364_v36, %v6363_v12  ;;  %v6415_v34 = vpack.c.b16 %v6402_v32, %v6401_v49  ;;  %v4186_v20 = vrot.slane %v4184_v58, 6  ;;  %v4195_v60 = vshrl.u32 %v13402_v1, 16 }
 0x2d9   : > { %v4189_v18 = vrot.slane %v16309_v31, 5  ;;  %v4190_v52 = vrot.slane %v16310_v2, 6  ;;  %v2618_v19 = vsel %vm16311_vm5, %v10101_v57, %v13136_v3  ;;  %v4198_v36 = vshll.u32 %v13402_v1, 16  ;;  %v4227_v31 = vld [vmem:[#allocation3 + $0x18] sm:$0xc]  ;;  %vm16318_vm5 = vmmov %vm16268_vm1 }
 0x2da   : > { %6387 = vrot.lane.b32.xlu0 %v6376_v41, %s16279_s17  ;;  %v2637_v15 = vsel %vm2625_vm12, %v2618_v19, %v13054_v8  ;;  %6425 = vrot.lane.b32.xlu1 %v6415_v34, %s10445_s25  ;;  %v6413_v38 = vpack.c.b16 %v6398_v47, %v6397_v46  ;;  %v4187_v49 = vor.u32 %v4186_v20, %v4183_v25  ;;  %v4197_v59 = vrot.slane %v4195_v60, 5  ;;  %v2556_v41 = vpop.permute.xlu2 %2555 }
 0x2db   : > { %v4191_v12 = vor.u32 %v4190_v52, %v4189_v18  ;;  %v2654_v14 = vsel %vm2642_vm13, %v2637_v15, %v13240_v42  ;;  %v4200_v32 = vrot.slane %v4198_v36, 6  ;;  %v9803_v58 = vrot.slane %v4231_v45, 10 }
 0x2dc   : > { %6421 = vrot.lane.b32.xlu2 %v6413_v38, %s10445_s25  ;;  %v4188_v3 = vrot.slane %v4187_v49, 4  ;;  %v4287_v57 = vrot.slane %v13002_v17, 6  ;;  %v4290_v11 = vrot.slane %v13346_v53, 6  ;;  %v9801_v8 = vrot.slane %v4229_v9, 10  ;;  %v4232_v38 = vld [vmem:[#allocation3 + $0x54] sm:$0xc] }
 0x2dd   : > { %v4193_v18 = vrot.slane %v4191_v12, 4  ;;  %v4201_v2 = vor.u32 %v4200_v32, %v4197_v59  ;;  %v4273_v46 = vrot.slane %v13027_v30, 6  ;;  %v4276_v34 = vrot.slane %v13367_v56, 6  ;;  %v13445_v36 = vpop.permute.xlu1 %6269 }
 0x2de   : > { %v4192_v25 = vsel %vm11630_vm15, %v4188_v3, %v4191_v12  ;;  %v4288_v42 = vsel %vm11504_vm6, %v9803_v58, %v4287_v57  ;;  %v4289_v52 = vrot.slane %v4287_v57, 4  ;;  %v13435_v47 = vpop.permute.xlu0 %2429  ;;  %v2671_v17 = vsel %vm2659_vm3, %v2654_v14, %v13356_v28 }
 0x2df   : > { %v4202_v53 = vsel %vm11630_vm15, %v4193_v18, %v4201_v2  ;;  %v4274_v30 = vsel %vm11504_vm6, %v9801_v8, %v4273_v46  ;;  %v9799_v20 = vrot.slane %v4227_v31, 10  ;;  %v6369_v60 = vunpack.c.l.b16 %v4192_v25  ;;  %v10102_v25 = vld [vmem:[#allocation2 + $0x48] sm:$0xff] }
 0x2e0   : > { %v6370_v45 = vunpack.c.l.b16 %v4202_v53  ;;  %v4291_v19 = vsel %vm11504_vm6, %v4289_v52, %v4290_v11  ;;  %v4275_v12 = vrot.slane %v4273_v46, 4  ;;  %v6407_v56 = vunpack.c.l.b16 %v4288_v42 }
 0x2e1   : > { %v6408_v9 = vunpack.c.l.b16 %v4291_v19  ;;  %v4259_v15 = vrot.slane %v13040_v50, 6  ;;  %v4262_v28 = vrot.slane %v13213_v4, 6  ;;  %v6403_v14 = vunpack.c.l.b16 %v4274_v30 }
 0x2e2   : > { %v6379_v49 = vpack.c.b16 %v6370_v45, %v6369_v60  ;;  %v4277_v59 = vsel %vm11504_vm6, %v4275_v12, %v4276_v34  ;;  %v2688_v57 = vsel %vm2676_vm11, %v2671_v17, %v13216_v13  ;;  %v9804_v50 = vrot.slane %v4232_v38, 10  ;;  %v13458_v31 = vpop.permute.xlu2 %2391 }
 0x2e3   : > { %v6418_v32 = vpack.c.b16 %v6408_v9, %v6407_v56  ;;  %v6404_v58 = vunpack.c.l.b16 %v4277_v59  ;;  %v4261_v3 = vrot.slane %v4259_v15, 4  ;;  %v2705_v11 = vsel %vm2693_vm4, %v2688_v57, %v13383_v62 }
 0x2e4   : > { %6393 = vrot.lane.b32.xlu0 %v6379_v49, %s16279_s17  ;;  %v4294_v4 = vrot.slane %v13077_v7, 6  ;;  %v4297_v8 = vrot.slane %v13402_v1, 6  ;;  %v4260_v2 = vsel %vm11504_vm6, %v9799_v20, %v4259_v15  ;;  %v2722_v46 = vsel %vm2710_vm10, %v2705_v11, %v2556_v41  ;;  %v4230_v1 = vld [vmem:[#allocation3 + $0x3c] sm:$0xc]  ;;  %v4233_v15 = vld [vmem:[#allocation3 + $0x60] sm:$0xc] }
 0x2e5   : > { %6431 = vrot.lane.b32.xlu1 %v6418_v32, %s10445_s25  ;;  %v6416_v18 = vpack.c.b16 %v6404_v58, %v6403_v14  ;;  %v4263_v13 = vsel %vm11504_vm6, %v4261_v3, %v4262_v28  ;;  %v2739_v7 = vsel %vm2727_vm14, %v2722_v46, %v13349_v5  ;;  %v4280_v52 = vrot.slane %v13097_v27, 6  ;;  %v13480_v12 = vpop.permute.xlu1 %2431  ;;  %v4309_v32 = vld [vmem:[#allocation3 + $0x24] sm:$0xf]  ;;  %v13497_v11 = vld [vmem:[#allocation3 + $0x28] sm:$0xf] }
 0x2e6   : > { %v6400_v62 = vunpack.c.l.b16 %v4263_v13  ;;  %v4296_v42 = vrot.slane %v4294_v4, 4  ;;  %9771 = vmatmul.msk.bf16.gmra.mxu1 %vm2764_vm8, %v2739_v7  ;;  %v4283_v34 = vrot.slane %v13267_v33, 6  ;;  %v2621_v17 = vsel %vm16312_vm9, %v10102_v25, %v13354_v37  ;;  %v13478_v30 = vpop.permute.xlu0 %2471  ;;  %v10138_v33 = vld [vmem:[#allocation3 + $0x18] sm:$0xff]  ;;  %v4315_v7 = vld [vmem:[#allocation3 + $0x48] sm:$0xf]  ;;  %vm16319_vm9 = vmmov %vm16268_vm1 }
 0x2e7   : > { %6427 = vrot.lane.b32.xlu2 %v6416_v18, %s10445_s25  ;;  %v6399_v53 = vunpack.c.l.b16 %v4260_v2  ;;  %v4295_v41 = vsel %vm11504_vm6, %v9804_v50, %v4294_v4  ;;  %v9802_v60 = vrot.slane %v4230_v1, 10  ;;  %v4282_v45 = vrot.slane %v4280_v52, 4  ;;  %v13499_v50 = vld [vmem:[#allocation3 + $0x2c] sm:$0x1] }
 0x2e8   : > { %v4298_v5 = vsel %vm11504_vm6, %v4296_v42, %v4297_v8  ;;  %v2639_v27 = vsel %vm2625_vm12, %v2621_v17, %v13277_v24  ;;  %v6409_v37 = vunpack.c.l.b16 %v4295_v41  ;;  %v4301_v9 = vrot.slane %v13153_v63, 6  ;;  %v10122_v24 = vld [vmem:[#allocation3] sm:$0xff] }
 0x2e9   : > { %v6410_v20 = vunpack.c.l.b16 %v4298_v5  ;;  %v6414_v19 = vpack.c.b16 %v6400_v62, %v6399_v53  ;;  %v4284_v56 = vsel %vm11504_vm6, %v4282_v45, %v4283_v34  ;;  %v4281_v38 = vsel %vm11504_vm6, %v9802_v60, %v4280_v52  ;;  %v10141_v42 = vld [vmem:[#allocation3 + $0x3c] sm:$0xff]  ;;  %v13514_v34 = vld [vmem:[#allocation3 + $0x4c] sm:$0xf]  ;;  %v10139_v60 = vld [vmem:[#allocation3 + $0x24] sm:$0xff] }
 0x2ea   : > { %v4304_v49 = vrot.slane %v13328_v21, 6  ;;  %v6406_v59 = vunpack.c.l.b16 %v4284_v56  ;;  %v2656_v14 = vsel %vm2642_vm13, %v2639_v27, %v13306_v40  ;;  %v2598_v58 = vpop.permute.xlu2 %2597  ;;  %v9805_v63 = vrot.slane %v4233_v15, 10 }
 0x2eb   : > { %v6419_v28 = vpack.c.b16 %v6410_v20, %v6409_v37  ;;  %v4303_v3 = vrot.slane %v4301_v9, 4  ;;  %v2673_v57 = vsel %vm2659_vm3, %v2656_v14, %v13435_v47  ;;  %v6695_v21 = vsel %vm16268_vm1, %v10122_v24, %v12364_v43  ;;  %v10103_v20 = vld [vmem:[#allocation2 + $0x54] sm:$0xff] }
 0x2ec   : > { %6423 = vrot.lane.b32.xlu0 %v6414_v19, %s10445_s25  ;;  %v6405_v4 = vunpack.c.l.b16 %v4281_v38  ;;  %v2690_v8 = vsel %vm2676_vm11, %v2673_v57, %v13386_v44  ;;  %v4356_v18 = vshrl.u32 %v4309_v32, 16  ;;  %v4359_v2 = vshll.u32 %v4309_v32, 16 }
 0x2ed   : > { %6469 = vrot.lane.b32.xlu1 %v10138_v33, %s10446_s23  ;;  %v4305_v40 = vsel %vm11504_vm6, %v4303_v3, %v4304_v49  ;;  %v16093_v46 = vshll.u32 %v13497_v11, 16  ;;  %v16094_v47 = vshrl.u32 %v13497_v11, 16  ;;  %v4375_v25 = vshll.u32 %v13499_v50, 16  ;;  %v13523_v5 = vpop.permute.xlu1 %6275  ;;  %v13538_v49 = vld [vmem:[#allocation3 + $0x50] sm:$0x1] }
 0x2ee   : > { %v6417_v13 = vpack.c.b16 %v6406_v59, %v6405_v4  ;;  %v2558_v62 = vpop.permute.xlu0 %2557  ;;  %v6718_v43 = vsel %vm2625_vm12, %v6695_v21, %v12330_v0  ;;  %v4302_v1 = vsel %vm11504_vm6, %v9805_v63, %v4301_v9  ;;  %v4358_v52 = vrot.slane %v4356_v18, 4  ;;  %v13553_v4 = vld [vmem:[#allocation3 + $0x38] sm:$0x1] }
 0x2ef   : > { %6433 = vrot.lane.b32.xlu2 %v6419_v28, %s10445_s25  ;;  %v4361_v44 = vrot.slane %v4359_v2, 5  ;;  %v6412_v17 = vunpack.c.l.b16 %v4305_v40  ;;  %v13519_v53 = vrot.slane %v16093_v46, 5  ;;  %v4371_v41 = vrot.slane %v16094_v47, 4  ;;  %v4311_v28 = vld [vmem:[#allocation3 + $0x30] sm:$0xf] }
 0x2f0   : > { %v2707_v0 = vsel %vm2693_vm4, %v2690_v8, %v13406_v55  ;;  %v4377_v19 = vrot.slane %v4375_v25, 5  ;;  %v4428_v33 = vshrl.u32 %v4315_v7, 16  ;;  %v4431_v9 = vshll.u32 %v4315_v7, 16  ;;  %v4307_v25 = vld [vmem:[#allocation3 + $0x18] sm:$0xf] }
 0x2f1   : > { %v4362_v45 = vor.u32 %v4361_v44, %v4358_v52  ;;  %v2724_v27 = vsel %vm2710_vm10, %v2707_v0, %v2558_v62  ;;  %v4372_v37 = vor.u32 %v4371_v41, %v13519_v53  ;;  %v16089_v15 = vshll.u32 %v13514_v34, 16  ;;  %v10144_v62 = vld [vmem:[#allocation3 + $0x60] sm:$0xff] }
 0x2f2   : > { %v2741_v56 = vsel %vm2727_vm14, %v2724_v27, %v2598_v58  ;;  %v6734_v55 = vsel %vm2642_vm13, %v6718_v43, %v12246_v6  ;;  %v2624_v38 = vsel %vm16313_vm2, %v10103_v20, %v13376_v61  ;;  %v4430_v24 = vrot.slane %v4428_v33, 4  ;;  %v13545_v6 = vld [vmem:[#allocation3 + $0x34] sm:$0xf]  ;;  %v13547_v3 = vpop.permute.xlu2 %6271  ;;  %vm16339_vm2 = vmmov %vm16268_vm1 }
 0x2f3   : > { %v16090_v59 = vshrl.u32 %v13514_v34, 16  ;;  %v6411_v14 = vunpack.c.l.b16 %v4302_v1  ;;  %v4373_v32 = vrot.slane %v4372_v37, 4  ;;  %v4433_v58 = vrot.slane %v4431_v9, 5  ;;  %v13579_v37 = vld [vmem:[#allocation3 + $0x20] sm:$0x1] }
 0x2f4   : > { %6429 = vrot.lane.b32.xlu0 %v6417_v13, %s10445_s25  ;;  %v13543_v63 = vrot.slane %v16089_v15, 5  ;;  %v2641_v61 = vsel %vm2625_vm12, %v2624_v38, %v13408_v22  ;;  %v4363_v57 = vrot.slane %v4362_v45, 4  ;;  %v4380_v40 = vshrl.u32 %v4311_v28, 16 }
 0x2f5   : > { %6475 = vrot.lane.b32.xlu1 %v10141_v42, %s10446_s23  ;;  %v4443_v21 = vrot.slane %v16090_v59, 4  ;;  %v6750_v8 = vsel %vm2659_vm3, %v6734_v55, %v12293_v51  ;;  %v6420_v18 = vpack.c.b16 %v6412_v17, %v6411_v14  ;;  %v4378_v2 = vsel %vm11616_vm0, %v4373_v32, %v4377_v19  ;;  %v10142_v17 = vld [vmem:[#allocation3 + $0x48] sm:$0xff]  ;;  %v13721_v59 = vld [vmem:[#allocation3 + $0x54] sm:$0xe] }
 0x2f6   : > { %9772 = vmatmul.msk.bf16.gmra.mxu1 %vm2764_vm8, %v2741_v56  ;;  %v4447_v13 = vshll.u32 %v13538_v49, 16  ;;  %v4434_v7 = vor.u32 %v4433_v58, %v4430_v24  ;;  %v4382_v43 = vrot.slane %v4380_v40, 4  ;;  %v4383_v42 = vshll.u32 %v4311_v28, 16  ;;  %v13581_v56 = vpop.permute.xlu1 %6305 }
 0x2f7   : > { %6471 = vrot.lane.b32.xlu2 %v10139_v60, %s10446_s23  ;;  %v4444_v22 = vor.u32 %v4443_v21, %v13543_v63  ;;  %v2658_v1 = vsel %vm2642_vm13, %v2641_v61, %v13458_v31  ;;  %v16087_v51 = vshll.u32 %v13545_v6, 16  ;;  %v16088_v52 = vshrl.u32 %v13545_v6, 16  ;;  %v13573_v60 = vld [vmem:[#allocation3 + $0x1c] sm:$0xf]  ;;  %v10140_v21 = vld [vmem:[#allocation3 + $0x30] sm:$0xff] }
 0x2f8   : > { %v4399_v44 = vshll.u32 %v13553_v4, 16  ;;  %v2675_v41 = vsel %vm2659_vm3, %v2658_v1, %v13480_v12  ;;  %v4368_v0 = vsel %vm11616_vm0, %v4363_v57, %v13519_v53  ;;  %v4385_v20 = vrot.slane %v4383_v42, 5  ;;  %v4321_v42 = vld [vmem:[#allocation3 + $0x6c] sm:$0xf] }
 0x2f9   : > { %v4332_v31 = vshrl.u32 %v4307_v25, 16  ;;  %v6488_v45 = vunpack.c.l.b16 %v4378_v2  ;;  %v4449_v19 = vrot.slane %v4447_v13, 5  ;;  %v4391_v27 = vrot.slane %v16087_v51, 5 }
 0x2fa   : > { %v4395_v33 = vrot.slane %v16088_v52, 4  ;;  %v4435_v12 = vrot.slane %v4434_v7, 4  ;;  %v4445_v53 = vrot.slane %v4444_v22, 4  ;;  %v4386_v9 = vor.u32 %v4385_v20, %v4382_v43  ;;  %v13678_v52 = vld [vmem:[#allocation3 + $0x18] sm:$0xe] }
 0x2fb   : > { %v4401_v28 = vrot.slane %v4399_v44, 5  ;;  %v4334_v38 = vrot.slane %v4332_v31, 4  ;;  %v4335_v24 = vshll.u32 %v4307_v25, 16  ;;  %v16097_v14 = vshll.u32 %v13573_v60, 16 }
 0x2fc   : > { %6435 = vrot.lane.b32.xlu0 %v6420_v18, %s10445_s25  ;;  %v4396_v55 = vor.u32 %v4395_v33, %v4391_v27  ;;  %v6487_v32 = vunpack.c.l.b16 %v4368_v0  ;;  %v4387_v58 = vrot.slane %v4386_v9, 4  ;;  %v16098_v61 = vshrl.u32 %v13573_v60, 16  ;;  %s10447_s25 = smov 44  }
 0x2fd   : > { %6481 = vrot.lane.b32.xlu1 %v10144_v62, %s10446_s23  ;;  %v4351_v57 = vshll.u32 %v13579_v37, 16  ;;  %v4450_v40 = vsel %vm11616_vm0, %v4445_v53, %v4449_v19  ;;  %v4337_v2 = vrot.slane %v4335_v24, 5  ;;  %v4343_v13 = vrot.slane %v16097_v14, 5  ;;  %v13595_v62 = vpop.permute.xlu2 %6301  ;;  %v13616_v19 = vpop.permute.xlu0 %6273 }
 0x2fe   : > { %v4397_v18 = vrot.slane %v4396_v55, 4  ;;  %v13593_v25 = vsel %vm2676_vm11, %v6750_v8, %v12409_v26  ;;  %16315 = vst [vmem:[#allocation60_spill] sm:$0xff] %v13595_v62  ;;  %v2692_v7 = vsel %vm2676_vm11, %v2675_v41, %v13478_v30  ;;  %v6502_v22 = vpack.c.b16 %v6488_v45, %v6487_v32  ;;  %v10145_v30 = vld [vmem:[#allocation3 + $0x6c] sm:$0xff] }
 0x2ff   : > { %6477 = vrot.lane.b32.xlu2 %v10142_v17, %s10446_s23  ;;  %16314 = vst [vmem:[#allocation59_spill] sm:$0xff] %v13593_v25  ;;  %v4347_v43 = vrot.slane %v16098_v61, 4  ;;  %v4440_v1 = vsel %vm11616_vm0, %v4435_v12, %v13543_v63  ;;  %v4392_v26 = vsel %vm11616_vm0, %v4387_v58, %v4391_v27  ;;  %v4338_v44 = vor.u32 %v4337_v2, %v4334_v38  ;;  %v13609_v17 = vld [vmem:[#allocation3 + $0x70] sm:$0xf]  ;;  %v4317_v38 = vld [vmem:[#allocation3 + $0x54] sm:$0xf] }
 0x300   : > { %v4402_v8 = vsel %vm11616_vm0, %v4397_v18, %v4401_v28  ;;  %v6494_v41 = vunpack.c.l.b16 %v4450_v40  ;;  %v4353_v31 = vrot.slane %v4351_v57, 5  ;;  %v13614_v63 = vsel %vm2693_vm4, %v2692_v7, %v12197_v35  ;;  %v13619_v28 = vld [vmem:[#allocation3 + $0x74] sm:$0x1]  ;;  %v13625_v57 = vld [vmem:[#allocation3 + $0x58] sm:$0xf]  ;;  %v16338_v25 = vld [vmem:[#allocation45_spill] sm:$0xff] }
 0x301   : > { %v6490_v0 = vunpack.c.l.b16 %v4402_v8  ;;  %v4348_v20 = vor.u32 %v4347_v43, %v4343_v13  ;;  %v4339_v45 = vrot.slane %v4338_v44, 4  ;;  %v4500_v27 = vshrl.u32 %v4321_v42, 16 }
 0x302   : > { %v4503_v33 = vshll.u32 %v4321_v42, 16  ;;  %v6493_v12 = vunpack.c.l.b16 %v4440_v1  ;;  %v6489_v53 = vunpack.c.l.b16 %v4392_v26  ;;  %v16085_v55 = vshll.u32 %v13609_v17, 16  ;;  %v13636_v26 = vld [vmem:[#allocation3 + $0x5c] sm:$0x1] }
 0x303   : > { %v4349_v9 = vrot.slane %v4348_v20, 4  ;;  %v4344_v24 = vsel %vm11616_vm0, %v4339_v45, %v4343_v13  ;;  %v4502_v35 = vrot.slane %v4500_v27, 4  ;;  %v16086_v58 = vshrl.u32 %v13609_v17, 16 }
 0x304   : > { %6473 = vrot.lane.b32.xlu0 %v10140_v21, %s10446_s23  ;;  %v4505_v32 = vrot.slane %v4503_v33, 5  ;;  %v13627_v21 = vpop.permute.xlu1 %6311  ;;  %v6505_v40 = vpack.c.b16 %v6494_v41, %v6493_v12  ;;  %v6503_v18 = vpack.c.b16 %v6490_v0, %v6489_v53  ;;  %v4511_v7 = vrot.slane %v16085_v55, 5  ;;  %v4313_v0 = vld [vmem:[#allocation3 + $0x3c] sm:$0xf] }
 0x305   : > { %6511 = vrot.lane.b32.xlu1 %v6502_v22, %s10447_s25  ;;  %v4354_v2 = vsel %vm11616_vm0, %v4349_v9, %v4353_v31  ;;  %v10143_v22 = vld [vmem:[#allocation3 + $0x54] sm:$0xff]  ;;  %v6485_v43 = vunpack.c.l.b16 %v4344_v24  ;;  %v4515_v13 = vrot.slane %v16086_v58, 4  ;;  %v4519_v1 = vshll.u32 %v13619_v28, 16  ;;  %v13641_v33 = vpop.permute.xlu2 %6307  ;;  %v13648_v24 = vld [vmem:[#allocation3 + $0x40] sm:$0xf] }
 0x306   : > { %v4506_v42 = vor.u32 %v4505_v32, %v4502_v35  ;;  %v4452_v8 = vshrl.u32 %v4317_v38, 16  ;;  %v4455_v44 = vshll.u32 %v4317_v38, 16  ;;  %v16084_v41 = vshrl.u32 %v13625_v57, 16 }
 0x307   : > { %6483 = vrot.lane.b32.xlu2 %v10145_v30, %s10446_s23  ;;  %v16083_v30 = vshll.u32 %v13625_v57, 16  ;;  %v6486_v20 = vunpack.c.l.b16 %v4354_v2  ;;  %v4516_v45 = vor.u32 %v4515_v13, %v4511_v7  ;;  %v4521_v27 = vrot.slane %v4519_v1, 5  ;;  %v13654_v1 = vld [vmem:[#allocation3 + $0x44] sm:$0x1] }
 0x308   : > { %v4507_v31 = vrot.slane %v4506_v42, 4  ;;  %v4454_v12 = vrot.slane %v4452_v8, 4  ;;  %v4457_v53 = vrot.slane %v4455_v44, 5  ;;  %v4467_v38 = vrot.slane %v16084_v41, 4 }
 0x309   : > { %v4463_v9 = vrot.slane %v16083_v30, 5  ;;  %v4517_v32 = vrot.slane %v4516_v45, 4  ;;  %v4471_v2 = vshll.u32 %v13636_v26, 16  ;;  %v4407_v8 = vshll.u32 %v4313_v0, 16 }
 0x30a   : > { %v4512_v35 = vsel %vm11616_vm0, %v4507_v31, %v4511_v7  ;;  %v4458_v42 = vor.u32 %v4457_v53, %v4454_v12  ;;  %v16095_v55 = vshll.u32 %v13648_v24, 16  ;;  %v13659_v7 = vpop.permute.xlu0 %6303  ;;  %v4423_v53 = vshll.u32 %v13654_v1, 16 }
 0x30b   : > { %v4468_v13 = vor.u32 %v4467_v38, %v4463_v9  ;;  %v4522_v44 = vsel %vm11616_vm0, %v4517_v32, %v4521_v27  ;;  %v4473_v30 = vrot.slane %v4471_v2, 5  ;;  %16316 = vst [vmem:[#allocation61_spill] sm:$0xff] %v13659_v7  ;;  %v4409_v51 = vrot.slane %v4407_v8, 5  ;;  %v13665_v27 = vld [vmem:[#allocation3 + $0x30] sm:$0xe]  ;;  %v10124_v32 = vld [vmem:[#allocation3 + $0x18] sm:$0xff] }
 0x30c   : > { %6479 = vrot.lane.b32.xlu0 %v10143_v22, %s10446_s23  ;;  %v4404_v22 = vshrl.u32 %v4313_v0, 16  ;;  %v6500_v31 = vunpack.c.l.b16 %v4522_v44  ;;  %v4459_v45 = vrot.slane %v4458_v42, 4  ;;  %v4415_v12 = vrot.slane %v16095_v55, 5  ;;  %v13667_v38 = vpop.permute.xlu1 %6341  ;;  %s10448_s23 = smov 48  }
 0x30d   : > { %6517 = vrot.lane.b32.xlu1 %v6505_v40, %s10447_s25  ;;  %v6499_v40 = vunpack.c.l.b16 %v4512_v35  ;;  %v4469_v58 = vrot.slane %v4468_v13, 4  ;;  %v6501_v35 = vpack.c.b16 %v6486_v20, %v6485_v43  ;;  %v16096_v0 = vshrl.u32 %v13648_v24, 16  ;;  %16317 = vst [vmem:[#allocation62_spill] sm:$0xff] %v13667_v38 }
 0x30e   : > { %v4406_v41 = vrot.slane %v4404_v22, 4  ;;  %v4464_v22 = vsel %vm11616_vm0, %v4459_v45, %v4463_v9  ;;  %v4319_v45 = vld [vmem:[#allocation3 + $0x60] sm:$0xf] }
 0x30f   : > { %6513 = vrot.lane.b32.xlu2 %v6503_v18, %s10447_s25  ;;  %v10123_v18 = vld [vmem:[#allocation3 + $0xc] sm:$0xff]  ;;  %v6508_v2 = vpack.c.b16 %v6500_v31, %v6499_v40  ;;  %v4474_v42 = vsel %vm11616_vm0, %v4469_v58, %v4473_v30  ;;  %v6495_v13 = vunpack.c.l.b16 %v4464_v22  ;;  %v4419_v44 = vrot.slane %v16096_v0, 4 }
 0x310   : > { %v4410_v43 = vor.u32 %v4409_v51, %v4406_v41  ;;  %v6698_v20 = vsel %vm16318_vm5, %v10123_v18, %v12439_v39  ;;  %v6496_v8 = vunpack.c.l.b16 %v4474_v42  ;;  %v6701_v40 = vsel %vm16319_vm9, %v10124_v32, %v12626_v48  ;;  %v13689_v18 = vpop.permute.xlu2 %6313  ;;  %vm16353_vm5 = vmmov %vm16268_vm1 }
 0x311   : > { %v2726_v51 = vsel %vm2710_vm10, %v13614_v63, %v12403_v23  ;;  %v9808_v39 = vrot.slane %v13665_v27, 9  ;;  %v4420_v30 = vor.u32 %v4419_v44, %v4415_v12  ;;  %v4425_v41 = vrot.slane %v4423_v53, 5  ;;  %vm16355_vm9 = vmmov %vm16268_vm1 }
 0x312   : > { %v4411_v9 = vrot.slane %v4410_v43, 4  ;;  %v6506_v58 = vpack.c.b16 %v6496_v8, %v6495_v13  ;;  %v2743_v31 = vsel %vm2727_vm14, %v2726_v51, %v12448_v29  ;;  %v4574_v23 = vrot.slane %v13553_v4, 5  ;;  %v13702_v43 = vld [vmem:[#allocation3 + $0x64] sm:$0xf] }
 0x313   : > { %9773 = vmatmul.msk.bf16.gmra.mxu1 %vm2764_vm8, %v2743_v31  ;;  %v9806_v63 = vrot.slane %v13678_v52, 9  ;;  %v4421_v53 = vrot.slane %v4420_v30, 4  ;;  %v4557_v29 = vrot.slane %v13573_v60, 5  ;;  %v4476_v13 = vshrl.u32 %v4319_v45, 16  ;;  %v13710_v30 = vpop.permute.xlu0 %6309 }
 0x314   : > { %6509 = vrot.lane.b32.xlu0 %v6501_v35, %s10447_s25  ;;  %v4416_v48 = vsel %vm11616_vm0, %v4411_v9, %v4415_v12  ;;  %v4571_v35 = vrot.slane %v13545_v6, 5  ;;  %v4479_v8 = vshll.u32 %v4319_v45, 16  ;;  %v16092_v15 = vshrl.u32 %v13702_v43, 16 }
 0x315   : > { %6523 = vrot.lane.b32.xlu1 %v6508_v2, %s10447_s25  ;;  %v6491_v32 = vunpack.c.l.b16 %v4416_v48  ;;  %v4560_v2 = vrot.slane %v13579_v37, 5  ;;  %v4426_v4 = vsel %vm11616_vm0, %v4421_v53, %v4425_v41  ;;  %v4558_v9 = vsel %vm11602_vm7, %v9806_v63, %v4557_v29 }
 0x316   : > { %v4572_v42 = vsel %vm11602_vm7, %v9808_v39, %v4571_v35  ;;  %v4573_v12 = vrot.slane %v4571_v35, 4  ;;  %v4559_v51 = vrot.slane %v4557_v29, 4  ;;  %v6492_v37 = vunpack.c.l.b16 %v4426_v4 }
 0x317   : > { %6519 = vrot.lane.b32.xlu2 %v6506_v58, %s10447_s25  ;;  %v6529_v44 = vunpack.c.l.b16 %v4572_v42  ;;  %v13708_v58 = vld [vmem:[#allocation3 + $0x68] sm:$0x1]  ;;  %v6525_v31 = vunpack.c.l.b16 %v4558_v9  ;;  %v4478_v48 = vrot.slane %v4476_v13, 4  ;;  %v4481_v41 = vrot.slane %v4479_v8, 5  ;;  %v13717_v42 = vpop.permute.xlu1 %6347  ;;  %v13727_v8 = vld [vmem:[#allocation3 + $0x3c] sm:$0xe] }
 0x318   : > { %v4575_v39 = vsel %vm11602_vm7, %v4573_v12, %v4574_v23  ;;  %v4561_v45 = vsel %vm11602_vm7, %v4559_v51, %v4560_v2  ;;  %v16091_v53 = vshll.u32 %v13702_v43, 16  ;;  %v6504_v63 = vpack.c.b16 %v6492_v37, %v6491_v32  ;;  %v16321_v23 = vld [vmem:[#allocation31_spill] sm:$0xff]  ;;  %v16322_v51 = vld [vmem:[#allocation34_spill] sm:$0xff]  ;;  %v16324_v37 = vld [vmem:[#allocation32_spill] sm:$0xff] }
 0x319   : > { %v6530_v35 = vunpack.c.l.b16 %v4575_v39  ;;  %v6526_v29 = vunpack.c.l.b16 %v4561_v45  ;;  %v4495_v4 = vshll.u32 %v13708_v58, 16  ;;  %v6720_v12 = vsel %vm2625_vm12, %v6698_v20, %v16321_v23  ;;  %v13742_v23 = vld [vmem:[#allocation3 + $0x24] sm:$0xe] }
 0x31a   : > { %v4482_v9 = vor.u32 %v4481_v41, %v4478_v48  ;;  %v4487_v2 = vrot.slane %v16091_v53, 5  ;;  %v13731_v32 = vsel %vm2642_vm13, %v6720_v12, %v16322_v51  ;;  %v6722_v39 = vsel %vm2625_vm12, %v6701_v40, %v16324_v37  ;;  %v10125_v12 = vld [vmem:[#allocation3 + $0x24] sm:$0xff]  ;;  %v13744_v40 = vpop.permute.xlu2 %6343 }
 0x31b   : > { %v6543_v13 = vpack.c.b16 %v6530_v35, %v6529_v44  ;;  %16323 = vst [vmem:[#allocation29_spill] sm:$0xff] %v13731_v32  ;;  %v6541_v45 = vpack.c.b16 %v6526_v29, %v6525_v31  ;;  %v4491_v20 = vrot.slane %v16092_v15, 4  ;;  %v9811_v48 = vrot.slane %v13721_v59, 9  ;;  %v16327_v15 = vld [vmem:[#allocation41_spill] sm:$0xff] }
 0x31c   : > { %6515 = vrot.lane.b32.xlu0 %v6504_v63, %s10447_s25  ;;  %v4483_v44 = vrot.slane %v4482_v9, 4  ;;  %v4592_v35 = vrot.slane %v13625_v57, 5  ;;  %v4595_v41 = vrot.slane %v13636_v26, 5  ;;  %16325 = vst [vmem:[#allocation31_spill] sm:$0xff] %v13744_v40  ;;  %v4497_v63 = vrot.slane %v4495_v4, 5  ;;  %v16326_v9 = vld [vmem:[#allocation36_spill] sm:$0xff] }
 0x31d   : > { %6553 = vrot.lane.b32.xlu1 %v6543_v13, %s10448_s23  ;;  %v4492_v31 = vor.u32 %v4491_v20, %v4487_v2  ;;  %v9809_v29 = vrot.slane %v13727_v8, 9  ;;  %v4578_v13 = vrot.slane %v13648_v24, 5  ;;  %v13751_v51 = vsel %vm2642_vm13, %v6722_v39, %v16326_v9  ;;  %v13777_v40 = vld [vmem:[#allocation3 + $0x20] sm:$0x3] }
 0x31e   : > { %v4593_v26 = vsel %vm11602_vm7, %v9811_v48, %v4592_v35  ;;  %v4594_v37 = vrot.slane %v4592_v35, 4  ;;  %v4581_v53 = vrot.slane %v13654_v1, 5  ;;  %v6704_v46 = vsel %vm16268_vm1, %v10125_v12, %v16327_v15  ;;  %v13766_v35 = vpop.permute.xlu0 %6315 }
 0x31f   : > { %6549 = vrot.lane.b32.xlu2 %v6541_v45, %s10448_s23  ;;  %v4488_v4 = vsel %vm11616_vm0, %v4483_v44, %v4487_v2  ;;  %v4493_v45 = vrot.slane %v4492_v31, 4  ;;  %v9807_v20 = vrot.slane %v13742_v23, 9  ;;  %v4579_v39 = vsel %vm11602_vm7, %v9809_v29, %v4578_v13  ;;  %v13773_v55 = vpop.permute.xlu1 %6353  ;;  %v16328_v29 = vld [vmem:[#allocation40_spill] sm:$0xff] }
 0x320   : > { %v4596_v47 = vsel %vm11602_vm7, %v4594_v37, %v4595_v41  ;;  %v4580_v9 = vrot.slane %v4578_v13, 4  ;;  %v4564_v48 = vrot.slane %v13497_v11, 5  ;;  %v6535_v1 = vunpack.c.l.b16 %v4593_v26 }
 0x321   : > { %v4498_v15 = vsel %vm11616_vm0, %v4493_v45, %v4497_v63  ;;  %v6536_v12 = vunpack.c.l.b16 %v4596_v47  ;;  %v4567_v2 = vrot.slane %v13499_v50, 5  ;;  %v6497_v44 = vunpack.c.l.b16 %v4488_v4 }
 0x322   : > { %v6498_v31 = vunpack.c.l.b16 %v4498_v15  ;;  %v4582_v41 = vsel %vm11602_vm7, %v4580_v9, %v4581_v53  ;;  %v4566_v37 = vrot.slane %v4564_v48, 4  ;;  %v6724_v13 = vsel %vm2625_vm12, %v6704_v46, %v16328_v29  ;;  %v13783_v53 = vld [vmem:[#allocation3 + $0x60] sm:$0xe] }
 0x323   : > { %v6546_v0 = vpack.c.b16 %v6536_v12, %v6535_v1  ;;  %v6531_v14 = vunpack.c.l.b16 %v4579_v39  ;;  %v6532_v61 = vunpack.c.l.b16 %v4582_v41  ;;  %v4620_v47 = vshrl.u32 %v13678_v52, 16 }
 0x324   : > { %v6507_v63 = vpack.c.b16 %v6498_v31, %v6497_v44  ;;  %v4568_v50 = vsel %vm11602_vm7, %v4566_v37, %v4567_v2  ;;  %v4623_v26 = vshll.u32 %v13678_v52, 16  ;;  %v4565_v46 = vsel %vm11602_vm7, %v9807_v20, %v4564_v48  ;;  %v13795_v44 = vld [vmem:[#allocation3 + $0x48] sm:$0xe] }
 0x325   : > { %6559 = vrot.lane.b32.xlu1 %v6546_v0, %s10448_s23  ;;  %v6544_v4 = vpack.c.b16 %v6532_v61, %v6531_v14  ;;  %v16329_v45 = vshrl.u32 %v13573_v60, 16  ;;  %v16330_v9 = vshll.u32 %v13573_v60, 16  ;;  %v4622_v1 = vrot.slane %v4620_v47, 5  ;;  %v13797_v14 = vpop.permute.xlu2 %6349 }
 0x326   : > { %6521 = vrot.lane.b32.xlu0 %v6507_v63, %s10447_s25  ;;  %v4625_v12 = vrot.slane %v4623_v26, 6  ;;  %v4634_v52 = vshrl.u32 %v13777_v40, 16  ;;  %v4637_v2 = vshll.u32 %v13777_v40, 16  ;;  %v6528_v61 = vunpack.c.l.b16 %v4568_v50  ;;  %s10449_s25 = smov 52  }
 0x327   : > { %v4628_v39 = vrot.slane %v16329_v45, 5  ;;  %v4629_v15 = vrot.slane %v16330_v9, 6  ;;  %6555 = vrot.lane.b32.xlu2 %v6544_v4, %s10448_s23  ;;  %v9812_v20 = vrot.slane %v13783_v53, 9  ;;  %v4599_v48 = vrot.slane %v13702_v43, 5 }
 0x328   : > { %v4626_v31 = vor.u32 %v4625_v12, %v4622_v1  ;;  %v4636_v41 = vrot.slane %v4634_v52, 5  ;;  %v4639_v37 = vrot.slane %v4637_v2, 6  ;;  %v4602_v29 = vrot.slane %v13708_v58, 5 }
 0x329   : > { %v4630_v0 = vor.u32 %v4629_v15, %v4628_v39  ;;  %v6527_v63 = vunpack.c.l.b16 %v4565_v46  ;;  %v4600_v47 = vsel %vm11602_vm7, %v9812_v20, %v4599_v48  ;;  %v4601_v26 = vrot.slane %v4599_v48, 4  ;;  %v13807_v15 = vpop.permute.xlu0 %6345  ;;  %v13818_v48 = vpop.permute.xlu1 %6383 }
 0x32a   : > { %v9810_v45 = vrot.slane %v13795_v44, 9  ;;  %v4627_v9 = vrot.slane %v4626_v31, 4  ;;  %v4640_v50 = vor.u32 %v4639_v37, %v4636_v41  ;;  %v4585_v39 = vrot.slane %v13514_v34, 5  ;;  %16331 = vst [vmem:[#allocation34_spill] sm:$0xff] %v13818_v48  ;;  %v16332_v31 = vld [vmem:[#allocation38_spill] sm:$0xff] }
 0x32b   : > { %v4632_v4 = vrot.slane %v4630_v0, 4  ;;  %v6542_v38 = vpack.c.b16 %v6528_v61, %v6527_v63  ;;  %v4603_v1 = vsel %vm11602_vm7, %v4601_v26, %v4602_v29  ;;  %v6537_v12 = vunpack.c.l.b16 %v4600_v47  ;;  %v13822_v63 = vld [vmem:[#allocation3 + $0x44] sm:$0x3] }
 0x32c   : > { %v4588_v58 = vrot.slane %v13538_v49, 5  ;;  %v4631_v46 = vsel %vm11630_vm15, %v4627_v9, %v4630_v0  ;;  %v6538_v2 = vunpack.c.l.b16 %v4603_v1  ;;  %v4586_v20 = vsel %vm11602_vm7, %v9810_v45, %v4585_v39 }
 0x32d   : > { %v4641_v52 = vsel %vm11630_vm15, %v4632_v4, %v4640_v50  ;;  %v6740_v61 = vsel %vm2642_vm13, %v6724_v13, %v16332_v31  ;;  %v6565_v41 = vunpack.c.l.b16 %v4631_v46  ;;  %v4587_v29 = vrot.slane %v4585_v39, 4 }
 0x32e   : > { %v6566_v37 = vunpack.c.l.b16 %v4641_v52  ;;  %6551 = vrot.lane.b32.xlu0 %v6542_v38, %s10448_s23  ;;  %v6547_v49 = vpack.c.b16 %v6538_v2, %v6537_v12  ;;  %v6533_v0 = vunpack.c.l.b16 %v4586_v20  ;;  %v4689_v47 = vshrl.u32 %v13727_v8, 16  ;;  %v13835_v52 = vpop.permute.xlu2 %6355  ;;  %v13839_v2 = vld [vmem:[#allocation3 + $0x2c] sm:$0x3] }
 0x32f   : > { %v4692_v26 = vshll.u32 %v13727_v8, 16  ;;  %v4589_v45 = vsel %vm11602_vm7, %v4587_v29, %v4588_v58  ;;  %v16333_v4 = vshrl.u32 %v13648_v24, 16  ;;  %v16334_v50 = vshll.u32 %v13648_v24, 16  ;;  %16335 = vst [vmem:[#allocation32_spill] sm:$0xff] %v13835_v52 }
 0x330   : > { %v6581_v9 = vpack.c.b16 %v6566_v37, %v6565_v41  ;;  %6561 = vrot.lane.b32.xlu2 %v6547_v49, %s10448_s23  ;;  %v6534_v1 = vunpack.c.l.b16 %v4589_v45  ;;  %v4691_v38 = vrot.slane %v4689_v47, 5  ;;  %v4703_v46 = vshrl.u32 %v13822_v63, 16 }
 0x331   : > { %v4697_v13 = vrot.slane %v16333_v4, 5  ;;  %v4698_v39 = vrot.slane %v16334_v50, 6  ;;  %v4694_v12 = vrot.slane %v4692_v26, 6  ;;  %v4706_v58 = vshll.u32 %v13822_v63, 16  ;;  %v13845_v26 = vld [vmem:[#allocation3 + $0x6c] sm:$0xe] }
 0x332   : > { %6589 = vrot.lane.b32.xlu1 %v6581_v9, %s10449_s25  ;;  %v4643_v20 = vshrl.u32 %v13742_v23, 16  ;;  %v4646_v31 = vshll.u32 %v13742_v23, 16  ;;  %v6545_v41 = vpack.c.b16 %v6534_v1, %v6533_v0  ;;  %v4705_v29 = vrot.slane %v4703_v46, 5  ;;  %v13851_v0 = vpop.permute.xlu0 %6351  ;;  %v10126_v1 = vld [vmem:[#allocation3 + $0x30] sm:$0xff] }
 0x333   : > { %v4699_v8 = vor.u32 %v4698_v39, %v4697_v13  ;;  %v4695_v37 = vor.u32 %v4694_v12, %v4691_v38  ;;  %v16336_v49 = vshrl.u32 %v13497_v11, 16  ;;  %v4708_v4 = vrot.slane %v4706_v58, 6 }
 0x334   : > { %v4645_v9 = vrot.slane %v4643_v20, 5  ;;  %v4648_v13 = vrot.slane %v4646_v31, 6  ;;  %v16337_v39 = vshll.u32 %v13497_v11, 16  ;;  %v4657_v7 = vshrl.u32 %v13839_v2, 16 }
 0x335   : > { %v4651_v47 = vrot.slane %v16336_v49, 5  ;;  %v4701_v45 = vrot.slane %v4699_v8, 4  ;;  %v4696_v50 = vrot.slane %v4695_v37, 4  ;;  %v4660_v23 = vshll.u32 %v13839_v2, 16 }
 0x336   : > { %v4652_v48 = vrot.slane %v16337_v39, 6  ;;  %v4709_v38 = vor.u32 %v4708_v4, %v4705_v29  ;;  %v4649_v12 = vor.u32 %v4648_v13, %v4645_v9  ;;  %v9813_v46 = vrot.slane %v13845_v26, 9  ;;  %6557 = vrot.lane.b32.xlu0 %v6545_v41, %s10448_s23  ;;  %v13858_v39 = vpop.permute.xlu1 %6389 }
 0x337   : > { %v4606_v49 = vrot.slane %v13609_v17, 5  ;;  %v4700_v58 = vsel %vm11630_vm15, %v4696_v50, %v4699_v8  ;;  %v4659_v31 = vrot.slane %v4657_v7, 5  ;;  %v4662_v37 = vrot.slane %v4660_v23, 6  ;;  %v16340_v8 = vld [vmem:[#allocation39_spill] sm:$0xff] }
 0x338   : > { %v4653_v20 = vor.u32 %v4652_v48, %v4651_v47  ;;  %v6707_v62 = vsel %vm16339_vm2, %v10126_v1, %v16338_v25  ;;  %v4710_v29 = vsel %vm11630_vm15, %v4701_v45, %v4709_v38  ;;  %v4650_v4 = vrot.slane %v4649_v12, 4  ;;  %v16341_v50 = vld [vmem:[#allocation43_spill] sm:$0xff]  ;;  %v13879_v12 = vld [vmem:[#allocation3 + $0x68] sm:$0x3] }
 0x339   : > { %v4607_v9 = vsel %vm11602_vm7, %v9813_v46, %v4606_v49  ;;  %v6571_v13 = vunpack.c.l.b16 %v4700_v58  ;;  %v6572_v41 = vunpack.c.l.b16 %v4710_v29  ;;  %v4663_v52 = vor.u32 %v4662_v37, %v4659_v31  ;;  %v13881_v46 = vpop.permute.xlu2 %6385 }
 0x33a   : > { %v4655_v32 = vrot.slane %v4653_v20, 4  ;;  %v13868_v7 = vsel %vm2659_vm3, %v6740_v61, %v16340_v8  ;;  %v4654_v48 = vsel %vm11630_vm15, %v4650_v4, %v4653_v20  ;;  %v4608_v47 = vrot.slane %v4606_v49, 4  ;;  %16342 = vst [vmem:[#allocation36_spill] sm:$0xff] %v13881_v46 }
 0x33b   : > { %v4609_v25 = vrot.slane %v13619_v28, 5  ;;  %v13875_v45 = vsel %vm2625_vm12, %v6707_v62, %v16341_v50  ;;  %v6584_v23 = vpack.c.b16 %v6572_v41, %v6571_v13  ;;  %v6539_v38 = vunpack.c.l.b16 %v4607_v9 }
 0x33c   : > { %v4664_v1 = vsel %vm11630_vm15, %v4655_v32, %v4663_v52  ;;  %v6567_v61 = vunpack.c.l.b16 %v4654_v48  ;;  %v4758_v28 = vshrl.u32 %v13783_v53, 16  ;;  %v4761_v20 = vshll.u32 %v13783_v53, 16  ;;  %v13897_v53 = vpop.permute.xlu0 %6381 }
 0x33d   : > { %v6568_v58 = vunpack.c.l.b16 %v4664_v1  ;;  %v4610_v49 = vsel %vm11602_vm7, %v4608_v47, %v4609_v25  ;;  %6595 = vrot.lane.b32.xlu1 %v6584_v23, %s10449_s25  ;;  %v16343_v31 = vshrl.u32 %v13702_v43, 16  ;;  %v16344_v52 = vshll.u32 %v13702_v43, 16  ;;  %v13894_v47 = vld [vmem:[#allocation3 + $0x50] sm:$0x3]  ;;  %16345 = vst [vmem:[#allocation41_spill] sm:$0xff] %v13897_v53 }
 0x33e   : > { %v6540_v62 = vunpack.c.l.b16 %v4610_v49  ;;  %v4760_v4 = vrot.slane %v4758_v28, 5  ;;  %v4772_v9 = vshrl.u32 %v13879_v12, 16  ;;  %v4775_v13 = vshll.u32 %v13879_v12, 16 }
 0x33f   : > { %v4766_v32 = vrot.slane %v16343_v31, 5  ;;  %v4767_v37 = vrot.slane %v16344_v52, 6  ;;  %v6582_v29 = vpack.c.b16 %v6568_v58, %v6567_v61  ;;  %v4763_v8 = vrot.slane %v4761_v20, 6 }
 0x340   : > { %v6548_v41 = vpack.c.b16 %v6540_v62, %v6539_v38  ;;  %v4712_v25 = vshrl.u32 %v13795_v44, 16  ;;  %v4774_v50 = vrot.slane %v4772_v9, 5  ;;  %v4777_v23 = vrot.slane %v4775_v13, 6 }
 0x341   : > { %v4768_v48 = vor.u32 %v4767_v37, %v4766_v32  ;;  %6591 = vrot.lane.b32.xlu2 %v6582_v29, %s10449_s25  ;;  %v4715_v1 = vshll.u32 %v13795_v44, 16  ;;  %v16346_v61 = vshrl.u32 %v13514_v34, 16  ;;  %v4764_v38 = vor.u32 %v4763_v8, %v4760_v4  ;;  %v13906_v31 = vpop.permute.xlu1 %6395 }
 0x342   : > { %6563 = vrot.lane.b32.xlu0 %v6548_v41, %s10448_s23  ;;  %v4714_v28 = vrot.slane %v4712_v25, 5  ;;  %v16347_v62 = vshll.u32 %v13514_v34, 16  ;;  %16348 = vst [vmem:[#allocation40_spill] sm:$0xff] %v13906_v31  ;;  %v4778_v32 = vor.u32 %v4777_v23, %v4774_v50  ;;  %v4726_v37 = vshrl.u32 %v13894_v47, 16  ;;  %v16354_v31 = vld [vmem:[#allocation52_spill] sm:$0xff]  ;;  %s16099_s23 = smov 56  }
 0x343   : > { %v4720_v58 = vrot.slane %v16346_v61, 5  ;;  %v4770_v49 = vrot.slane %v4768_v48, 4  ;;  %v4717_v52 = vrot.slane %v4715_v1, 6  ;;  %v4729_v29 = vshll.u32 %v13894_v47, 16  ;;  %v13914_v61 = vld [vmem:[#allocation3 + $0x38] sm:$0x3] }
 0x344   : > { %v4721_v20 = vrot.slane %v16347_v62, 6  ;;  %v4765_v44 = vrot.slane %v4764_v38, 4  ;;  %v4666_v13 = vshrl.u32 %v13665_v27, 16  ;;  %v4669_v41 = vshll.u32 %v13665_v27, 16  ;;  %v13918_v38 = vpop.permute.xlu2 %6391 }
 0x345   : > { %v4779_v4 = vsel %vm11630_vm15, %v4770_v49, %v4778_v32  ;;  %v4718_v8 = vor.u32 %v4717_v52, %v4714_v28  ;;  %v4728_v34 = vrot.slane %v4726_v37, 5  ;;  %v4731_v25 = vrot.slane %v4729_v29, 6  ;;  %16349 = vst [vmem:[#allocation38_spill] sm:$0xff] %v13918_v38  ;;  %v10128_v29 = vld [vmem:[#allocation3 + $0x48] sm:$0xff] }
 0x346   : > { %v4722_v9 = vor.u32 %v4721_v20, %v4720_v58  ;;  %v4769_v50 = vsel %vm11630_vm15, %v4765_v44, %v4768_v48  ;;  %v6578_v23 = vunpack.c.l.b16 %v4779_v4  ;;  %v4668_v62 = vrot.slane %v4666_v13, 5  ;;  %v10127_v48 = vld [vmem:[#allocation3 + $0x3c] sm:$0xff] }
 0x347   : > { %v6577_v58 = vunpack.c.l.b16 %v4769_v50  ;;  %v4719_v20 = vrot.slane %v4718_v8, 4  ;;  %v4732_v53 = vor.u32 %v4731_v25, %v4728_v34  ;;  %v4671_v27 = vrot.slane %v4669_v41, 6 }
 0x348   : > { %v4724_v1 = vrot.slane %v4722_v9, 4  ;;  %v16350_v46 = vshrl.u32 %v13545_v6, 16  ;;  %v16351_v28 = vshll.u32 %v13545_v6, 16  ;;  %v4680_v52 = vshrl.u32 %v13914_v61, 16  ;;  %v4804_v6 = vld [vmem:[#allocation3 + $0x24] sm:$0xc] }
 0x349   : > { %v4683_v37 = vshll.u32 %v13914_v61, 16  ;;  %v6587_v44 = vpack.c.b16 %v6578_v23, %v6577_v58  ;;  %v4723_v13 = vsel %vm11630_vm15, %v4719_v20, %v4722_v9  ;;  %v4672_v41 = vor.u32 %v4671_v27, %v4668_v62  ;;  %v16358_v62 = vld [vmem:[#allocation47_spill] sm:$0xff] }
 0x34a   : > { %v4674_v49 = vrot.slane %v16350_v46, 5  ;;  %v4675_v32 = vrot.slane %v16351_v28, 6  ;;  %v4733_v4 = vsel %vm11630_vm15, %v4724_v1, %v4732_v53  ;;  %v6573_v8 = vunpack.c.l.b16 %v4723_v13  ;;  %v16352_v28 = vld [vmem:[#allocation51_spill] sm:$0xff]  ;;  %v16357_v53 = vld [vmem:[#allocation44_spill] sm:$0xff]  ;;  %v16360_v13 = vld [vmem:[#allocation54_spill] sm:$0xff] }
 0x34b   : > { %v6574_v34 = vunpack.c.l.b16 %v4733_v4  ;;  %v4682_v25 = vrot.slane %v4680_v52, 5  ;;  %v6710_v38 = vsel %vm16353_vm5, %v10127_v48, %v16352_v28  ;;  %v6713_v23 = vsel %vm16355_vm9, %v10128_v29, %v16354_v31  ;;  %6601 = vrot.lane.b32.xlu1 %v6587_v44, %s10449_s25  ;;  %v16359_v29 = vld [vmem:[#allocation46_spill] sm:$0xff] }
 0x34c   : > { %v4676_v46 = vor.u32 %v4675_v32, %v4674_v49  ;;  %v13930_v50 = vpop.permute.xlu0 %6387  ;;  %v4673_v9 = vrot.slane %v4672_v41, 4  ;;  %v4685_v58 = vrot.slane %v4683_v37, 6  ;;  %v13937_v20 = vpop.permute.xlu1 %6425  ;;  %v13942_v1 = vsel %vm2676_vm11, %v13868_v7, %v16357_v53 }
 0x34d   : > { %16356 = vst [vmem:[#allocation45_spill] sm:$0xff] %v13937_v20  ;;  %v13947_v27 = vsel %vm2642_vm13, %v13875_v45, %v16358_v62  ;;  %v6585_v49 = vpack.c.b16 %v6574_v34, %v6573_v8  ;;  %v9815_v48 = vrot.slane %v4804_v6, 10  ;;  %v4836_v37 = vrot.slane %v13497_v11, 6  ;;  %v4618_v11 = vld [vmem:[#allocation3 + $0x74] sm:$0x3] }
 0x34e   : > { %v4678_v32 = vrot.slane %v4676_v46, 4  ;;  %v4677_v31 = vsel %vm11630_vm15, %v4673_v9, %v4676_v46  ;;  %v4686_v52 = vor.u32 %v4685_v58, %v4682_v25  ;;  %v6728_v44 = vsel %vm2625_vm12, %v6710_v38, %v16359_v29  ;;  %v13972_v29 = vld [vmem:[#allocation3 + $0x5c] sm:$0x3] }
 0x34f   : > { %v6730_v7 = vsel %vm2625_vm12, %v6713_v23, %v16360_v13  ;;  %6597 = vrot.lane.b32.xlu2 %v6585_v49, %s10449_s25  ;;  %v4839_v45 = vrot.slane %v13839_v2, 6  ;;  %v4781_v4 = vshrl.u32 %v13845_v26, 16  ;;  %v4837_v8 = vsel %vm11504_vm6, %v9815_v48, %v4836_v37  ;;  %v13964_v23 = vpop.permute.xlu2 %6421 }
 0x350   : > { %v4687_v41 = vsel %vm11630_vm15, %v4678_v32, %v4686_v52  ;;  %v4838_v34 = vrot.slane %v4836_v37, 4  ;;  %v4784_v46 = vshll.u32 %v13845_v26, 16  ;;  %v6569_v38 = vunpack.c.l.b16 %v4677_v31  ;;  %16361 = vst [vmem:[#allocation39_spill] sm:$0xff] %v13964_v23 }
 0x351   : > { %v6570_v25 = vunpack.c.l.b16 %v4687_v41  ;;  %v6607_v6 = vunpack.c.l.b16 %v4837_v8  ;;  %v4783_v28 = vrot.slane %v4781_v4, 5  ;;  %v16362_v58 = vshrl.u32 %v13609_v17, 16 }
 0x352   : > { %v4840_v2 = vsel %vm11504_vm6, %v4838_v34, %v4839_v45  ;;  %v4786_v9 = vrot.slane %v4784_v46, 6  ;;  %v16363_v62 = vshll.u32 %v13609_v17, 16  ;;  %v4795_v48 = vshrl.u32 %v4618_v11, 16 }
 0x353   : > { %v4789_v53 = vrot.slane %v16362_v58, 5  ;;  %v6583_v32 = vpack.c.b16 %v6570_v25, %v6569_v38  ;;  %v6608_v52 = vunpack.c.l.b16 %v4840_v2  ;;  %v4798_v26 = vshll.u32 %v4618_v11, 16  ;;  %v10129_v38 = vld [vmem:[#allocation3 + $0x54] sm:$0xff] }
 0x354   : > { %v4790_v49 = vrot.slane %v16363_v62, 6  ;;  %v4787_v31 = vor.u32 %v4786_v9, %v4783_v28  ;;  %v4735_v13 = vshrl.u32 %v13721_v59, 16  ;;  %v4738_v4 = vshll.u32 %v13721_v59, 16 }
 0x355   : > { %6593 = vrot.lane.b32.xlu0 %v6583_v32, %s10449_s25  ;;  %v6622_v45 = vpack.c.b16 %v6608_v52, %v6607_v6  ;;  %v4797_v41 = vrot.slane %v4795_v48, 5  ;;  %v4800_v8 = vrot.slane %v4798_v26, 6  ;;  %v16364_v17 = vshrl.u32 %v13625_v57, 16  ;;  %v16368_v52 = vld [vmem:[#allocation58_spill] sm:$0xff] }
 0x356   : > { %v4791_v37 = vor.u32 %v4790_v49, %v4789_v53  ;;  %v13979_v46 = vpop.permute.xlu0 %6393  ;;  %v4788_v11 = vrot.slane %v4787_v31, 4  ;;  %v4737_v28 = vrot.slane %v4735_v13, 5  ;;  %v4740_v2 = vrot.slane %v4738_v4, 6  ;;  %v16367_v49 = vld [vmem:[#allocation53_spill] sm:$0xff]  ;;  %v16369_v4 = vld [vmem:[#allocation48_spill] sm:$0xff] }
 0x357   : > { %v4743_v34 = vrot.slane %v16364_v17, 5  ;;  %v13981_v9 = vpop.permute.xlu1 %6431  ;;  %6631 = vrot.lane.b32.xlu1 %v6622_v45, %s16099_s23  ;;  %v4801_v59 = vor.u32 %v4800_v8, %v4797_v41  ;;  %v16366_v6 = vshll.u32 %v13625_v57, 16  ;;  %v4749_v53 = vshrl.u32 %v13972_v29, 16  ;;  %v4807_v13 = vld [vmem:[#allocation3 + $0x48] sm:$0xc] }
 0x358   : > { %v4793_v25 = vrot.slane %v4791_v37, 4  ;;  %16365 = vst [vmem:[#allocation43_spill] sm:$0xff] %v13981_v9  ;;  %v4752_v62 = vshll.u32 %v13972_v29, 16  ;;  %v13990_v32 = vsel %vm2642_vm13, %v6730_v7, %v16367_v49  ;;  %v6716_v48 = vsel %vm16268_vm1, %v10129_v38, %v16368_v52  ;;  %v16370_v9 = vld [vmem:[#allocation55_spill] sm:$0xff] }
 0x359   : > { %v4744_v58 = vrot.slane %v16366_v6, 6  ;;  %v4792_v26 = vsel %vm11630_vm15, %v4788_v11, %v4791_v37  ;;  %v4741_v31 = vor.u32 %v4740_v2, %v4737_v28  ;;  %v6744_v45 = vsel %vm2642_vm13, %v6728_v44, %v16369_v4  ;;  %v10331_v37 = vld [vmem:[#allocation3 + $0x4c] sm:$0xf]  ;;  %v4805_v28 = vld [vmem:[#allocation3 + $0x30] sm:$0xc]  ;;  %v14002_v2 = vpop.permute.xlu2 %6427 }
 0x35a   : > { %v4802_v41 = vsel %vm11630_vm15, %v4793_v25, %v4801_v59  ;;  %v4751_v17 = vrot.slane %v4749_v53, 5  ;;  %v6579_v6 = vunpack.c.l.b16 %v4792_v26  ;;  %v4754_v49 = vrot.slane %v4752_v62, 6  ;;  %v16372_v62 = vld [vmem:[#allocation49_spill] sm:$0xff] }
 0x35b   : > { %v4745_v8 = vor.u32 %v4744_v58, %v4743_v34  ;;  %v6580_v23 = vunpack.c.l.b16 %v4802_v41  ;;  %v4742_v7 = vrot.slane %v4741_v31, 4  ;;  %v6732_v38 = vsel %vm2625_vm12, %v6716_v48, %v16370_v9  ;;  %v16371_v58 = vld [vmem:[#allocation57_spill] sm:$0xff]  ;;  %v4803_v31 = vld [vmem:[#allocation3 + $0x18] sm:$0xc]  ;;  %v10332_v41 = vld [vmem:[#allocation3 + $0x34] sm:$0xf] }
 0x35c   : > { %v9818_v20 = vrot.slane %v4807_v13, 10  ;;  %v4857_v11 = vrot.slane %v10331_v37, 6  ;;  %v4755_v34 = vor.u32 %v4754_v49, %v4751_v17  ;;  %v4860_v59 = vrot.slane %v13894_v47, 6 }
 0x35d   : > { %v4747_v52 = vrot.slane %v4745_v8, 4  ;;  %v6588_v44 = vpack.c.b16 %v6580_v23, %v6579_v6  ;;  %v4746_v25 = vsel %vm11630_vm15, %v4742_v7, %v4745_v8  ;;  %v6748_v53 = vsel %vm2642_vm13, %v6732_v38, %v16371_v58 }
 0x35e   : > { %v6760_v9 = vsel %vm2659_vm3, %v6744_v45, %v16372_v62  ;;  %v4858_v48 = vsel %vm11504_vm6, %v9818_v20, %v4857_v11  ;;  %v4859_v26 = vrot.slane %v4857_v11, 4  ;;  %v14013_v13 = vpop.permute.xlu0 %6423  ;;  %v6575_v4 = vunpack.c.l.b16 %v4746_v25 }
 0x35f   : > { %6603 = vrot.lane.b32.xlu2 %v6588_v44, %s10449_s25  ;;  %v4756_v23 = vsel %vm11630_vm15, %v4747_v52, %v4755_v34  ;;  %v9816_v47 = vrot.slane %v4805_v28, 10  ;;  %v4843_v8 = vrot.slane %v10332_v41, 6  ;;  %v6613_v6 = vunpack.c.l.b16 %v4858_v48  ;;  %v14021_v7 = vpop.permute.xlu1 %6469  ;;  %v16373_v52 = vld [vmem:[#allocation42_spill] sm:$0xff] }
 0x360   : > { %v6576_v17 = vunpack.c.l.b16 %v4756_v23  ;;  %v4861_v45 = vsel %vm11504_vm6, %v4859_v26, %v4860_v59  ;;  %v4846_v20 = vrot.slane %v13914_v61, 6  ;;  %v9814_v11 = vrot.slane %v4803_v31, 10  ;;  %v14030_v59 = vld [vmem:[#allocation3 + $0x28] sm:$0xf]  ;;  %v14032_v61 = vld [vmem:[#allocation3 + $0x24] sm:$0xe] }
 0x361   : > { %v6614_v49 = vunpack.c.l.b16 %v4861_v45  ;;  %v4844_v38 = vsel %vm11504_vm6, %v9816_v47, %v4843_v8  ;;  %v4845_v37 = vrot.slane %v4843_v8, 4  ;;  %v6758_v28 = vsel %vm2659_vm3, %v13947_v27, %v16373_v52  ;;  %v4900_v26 = vld [vmem:[#allocation3 + $0x2c] sm:$0x1]  ;;  %v16376_v52 = vld [vmem:[#allocation35_spill] sm:$0xff] }
 0x362   : > { %v6586_v44 = vpack.c.b16 %v6576_v17, %v6575_v4  ;;  %v4829_v25 = vrot.slane %v13573_v60, 6  ;;  %v4832_v34 = vrot.slane %v13777_v40, 6  ;;  %v14036_v58 = vsel %vm2676_vm11, %v6760_v9, %v13547_v3  ;;  %v4808_v60 = vld [vmem:[#allocation3 + $0x54] sm:$0xc]  ;;  %v16374_v3 = vld [vmem:[#allocation56_spill] sm:$0xff]  ;;  %v16375_v47 = vld [vmem:[#allocation37_spill] sm:$0xff] }
 0x363   : > { %v14040_v62 = vsel %vm2676_vm11, %v6758_v28, %v13445_v36  ;;  %v6625_v48 = vpack.c.b16 %v6614_v49, %v6613_v6  ;;  %v4847_v27 = vsel %vm11504_vm6, %v4845_v37, %v4846_v20  ;;  %v6609_v40 = vunpack.c.l.b16 %v4844_v38  ;;  %v4806_v17 = vld [vmem:[#allocation3 + $0x3c] sm:$0xc]  ;;  %v14057_v38 = vpop.permute.xlu2 %6433 }
 0x364   : > { %6599 = vrot.lane.b32.xlu0 %v6586_v44, %s10449_s25  ;;  %v6610_v31 = vunpack.c.l.b16 %v4847_v27  ;;  %v4830_v23 = vsel %vm11504_vm6, %v9814_v11, %v4829_v25  ;;  %v4831_v4 = vrot.slane %v4829_v25, 4  ;;  %v6764_v9 = vsel %vm2659_vm3, %v6748_v53, %v16374_v3  ;;  %s16383_s25 = smov 24  }
 0x365   : > { %v6754_v36 = vsel %vm2659_vm3, %v13751_v51, %v16375_v47  ;;  %6637 = vrot.lane.b32.xlu1 %v6625_v48, %s16099_s23  ;;  %v9822_v41 = vrot.slane %v14032_v61, 9  ;;  %v5134_v8 = vrot.slane %v14030_v59, 5  ;;  %v5137_v20 = vrot.slane %v4900_v26, 5 }
 0x366   : > { %v6623_v45 = vpack.c.b16 %v6610_v31, %v6609_v40  ;;  %v4833_v6 = vsel %vm11504_vm6, %v4831_v4, %v4832_v34  ;;  %v9819_v49 = vrot.slane %v4808_v60, 10  ;;  %v6605_v53 = vunpack.c.l.b16 %v4830_v23  ;;  %v14066_v48 = vpop.permute.xlu0 %6429 }
 0x367   : > { %v6606_v37 = vunpack.c.l.b16 %v4833_v6  ;;  %v5135_v51 = vsel %vm11602_vm7, %v9822_v41, %v5134_v8  ;;  %v5136_v11 = vrot.slane %v5134_v8, 4  ;;  %v6770_v28 = vsel %vm2676_vm11, %v6754_v36, %v16376_v52  ;;  %v16377_v41 = vld [vmem:[#allocation50_spill] sm:$0xff] }
 0x368   : > { %6633 = vrot.lane.b32.xlu2 %v6623_v45, %s16099_s23  ;;  %v4864_v44 = vrot.slane %v13625_v57, 6  ;;  %v4867_v25 = vrot.slane %v13972_v29, 6  ;;  %v9817_v34 = vrot.slane %v4806_v17, 10  ;;  %v6971_v60 = vunpack.c.l.b16 %v5135_v51  ;;  %v14074_v57 = vpop.permute.xlu1 %6475 }
 0x369   : > { %v6621_v27 = vpack.c.b16 %v6606_v37, %v6605_v53  ;;  %v5138_v26 = vsel %vm11602_vm7, %v5136_v11, %v5137_v20  ;;  %v4850_v40 = vrot.slane %v13648_v24, 6  ;;  %v4853_v3 = vrot.slane %v13822_v63, 6  ;;  %v4809_v11 = vld [vmem:[#allocation3 + $0x60] sm:$0xc] }
 0x36a   : > { %v6972_v31 = vunpack.c.l.b16 %v5138_v26  ;;  %v4865_v23 = vsel %vm11504_vm6, %v9819_v49, %v4864_v44  ;;  %v4866_v4 = vrot.slane %v4864_v44, 4  ;;  %v6788_v29 = vsel %vm2693_vm4, %v13942_v1, %v13641_v33  ;;  %v14093_v1 = vld [vmem:[#allocation3 + $0x2c] sm:$0x3] }
 0x36b   : > { %v6780_v47 = vsel %vm2676_vm11, %v6764_v9, %v13523_v5  ;;  %v14083_v36 = vsel %vm2693_vm4, %v6770_v28, %v13581_v56  ;;  %v4852_v24 = vrot.slane %v4850_v40, 4  ;;  %v6762_v8 = vsel %vm2659_vm3, %v13990_v32, %v16377_v41 }
 0x36c   : > { %6629 = vrot.lane.b32.xlu0 %v6621_v27, %s16099_s23  ;;  %v6987_v63 = vpack.c.b16 %v6972_v31, %v6971_v60  ;;  %v4868_v17 = vsel %vm11504_vm6, %v4866_v4, %v4867_v25  ;;  %v4851_v33 = vsel %vm11504_vm6, %v9817_v34, %v4850_v40  ;;  %v6778_v5 = vsel %vm2676_vm11, %v6762_v8, %v13616_v19  ;;  %v14114_v34 = vpop.permute.xlu2 %6471  ;;  %v14131_v8 = vld [vmem:[#allocation3 + $0x34] sm:$0xf] }
 0x36d   : > { %v6615_v56 = vunpack.c.l.b16 %v4865_v23  ;;  %v6616_v9 = vunpack.c.l.b16 %v4868_v17  ;;  %v4854_v45 = vsel %vm11504_vm6, %v4852_v24, %v4853_v3  ;;  %v4918_v6 = vshll.u32 %v14030_v59, 16 }
 0x36e   : > { %6995 = vrot.lane.b32.xlu1 %v6987_v63, %s16112_s30  ;;  %v6612_v32 = vunpack.c.l.b16 %v4854_v45  ;;  %v4922_v20 = vshrl.u32 %v14030_v59, 16  ;;  %v5197_v49 = vshrl.u32 %v14032_v61, 16  ;;  %v6611_v37 = vunpack.c.l.b16 %v4851_v33  ;;  %v14120_v23 = vpop.permute.xlu0 %6435  ;;  %v14133_v63 = vld [vmem:[#allocation3 + $0x30] sm:$0xe] }
 0x36f   : > { %v6626_v53 = vpack.c.b16 %v6616_v9, %v6615_v56  ;;  %v5200_v51 = vshll.u32 %v14032_v61, 16  ;;  %v5211_v19 = vshrl.u32 %v14093_v1, 16  ;;  %v14108_v52 = vsel %vm2693_vm4, %v14036_v58, %v13627_v21 }
 0x370   : > { %v5199_v28 = vrot.slane %v5197_v49, 5  ;;  %v5205_v44 = vrot.slane %v4922_v20, 5  ;;  %v5206_v25 = vrot.slane %v4918_v6, 6  ;;  %v6624_v61 = vpack.c.b16 %v6612_v32, %v6611_v37 }
 0x371   : > { %6639 = vrot.lane.b32.xlu2 %v6626_v53, %s16099_s23  ;;  %v5202_v27 = vrot.slane %v5200_v51, 6  ;;  %v5213_v26 = vrot.slane %v5211_v19, 5  ;;  %v5214_v60 = vshll.u32 %v14093_v1, 16  ;;  %v9820_v31 = vrot.slane %v4809_v11, 10  ;;  %v5461_v51 = vld [vmem:[#allocation3 + $0x30] sm:$0xf] }
 0x372   : > { %v5207_v40 = vor.u32 %v5206_v25, %v5205_v44  ;;  %v4871_v21 = vrot.slane %v13702_v43, 6  ;;  %v4874_v58 = vrot.slane %v13879_v12, 6  ;;  %v14125_v4 = vsel %vm2693_vm4, %v14040_v62, %v13710_v30  ;;  %v10154_v30 = vld [vmem:[#allocation3 + $0x30] sm:$0xff] }
 0x373   : > { %v14129_v3 = vsel %vm2710_vm10, %v6788_v29, %v13717_v42  ;;  %v5203_v24 = vor.u32 %v5202_v27, %v5199_v28  ;;  %v5216_v41 = vrot.slane %v5214_v60, 6  ;;  %v14137_v43 = vsel %vm2693_vm4, %v6780_v47, %v13766_v35  ;;  %v14144_v29 = vpop.permute.xlu1 %6481  ;;  %v5380_v60 = vld [vmem:[#allocation3 + $0x24] sm:$0xc] }
 0x374   : > { %v6794_v12 = vsel %vm2693_vm4, %v6778_v5, %v13689_v18  ;;  %6635 = vrot.lane.b32.xlu0 %v6624_v61, %s16099_s23  ;;  %v4872_v42 = vsel %vm11504_vm6, %v9820_v31, %v4871_v21  ;;  %v4873_v62 = vrot.slane %v4871_v21, 4  ;;  %v5209_v33 = vrot.slane %v5207_v40, 4  ;;  %v14151_v5 = vld [vmem:[#allocation3 + $0x38] sm:$0x3] }
 0x375   : > { %v5204_v17 = vrot.slane %v5203_v24, 4  ;;  %v5217_v56 = vor.u32 %v5216_v41, %v5213_v26  ;;  %v6617_v9 = vunpack.c.l.b16 %v4872_v42  ;;  %v5495_v18 = vshll.u32 %v14131_v8, 16  ;;  %v14161_v21 = vld [vmem:[#allocation3 + $0x38] sm:$0x1]  ;;  %v14163_v41 = vpop.permute.xlu2 %6477 }
 0x376   : > { %7123 = vrot.lane.b32.xlu1 %v10154_v30, %s16102_s14  ;;  %v4875_v35 = vsel %vm11504_vm6, %v4873_v62, %v4874_v58  ;;  %v5499_v47 = vshrl.u32 %v14131_v8, 16  ;;  %v5774_v45 = vshrl.u32 %v14133_v63, 16  ;;  %v5777_v37 = vshll.u32 %v14133_v63, 16 }
 0x377   : > { %v5208_v32 = vsel %vm11630_vm15, %v5204_v17, %v5207_v40  ;;  %v5218_v49 = vsel %vm11630_vm15, %v5209_v33, %v5217_v56  ;;  %v6618_v53 = vunpack.c.l.b16 %v4875_v35  ;;  %v5783_v27 = vrot.slane %v5495_v18, 6 }
 0x378   : > { %v7011_v19 = vunpack.c.l.b16 %v5208_v32  ;;  %v7012_v11 = vunpack.c.l.b16 %v5218_v49  ;;  %v5776_v28 = vrot.slane %v5774_v45, 5  ;;  %v5782_v44 = vrot.slane %v5499_v47, 5  ;;  %v14167_v45 = vpop.permute.xlu0 %6473 }
 0x379   : > { %v6627_v25 = vpack.c.b16 %v6618_v53, %v6617_v9  ;;  %v5779_v61 = vrot.slane %v5777_v37, 6  ;;  %v5788_v26 = vshrl.u32 %v14151_v5, 16  ;;  %v5791_v40 = vshll.u32 %v14151_v5, 16 }
 0x37a   : > { %v7027_v31 = vpack.c.b16 %v7012_v11, %v7011_v19  ;;  %v5486_v58 = vshrl.u32 %v5461_v51, 16  ;;  %v5489_v24 = vshll.u32 %v5461_v51, 16  ;;  %v5784_v42 = vor.u32 %v5783_v27, %v5782_v44 }
 0x37b   : > { %v5780_v30 = vor.u32 %v5779_v61, %v5776_v28  ;;  %v5790_v62 = vrot.slane %v5788_v26, 5  ;;  %v5497_v17 = vrot.slane %v5495_v18, 5  ;;  %v5793_v33 = vrot.slane %v5791_v40, 6  ;;  %v14171_v28 = vpop.permute.xlu1 %6511 }
 0x37c   : > { %7035 = vrot.lane.b32.xlu2 %v7027_v31, %s16110_s16  ;;  %6641 = vrot.lane.b32.xlu0 %v6627_v25, %s16099_s23  ;;  %v5488_v56 = vrot.slane %v5486_v58, 4  ;;  %v5491_v9 = vrot.slane %v5489_v24, 5  ;;  %v5501_v35 = vrot.slane %v5499_v47, 4  ;;  %v5786_v49 = vrot.slane %v5784_v42, 4  ;;  %v14189_v24 = vld [vmem:[#allocation3 + $0x34] sm:$0xf] }
 0x37d   : > { %v5781_v32 = vrot.slane %v5780_v30, 4  ;;  %v5505_v53 = vshll.u32 %v14161_v21, 16  ;;  %v9830_v37 = vrot.slane %v5380_v60, 10  ;;  %v5794_v51 = vor.u32 %v5793_v33, %v5790_v62  ;;  %v14205_v62 = vld [vmem:[#allocation3 + $0x38] sm:$0x3]  ;;  %s16121_s23 = smov 60  }
 0x37e   : > { %v5492_v19 = vor.u32 %v5491_v9, %v5488_v56  ;;  %v5502_v11 = vor.u32 %v5501_v35, %v5497_v17  ;;  %v5406_v18 = vrot.slane %v14030_v59, 6  ;;  %v14176_v44 = vsel %vm2710_vm10, %v14083_v36, %v13807_v15 }
 0x37f   : > { %v5785_v47 = vsel %vm11630_vm15, %v5781_v32, %v5784_v42  ;;  %v5507_v25 = vrot.slane %v5505_v53, 5  ;;  %v5409_v61 = vrot.slane %v14093_v1, 6  ;;  %v14183_v27 = vsel %vm2710_vm10, %v6794_v12, %v13773_v55  ;;  %v14203_v42 = vld [vmem:[#allocation3 + $0x30] sm:$0xe] }
 0x380   : > { %v5795_v26 = vsel %vm11630_vm15, %v5786_v49, %v5794_v51  ;;  %v5493_v60 = vrot.slane %v5492_v19, 4  ;;  %v5503_v31 = vrot.slane %v5502_v11, 4  ;;  %v7219_v40 = vunpack.c.l.b16 %v5785_v47  ;;  %v5957_v51 = vld [vmem:[#allocation3 + $0x30] sm:$0xc] }
 0x381   : > { %v7220_v58 = vunpack.c.l.b16 %v5795_v26  ;;  %v5407_v15 = vsel %vm11504_vm6, %v9830_v37, %v5406_v18  ;;  %v5408_v36 = vrot.slane %v5406_v18, 4  ;;  %v14194_v1 = vsel %vm2710_vm10, %v14108_v52, %v13851_v0 }
 0x382   : > { %v6806_v55 = vsel %vm2710_vm10, %v14125_v4, %v13797_v14  ;;  %v5498_v12 = vsel %vm11616_vm0, %v5493_v60, %v5497_v17  ;;  %v5508_v30 = vsel %vm11616_vm0, %v5503_v31, %v5507_v25  ;;  %v7051_v52 = vunpack.c.l.b16 %v5407_v15  ;;  %v14211_v17 = vpop.permute.xlu2 %6483  ;;  %v14225_v25 = vpop.permute.xlu0 %6479 }
 0x383   : > { %v7235_v33 = vpack.c.b16 %v7220_v58, %v7219_v40  ;;  %v7139_v56 = vunpack.c.l.b16 %v5498_v12  ;;  %v7140_v9 = vunpack.c.l.b16 %v5508_v30  ;;  %v5410_v0 = vsel %vm11504_vm6, %v5408_v36, %v5409_v61  ;;  %v16378_v40 = vld [vmem:[#allocation32_spill] sm:$0xff] }
 0x384   : > { %v7052_v35 = vunpack.c.l.b16 %v5410_v0  ;;  %v16101_v14 = vshll.u32 %v14189_v24, 16  ;;  %v16100_v4 = vshrl.u32 %v14189_v24, 16  ;;  %v5220_v49 = vshrl.u32 %v14203_v42, 16 }
 0x385   : > { %7243 = vrot.lane.b32.xlu1 %v7235_v33, %s16252_s24  ;;  %v7155_v32 = vpack.c.b16 %v7140_v9, %v7139_v56  ;;  %v5223_v53 = vshll.u32 %v14203_v42, 16  ;;  %v5234_v37 = vshrl.u32 %v14205_v62, 16  ;;  %v14219_v19 = vsel %vm2727_vm14, %v6806_v55, %v13858_v39  ;;  %v14234_v55 = vpop.permute.xlu1 %6517 }
 0x386   : > { %v7067_v11 = vpack.c.b16 %v7052_v35, %v7051_v52  ;;  %v5228_v18 = vrot.slane %v16100_v4, 5  ;;  %v5229_v47 = vrot.slane %v16101_v14, 6  ;;  %v5222_v61 = vrot.slane %v5220_v49, 5  ;;  %v16393_v14 = vld [vmem:[#allocation34_spill] sm:$0xff] }
 0x387   : > { %7163 = vrot.lane.b32.xlu2 %v7155_v32, %s16104_s20  ;;  %v5225_v26 = vrot.slane %v5223_v53, 6  ;;  %v5236_v60 = vrot.slane %v5234_v37, 5  ;;  %v5237_v31 = vshll.u32 %v14205_v62, 16  ;;  %v6812_v39 = vsel %vm2710_vm10, %v14137_v43, %v16378_v40  ;;  %v16379_v37 = vld [vmem:[#allocation40_spill] sm:$0xff] }
 0x388   : > { %7075 = vrot.lane.b32.xlu0 %v7067_v11, %s16106_s19  ;;  %v5230_v58 = vor.u32 %v5229_v47, %v5228_v18  ;;  %v9846_v15 = vrot.slane %v5957_v51, 10  ;;  %v5983_v36 = vrot.slane %v14131_v8, 6  ;;  %v5986_v33 = vrot.slane %v14151_v5, 6  ;;  %v14259_v47 = vld [vmem:[#allocation3 + $0x40] sm:$0xf] }
 0x389   : > { %v5226_v12 = vor.u32 %v5225_v26, %v5222_v61  ;;  %v5239_v30 = vrot.slane %v5237_v31, 6  ;;  %v9838_v56 = vrot.slane %v14133_v63, 9  ;;  %v14241_v9 = vsel %vm2727_vm14, %v14129_v3, %v13930_v50  ;;  %v16380_v61 = vld [vmem:[#allocation36_spill] sm:$0xff] }
 0x38a   : > { %v5984_v43 = vsel %vm11504_vm6, %v9846_v15, %v5983_v36  ;;  %v5985_v0 = vrot.slane %v5983_v36, 4  ;;  %v5711_v52 = vrot.slane %v14131_v8, 5  ;;  %v5232_v32 = vrot.slane %v5230_v58, 4  ;;  %v14273_v15 = vpop.permute.xlu2 %6513 }
 0x38b   : > { %v5227_v35 = vrot.slane %v5226_v12, 4  ;;  %v5240_v49 = vor.u32 %v5239_v30, %v5236_v60  ;;  %v5714_v53 = vrot.slane %v14161_v21, 5  ;;  %v14249_v5 = vsel %vm2727_vm14, %v6812_v39, %v16379_v37  ;;  %v5463_v21 = vld [vmem:[#allocation3 + $0x3c] sm:$0xf]  ;;  %v14266_v39 = vld [vmem:[#allocation3 + $0x44] sm:$0x1] }
 0x38c   : > { %v5987_v63 = vsel %vm11504_vm6, %v5985_v0, %v5986_v33  ;;  %v5712_v50 = vsel %vm11602_vm7, %v9838_v56, %v5711_v52  ;;  %v5713_v3 = vrot.slane %v5711_v52, 4  ;;  %v7259_v11 = vunpack.c.l.b16 %v5984_v43  ;;  %v5381_v33 = vld [vmem:[#allocation3 + $0x30] sm:$0xc]  ;;  %v14276_v52 = vpop.permute.xlu0 %6509 }
 0x38d   : > { %v5231_v51 = vsel %vm11630_vm15, %v5227_v35, %v5230_v58  ;;  %v5241_v8 = vsel %vm11630_vm15, %v5232_v32, %v5240_v49  ;;  %v7260_v18 = vunpack.c.l.b16 %v5987_v63  ;;  %v6818_v26 = vsel %vm2727_vm14, %v14176_v44, %v16380_v61  ;;  %v16381_v35 = vld [vmem:[#allocation45_spill] sm:$0xff] }
 0x38e   : > { %v7013_v60 = vunpack.c.l.b16 %v5231_v51  ;;  %v7014_v31 = vunpack.c.l.b16 %v5241_v8  ;;  %v5715_v40 = vsel %vm11602_vm7, %v5713_v3, %v5714_v53  ;;  %v14271_v58 = vsel %vm2727_vm14, %v14183_v27, %v13979_v46  ;;  %v14288_v3 = vld [vmem:[#allocation3 + $0x38] sm:$0x1]  ;;  %v14290_v51 = vpop.permute.xlu1 %6523  ;;  %v16382_v8 = vld [vmem:[#allocation38_spill] sm:$0xff] }
 0x38f   : > { %v7275_v36 = vpack.c.b16 %v7260_v18, %v7259_v11  ;;  %v7179_v12 = vunpack.c.l.b16 %v5712_v50  ;;  %v7180_v30 = vunpack.c.l.b16 %v5715_v40  ;;  %v5510_v44 = vshrl.u32 %v5463_v21, 16 }
 0x390   : > { %v7028_v56 = vpack.c.b16 %v7014_v31, %v7013_v60  ;;  %v5513_v43 = vshll.u32 %v5463_v21, 16  ;;  %v5519_v0 = vshll.u32 %v14259_v47, 16  ;;  %v14280_v32 = vsel %vm2764_vm8, %v6818_v26, %v16381_v35 }
 0x391   : > { %7283 = vrot.lane.b32.xlu2 %v7275_v36, %s16279_s17  ;;  %v7195_v46 = vpack.c.b16 %v7180_v30, %v7179_v12  ;;  %v5523_v27 = vshrl.u32 %v14259_v47, 16  ;;  %v5529_v49 = vshll.u32 %v14266_v39, 16  ;;  %v5512_v53 = vrot.slane %v5510_v44, 4 }
 0x392   : > { %7037 = vrot.lane.b32.xlu1 %v7028_v56, %s16110_s16  ;;  %v5515_v37 = vrot.slane %v5513_v43, 5  ;;  %v5521_v63 = vrot.slane %v5519_v0, 5  ;;  %v9831_v50 = vrot.slane %v5381_v33, 10  ;;  %v6824_v11 = vsel %vm2727_vm14, %v14194_v1, %v16382_v8  ;;  %v16384_v33 = vld [vmem:[#allocation43_spill] sm:$0xff] }
 0x393   : > { %7203 = vrot.lane.b32.xlu0 %v7195_v46, %s16383_s25  ;;  %v5525_v18 = vrot.slane %v5523_v27, 4  ;;  %v5531_v21 = vrot.slane %v5529_v49, 5  ;;  %v5413_v61 = vrot.slane %v14189_v24, 6  ;;  %v5416_v60 = vrot.slane %v14205_v62, 6  ;;  %v5958_v49 = vld [vmem:[#allocation3 + $0x3c] sm:$0xc] }
 0x394   : > { %v5516_v26 = vor.u32 %v5515_v37, %v5512_v53  ;;  %v9823_v31 = vrot.slane %v14203_v42, 9  ;;  %v5141_v40 = vrot.slane %v14189_v24, 5  ;;  %v5144_v30 = vrot.slane %v14288_v3, 5 }
 0x395   : > { %v5526_v36 = vor.u32 %v5525_v18, %v5521_v63  ;;  %v5414_v12 = vsel %vm11504_vm6, %v9831_v50, %v5413_v61  ;;  %v5415_v1 = vrot.slane %v5413_v61, 4  ;;  %v14307_v56 = vsel %vm2764_vm8, %v6824_v11, %v16384_v33  ;;  %v14320_v11 = vld [vmem:[#allocation3 + $0x44] sm:$0x3]  ;;  %v14322_v18 = vld [vmem:[#allocation3 + $0x3c] sm:$0xe]  ;;  %v14324_v61 = vpop.permute.xlu2 %6519 }
 0x396   : > { %v5517_v44 = vrot.slane %v5516_v26, 4  ;;  %v5142_v43 = vsel %vm11602_vm7, %v9823_v31, %v5141_v40  ;;  %v5143_v62 = vrot.slane %v5141_v40, 4  ;;  %vm6845_vm2 = vcmask 326656  }
 0x397   : > { %v6838_v42 = vsel %vm2764_vm8, %v14219_v19, %v14066_v48  ;;  %v5527_v35 = vrot.slane %v5526_v36, 4  ;;  %v5417_v46 = vsel %vm11504_vm6, %v5415_v1, %v5416_v60  ;;  %v7053_v37 = vunpack.c.l.b16 %v5414_v12  ;;  %v14328_v36 = vpop.permute.xlu0 %6515 }
 0x398   : > { %v5522_v53 = vsel %vm11616_vm0, %v5517_v44, %v5521_v63  ;;  %v7054_v50 = vunpack.c.l.b16 %v5417_v46  ;;  %v5145_v8 = vsel %vm11602_vm7, %v5143_v62, %v5144_v30  ;;  %v6973_v19 = vunpack.c.l.b16 %v5142_v43  ;;  %v5382_v44 = vld [vmem:[#allocation3 + $0x3c] sm:$0xc]  ;;  %v14338_v46 = vld [vmem:[#allocation3 + $0x40] sm:$0xf] }
 0x399   : > { %v5532_v48 = vsel %vm11616_vm0, %v5527_v35, %v5531_v21  ;;  %v6974_v26 = vunpack.c.l.b16 %v5145_v8  ;;  %vm6862_vm5 = vcmask 359424   ;;  %v7141_v60 = vunpack.c.l.b16 %v5522_v53 }
 0x39a   : > { %v7142_v31 = vunpack.c.l.b16 %v5532_v48  ;;  %v7068_v63 = vpack.c.b16 %v7054_v50, %v7053_v37  ;;  %v9847_v40 = vrot.slane %v5958_v49, 10  ;;  %v5990_v1 = vrot.slane %v14259_v47, 6  ;;  %v14340_v49 = vpop.permute.xlu1 %6553  ;;  %v14359_v48 = vld [vmem:[#allocation3 + $0x44] sm:$0x1] }
 0x39b   : > { %v6988_v12 = vpack.c.b16 %v6974_v26, %v6973_v19  ;;  %v5993_v30 = vrot.slane %v14320_v11, 6  ;;  %v9839_v33 = vrot.slane %v14322_v18, 9  ;;  %v5718_v21 = vrot.slane %v14259_v47, 5 }
 0x39c   : > { %v7156_v62 = vpack.c.b16 %v7142_v31, %v7141_v60  ;;  %7077 = vrot.lane.b32.xlu2 %v7068_v63, %s16106_s19  ;;  %v5721_v43 = vrot.slane %v14266_v39, 5  ;;  %v6855_v35 = vsel %vm6845_vm2, %v6838_v42, %v14163_v41  ;;  %v6836_v53 = vsel %vm2764_vm8, %v14241_v9, %v14002_v2  ;;  %v14357_v2 = vld [vmem:[#allocation3 + $0x44] sm:$0x3]  ;;  %v14367_v60 = vld [vmem:[#allocation3 + $0x3c] sm:$0xe] }
 0x39d   : > { %6997 = vrot.lane.b32.xlu0 %v6988_v12, %s16112_s30  ;;  %v5991_v37 = vsel %vm11504_vm6, %v9847_v40, %v5990_v1  ;;  %v5992_v50 = vrot.slane %v5990_v1, 4  ;;  %v14350_v39 = vsel %vm6862_vm5, %v6855_v35, %v14234_v55  ;;  %v6853_v41 = vsel %vm6845_vm2, %v6836_v53, %v14074_v57 }
 0x39e   : > { %7165 = vrot.lane.b32.xlu1 %v7156_v62, %s16104_s20  ;;  %v5719_v42 = vsel %vm11602_vm7, %v9839_v33, %v5718_v21  ;;  %v5720_v8 = vrot.slane %v5718_v21, 4  ;;  %v9832_v9 = vrot.slane %v5382_v44, 10  ;;  %v6842_v19 = vsel %vm2764_vm8, %v14271_v58, %v14057_v38 }
 0x39f   : > { %v5994_v55 = vsel %vm11504_vm6, %v5992_v50, %v5993_v30  ;;  %v7261_v26 = vunpack.c.l.b16 %v5991_v37  ;;  %v5420_v57 = vrot.slane %v14338_v46, 6  ;;  %v7181_v40 = vunpack.c.l.b16 %v5719_v42  ;;  %v10155_v37 = vld [vmem:[#allocation3 + $0x3c] sm:$0xff] }
 0x3a0   : > { %v7262_v31 = vunpack.c.l.b16 %v5994_v55  ;;  %v5722_v63 = vsel %vm11602_vm7, %v5720_v8, %v5721_v43  ;;  %v5148_v12 = vrot.slane %v14338_v46, 5  ;;  %v5423_v38 = vrot.slane %v14357_v2, 6  ;;  %v14384_v43 = vpop.permute.xlu2 %6549 }
 0x3a1   : > { %v7182_v1 = vunpack.c.l.b16 %v5722_v63  ;;  %v5421_v33 = vsel %vm11504_vm6, %v9832_v9, %v5420_v57  ;;  %v5151_v58 = vrot.slane %v14359_v48, 5  ;;  %v6844_v30 = vsel %vm2764_vm8, %v14249_v5, %v14120_v23  ;;  %v14392_v5 = vpop.permute.xlu0 %6521 }
 0x3a2   : > { %v14381_v44 = vsel %vm6845_vm2, %v6842_v19, %v14144_v29  ;;  %v9824_v62 = vrot.slane %v14367_v60, 9  ;;  %v5150_v21 = vrot.slane %v5148_v12, 4  ;;  %v7276_v35 = vpack.c.b16 %v7262_v31, %v7261_v26  ;;  %v14401_v31 = vld [vmem:[#allocation3 + $0x4c] sm:$0xf]  ;;  %v14413_v47 = vpop.permute.xlu1 %6559 }
 0x3a3   : > { %v7196_v53 = vpack.c.b16 %v7182_v1, %v7181_v40  ;;  %v5422_v50 = vrot.slane %v5420_v57, 4  ;;  %v5797_v42 = vshrl.u32 %v14322_v18, 16  ;;  %v7055_v8 = vunpack.c.l.b16 %v5421_v33  ;;  %v14409_v1 = vld [vmem:[#allocation3 + $0x50] sm:$0x1]  ;;  %v14411_v33 = vld [vmem:[#allocation3 + $0x48] sm:$0xe] }
 0x3a4   : > { %v5152_v9 = vsel %vm11602_vm7, %v5150_v21, %v5151_v58  ;;  %v5800_v23 = vshll.u32 %v14322_v18, 16  ;;  %v5805_v29 = vrot.slane %v5523_v27, 5  ;;  %v5806_v26 = vrot.slane %v5519_v0, 6 }
 0x3a5   : > { %7205 = vrot.lane.b32.xlu2 %v7196_v53, %s16383_s25  ;;  %7125 = vrot.lane.b32.xlu0 %v10155_v37, %s16102_s14  ;;  %v5424_v19 = vsel %vm11504_vm6, %v5422_v50, %v5423_v38  ;;  %v5799_v55 = vrot.slane %v5797_v42, 5  ;;  %v5811_v57 = vshrl.u32 %v14320_v11, 16  ;;  %v5149_v27 = vsel %vm11602_vm7, %v9824_v62, %v5148_v12 }
 0x3a6   : > { %7285 = vrot.lane.b32.xlu1 %v7276_v35, %s16279_s17  ;;  %v5802_v18 = vrot.slane %v5800_v23, 6  ;;  %v5814_v63 = vshll.u32 %v14320_v11, 16  ;;  %v6861_v40 = vsel %vm6845_vm2, %v6844_v30, %v14211_v17  ;;  %v6976_v0 = vunpack.c.l.b16 %v5152_v9 }
 0x3a7   : > { %v5807_v38 = vor.u32 %v5806_v26, %v5805_v29  ;;  %v5813_v58 = vrot.slane %v5811_v57, 5  ;;  %v14417_v21 = vsel %vm6862_vm5, %v6861_v40, %v14290_v51  ;;  %v7056_v12 = vunpack.c.l.b16 %v5424_v19 }
 0x3a8   : > { %v5803_v62 = vor.u32 %v5802_v18, %v5799_v55  ;;  %v5816_v35 = vrot.slane %v5814_v63, 6  ;;  %v14421_v11 = vsel %vm6862_vm5, %v6853_v41, %v14328_v36  ;;  %v6975_v17 = vunpack.c.l.b16 %v5149_v27  ;;  %v14436_v27 = vpop.permute.xlu2 %6555 }
 0x3a9   : > { %v9840_v30 = vrot.slane %v14411_v33, 9  ;;  %v5725_v53 = vrot.slane %v14401_v31, 5  ;;  %v5728_v37 = vrot.slane %v14409_v1, 5  ;;  %v5809_v42 = vrot.slane %v5807_v38, 4 }
 0x3aa   : > { %v5804_v50 = vrot.slane %v5803_v62, 4  ;;  %v5817_v9 = vor.u32 %v5816_v35, %v5813_v58  ;;  %v4966_v51 = vshll.u32 %v14338_v46, 16  ;;  %v6989_v23 = vpack.c.b16 %v6976_v0, %v6975_v17  ;;  %v14449_v58 = vpop.permute.xlu0 %6551 }
 0x3ab   : > { %v5727_v29 = vrot.slane %v5725_v53, 4  ;;  %v4970_v19 = vshrl.u32 %v14338_v46, 16  ;;  %v5243_v55 = vshrl.u32 %v14367_v60, 16  ;;  %v6851_v36 = vsel %vm6845_vm2, %v14280_v32, %v14167_v45 }
 0x3ac   : > { %v7069_v41 = vpack.c.b16 %v7056_v12, %v7055_v8  ;;  %v5808_v26 = vsel %vm11630_vm15, %v5804_v50, %v5807_v38  ;;  %v5818_v57 = vsel %vm11630_vm15, %v5809_v42, %v5817_v9  ;;  %v5726_v40 = vsel %vm11602_vm7, %v9840_v30, %v5725_v53 }
 0x3ad   : > { %6999 = vrot.lane.b32.xlu2 %v6989_v23, %s16112_s30  ;;  %v7221_v18 = vunpack.c.l.b16 %v5808_v26  ;;  %v7222_v63 = vunpack.c.l.b16 %v5818_v57  ;;  %v5729_v0 = vsel %vm11602_vm7, %v5727_v29, %v5728_v37  ;;  %v5245_v45 = vrot.slane %v5243_v55, 5 }
 0x3ae   : > { %7079 = vrot.lane.b32.xlu1 %v7069_v41, %s16106_s19  ;;  %v5246_v32 = vshll.u32 %v14367_v60, 16  ;;  %v5251_v8 = vrot.slane %v4970_v19, 5  ;;  %v5252_v38 = vrot.slane %v4966_v51, 6  ;;  %v5257_v62 = vshrl.u32 %v14357_v2, 16  ;;  %v14455_v60 = vpop.permute.xlu1 %6589  ;;  %v10156_v41 = vld [vmem:[#allocation3 + $0x48] sm:$0xff] }
 0x3af   : > { %v7236_v12 = vpack.c.b16 %v7222_v63, %v7221_v18  ;;  %v5260_v35 = vshll.u32 %v14357_v2, 16  ;;  %v6868_v17 = vsel %vm6862_vm5, %v6851_v36, %v14273_v15  ;;  %v7184_v30 = vunpack.c.l.b16 %v5729_v0  ;;  %v14467_v15 = vld [vmem:[#allocation3 + $0x50] sm:$0x3] }
 0x3b0   : > { %v5248_v53 = vrot.slane %v5246_v32, 6  ;;  %v5253_v37 = vor.u32 %v5252_v38, %v5251_v8  ;;  %vm6879_vm9 = vcmask 392192   ;;  %v5259_v50 = vrot.slane %v5257_v62, 5  ;;  %v5465_v38 = vld [vmem:[#allocation3 + $0x48] sm:$0xf] }
 0x3b1   : > { %7245 = vrot.lane.b32.xlu0 %v7236_v12, %s16252_s24  ;;  %v5262_v42 = vrot.slane %v5260_v35, 6  ;;  %v14460_v9 = vsel %vm6879_vm9, %v6868_v17, %v14340_v49  ;;  %v14465_v2 = vsel %vm6862_vm5, %v14381_v44, %v14392_v5  ;;  %v7183_v23 = vunpack.c.l.b16 %v5726_v40  ;;  %v14483_v17 = vpop.permute.xlu2 %6561 }
 0x3b2   : > { %v5249_v29 = vor.u32 %v5248_v53, %v5245_v45  ;;  %v5255_v55 = vrot.slane %v5253_v37, 4  ;;  %v5543_v36 = vshll.u32 %v14401_v31, 16  ;;  %v5547_v57 = vshrl.u32 %v14401_v31, 16 }
 0x3b3   : > { %v5263_v26 = vor.u32 %v5262_v42, %v5259_v50  ;;  %v5820_v18 = vshrl.u32 %v14411_v33, 16  ;;  %v5823_v49 = vshll.u32 %v14411_v33, 16  ;;  %v7197_v63 = vpack.c.b16 %v7184_v30, %v7183_v23 }
 0x3b4   : > { %v5250_v0 = vrot.slane %v5249_v29, 4  ;;  %v5829_v32 = vrot.slane %v5543_v36, 6  ;;  %v5834_v44 = vshrl.u32 %v14467_v15, 16  ;;  %v5828_v8 = vrot.slane %v5547_v57, 5 }
 0x3b5   : > { %7127 = vrot.lane.b32.xlu2 %v10156_v41, %s16102_s14  ;;  %v5264_v5 = vsel %vm11630_vm15, %v5255_v55, %v5263_v26  ;;  %v5822_v40 = vrot.slane %v5820_v18, 5  ;;  %v5825_v45 = vrot.slane %v5823_v49, 6  ;;  %v6857_v12 = vsel %vm6845_vm2, %v14307_v56, %v14225_v25  ;;  %v14486_v26 = vpop.permute.xlu0 %6557  ;;  %v16385_v25 = vld [vmem:[#allocation30_spill] sm:$0xff]  ;;  %v16386_v56 = vld [vmem:[#allocation29_spill] sm:$0xff] }
 0x3b6   : > { %7207 = vrot.lane.b32.xlu1 %v7197_v63, %s16383_s25  ;;  %v5254_v33 = vsel %vm11630_vm15, %v5250_v0, %v5253_v37  ;;  %v7016_v62 = vunpack.c.l.b16 %v5264_v5  ;;  %v5836_v35 = vrot.slane %v5834_v44, 5  ;;  %v5830_v50 = vor.u32 %v5829_v32, %v5828_v8 }
 0x3b7   : > { %v7015_v30 = vunpack.c.l.b16 %v5254_v33  ;;  %v5826_v53 = vor.u32 %v5825_v45, %v5822_v40  ;;  %v5837_v42 = vshll.u32 %v14467_v15, 16  ;;  %v5534_v23 = vshrl.u32 %v5465_v38, 16  ;;  %v14492_v40 = vld [vmem:[#allocation3 + $0x4c] sm:$0xf]  ;;  %v14494_v45 = vpop.permute.xlu1 %6595  ;;  %v16387_v33 = vld [vmem:[#allocation60_spill] sm:$0xff] }
 0x3b8   : > { %v5537_v29 = vshll.u32 %v5465_v38, 16  ;;  %v5545_v55 = vrot.slane %v5543_v36, 5  ;;  %v5549_v41 = vrot.slane %v5547_v57, 4  ;;  %v6752_v18 = vsel %vm2659_vm3, %v16386_v56, %v16385_v25 }
 0x3b9   : > { %v7029_v37 = vpack.c.b16 %v7016_v62, %v7015_v30  ;;  %v5827_v49 = vrot.slane %v5826_v53, 4  ;;  %v5839_v63 = vrot.slane %v5837_v42, 6  ;;  %v5536_v0 = vrot.slane %v5534_v23, 4  ;;  %v16388_v62 = vld [vmem:[#allocation59_spill] sm:$0xff]  ;;  %v10146_v53 = vld [vmem:[#allocation3 + $0x24] sm:$0xff] }
 0x3ba   : > { %v5539_v44 = vrot.slane %v5537_v29, 5  ;;  %v5550_v5 = vor.u32 %v5549_v41, %v5545_v55  ;;  %v5553_v32 = vshll.u32 %v14409_v1, 16  ;;  %v5832_v57 = vrot.slane %v5830_v50, 4  ;;  %v14504_v29 = vld [vmem:[#allocation3 + $0x48] sm:$0xe] }
 0x3bb   : > { %7039 = vrot.lane.b32.xlu0 %v7029_v37, %s16110_s16  ;;  %v5831_v36 = vsel %vm11630_vm15, %v5827_v49, %v5830_v50  ;;  %v5840_v8 = vor.u32 %v5839_v63, %v5836_v35  ;;  %v6874_v38 = vsel %vm6862_vm5, %v6857_v12, %v14324_v61  ;;  %v6782_v30 = vsel %vm2693_vm4, %v16388_v62, %v16387_v33  ;;  %v16389_v49 = vld [vmem:[#allocation33_spill] sm:$0xff]  ;;  %v14531_v62 = vpop.permute.xlu2 %6591 }
 0x3bc   : > { %v5540_v1 = vor.u32 %v5539_v44, %v5536_v0  ;;  %v5551_v42 = vrot.slane %v5550_v5, 4  ;;  %v5555_v23 = vrot.slane %v5553_v32, 5  ;;  %v7223_v25 = vunpack.c.l.b16 %v5831_v36  ;;  %v14519_v44 = vld [vmem:[#allocation3 + $0x50] sm:$0x3]  ;;  %v5959_v32 = vld [vmem:[#allocation3 + $0x48] sm:$0xc] }
 0x3bd   : > { %v5841_v41 = vsel %vm11630_vm15, %v5832_v57, %v5840_v8  ;;  %v14510_v35 = vsel %vm6879_vm9, %v6874_v38, %v14413_v47  ;;  %v4990_v61 = vshll.u32 %v14492_v40, 16  ;;  %v4994_v37 = vshrl.u32 %v14492_v40, 16  ;;  %v16390_v33 = vld [vmem:[#allocation61_spill] sm:$0xff] }
 0x3be   : > { %6677 = vrot.lane.b32.xlu1 %v10146_v53, %s16121_s23  ;;  %v7224_v12 = vunpack.c.l.b16 %v5841_v41  ;;  %v5541_v50 = vrot.slane %v5540_v1, 4  ;;  %v5556_v56 = vsel %vm11616_vm0, %v5551_v42, %v5555_v23  ;;  %v6768_v63 = vsel %vm2676_vm11, %v6752_v18, %v16389_v49 }
 0x3bf   : > { %v7144_v0 = vunpack.c.l.b16 %v5556_v56  ;;  %v5266_v47 = vshrl.u32 %v14504_v29, 16  ;;  %v5269_v5 = vshll.u32 %v14504_v29, 16  ;;  %v5274_v8 = vrot.slane %v4994_v37, 5  ;;  %v14542_v4 = vpop.permute.xlu1 %6601 }
 0x3c0   : > { %v7237_v36 = vpack.c.b16 %v7224_v12, %v7223_v25  ;;  %v5546_v57 = vsel %vm11616_vm0, %v5541_v50, %v5545_v55  ;;  %v5275_v38 = vrot.slane %v4990_v61, 6  ;;  %v6784_v18 = vsel %vm2693_vm4, %v6768_v63, %v16390_v33  ;;  %v6564_v12 = vpop.permute.xlu0 %6563  ;;  %v16391_v33 = vld [vmem:[#allocation62_spill] sm:$0xff] }
 0x3c1   : > { %v7143_v53 = vunpack.c.l.b16 %v5546_v57  ;;  %v5268_v1 = vrot.slane %v5266_v47, 5  ;;  %v5271_v42 = vrot.slane %v5269_v5, 6  ;;  %v5280_v41 = vshrl.u32 %v14519_v44, 16  ;;  %v16392_v47 = vld [vmem:[#allocation31_spill] sm:$0xff] }
 0x3c2   : > { %7247 = vrot.lane.b32.xlu2 %v7237_v36, %s16252_s24  ;;  %v5276_v23 = vor.u32 %v5275_v38, %v5274_v8  ;;  %v5283_v55 = vshll.u32 %v14519_v44, 16  ;;  %v9848_v25 = vrot.slane %v5959_v32, 10  ;;  %v5997_v49 = vrot.slane %v14401_v31, 6  ;;  %v5467_v38 = vld [vmem:[#allocation3 + $0x54] sm:$0xf] }
 0x3c3   : > { %v7157_v50 = vpack.c.b16 %v7144_v0, %v7143_v53  ;;  %v5272_v56 = vor.u32 %v5271_v42, %v5268_v1  ;;  %v6000_v63 = vrot.slane %v14467_v15, 6  ;;  %v6798_v57 = vsel %vm2710_vm10, %v6782_v30, %v16391_v33  ;;  %v16394_v53 = vld [vmem:[#allocation41_spill] sm:$0xff] }
 0x3c4   : > { %v6800_v5 = vsel %vm2710_vm10, %v6784_v18, %v16392_v47  ;;  %v5282_v36 = vrot.slane %v5280_v41, 5  ;;  %v5285_v8 = vrot.slane %v5283_v55, 6  ;;  %v5998_v31 = vsel %vm11504_vm6, %v9848_v25, %v5997_v49  ;;  %v14556_v41 = vld [vmem:[#allocation3 + $0x58] sm:$0xf] }
 0x3c5   : > { %v6816_v32 = vsel %vm2727_vm14, %v6800_v5, %v16393_v14  ;;  %7167 = vrot.lane.b32.xlu0 %v7157_v50, %s16104_s20  ;;  %v5273_v0 = vrot.slane %v5272_v56, 4  ;;  %v5999_v15 = vrot.slane %v5997_v49, 4  ;;  %v6814_v30 = vsel %vm2727_vm14, %v6798_v57, %v16394_v53  ;;  %v14564_v50 = vld [vmem:[#allocation3 + $0x5c] sm:$0x1] }
 0x3c6   : > { %v5278_v1 = vrot.slane %v5276_v23, 4  ;;  %v5286_v18 = vor.u32 %v5285_v8, %v5282_v36  ;;  %v14554_v42 = vsel %vm6879_vm9, %v14350_v39, %v14486_v26  ;;  %v6832_v14 = vsel %vm2764_vm8, %v6816_v32, %v14013_v13  ;;  %v16395_v36 = vld [vmem:[#allocation39_spill] sm:$0xff] }
 0x3c7   : > { %v5277_v55 = vsel %vm11630_vm15, %v5273_v0, %v5276_v23  ;;  %v6001_v25 = vsel %vm11504_vm6, %v5999_v15, %v6000_v63  ;;  %v5558_v56 = vshrl.u32 %v5467_v38, 16  ;;  %v7263_v33 = vunpack.c.l.b16 %v5998_v31  ;;  %v14573_v0 = vld [vmem:[#allocation3 + $0x50] sm:$0x1]  ;;  %v14575_v15 = vpop.permute.xlu2 %6597 }
 0x3c8   : > { %v5287_v49 = vsel %vm11630_vm15, %v5278_v1, %v5286_v18  ;;  %v7264_v39 = vunpack.c.l.b16 %v6001_v25  ;;  %v5561_v26 = vshll.u32 %v5467_v38, 16  ;;  %v7017_v57 = vunpack.c.l.b16 %v5277_v55 }
 0x3c9   : > { %v7018_v47 = vunpack.c.l.b16 %v5287_v49  ;;  %v5560_v5 = vrot.slane %v5558_v56, 4  ;;  %v5567_v13 = vshll.u32 %v14556_v41, 16  ;;  %v6830_v23 = vsel %vm2764_vm8, %v6814_v30, %v16395_v36  ;;  %v14579_v30 = vld [vmem:[#allocation3 + $0x5c] sm:$0x3]  ;;  %v6594_v56 = vpop.permute.xlu0 %6593  ;;  %v6632_v36 = vpop.permute.xlu1 %6631 }
 0x3ca   : > { %v5563_v8 = vrot.slane %v5561_v26, 5  ;;  %v5571_v63 = vshrl.u32 %v14556_v41, 16  ;;  %v5577_v32 = vshll.u32 %v14564_v50, 16  ;;  %v7277_v53 = vpack.c.b16 %v7264_v39, %v7263_v33 }
 0x3cb   : > { %v7030_v31 = vpack.c.b16 %v7018_v47, %v7017_v57  ;;  %v5569_v38 = vrot.slane %v5567_v13, 5  ;;  %v9825_v1 = vrot.slane %v14504_v29, 9  ;;  %vm16120_vm1 = vcmask 424960  }
 0x3cc   : > { %v5564_v18 = vor.u32 %v5563_v8, %v5560_v5  ;;  %v5573_v55 = vrot.slane %v5571_v63, 4  ;;  %v5155_v25 = vrot.slane %v14492_v40, 5  ;;  %v5579_v49 = vrot.slane %v5577_v32, 5 }
 0x3cd   : > { %7041 = vrot.lane.b32.xlu1 %v7030_v31, %s16110_s16  ;;  %7287 = vrot.lane.b32.xlu0 %v7277_v53, %s16279_s17  ;;  %v5158_v26 = vrot.slane %v14573_v0, 5  ;;  %v6887_v33 = vsel %vm6879_vm9, %v14421_v11, %v14436_v27  ;;  %v14589_v29 = vsel %vm6879_vm9, %v14417_v21, %v6564_v12  ;;  %v6847_v8 = vsel %vm6845_vm2, %v6830_v23, %v14021_v7  ;;  %v5960_v53 = vld [vmem:[#allocation3 + $0x54] sm:$0xc] }
 0x3ce   : > { %16396 = vst [vmem:[#allocation51_spill] sm:$0xff] %v14589_v29  ;;  %v5565_v39 = vrot.slane %v5564_v18, 4  ;;  %v5574_v57 = vor.u32 %v5573_v55, %v5569_v38  ;;  %v5156_v47 = vsel %vm11602_vm7, %v9825_v1, %v5155_v25  ;;  %v5157_v5 = vrot.slane %v5155_v25, 4  ;;  %v14612_v55 = vld [vmem:[#allocation3 + $0x54] sm:$0xe] }
 0x3cf   : > { %v14597_v32 = vsel %vm16120_vm1, %v6887_v33, %v14494_v45  ;;  %v6004_v11 = vrot.slane %v14556_v41, 6  ;;  %v6007_v27 = vrot.slane %v14579_v30, 6  ;;  %v6893_v7 = vsel %vm6879_vm9, %v14465_v2, %v14483_v17 }
 0x3d0   : > { %v5570_v21 = vsel %vm11616_vm0, %v5565_v39, %v5569_v38  ;;  %v5575_v12 = vrot.slane %v5574_v57, 4  ;;  %v5159_v31 = vsel %vm11602_vm7, %v5157_v5, %v5158_v26  ;;  %v6849_v45 = vsel %vm6845_vm2, %v6832_v14, %v14114_v34 }
 0x3d1   : > { %v6864_v23 = vsel %vm6862_vm5, %v6847_v8, %v14276_v52  ;;  %v6977_v1 = vunpack.c.l.b16 %v5156_v47  ;;  %v6978_v18 = vunpack.c.l.b16 %v5159_v31  ;;  %v6006_v25 = vrot.slane %v6004_v11, 4 }
 0x3d2   : > { %v5580_v38 = vsel %vm11616_vm0, %v5575_v12, %v5579_v49  ;;  %v14618_v26 = vsel %vm16120_vm1, %v6893_v7, %v14542_v4  ;;  %v14622_v2 = vsel %vm16120_vm1, %v14460_v9, %v6594_v56  ;;  %v7145_v34 = vunpack.c.l.b16 %v5570_v21  ;;  %v14628_v49 = vld [vmem:[#allocation3 + $0x58] sm:$0xf]  ;;  %v14631_v4 = vpop.permute.xlu2 %6603  ;;  %v14634_v9 = vld [vmem:[#allocation3 + $0x5c] sm:$0x1] }
 0x3d3   : > { %v7146_v17 = vunpack.c.l.b16 %v5580_v38  ;;  %v6990_v14 = vpack.c.b16 %v6978_v18, %v6977_v1  ;;  %v9849_v52 = vrot.slane %v5960_v53, 10  ;;  %v6866_v33 = vsel %vm6862_vm5, %v6849_v45, %v14171_v28  ;;  %16397 = vst [vmem:[#allocation52_spill] sm:$0xff] %v14631_v4 }
 0x3d4   : > { %v6008_v39 = vsel %vm11504_vm6, %v6006_v25, %v6007_v27  ;;  %v5843_v57 = vshrl.u32 %v14612_v55, 16  ;;  %v5846_v56 = vshll.u32 %v14612_v55, 16  ;;  %v5851_v5 = vrot.slane %v5571_v63, 5 }
 0x3d5   : > { %v7158_v47 = vpack.c.b16 %v7146_v17, %v7145_v34  ;;  %7001 = vrot.lane.b32.xlu0 %v6990_v14, %s16112_s30  ;;  %v5852_v8 = vrot.slane %v5567_v13, 6  ;;  %v6883_v28 = vsel %vm6879_vm9, %v6866_v33, %v14449_v58  ;;  %v6881_v27 = vsel %vm6879_vm9, %v6864_v23, %v14384_v43  ;;  %v14648_v43 = vld [vmem:[#allocation3 + $0x54] sm:$0xe]  ;;  %v14662_v14 = vld [vmem:[#allocation3 + $0x64] sm:$0xf] }
 0x3d6   : > { %v5845_v21 = vrot.slane %v5843_v57, 5  ;;  %v6600_v12 = vpop.permute.xlu0 %6599  ;;  %v6005_v31 = vsel %vm11504_vm6, %v9849_v52, %v6004_v11  ;;  %v5162_v53 = vrot.slane %v14628_v49, 5  ;;  %v5848_v7 = vrot.slane %v5846_v56, 6  ;;  %v10157_v33 = vld [vmem:[#allocation3 + $0x54] sm:$0xff] }
 0x3d7   : > { %7169 = vrot.lane.b32.xlu1 %v7158_v47, %s16104_s20  ;;  %v5857_v45 = vshrl.u32 %v14579_v30, 16  ;;  %v7266_v63 = vunpack.c.l.b16 %v6008_v39  ;;  %v5165_v13 = vrot.slane %v14634_v9, 5  ;;  %v5853_v1 = vor.u32 %v5852_v8, %v5851_v5  ;;  %v6638_v18 = vpop.permute.xlu1 %6637  ;;  %v14667_v47 = vld [vmem:[#allocation3 + $0x60] sm:$0xe] }
 0x3d8   : > { %v5860_v58 = vshll.u32 %v14579_v30, 16  ;;  %v5849_v23 = vor.u32 %v5848_v7, %v5845_v21  ;;  %v6900_v25 = vsel %vm16120_vm1, %v6883_v28, %v14531_v62  ;;  %vm6913_vm8 = vcmask 457728  }
 0x3d9   : > { %v5859_v38 = vrot.slane %v5857_v45, 5  ;;  %v14653_v34 = vsel %vm6913_vm8, %v6900_v25, %v6632_v36  ;;  %v14657_v17 = vsel %vm16120_vm1, %v14510_v35, %v6600_v12  ;;  %v6906_v30 = vsel %vm16120_vm1, %v14554_v42, %v14575_v15  ;;  %v14681_v12 = vld [vmem:[#allocation3 + $0x68] sm:$0x3]  ;;  %v4884_v25 = vld [vmem:[#allocation3 + $0x24] sm:$0xf] }
 0x3da   : > { %v5862_v11 = vrot.slane %v5860_v58, 6  ;;  %16398 = vst [vmem:[#allocation44_spill] sm:$0xff] %v14657_v17  ;;  %v7265_v52 = vunpack.c.l.b16 %v6005_v31  ;;  %v5164_v39 = vrot.slane %v5162_v53, 4  ;;  %v5850_v57 = vrot.slane %v5849_v23, 4  ;;  %v14685_v45 = vpop.permute.xlu2 %6633 }
 0x3db   : > { %v14665_v62 = vsel %vm6913_vm8, %v6906_v30, %v6638_v18  ;;  %v6898_v36 = vsel %vm16120_vm1, %v6881_v27, %v14455_v60  ;;  %v9826_v35 = vrot.slane %v14648_v43, 9  ;;  %v5855_v56 = vrot.slane %v5853_v1, 4 }
 0x3dc   : > { %v5863_v5 = vor.u32 %v5862_v11, %v5859_v38  ;;  %v7278_v8 = vpack.c.b16 %v7266_v63, %v7265_v52  ;;  %v5166_v42 = vsel %vm11602_vm7, %v5164_v39, %v5165_v13  ;;  %v5591_v15 = vshll.u32 %v14662_v14, 16 }
 0x3dd   : > { %7129 = vrot.lane.b32.xlu0 %v10157_v33, %s16102_s14  ;;  %v5595_v28 = vshrl.u32 %v14662_v14, 16  ;;  %v5854_v21 = vsel %vm11630_vm15, %v5850_v57, %v5853_v1  ;;  %v5866_v31 = vshrl.u32 %v14667_v47, 16  ;;  %v5869_v7 = vshll.u32 %v14667_v47, 16 }
 0x3de   : > { %v5864_v60 = vsel %vm11630_vm15, %v5855_v56, %v5863_v5  ;;  %v6630_v27 = vpop.permute.xlu0 %6629  ;;  %v5163_v1 = vsel %vm11602_vm7, %v9826_v35, %v5162_v53  ;;  %v6980_v58 = vunpack.c.l.b16 %v5166_v42  ;;  %v7225_v18 = vunpack.c.l.b16 %v5854_v21  ;;  %v4888_v56 = vld [vmem:[#allocation3 + $0x3c] sm:$0xf] }
 0x3df   : > { %7289 = vrot.lane.b32.xlu1 %v7278_v8, %s16279_s17  ;;  %v7226_v63 = vunpack.c.l.b16 %v5864_v60  ;;  %v14689_v13 = vsel %vm6913_vm8, %v6898_v36, %v6630_v27  ;;  %v5880_v23 = vshrl.u32 %v14681_v12, 16  ;;  %v5883_v38 = vshll.u32 %v14681_v12, 16 }
 0x3e0   : > { %v5868_v11 = vrot.slane %v5866_v31, 5  ;;  %v5871_v30 = vrot.slane %v5869_v7, 6  ;;  %v5874_v52 = vrot.slane %v5595_v28, 5  ;;  %v5875_v33 = vrot.slane %v5591_v15, 6 }
 0x3e1   : > { %v6979_v39 = vunpack.c.l.b16 %v5163_v1  ;;  %v7238_v57 = vpack.c.b16 %v7226_v63, %v7225_v18  ;;  %v4968_v53 = vrot.slane %v4966_v51, 5  ;;  %v4909_v36 = vshrl.u32 %v4884_v25, 16 }
 0x3e2   : > { %v4912_v35 = vshll.u32 %v4884_v25, 16  ;;  %v4972_v5 = vrot.slane %v4970_v19, 4  ;;  %v4976_v8 = vshll.u32 %v14359_v48, 16  ;;  %v5882_v21 = vrot.slane %v5880_v23, 5  ;;  %v14714_v25 = vpop.permute.xlu2 %6639 }
 0x3e3   : > { %v6991_v42 = vpack.c.b16 %v6980_v58, %v6979_v39  ;;  %v5885_v60 = vrot.slane %v5883_v38, 6  ;;  %v5872_v27 = vor.u32 %v5871_v30, %v5868_v11  ;;  %v5876_v31 = vor.u32 %v5875_v33, %v5874_v52  ;;  %v10333_v33 = vld [vmem:[#allocation3 + $0x2c] sm:$0x1] }
 0x3e4   : > { %v4957_v63 = vshrl.u32 %v4888_v56, 16  ;;  %v4960_v1 = vshll.u32 %v4888_v56, 16  ;;  %v4920_v51 = vrot.slane %v4918_v6, 5  ;;  %v4973_v48 = vor.u32 %v4972_v5, %v4968_v53 }
 0x3e5   : > { %7249 = vrot.lane.b32.xlu0 %v7238_v57, %s16252_s24  ;;  %v4978_v19 = vrot.slane %v4976_v8, 5  ;;  %v4911_v58 = vrot.slane %v4909_v36, 4  ;;  %v4914_v18 = vrot.slane %v4912_v35, 5  ;;  %v4924_v23 = vrot.slane %v4922_v20, 4  ;;  %v10158_v35 = vld [vmem:[#allocation3 + $0x60] sm:$0xff] }
 0x3e6   : > { %v6636_v7 = vpop.permute.xlu0 %6635  ;;  %v4959_v38 = vrot.slane %v4957_v63, 4  ;;  %v5886_v11 = vor.u32 %v5885_v60, %v5882_v21  ;;  %v4962_v30 = vrot.slane %v4960_v1, 5  ;;  %v4974_v52 = vrot.slane %v4973_v48, 4 }
 0x3e7   : > { %7003 = vrot.lane.b32.xlu1 %v6991_v42, %s16112_s30  ;;  %v14710_v46 = vsel %vm6913_vm8, %v14597_v32, %v6636_v7  ;;  %v4928_v39 = vshll.u32 %v10333_v33, 16  ;;  %v5873_v6 = vrot.slane %v5872_v27, 4  ;;  %v5878_v57 = vrot.slane %v5876_v31, 4 }
 0x3e8   : > { %v4963_v56 = vor.u32 %v4962_v30, %v4959_v38  ;;  %v4979_v32 = vsel %vm11616_vm0, %v4974_v52, %v4978_v19  ;;  %v4915_v5 = vor.u32 %v4914_v18, %v4911_v58  ;;  %v4925_v36 = vor.u32 %v4924_v23, %v4920_v51  ;;  %v5383_v18 = vld [vmem:[#allocation3 + $0x48] sm:$0xc] }
 0x3e9   : > { %v5887_v59 = vsel %vm11630_vm15, %v5878_v57, %v5886_v11  ;;  %v4930_v8 = vrot.slane %v4928_v39, 5  ;;  %v14720_v21 = vunpack.c.l.b16 %v4979_v32  ;;  %v5877_v60 = vsel %vm11630_vm15, %v5873_v6, %v5876_v31  ;;  %v6996_v11 = vpop.permute.xlu1 %6995 }
 0x3ea   : > { %v4964_v20 = vrot.slane %v4963_v56, 4  ;;  %v5427_v63 = vrot.slane %v14492_v40, 6  ;;  %v7228_v1 = vunpack.c.l.b16 %v5887_v59  ;;  %v4916_v48 = vrot.slane %v4915_v5, 4  ;;  %v7036_v33 = vpop.permute.xlu2 %7035  ;;  %v4886_v59 = vld [vmem:[#allocation3 + $0x30] sm:$0xf] }
 0x3eb   : > { %v4926_v19 = vrot.slane %v4925_v36, 4  ;;  %v5430_v38 = vrot.slane %v14519_v44, 6  ;;  %v14737_v31 = vrot.slane %v4990_v61, 5  ;;  %v9833_v52 = vrot.slane %v5383_v18, 10 }
 0x3ec   : > { %v4969_v7 = vsel %vm11616_vm0, %v4964_v20, %v4968_v53  ;;  %v5429_v23 = vrot.slane %v5427_v63, 4  ;;  %v7227_v39 = vunpack.c.l.b16 %v5877_v60  ;;  %v4921_v40 = vsel %vm11616_vm0, %v4916_v48, %v4920_v51 }
 0x3ed   : > { %v14732_v58 = vunpack.c.l.b16 %v4969_v7  ;;  %v4931_v53 = vsel %vm11616_vm0, %v4926_v19, %v4930_v8  ;;  %v6947_v5 = vunpack.c.l.b16 %v4921_v40  ;;  %vm16400_vm2 = vcmask 31744  }
 0x3ee   : > { %v6642_v42 = vpop.permute.xlu0 %6641  ;;  %v5431_v44 = vsel %vm11504_vm6, %v5429_v23, %v5430_v38  ;;  %v7239_v57 = vpack.c.b16 %v7228_v1, %v7227_v39  ;;  %v6948_v56 = vunpack.c.l.b16 %v4931_v53  ;;  %v9841_v60 = vrot.slane %v14612_v55, 9  ;;  %vm16403_vm5 = vmmov %vm16400_vm2 }
 0x3ef   : > { %7131 = vrot.lane.b32.xlu1 %v10158_v35, %s16102_s14  ;;  %v14727_v27 = vsel %vm6913_vm8, %v14618_v26, %v6642_v42  ;;  %v14741_v26 = vrot.slane %v4994_v37, 4  ;;  %v6965_v30 = vpack.c.b16 %v14720_v21, %v14732_v58  ;;  %v5428_v37 = vsel %vm11504_vm6, %v9833_v52, %v5427_v63  ;;  %s16108_s14 = smov 64   ;;  %vm16404_vm9 = vmmov %vm16400_vm2 }
 0x3f0   : > { %16399 = vst [vmem:[#allocation47_spill] sm:$0xff] %v14727_v27  ;;  %v7058_v6 = vunpack.c.l.b16 %v5431_v44  ;;  %v7057_v32 = vunpack.c.l.b16 %v5428_v37  ;;  %v6963_v35 = vpack.c.b16 %v6948_v56, %v6947_v5  ;;  %v5732_v51 = vrot.slane %v14556_v41, 5 }
 0x3f1   : > { %v4997_v61 = vor.u32 %v14741_v26, %v14737_v31  ;;  %v7124_v42 = vpop.permute.xlu1 %7123  ;;  %v5735_v7 = vrot.slane %v14564_v50, 5  ;;  %v4933_v1 = vshrl.u32 %v4886_v59, 16  ;;  %v4936_v19 = vshll.u32 %v4886_v59, 16  ;;  %v5469_v26 = vld [vmem:[#allocation3 + $0x60] sm:$0xf] }
 0x3f2   : > { %v7070_v36 = vpack.c.b16 %v7058_v6, %v7057_v32  ;;  %v7301_v20 = vsel %vm16400_vm2, %v6963_v35, %v6996_v11  ;;  %v7164_v63 = vpop.permute.xlu2 %7163  ;;  %v5733_v18 = vsel %vm11602_vm7, %v9841_v60, %v5732_v51  ;;  %v5734_v23 = vrot.slane %v5732_v51, 4 }
 0x3f3   : > { %v7324_v48 = vsel %vm2625_vm12, %v7301_v20, %v7036_v33  ;;  %v5014_v53 = vshll.u32 %v14628_v49, 16  ;;  %v5018_v11 = vshrl.u32 %v14628_v49, 16  ;;  %v16401_v55 = vshll.u32 %v14189_v24, 16 }
 0x3f4   : > { %v5736_v50 = vsel %vm11602_vm7, %v5734_v23, %v5735_v7  ;;  %v4935_v52 = vrot.slane %v4933_v1, 4  ;;  %v16402_v33 = vshrl.u32 %v14189_v24, 16  ;;  %v7185_v44 = vunpack.c.l.b16 %v5733_v18  ;;  %v4890_v24 = vld [vmem:[#allocation3 + $0x48] sm:$0xf] }
 0x3f5   : > { %v4944_v41 = vrot.slane %v16401_v55, 5  ;;  %v7186_v40 = vunpack.c.l.b16 %v5736_v50  ;;  %v4938_v6 = vrot.slane %v4936_v19, 5  ;;  %v14775_v56 = vrot.slane %v5018_v11, 4 }
 0x3f6   : > { %v4948_v39 = vrot.slane %v16402_v33, 4  ;;  %v4952_v5 = vshll.u32 %v14288_v3, 16  ;;  %v4981_v18 = vshrl.u32 %v4890_v24, 16  ;;  %v4984_v3 = vshll.u32 %v4890_v24, 16 }
 0x3f7   : > { %7251 = vrot.lane.b32.xlu1 %v7239_v57, %s16252_s24  ;;  %v14773_v57 = vrot.slane %v5014_v53, 5  ;;  %v7198_v32 = vpack.c.b16 %v7186_v40, %v7185_v44  ;;  %v4939_v51 = vor.u32 %v4938_v6, %v4935_v52  ;;  %v5297_v44 = vrot.slane %v5018_v11, 5 }
 0x3f8   : > { %v4954_v19 = vrot.slane %v4952_v5, 5  ;;  %v4983_v55 = vrot.slane %v4981_v18, 4  ;;  %v4986_v50 = vrot.slane %v4984_v3, 5  ;;  %v5298_v40 = vrot.slane %v5014_v53, 6 }
 0x3f9   : > { %v5021_v35 = vor.u32 %v14775_v56, %v14773_v57  ;;  %v4940_v23 = vrot.slane %v4939_v51, 4  ;;  %v5292_v24 = vshll.u32 %v14648_v43, 16  ;;  %v5000_v53 = vshll.u32 %v14573_v0, 16 }
 0x3fa   : > { %v7076_v8 = vpop.permute.xlu0 %7075  ;;  %v7284_v7 = vpop.permute.xlu2 %7283  ;;  %v4987_v6 = vor.u32 %v4986_v50, %v4983_v55  ;;  %v4998_v18 = vrot.slane %v4997_v61, 4  ;;  %vm16405_vm2 = vcmask 1041408   ;;  %vm16412_vm1 = vcmask 31744  }
 0x3fb   : > { %v7340_v38 = vsel %vm2642_vm13, %v7324_v48, %v7076_v8  ;;  %v7244_v8 = vpop.permute.xlu1 %7243  ;;  %v4945_v52 = vsel %vm11616_vm0, %v4940_v23, %v4944_v41 }
 0x3fc   : > { %v7356_v37 = vsel %vm2659_vm3, %v7340_v38, %v7124_v42  ;;  %v4949_v42 = vor.u32 %v4948_v39, %v4944_v41  ;;  %v6949_v5 = vunpack.c.l.b16 %v4945_v52  ;;  %v4988_v11 = vrot.slane %v4987_v6, 4  ;;  %v5481_v52 = vld [vmem:[#allocation3 + $0x68] sm:$0x1] }
 0x3fd   : > { %v7372_v20 = vsel %vm2676_vm11, %v7356_v37, %v7164_v63  ;;  %v5742_v6 = vrot.slane %v5481_v52, 5 }
 0x3fe   : > { %v4950_v38 = vrot.slane %v4949_v42, 4  ;;  %v5739_v42 = vrot.slane %v14662_v14, 5  ;;  %v4993_v0 = vsel %vm11616_vm0, %v4988_v11, %v14737_v31 }
 0x400   : > { %v4955_v63 = vsel %vm11616_vm0, %v4950_v38, %v4954_v19  ;;  %v5002_v19 = vrot.slane %v5000_v53, 5 }
 0x401   : > { %v6950_v33 = vunpack.c.l.b16 %v4955_v63  ;;  %v4892_v63 = vld [vmem:[#allocation3 + $0x54] sm:$0xf] }
 0x402   : > { %v5003_v61 = vsel %vm11616_vm0, %v4998_v18, %v5002_v19 }
 0x404   : > { %v7038_v37 = vpop.permute.xlu1 %7037 }
 0x405   : > { %v7204_v59 = vpop.permute.xlu0 %7203 }
 0x406   : > { %v7388_v60 = vsel %vm2693_vm4, %v7372_v20, %v7204_v59  ;;  %v14790_v59 = vld [vmem:[#allocation3 + $0x5c] sm:$0x3]  ;;  %v5289_v20 = vshrl.u32 %v14648_v43, 16  ;;  %v5434_v43 = vrot.slane %v14628_v49, 6  ;;  %v14862_v49 = vld [vmem:[#allocation3 + $0x60] sm:$0xe] }
 0x407   : > { %v7404_v1 = vsel %vm2710_vm10, %v7388_v60, %v7244_v8  ;;  %v6964_v8 = vpack.c.b16 %v6950_v33, %v6949_v5  ;;  %v14794_v60 = vor.u32 %v5298_v40, %v5297_v44  ;;  %v5303_v41 = vshrl.u32 %v14790_v59, 16 }
 0x408   : > { %v7420_v48 = vsel %vm2727_vm14, %v7404_v1, %v7284_v7  ;;  %v5306_v51 = vshll.u32 %v14790_v59, 16  ;;  %v7078_v7 = vpop.permute.xlu2 %7077  ;;  %v5291_v1 = vrot.slane %v5289_v20, 5  ;;  %v9842_v33 = vrot.slane %v14667_v47, 9 }
 0x409   : > { %7443 = vrot.lane.b32.xlu2 %v7420_v48, %s16108_s14  ;;  %v5294_v48 = vrot.slane %v5292_v24, 6  ;;  %v5301_v3 = vrot.slane %v14794_v60, 4  ;;  %v5305_v23 = vrot.slane %v5303_v41, 5  ;;  %v5582_v5 = vshrl.u32 %v5469_v26, 16 }
 0x40a   : > { %v5308_v38 = vrot.slane %v5306_v51, 6  ;;  %v5585_v20 = vshll.u32 %v5469_v26, 16  ;;  %v5740_v31 = vsel %vm11602_vm7, %v9842_v33, %v5739_v42  ;;  %v14818_v24 = vunpack.c.l.b16 %v5003_v61 }
 0x40b   : > { %v5295_v40 = vor.u32 %v5294_v48, %v5291_v1  ;;  %v14825_v51 = vrot.slane %v5591_v15, 5  ;;  %v7187_v53 = vunpack.c.l.b16 %v5740_v31  ;;  %v5384_v1 = vld [vmem:[#allocation3 + $0x54] sm:$0xc]  ;;  %v5584_v19 = vrot.slane %v5582_v5, 4 }
 0x40c   : > { %v5587_v18 = vrot.slane %v5585_v20, 5  ;;  %v5601_v33 = vshll.u32 %v5481_v52, 16  ;;  %v5436_v26 = vrot.slane %v5434_v43, 4  ;;  %v5024_v52 = vshll.u32 %v14634_v9, 16 }
 0x40d   : > { %v5296_v48 = vrot.slane %v5295_v40, 4 }
 0x40e   : > { %v5588_v61 = vor.u32 %v5587_v18, %v5584_v19  ;;  %v5961_v18 = vld [vmem:[#allocation3 + $0x60] sm:$0xc] }
 0x40f   : > { %v6998_v39 = vpop.permute.xlu0 %6997  ;;  %v9850_v56 = vrot.slane %v5961_v18, 10 }
 0x410   : > { %v7166_v44 = vpop.permute.xlu1 %7165 }
 0x411   : > { %7081 = vrot.lane.b32.xlu2 %v7070_v36, %s16106_s19  ;;  %v7304_v36 = vsel %vm16403_vm5, %v6964_v8, %v6998_v39  ;;  %v5741_v39 = vrot.slane %v5739_v42, 4  ;;  %v5309_v8 = vor.u32 %v5308_v38, %v5305_v23  ;;  %v10147_v23 = vld [vmem:[#allocation3 + $0x30] sm:$0xff]  ;;  %vm6930_vm5 = vcmask 490496  }
 0x412   : > { %v7326_v55 = vsel %vm2625_vm12, %v7304_v36, %v7038_v37  ;;  %v14816_v37 = vunpack.c.l.b16 %v4993_v0  ;;  %v7206_v0 = vpop.permute.xlu2 %7205 }
 0x413   : > { %v7342_v47 = vsel %vm2642_vm13, %v7326_v55, %v7078_v7  ;;  %v5743_v41 = vsel %vm11602_vm7, %v5741_v39, %v5742_v6  ;;  %v5597_v7 = vrot.slane %v5595_v28, 4  ;;  %v5437_v55 = vrot.slane %v14790_v59, 6 }
 0x414   : > { %v7188_v36 = vunpack.c.l.b16 %v5743_v41  ;;  %v9834_v39 = vrot.slane %v5384_v1, 10  ;;  %v5300_v28 = vsel %vm11630_vm15, %v5296_v48, %v14794_v60 }
 0x415   : > { %v5598_v40 = vor.u32 %v5597_v7, %v14825_v51  ;;  %v7019_v41 = vunpack.c.l.b16 %v5300_v28  ;;  %v5022_v7 = vrot.slane %v5021_v35, 4  ;;  %v14870_v35 = vld [vmem:[#allocation3 + $0x64] sm:$0xf]  ;;  %v5312_v28 = vshrl.u32 %v14862_v49, 16 }
 0x416   : > { %v14832_v38 = vpack.c.b16 %v7188_v36, %v7187_v53  ;;  %v5026_v53 = vrot.slane %v5024_v52, 5  ;;  %v5169_v58 = vrot.slane %v14870_v35, 5 }
 0x417   : > { %v7126_v50 = vpop.permute.xlu0 %7125  ;;  %v5599_v9 = vrot.slane %v5598_v40, 4 }
 0x418   : > { %v7358_v11 = vsel %vm2659_vm3, %v7342_v47, %v7126_v50  ;;  %v5310_v50 = vsel %vm11630_vm15, %v5301_v3, %v5309_v8  ;;  %v5008_v3 = vshll.u32 %v4892_v63, 16  ;;  %v7286_v20 = vpop.permute.xlu1 %7285  ;;  %v5438_v47 = vsel %vm11504_vm6, %v5436_v26, %v5437_v55 }
 0x419   : > { %7209 = vrot.lane.b32.xlu2 %v7198_v32, %s16383_s25  ;;  %v5005_v32 = vshrl.u32 %v4892_v63, 16  ;;  %v7374_v15 = vsel %vm2676_vm11, %v7358_v11, %v7166_v44  ;;  %v7020_v5 = vunpack.c.l.b16 %v5310_v50  ;;  %v5603_v8 = vrot.slane %v5601_v33, 5 }
 0x41a   : > { %v7390_v59 = vsel %vm2693_vm4, %v7374_v15, %v7206_v0  ;;  %v5010_v11 = vrot.slane %v5008_v3, 5  ;;  %v5435_v63 = vsel %vm11504_vm6, %v9834_v39, %v5434_v43  ;;  %v7060_v36 = vunpack.c.l.b16 %v5438_v47  ;;  %v7000_v0 = vpop.permute.xlu2 %6999 }
 0x41b   : > { %v5007_v44 = vrot.slane %v5005_v32, 4  ;;  %v5589_v32 = vrot.slane %v5588_v61, 4  ;;  %v7031_v1 = vpack.c.b16 %v7020_v5, %v7019_v41  ;;  %v5604_v19 = vsel %vm11616_vm0, %v5599_v9, %v5603_v8 }
 0x41c   : > { %v6011_v55 = vrot.slane %v14662_v14, 6  ;;  %v5027_v50 = vsel %vm11616_vm0, %v5022_v7, %v5026_v53  ;;  %v7148_v39 = vunpack.c.l.b16 %v5604_v19  ;;  %v6014_v26 = vrot.slane %v14681_v12, 6  ;;  %v14909_v19 = vld [vmem:[#allocation3 + $0x60] sm:$0xc] }
 0x41d   : > { %v5011_v48 = vor.u32 %v5010_v11, %v5007_v44  ;;  %v5594_v15 = vsel %vm11616_vm0, %v5589_v32, %v14825_v51  ;;  %v5315_v61 = vshll.u32 %v14862_v49, 16  ;;  %v14878_v44 = vld [vmem:[#allocation3 + $0x68] sm:$0x3]  ;;  %v16117_v5 = vshll.u32 %v14870_v35, 16 }
 0x41e   : > { %v7147_v14 = vunpack.c.l.b16 %v5594_v15  ;;  %v16116_v12 = vshrl.u32 %v14870_v35, 16  ;;  %v6012_v52 = vsel %vm11504_vm6, %v9850_v56, %v6011_v55  ;;  %v5314_v47 = vrot.slane %v5312_v28, 5  ;;  %v14899_v32 = vld [vmem:[#allocation3 + $0x68] sm:$0x1] }
 0x41f   : > { %v5012_v43 = vrot.slane %v5011_v48, 4  ;;  %v5317_v8 = vrot.slane %v5315_v61, 6  ;;  %v7307_v41 = vsel %vm16404_vm9, %v6965_v30, %v7000_v0  ;;  %v5321_v21 = vrot.slane %v16117_v5, 6  ;;  %v5471_v30 = vld [vmem:[#allocation3 + $0x6c] sm:$0xf] }
 0x420   : > { %v7159_v3 = vpack.c.b16 %v7148_v39, %v7147_v14  ;;  %v7080_v11 = vpop.permute.xlu1 %7079  ;;  %v9827_v7 = vrot.slane %v14862_v49, 9  ;;  %v5609_v28 = vshll.u32 %v5471_v30, 16  ;;  %v9835_v49 = vrot.slane %v14909_v19, 10 }
 0x421   : > { %6679 = vrot.lane.b32.xlu2 %v10147_v23, %s16121_s23  ;;  %v7059_v23 = vunpack.c.l.b16 %v5435_v63  ;;  %v5017_v51 = vsel %vm11616_vm0, %v5012_v43, %v14773_v57  ;;  %v5329_v63 = vshll.u32 %v14878_v44, 16  ;;  %v5318_v0 = vor.u32 %v5317_v8, %v5314_v47 }
 0x422   : > { %v14888_v57 = vunpack.c.l.b16 %v5017_v51  ;;  %v7128_v43 = vpop.permute.xlu2 %7127  ;;  %v5171_v51 = vrot.slane %v5169_v58, 4  ;;  %vm7459_vm9 = vcmask 523264  }
 0x423   : > { %v7246_v6 = vpop.permute.xlu0 %7245  ;;  %v7071_v33 = vpack.c.b16 %v7060_v36, %v7059_v23  ;;  %v5320_v36 = vrot.slane %v16116_v12, 5  ;;  %v7488_v23 = vld [vmem:[%s16025_s7 + $0x30] sm:$0x3]  ;;  %v5331_v56 = vrot.slane %v5329_v63, 6  ;;  %v15090_v12 = vpop.f32.mrf.mxu1 }
 0x424   : > { %v7406_v31 = vsel %vm2710_vm10, %v7390_v59, %v7246_v6  ;;  %v14880_v6 = vunpack.c.l.b16 %v5027_v50  ;;  %v6013_v59 = vrot.slane %v6011_v55, 4  ;;  %v5172_v55 = vrot.slane %v14899_v32, 5  ;;  %v14920_v50 = vld [vmem:[#allocation3 + $0x70] sm:$0xf] }
 0x425   : > { %v7422_v60 = vsel %vm2727_vm14, %v7406_v31, %v7286_v20  ;;  %v5441_v20 = vrot.slane %v14870_v35, 6  ;;  %v5322_v61 = vor.u32 %v5321_v21, %v5320_v36  ;;  %v5619_v47 = vshrl.u32 %v14920_v50, 16 }
 0x426   : > { %7445 = vrot.lane.b32.xlu0 %v7422_v60, %s16108_s14  ;;  %v6015_v31 = vsel %vm11504_vm6, %v6013_v59, %v6014_v26  ;;  %v5326_v60 = vshrl.u32 %v14878_v44, 16  ;;  %v5606_v26 = vshrl.u32 %v5471_v30, 16  ;;  %v5611_v21 = vrot.slane %v5609_v28, 5  ;;  %v10167_v30 = vld [vmem:[%s16025_s7 + $0x28] sm:$0xff] }
 0x427   : > { %v7268_v48 = vunpack.c.l.b16 %v6015_v31  ;;  %v14913_v18 = vrot.slane %v5441_v20, 4  ;;  %v5615_v31 = vshll.u32 %v14920_v50, 16 }
 0x428   : > { %v5328_v15 = vrot.slane %v5326_v60, 5  ;;  %v5319_v60 = vrot.slane %v5318_v0, 4  ;;  %v5608_v36 = vrot.slane %v5606_v26, 4 }
 0x429   : > { %7043 = vrot.lane.b32.xlu2 %v7031_v1, %s16110_s16  ;;  %v7267_v1 = vunpack.c.l.b16 %v6012_v52  ;;  %v14928_v52 = vld [vmem:[#allocation3 + $0x6c] sm:$0xe]  ;;  %v14948_v0 = vrot.slane %v5615_v31, 5 }
 0x42a   : > { %v5332_v63 = vor.u32 %v5331_v56, %v5328_v15  ;;  %v5892_v19 = vshll.u32 %v14928_v52, 16  ;;  %v5621_v15 = vrot.slane %v5619_v47, 4  ;;  %v5323_v28 = vsel %vm11630_vm15, %v5319_v60, %v5322_v61 }
 0x42b   : > { %v7279_v59 = vpack.c.b16 %v7268_v48, %v7267_v1  ;;  %v14943_v1 = vld [vmem:[#allocation3 + $0x74] sm:$0x3]  ;;  %v5889_v48 = vshrl.u32 %v14928_v52, 16 }
 0x42c   : > { %v5903_v56 = vshrl.u32 %v14943_v1, 16  ;;  %v5906_v26 = vshll.u32 %v14943_v1, 16 }
 0x42d   : > { %v7040_v40 = vpop.permute.xlu0 %7039 }
 0x42e   : > { %7083 = vrot.lane.b32.xlu0 %v7071_v33, %s16106_s19  ;;  %v7328_v53 = vsel %vm2625_vm12, %v7307_v41, %v7040_v40  ;;  %v7514_v33 = vunpack.c.l.b16 %v7488_v23  ;;  %v5444_v23 = vrot.slane %v14878_v44, 6  ;;  %s16406_s19 = smov 12  }
 0x42f   : > { %v7344_v39 = vsel %vm2642_vm13, %v7328_v53, %v7080_v11  ;;  %v14938_v53 = vld [vmem:[#allocation3 + $0x74] sm:$0x1] }
 0x430   : > { %v7521_v40 = vpack.c.b16 %v7514_v33, %v7514_v33  ;;  %v7360_v8 = vsel %vm2659_vm3, %v7344_v39, %v7128_v43  ;;  %v10148_v33 = vld [vmem:[#allocation3 + $0x3c] sm:$0xff]  ;;  %v5625_v44 = vshll.u32 %v14938_v53, 16 }
 0x431   : > { %7171 = vrot.lane.b32.xlu2 %v7159_v3, %s16104_s20  ;;  %v5170_v3 = vsel %vm11602_vm7, %v9827_v7, %v5169_v58  ;;  %v5324_v58 = vrot.slane %v5322_v61, 4  ;;  %v7208_v7 = vpop.permute.xlu1 %7207  ;;  %v10166_v61 = vld [vmem:[%s16025_s7 + $0x20] sm:$0xff]  ;;  %s16407_s20 = smov 16  }
 0x432   : > { %v7546_v41 = vsel %vm16405_vm2, %v7521_v40, 0  ;;  %v6981_v39 = vunpack.c.l.b16 %v5170_v3  ;;  %v5612_v40 = vor.u32 %v5611_v21, %v5608_v36  ;;  %v5891_v3 = vrot.slane %v5889_v48, 5 }
 0x433   : > { %7549 = vmatpush.bf16.msra.mxu2 %v7546_v41  ;;  %v5898_v41 = vrot.slane %v5615_v31, 6  ;;  %v5622_v21 = vor.u32 %v5621_v15, %v14948_v0  ;;  %v5905_v48 = vrot.slane %v5903_v56, 5  ;;  %v5442_v31 = vsel %vm11504_vm6, %v9835_v49, %v5441_v20 }
 0x434   : > { %v5749_v20 = vrot.slane %v14938_v53, 5  ;;  %vm7528_vm2 = vcmask 818176  }
 0x435   : > { %v5623_v56 = vrot.slane %v5622_v21, 4 }
 0x436   : > { %7211 = vrot.lane.b32.xlu0 %v14832_v38, %s16383_s25  ;;  %v5173_v38 = vsel %vm11602_vm7, %v5171_v51, %v5172_v55  ;;  %v5333_v51 = vsel %vm11630_vm15, %v5324_v58, %v5332_v63  ;;  %v5445_v63 = vsel %vm11504_vm6, %v14913_v18, %v5444_v23  ;;  %v5746_v23 = vrot.slane %v14920_v50, 5 }
 0x437   : > { %v7168_v14 = vpop.permute.xlu0 %7167  ;;  %v6982_v43 = vunpack.c.l.b16 %v5173_v38  ;;  %7550 = vmatpush.bf16.msra.mxu2 %v10167_v30  ;;  %v5897_v38 = vrot.slane %v5619_v47, 5  ;;  %v7022_v30 = vunpack.c.l.b16 %v5333_v51  ;;  %v5908_v47 = vrot.slane %v5906_v26, 6 }
 0x438   : > { %v7376_v11 = vsel %vm2676_vm11, %v7360_v8, %v7168_v14  ;;  %v14958_v14 = vld [vmem:[#allocation3 + $0x78] sm:$0xf]  ;;  %v5894_v8 = vrot.slane %v5892_v19, 6  ;;  %v7021_v19 = vunpack.c.l.b16 %v5323_v28  ;;  %v14982_v28 = vld [vmem:[#allocation3 + $0x7c] sm:$0xf]  ;;  %v7061_v51 = vunpack.c.l.b16 %v5442_v31 }
 0x439   : > { %7291 = vrot.lane.b32.xlu2 %v7279_v59, %s16279_s17  ;;  %v7392_v55 = vsel %vm2693_vm4, %v7376_v11, %v7208_v7  ;;  %v7248_v59 = vpop.permute.xlu2 %7247  ;;  %v6992_v36 = vpack.c.b16 %v6982_v43, %v6981_v39  ;;  %v5627_v7 = vrot.slane %v5625_v44, 5  ;;  %v5630_v18 = vshrl.u32 %v14958_v14, 16 }
 0x43a   : > { %v7408_v11 = vsel %vm2710_vm10, %v7392_v55, %v7248_v59  ;;  %v5613_v43 = vrot.slane %v5612_v40, 4  ;;  %v5895_v15 = vor.u32 %v5894_v8, %v5891_v3  ;;  %v5899_v55 = vor.u32 %v5898_v41, %v5897_v38  ;;  %v14993_v41 = vld [vmem:[#allocation3 + $0x70] sm:$0xf] }
 0x43b   : > { %7551 = vmatpush.bf16.msra.mxu2 %v10166_v61  ;;  %v7062_v39 = vunpack.c.l.b16 %v5445_v63  ;;  %v7032_v26 = vpack.c.b16 %v7022_v30, %v7021_v19  ;;  %v5909_v49 = vor.u32 %v5908_v47, %v5905_v48  ;;  %v9843_v44 = vrot.slane %v14928_v52, 9  ;;  %v10164_v52 = vld [vmem:[%s16025_s7 + $0x10] sm:$0xff]  ;;  %v14999_v63 = vld [vmem:[#allocation3 + $0x6c] sm:$0xe] }
 0x43c   : > { %v5628_v40 = vsel %vm11616_vm0, %v5623_v56, %v5627_v7  ;;  %v14987_v59 = vrot.slane %v5630_v18, 4  ;;  %v5748_v3 = vrot.slane %v5746_v23, 4  ;;  %v5618_v8 = vsel %vm11616_vm0, %v5613_v43, %v14948_v0  ;;  %v5962_v30 = vld [vmem:[#allocation3 + $0x6c] sm:$0xc]  ;;  %v15014_v7 = vld [vmem:[#allocation3 + $0x74] sm:$0x3] }
 0x43d   : > { %v5896_v38 = vrot.slane %v5895_v15, 4  ;;  %v5901_v53 = vrot.slane %v5899_v55, 4  ;;  %v7072_v61 = vpack.c.b16 %v7062_v39, %v7061_v51  ;;  %v5639_v21 = vshll.u32 %v14982_v28, 16 }
 0x43e   : > { %6681 = vrot.lane.b32.xlu0 %v10148_v33, %s16121_s23  ;;  %v10165_v33 = vld [vmem:[%s16025_s7 + $0x18] sm:$0xff]  ;;  %v5750_v0 = vsel %vm11602_vm7, %v5748_v3, %v5749_v20  ;;  %v5643_v47 = vshrl.u32 %v14982_v28, 16  ;;  %v7149_v31 = vunpack.c.l.b16 %v5618_v8  ;;  %v16114_v19 = vshrl.u32 %v14993_v41, 16 }
 0x43f   : > { %v7288_v60 = vpop.permute.xlu0 %7287  ;;  %7552 = vmatpush.bf16.msra.mxu2 %v10165_v33  ;;  %v5910_v48 = vsel %vm11630_vm15, %v5901_v53, %v5909_v49  ;;  %v5900_v18 = vsel %vm11630_vm15, %v5896_v38, %v5899_v55  ;;  %v16115_v43 = vshll.u32 %v14993_v41, 16  ;;  %v5335_v15 = vshrl.u32 %v14999_v63, 16  ;;  %v15032_v38 = vld [vmem:[#allocation3 + $0x78] sm:$0xe] }
 0x440   : > { %v7424_v58 = vsel %vm2727_vm14, %v7408_v11, %v7288_v60  ;;  %v10159_v60 = vld [vmem:[#allocation3 + $0x6c] sm:$0xff]  ;;  %v6018_v11 = vrot.slane %v14920_v50, 6  ;;  %v5747_v50 = vsel %vm11602_vm7, %v9843_v44, %v5746_v23  ;;  %v5338_v33 = vshll.u32 %v14999_v63, 16 }
 0x441   : > { %7447 = vrot.lane.b32.xlu1 %v7424_v58, %s16108_s14  ;;  %7005 = vrot.lane.b32.xlu2 %v6992_v36, %s16112_s30  ;;  %v5633_v36 = vshll.u32 %v14958_v14, 16  ;;  %v7150_v58 = vunpack.c.l.b16 %v5628_v40  ;;  %v6021_v14 = vrot.slane %v14943_v1, 6  ;;  %v10163_v23 = vld [vmem:[%s16025_s7 + $0x8] sm:$0xff]  ;;  %v7190_v39 = vunpack.c.l.b16 %v5750_v0  ;;  %s16408_s14 = smov 20   ;;  %s16409_s30 = smov 4  }
 0x442   : > { %v9851_v1 = vrot.slane %v5962_v30, 10  ;;  %v6020_v56 = vrot.slane %v6018_v11, 4  ;;  %v5349_v49 = vshrl.u32 %v15014_v7, 16  ;;  %v5352_v55 = vshll.u32 %v15014_v7, 16 }
 0x443   : > { %7553 = vmatpush.bf16.msra.mxu2 %v10164_v52  ;;  %v7160_v20 = vpack.c.b16 %v7150_v58, %v7149_v31  ;;  %v15026_v51 = vrot.slane %v5633_v36, 5  ;;  %v7189_v44 = vunpack.c.l.b16 %v5747_v50  ;;  %v7229_v3 = vunpack.c.l.b16 %v5900_v18  ;;  %v10162_v36 = vld [vmem:[%s16025_s7] sm:$0xff] }
 0x444   : > { %v6022_v40 = vsel %vm11504_vm6, %v6020_v56, %v6021_v14  ;;  %v5343_v8 = vrot.slane %v16114_v19, 5  ;;  %v5337_v53 = vrot.slane %v5335_v15, 5  ;;  %v5340_v52 = vrot.slane %v5338_v33, 6 }
 0x445   : > { %v7200_v0 = vpack.c.b16 %v7190_v39, %v7189_v44  ;;  %v6019_v58 = vsel %vm11504_vm6, %v9851_v1, %v6018_v11  ;;  %v7270_v50 = vunpack.c.l.b16 %v6022_v40  ;;  %v5351_v31 = vrot.slane %v5349_v49, 5 }
 0x446   : > { %7045 = vrot.lane.b32.xlu0 %v7032_v26, %s16110_s16  ;;  %v7230_v26 = vunpack.c.l.b16 %v5910_v48  ;;  %v5176_v48 = vrot.slane %v14993_v41, 5  ;;  %v5354_v14 = vrot.slane %v5352_v55, 6  ;;  %v15050_v15 = vrot.slane %v5639_v21, 5  ;;  %s16410_s16 = smov 8  }
 0x447   : > { %7554 = vmatpush.bf16.msra.mxu2 %v10163_v23  ;;  %v5645_v33 = vrot.slane %v5643_v47, 4  ;;  %v5912_v11 = vshrl.u32 %v15032_v38, 16  ;;  %v15055_v23 = vld [vmem:[#allocation3 + $0x7c] sm:$0xf]  ;;  %v7269_v39 = vunpack.c.l.b16 %v6019_v58  ;;  %v5341_v1 = vor.u32 %v5340_v52, %v5337_v53  ;;  %v4898_v58 = vld [vmem:[#allocation3 + $0x78] sm:$0xf] }
 0x448   : > { %v7240_v30 = vpack.c.b16 %v7230_v26, %v7229_v3  ;;  %v15057_v26 = vld [vmem:[#allocation3 + $0x80] sm:$0x1]  ;;  %v5178_v49 = vrot.slane %v5176_v48, 4  ;;  %v5636_v55 = vor.u32 %v15026_v51, %v14987_v59  ;;  %v5355_v40 = vor.u32 %v5354_v14, %v5351_v31  ;;  %v6678_v31 = vpop.permute.xlu1 %6677  ;;  %v10149_v14 = vld [vmem:[#allocation3 + $0x48] sm:$0xff] }
 0x449   : > { %7085 = vrot.lane.b32.xlu1 %v7072_v61, %s16406_s19  ;;  %7133 = vrot.lane.b32.xlu2 %v10159_v60, %s16407_s20  ;;  %v5344_v61 = vrot.slane %v16115_v43, 6  ;;  %v15037_v60 = vld [vmem:[#allocation3 + $0x74] sm:$0x1]  ;;  %v7280_v44 = vpack.c.b16 %v7270_v50, %v7269_v39  ;;  %v15062_v3 = vld [vmem:[#allocation3 + $0x80] sm:$0x3]  ;;  %v5646_v53 = vor.u32 %v5645_v33, %v15050_v15  ;;  %v15070_v52 = vrot.slane %v5912_v11, 5 }
 0x44a   : > { %v5179_v18 = vrot.slane %v15037_v60, 5  ;;  %v5342_v59 = vrot.slane %v5341_v1, 4  ;;  %v15076_v50 = vld [vmem:[#allocation3 + $0x80] sm:$0x1]  ;;  %v5926_v33 = vshrl.u32 %v15062_v3, 16  ;;  %v5077_v11 = vshrl.u32 %v4898_v58, 16 }
 0x44b   : > { %v5345_v56 = vor.u32 %v5344_v61, %v5343_v8  ;;  %7555 = vmatpush.bf16.msra.mxu2 %v10162_v36  ;;  %v5915_v61 = vshll.u32 %v15032_v38, 16  ;;  %v5920_v36 = vrot.slane %v5643_v47, 5  ;;  %v5080_v39 = vshll.u32 %v4898_v58, 16 }
 0x44c   : > { %v5180_v8 = vsel %vm11602_vm7, %v5178_v49, %v5179_v18  ;;  %v5929_v19 = vshll.u32 %v15062_v3, 16  ;;  %v5079_v43 = vrot.slane %v5077_v11, 4  ;;  %v5928_v11 = vrot.slane %v5926_v33, 5 }
 0x44d   : > { %v5347_v51 = vrot.slane %v5345_v56, 4  ;;  %v6984_v49 = vunpack.c.l.b16 %v5180_v8  ;;  %v5917_v8 = vrot.slane %v5915_v61, 6  ;;  %v5637_v17 = vrot.slane %v5636_v55, 4 }
 0x44e   : > { %7173 = vrot.lane.b32.xlu0 %v7160_v20, %s16408_s14  ;;  %v9828_v20 = vrot.slane %v14999_v63, 9  ;;  %v5649_v63 = vshll.u32 %v15057_v26, 16  ;;  %v5931_v29 = vrot.slane %v5929_v19, 6 }
 0x44f   : > { %v5356_v1 = vsel %vm11630_vm15, %v5347_v51, %v5355_v40  ;;  %v5346_v40 = vsel %vm11630_vm15, %v5342_v59, %v5345_v56  ;;  %v5921_v51 = vrot.slane %v5639_v21, 6  ;;  %v5647_v56 = vrot.slane %v5646_v53, 4 }
 0x450   : > { %v5177_v18 = vsel %vm11602_vm7, %v9828_v20, %v5176_v48  ;;  %v5082_v48 = vrot.slane %v5080_v39, 5  ;;  %v5096_v20 = vshll.u32 %v15076_v50, 16  ;;  %v7024_v5 = vunpack.c.l.b16 %v5356_v1  ;;  %v7042_v55 = vpop.permute.xlu1 %7041 }
 0x451   : > { %7213 = vrot.lane.b32.xlu1 %v7200_v0, %s16383_s25  ;;  %7253 = vrot.lane.b32.xlu2 %v7240_v30, %s16252_s24  ;;  %v16118_v0 = vshll.u32 %v15055_v23, 16  ;;  %v16119_v30 = vshrl.u32 %v15055_v23, 16  ;;  %v6983_v58 = vunpack.c.l.b16 %v5177_v18  ;;  %v5651_v42 = vrot.slane %v5649_v63, 5  ;;  %v7002_v63 = vpop.permute.xlu0 %7001 }
 0x452   : > { %v5083_v9 = vor.u32 %v5082_v48, %v5079_v43  ;;  %v7023_v39 = vunpack.c.l.b16 %v5346_v40  ;;  %v5918_v59 = vor.u32 %v5917_v8, %v15070_v52  ;;  %v5922_v18 = vor.u32 %v5921_v51, %v5920_v36  ;;  %v5963_v36 = vld [vmem:[#allocation3 + $0x78] sm:$0xc] }
 0x453   : > { %v5092_v47 = vrot.slane %v16119_v30, 4  ;;  %v6993_v30 = vpack.c.b16 %v6984_v49, %v6983_v58  ;;  %v15117_v49 = vpop.f32.mrf.mxu1 }
 0x454   : > { %v5084_v4 = vrot.slane %v5083_v9, 4  ;;  %v7033_v61 = vpack.c.b16 %v7024_v5, %v7023_v39  ;;  %v5652_v9 = vsel %vm11616_vm0, %v5647_v56, %v5651_v42  ;;  %v5932_v5 = vor.u32 %v5931_v29, %v5928_v11  ;;  %v10160_v29 = vld [vmem:[#allocation3 + $0x78] sm:$0xff] }
 0x455   : > { %v6932_v42 = vsel %vm6930_vm5, %v14689_v13, %v6678_v31  ;;  %v7152_v53 = vunpack.c.l.b16 %v5652_v9  ;;  %v5919_v33 = vrot.slane %v5918_v59, 4  ;;  %v5924_v1 = vrot.slane %v5922_v18, 4 }
 0x456   : > { %7293 = vrot.lane.b32.xlu0 %v7280_v44, %s16279_s17  ;;  %v5088_v44 = vrot.slane %v16118_v0, 5  ;;  %v9852_v13 = vrot.slane %v5963_v36, 10  ;;  %v5183_v39 = vrot.slane %v15055_v23, 5  ;;  %v15153_v36 = vld [vmem:[#allocation3 + $0x8c] sm:$0x3] }
 0x458   : > { %v5093_v0 = vor.u32 %v5092_v47, %v5088_v44  ;;  %v5089_v21 = vsel %vm11616_vm0, %v5084_v4, %v5088_v44  ;;  %v5642_v4 = vsel %vm11616_vm0, %v5637_v17, %v15050_v15  ;;  %v6028_v17 = vrot.slane %v15062_v3, 6  ;;  %v7170_v56 = vpop.permute.xlu1 %7169 }
 0x459   : > { %6683 = vrot.lane.b32.xlu1 %v10149_v14, %s16121_s23  ;;  %v5098_v14 = vrot.slane %v5096_v20, 5  ;;  %v15104_v19 = vunpack.c.l.b16 %v5089_v21  ;;  %v7151_v15 = vunpack.c.l.b16 %v5642_v4  ;;  %v5933_v47 = vsel %vm11630_vm15, %v5924_v1, %v5932_v5  ;;  %v7130_v51 = vpop.permute.xlu0 %7129  ;;  %s16413_s23 = smov 64  }
 0x45a   : > { %v5094_v27 = vrot.slane %v5093_v0, 4  ;;  %v5923_v20 = vsel %vm11630_vm15, %v5919_v33, %v5922_v18  ;;  %v7232_v58 = vunpack.c.l.b16 %v5933_v47  ;;  %v16411_v3 = vpack.c.b16 %v14818_v24, %v14816_v37  ;;  %v15137_v18 = vld [vmem:[#allocation3 + $0x78] sm:$0xe] }
 0x45b   : > { %v7161_v48 = vpack.c.b16 %v7152_v53, %v7151_v15  ;;  %v7231_v11 = vunpack.c.l.b16 %v5923_v20  ;;  %v15139_v21 = vpop.f32.mrf.mxu1  ;;  %v5186_v24 = vrot.slane %v15076_v50, 5  ;;  %v9829_v5 = vrot.slane %v15137_v18, 9  ;;  %v15148_v53 = vld [vmem:[#allocation3 + $0x84] sm:$0xe] }
 0x45c   : > { %v5099_v43 = vsel %vm11616_vm0, %v5094_v27, %v5098_v14  ;;  %v6025_v27 = vrot.slane %v14982_v28, 6  ;;  %v7310_v8 = vsel %vm16412_vm1, %v16411_v3, %v7002_v63  ;;  %v5185_v4 = vrot.slane %v5183_v39, 4 }
 0x45d   : > { %v15106_v0 = vunpack.c.l.b16 %v5099_v43  ;;  %v7241_v43 = vpack.c.b16 %v7232_v58, %v7231_v11  ;;  %v7330_v37 = vsel %vm2625_vm12, %v7310_v8, %v7042_v55  ;;  %v5448_v50 = vrot.slane %v14993_v41, 6 }
 0x45e   : > { %7007 = vrot.lane.b32.xlu0 %v6993_v30, %s16409_s30  ;;  %v6027_v31 = vrot.slane %v6025_v27, 4  ;;  %v6026_v14 = vsel %vm11504_vm6, %v9852_v13, %v6025_v27  ;;  %v15146_v27 = vld [vmem:[#allocation3 + $0x88] sm:$0xf]  ;;  %v5187_v55 = vsel %vm11602_vm7, %v5185_v4, %v5186_v24  ;;  %v5938_v15 = vshll.u32 %v15148_v53, 16 }
 0x45f   : > { %v6970_v30 = vpack.c.b16 %v15106_v0, %v15104_v19  ;;  %v7271_v63 = vunpack.c.l.b16 %v6026_v14  ;;  %v5663_v33 = vshll.u32 %v15146_v27, 16  ;;  %v5667_v1 = vshrl.u32 %v15146_v27, 16 }
 0x460   : > { %v6029_v40 = vsel %vm11504_vm6, %v6027_v31, %v6028_v17  ;;  %v5935_v17 = vshrl.u32 %v15148_v53, 16  ;;  %v5451_v47 = vrot.slane %v15014_v7, 6  ;;  %v6986_v13 = vunpack.c.l.b16 %v5187_v55  ;;  %v7290_v14 = vpop.permute.xlu1 %7289 }
 0x461   : > { %7047 = vrot.lane.b32.xlu1 %v7033_v61, %s16410_s16  ;;  %v7272_v59 = vunpack.c.l.b16 %v6029_v40  ;;  %v5949_v20 = vshrl.u32 %v15153_v36, 16  ;;  %v7250_v40 = vpop.permute.xlu0 %7249  ;;  %v5952_v3 = vshll.u32 %v15153_v36, 16  ;;  %v5943_v7 = vrot.slane %v5667_v1, 5 }
 0x463   : > { %v7444_v52 = vpop.permute.xlu2 %7443 }
 0x464   : > { %v7461_v44 = vsel %vm7459_vm9, %v6932_v42, %v7444_v52  ;;  %v7281_v42 = vpack.c.b16 %v7272_v59, %v7271_v63  ;;  %v5944_v59 = vrot.slane %v5663_v33, 6 }
 0x465   : > { %10038 = vmatmul.msk.bf16.vlgmr.msra.gmra.mxu2 %vm7528_vm2, %v7461_v44  ;;  %v5184_v44 = vsel %vm11602_vm7, %v9829_v5, %v5183_v39  ;;  %v5954_v5 = vrot.slane %v5952_v3, 6  ;;  %v5358_v3 = vshrl.u32 %v15137_v18, 16 }
 0x466   : > { %7135 = vrot.lane.b32.xlu0 %v10160_v29, %s16407_s20  ;;  %v5386_v29 = vld [vmem:[#allocation3 + $0x6c] sm:$0xc]  ;;  %v6985_v11 = vunpack.c.l.b16 %v5184_v44  ;;  %v5756_v44 = vrot.slane %v15057_v26, 5 }
 0x467   : > { %v9836_v8 = vrot.slane %v5386_v29, 10  ;;  %v5945_v29 = vor.u32 %v5944_v59, %v5943_v7 }
 0x468   : > { %v6994_v63 = vpack.c.b16 %v6986_v13, %v6985_v11 }
 0x469   : > { %7175 = vrot.lane.b32.xlu1 %v7161_v48, %s16408_s14  ;;  %v5449_v4 = vsel %vm11504_vm6, %v9836_v8, %v5448_v50  ;;  %v5361_v8 = vshll.u32 %v15137_v18, 16 }
 0x46b   : > { %v7082_v61 = vpop.permute.xlu2 %7081 }
 0x46c   : > { %v7346_v9 = vsel %vm2642_vm13, %v7330_v37, %v7082_v61  ;;  %v5940_v37 = vrot.slane %v5938_v15, 6 }
 0x46d   : > { %v7362_v52 = vsel %vm2659_vm3, %v7346_v9, %v7130_v51  ;;  %v5450_v51 = vrot.slane %v5448_v50, 4  ;;  %v5951_v9 = vrot.slane %v5949_v20, 5  ;;  %v10161_v50 = vld [vmem:[#allocation3 + $0x84] sm:$0xff] }
 0x46e   : > { %7255 = vrot.lane.b32.xlu0 %v7241_v43, %s16252_s24  ;;  %v7378_v48 = vsel %vm2676_vm11, %v7362_v52, %v7170_v56  ;;  %v15173_v56 = vpop.f32.mrf.mxu1  ;;  %v5937_v43 = vrot.slane %v5935_v17, 5  ;;  %v7063_v17 = vunpack.c.l.b16 %v5449_v4  ;;  %v5475_v4 = vld [vmem:[#allocation3 + $0x84] sm:$0xf] }
 0x46f   : > { %v5452_v24 = vsel %vm11504_vm6, %v5450_v51, %v5451_v47  ;;  %v5955_v15 = vor.u32 %v5954_v5, %v5951_v9  ;;  %v9844_v47 = vrot.slane %v15032_v38, 9 }
 0x470   : > { %v7064_v52 = vunpack.c.l.b16 %v5452_v24  ;;  %v5941_v55 = vor.u32 %v5940_v37, %v5937_v43  ;;  %v5363_v43 = vrot.slane %v5361_v8, 6  ;;  %v16414_v37 = vshrl.u32 %v15055_v23, 16  ;;  %v10150_v8 = vld [vmem:[#allocation3 + $0x54] sm:$0xff] }
 0x471   : > { %7295 = vrot.lane.b32.xlu1 %v7281_v42, %s16279_s17  ;;  %v5753_v42 = vrot.slane %v14982_v28, 5 }
 0x472   : > { %v5942_v20 = vrot.slane %v5941_v55, 4  ;;  %v5366_v24 = vrot.slane %v16414_v37, 5 }
 0x473   : > { %v7210_v31 = vpop.permute.xlu2 %7209  ;;  %v5755_v13 = vrot.slane %v5753_v42, 4  ;;  %v5754_v38 = vsel %vm11602_vm7, %v9844_v47, %v5753_v42  ;;  %v5657_v47 = vshll.u32 %v5475_v4, 16 }
 0x474   : > { %v7394_v58 = vsel %vm2693_vm4, %v7378_v48, %v7210_v31  ;;  %v7073_v31 = vpack.c.b16 %v7064_v52, %v7063_v17  ;;  %v7191_v59 = vunpack.c.l.b16 %v5754_v38 }
 0x475   : > { %v7410_v39 = vsel %vm2710_vm10, %v7394_v58, %v7250_v40  ;;  %v5947_v40 = vrot.slane %v5945_v29, 4  ;;  %v5757_v28 = vsel %vm11602_vm7, %v5755_v13, %v5756_v44  ;;  %v15190_v58 = vld [vmem:[#allocation3 + $0x80] sm:$0x3] }
 0x476   : > { %v7426_v61 = vsel %vm2727_vm14, %v7410_v39, %v7290_v14  ;;  %v15185_v48 = vpop.f32.mrf.mxu1  ;;  %v7192_v51 = vunpack.c.l.b16 %v5757_v28  ;;  %v5946_v14 = vsel %vm11630_vm15, %v5942_v20, %v5945_v29  ;;  %v5372_v11 = vshrl.u32 %v15190_v58, 16  ;;  %v15211_v20 = vld [vmem:[#allocation3 + $0x8c] sm:$0x1] }
 0x477   : > { %7449 = vrot.lane.b32.xlu2 %v7426_v61, %s16413_s23  ;;  %v5956_v26 = vsel %vm11630_vm15, %v5947_v40, %v5955_v15  ;;  %v5375_v39 = vshll.u32 %v15190_v58, 16  ;;  %v5360_v61 = vrot.slane %v5358_v3, 5  ;;  %v7233_v9 = vunpack.c.l.b16 %v5946_v14 }
 0x478   : > { %v7234_v7 = vunpack.c.l.b16 %v5956_v26  ;;  %v7201_v5 = vpack.c.b16 %v7192_v51, %v7191_v59  ;;  %v5374_v42 = vrot.slane %v5372_v11, 5  ;;  %v5654_v15 = vshrl.u32 %v5475_v4, 16 }
 0x479   : > { %7009 = vrot.lane.b32.xlu1 %v6994_v63, %s16409_s30  ;;  %v16415_v63 = vshll.u32 %v15055_v23, 16  ;;  %v5377_v52 = vrot.slane %v5375_v39, 6  ;;  %v5364_v44 = vor.u32 %v5363_v43, %v5360_v61  ;;  %v5665_v40 = vrot.slane %v5663_v33, 5 }
 0x47a   : > { %v7242_v55 = vpack.c.b16 %v7234_v7, %v7233_v9  ;;  %v5669_v28 = vrot.slane %v5667_v1, 4  ;;  %v5656_v38 = vrot.slane %v5654_v15, 4  ;;  %v5659_v3 = vrot.slane %v5657_v47, 5 }
 0x47b   : > { %v5367_v18 = vrot.slane %v16415_v63, 6  ;;  %v5378_v13 = vor.u32 %v5377_v52, %v5374_v42  ;;  %v5673_v14 = vshll.u32 %v15211_v20, 16  ;;  %v6032_v42 = vrot.slane %v15146_v27, 6 }
 0x47c   : > { %v5660_v39 = vor.u32 %v5659_v3, %v5656_v38  ;;  %v5670_v7 = vor.u32 %v5669_v28, %v5665_v40  ;;  %v6035_v15 = vrot.slane %v15153_v36, 6 }
 0x47d   : > { %v5368_v17 = vor.u32 %v5367_v18, %v5366_v24  ;;  %v5675_v59 = vrot.slane %v5673_v14, 5  ;;  %v7004_v24 = vpop.permute.xlu1 %7003  ;;  %v6034_v28 = vrot.slane %v6032_v42, 4 }
 0x47e   : > { %v15208_v29 = vpop.f32.mrf.mxu1  ;;  %v5661_v43 = vrot.slane %v5660_v39, 4  ;;  %v5671_v37 = vrot.slane %v5670_v7, 4 }
 0x47f   : > { %7087 = vrot.lane.b32.xlu2 %v7073_v31, %s16406_s19  ;;  %v6680_v31 = vpop.permute.xlu2 %6679  ;;  %v5370_v26 = vrot.slane %v5368_v17, 4 }
 0x480   : > { %v5676_v9 = vsel %vm11616_vm0, %v5671_v37, %v5675_v59  ;;  %v5666_v4 = vsel %vm11616_vm0, %v5661_v43, %v5665_v40  ;;  %v5387_v43 = vld [vmem:[#allocation3 + $0x78] sm:$0xc]  ;;  %v5458_v37 = vrot.slane %v15190_v58, 6 }
 0x481   : > { %7137 = vrot.lane.b32.xlu1 %v10161_v50, %s16407_s20  ;;  %v5365_v50 = vrot.slane %v5364_v44, 4  ;;  %v5379_v51 = vsel %vm11630_vm15, %v5370_v26, %v5378_v13  ;;  %v5964_v44 = vld [vmem:[#allocation3 + $0x84] sm:$0xc]  ;;  %v7153_v47 = vunpack.c.l.b16 %v5666_v4  ;;  %v16417_v26 = vpack.c.b16 %v14880_v6, %v14888_v57 }
 0x482   : > { %v7026_v1 = vunpack.c.l.b16 %v5379_v51  ;;  %v9853_v13 = vrot.slane %v5964_v44, 10  ;;  %v5455_v57 = vrot.slane %v15055_v23, 6  ;;  %v5048_v23 = vshll.u32 %v14899_v32, 16  ;;  %v10152_v32 = vld [vmem:[#allocation3 + $0x6c] sm:$0xff] }
 0x483   : > { %v5369_v33 = vsel %vm11630_vm15, %v5365_v50, %v5368_v17  ;;  %vm16418_vm15 = vmmov %vm16412_vm1  ;;  %v9837_v58 = vrot.slane %v5387_v43, 10 }
 0x484   : > { %v7025_v61 = vunpack.c.l.b16 %v5369_v33  ;;  %v7313_v38 = vsel %vm16418_vm15, %v16417_v26, %v7004_v24  ;;  %v6033_v36 = vsel %vm11504_vm6, %v9853_v13, %v6032_v42  ;;  %vm8242_vm15 = vcmask 1045504  }
 0x485   : > { %v7132_v40 = vpop.permute.xlu1 %7131 }
 0x486   : > { %v15221_v11 = vpop.f32.mrf.mxu1  ;;  %v7034_v18 = vpack.c.b16 %v7026_v1, %v7025_v61  ;;  %v7273_v1 = vunpack.c.l.b16 %v6033_v36  ;;  %v5763_v36 = vrot.slane %v15211_v20, 5 }
 0x487   : > { %7215 = vrot.lane.b32.xlu2 %v7201_v5, %s16383_s25  ;;  %v7044_v63 = vpop.permute.xlu2 %7043  ;;  %v6934_v5 = vsel %vm6930_vm5, %v14653_v34, %v6680_v31  ;;  %v6036_v31 = vsel %vm11504_vm6, %v6034_v28, %v6035_v15  ;;  %v5457_v15 = vrot.slane %v5455_v57, 4 }
 0x488   : > { %v7332_v51 = vsel %vm2625_vm12, %v7313_v38, %v7044_v63  ;;  %v7274_v14 = vunpack.c.l.b16 %v6036_v31  ;;  %v16419_v63 = vshll.u32 %v14870_v35, 16  ;;  %v5050_v31 = vrot.slane %v5048_v23, 5 }
 0x489   : > { %7257 = vrot.lane.b32.xlu1 %v7242_v55, %s16252_s24  ;;  %s16416_s24 = smov 60   ;;  %v7154_v55 = vunpack.c.l.b16 %v5676_v9 }
 0x48a   : > { %v7282_v6 = vpack.c.b16 %v7274_v14, %v7273_v1  ;;  %v5040_v9 = vrot.slane %v16419_v63, 5 }
 0x48b   : > { %v7162_v34 = vpack.c.b16 %v7154_v55, %v7153_v47 }
 0x48e   : > { %v15234_v17 = vpop.f32.mrf.mxu1 }
 0x48f   : > { %6685 = vrot.lane.b32.xlu2 %v10150_v8, %s16416_s24  ;;  %v7172_v50 = vpop.permute.xlu2 %7171  ;;  %v4894_v8 = vld [vmem:[#allocation3 + $0x60] sm:$0xf] }
 0x490   : > { %v5029_v39 = vshrl.u32 %v4894_v8, 16  ;;  %v5032_v7 = vshll.u32 %v4894_v8, 16 }
 0x492   : > { %v5031_v24 = vrot.slane %v5029_v39, 4 }
 0x496   : > { %v15249_v59 = vpop.f32.mrf.mxu1 }
 0x497   : > { %7049 = vrot.lane.b32.xlu2 %v7034_v18, %s16410_s16  ;;  %v5034_v18 = vrot.slane %v5032_v7, 5  ;;  %v7292_v55 = vpop.permute.xlu2 %7291  ;;  %v9845_v7 = vrot.slane %v15148_v53, 9 }
 0x498   : > { %v7446_v54 = vpop.permute.xlu0 %7445 }
 0x499   : > { %v7463_v52 = vsel %vm7459_vm9, %v6934_v5, %v7446_v54  ;;  %v16420_v5 = vshrl.u32 %v14870_v35, 16  ;;  %v5035_v13 = vor.u32 %v5034_v18, %v5031_v24  ;;  %v10153_v18 = vld [vmem:[#allocation3 + $0x78] sm:$0xff] }
 0x49a   : > { %10039 = vmatmul.msk.bf16.gmra.mxu2 %vm7528_vm2, %v7463_v52  ;;  %v7252_v52 = vpop.permute.xlu1 %7251 }
 0x49b   : > { %v5044_v54 = vrot.slane %v16420_v5, 4 }
 0x49d   : > { %v5045_v28 = vor.u32 %v5044_v54, %v5040_v9  ;;  %v15302_v54 = vld [vmem:[%s16024_s6] ss:$0 sm:$0xff] }
 0x49e   : > { %v15270_v26 = vpop.f32.mrf.mxu1 }
 0x49f   : > { %7177 = vrot.lane.b32.xlu2 %v7162_v34, %s16408_s14  ;;  %v5459_v34 = vsel %vm11504_vm6, %v5457_v15, %v5458_v37  ;;  %v5046_v8 = vrot.slane %v5045_v28, 4 }
 0x4a0   : > { %v7084_v3 = vpop.permute.xlu0 %7083  ;;  %v7066_v38 = vunpack.c.l.b16 %v5459_v34 }
 0x4a1   : > { %v7348_v33 = vsel %vm2642_vm13, %v7332_v51, %v7084_v3  ;;  %v5036_v3 = vrot.slane %v5035_v13, 4  ;;  %v6919_v51 = vsel %vm6913_vm8, %v14622_v2, %v14685_v45  ;;  %v5051_v39 = vsel %vm11616_vm0, %v5046_v8, %v5050_v31  ;;  %v7006_v2 = vpop.permute.xlu2 %7005  ;;  %v4896_v13 = vld [vmem:[#allocation3 + $0x6c] sm:$0xf] }
 0x4a2   : > { %v7364_v61 = vsel %vm2659_vm3, %v7348_v33, %v7132_v40  ;;  %v5456_v40 = vsel %vm11504_vm6, %v9837_v58, %v5455_v57  ;;  %v6958_v43 = vunpack.c.l.b16 %v5051_v39  ;;  %v5053_v31 = vshrl.u32 %v4896_v13, 16 }
 0x4a3   : > { %v7380_v42 = vsel %vm2676_vm11, %v7364_v61, %v7172_v50  ;;  %v5760_v50 = vrot.slane %v15146_v27, 5  ;;  %v7065_v33 = vunpack.c.l.b16 %v5456_v40  ;;  %v5041_v20 = vsel %vm11616_vm0, %v5036_v3, %v5040_v9  ;;  %v10151_v3 = vld [vmem:[#allocation3 + $0x60] sm:$0xff] }
 0x4a4   : > { %v6957_v9 = vunpack.c.l.b16 %v5041_v20  ;;  %v5056_v40 = vshll.u32 %v4896_v13, 16 }
 0x4a5   : > { %v5762_v1 = vrot.slane %v5760_v50, 4  ;;  %v7074_v61 = vpack.c.b16 %v7066_v38, %v7065_v33  ;;  %v5761_v24 = vsel %vm11602_vm7, %v9845_v7, %v5760_v50  ;;  %v16421_v33 = vshll.u32 %v14993_v41, 16 }
 0x4a6   : > { %v15297_v63 = vpop.f32.mrf.mxu1 }
 0x4a7   : > { %7297 = vrot.lane.b32.xlu2 %v7282_v6, %s16279_s17  ;;  %v15284_v6 = vld [vmem:[%s16023_s5] ss:$0 sm:$0xff]  ;;  %v5764_v57 = vsel %vm11602_vm7, %v5762_v1, %v5763_v36  ;;  %v5064_v39 = vrot.slane %v16421_v33, 5  ;;  %v4810_v1 = vld [vmem:[#allocation3 + $0x6c] sm:$0xc]  ;;  %vm16424_vm7 = vmmov %vm16412_vm1 }
 0x4a8   : > { %v7212_v4 = vpop.permute.xlu0 %7211  ;;  %v2838_v53 = vmul.f32 %v15284_v6, %v15117_v49  ;;  %v7194_v5 = vunpack.c.l.b16 %v5764_v57  ;;  %v7193_v49 = vunpack.c.l.b16 %v5761_v24  ;;  %v2841_v15 = vmul.f32 %v15284_v6, %v15185_v48  ;;  %v10334_v48 = vld [vmem:[#allocation3 + $0x70] sm:$0xf] }
 0x4a9   : > { %v7396_v44 = vsel %vm2693_vm4, %v7380_v42, %v7212_v4  ;;  %v6968_v4 = vpack.c.b16 %v6958_v43, %v6957_v9  ;;  %v4878_v36 = vrot.slane %v10334_v48, 6  ;;  %v2844_v20 = vmul.f32 %v15284_v6, %v15234_v17 }
 0x4aa   : > { %v7412_v47 = vsel %vm2710_vm10, %v7396_v44, %v7252_v52  ;;  %v2858_v52 = vadd.f32 %v15302_v54, %v2838_v53  ;;  %v5072_v43 = vshll.u32 %v15037_v60, 16  ;;  %v9821_v53 = vrot.slane %v4810_v1, 10 }
 0x4ab   : > { %v7428_v35 = vsel %vm2727_vm14, %v7412_v47, %v7292_v55  ;;  %v7316_v22 = vsel %vm16412_vm1, %v6968_v4, %v7006_v2  ;;  %v7202_v55 = vpack.c.b16 %v7194_v5, %v7193_v49  ;;  %v7134_v47 = vpop.permute.xlu2 %7133  ;;  %v4880_v24 = vrot.slane %v4878_v36, 4 }
 0x4ac   : > { %7451 = vrot.lane.b32.xlu0 %v7428_v35, %s16413_s23  ;;  %v2874_v58 = vmax.f32 %v2858_v52, 0.0  ;;  %v2864_v17 = vadd.f32 %v15302_v54, %v2844_v20  ;;  %v5074_v60 = vrot.slane %v5072_v43, 5  ;;  %v2840_v33 = vmul.f32 %v15284_v6, %v15173_v56 }
 0x4ad   : > { %v2843_v56 = vmul.f32 %v15284_v6, %v15221_v11  ;;  %v15378_v11 = vld [vmem:[%s16026_s8] ss:$0 sm:$0xff] }
 0x4ae   : > { %v15313_v35 = vpop.f32.mrf.mxu1 }
 0x4af   : > { %6689 = vrot.lane.b32.xlu2 %v10152_v32, %s16416_s24  ;;  %v2861_v32 = vadd.f32 %v15302_v54, %v2841_v15  ;;  %v2847_v15 = vmul.f32 %v15284_v6, %v15297_v63 }
 0x4b0   : > { %v6682_v14 = vpop.permute.xlu0 %6681 }
 0x4b1   : > { %v6936_v27 = vsel %vm6930_vm5, %v6919_v51, %v6682_v14  ;;  %v5055_v51 = vrot.slane %v5053_v31, 4  ;;  %v5058_v14 = vrot.slane %v5056_v40, 5  ;;  %v2867_v40 = vadd.f32 %v15302_v54, %v2847_v15 }
 0x4b3   : > { %v7448_v45 = vpop.permute.xlu1 %7447  ;;  %v5059_v5 = vor.u32 %v5058_v14, %v5055_v51 }
 0x4b4   : > { %v7465_v37 = vsel %vm7459_vm9, %v6936_v27, %v7448_v45  ;;  %7089 = vrot.lane.b32.xlu0 %v7074_v61, %s16406_s19  ;;  %v16422_v27 = vshrl.u32 %v14993_v41, 16  ;;  %v2877_v61 = vmax.f32 %v2861_v32, 0.0  ;;  %v10335_v45 = vld [vmem:[#allocation3 + $0x74] sm:$0x3]  ;;  %s16423_s19 = smov 56  }
 0x4b5   : > { %10040 = vmatmul.msk.bf16.gmra.mxu2 %vm7528_vm2, %v7465_v37  ;;  %v4881_v57 = vrot.slane %v10335_v45, 6  ;;  %v7254_v37 = vpop.permute.xlu2 %7253 }
 0x4b6   : > { %v5068_v7 = vrot.slane %v16422_v27, 4 }
 0x4b7   : > { %6691 = vrot.lane.b32.xlu2 %v10153_v18, %s16416_s24  ;;  %v15328_v18 = vpop.f32.mrf.mxu1  ;;  %v4882_v49 = vsel %vm11504_vm6, %v4880_v24, %v4881_v57 }
 0x4b8   : > { %v7046_v42 = vpop.permute.xlu0 %7045  ;;  %v5069_v4 = vor.u32 %v5068_v7, %v5064_v39 }
 0x4b9   : > { %v7334_v44 = vsel %vm2625_vm12, %v7316_v22, %v7046_v42  ;;  %v4879_v22 = vsel %vm11504_vm6, %v9821_v53, %v4878_v36  ;;  %vm16425_vm6 = vcmask 1041408  }
 0x4ba   : > { %v6619_v13 = vunpack.c.l.b16 %v4879_v22 }
 0x4bb   : > { %v7086_v23 = vpop.permute.xlu1 %7085 }
 0x4bc   : > { %7217 = vrot.lane.b32.xlu0 %v7202_v55, %s16383_s25  ;;  %v7350_v28 = vsel %vm2642_vm13, %v7334_v44, %v7086_v23  ;;  %v5060_v55 = vrot.slane %v5059_v5, 4  ;;  %v5070_v23 = vrot.slane %v5069_v4, 4  ;;  %v6620_v44 = vunpack.c.l.b16 %v4882_v49 }
 0x4bd   : > { %v7366_v50 = vsel %vm2659_vm3, %v7350_v28, %v7134_v47  ;;  %v2837_v28 = vmul.f32 %v15284_v6, %v15090_v12  ;;  %v2883_v12 = vmax.f32 %v2867_v40, 0.0  ;;  %v2863_v4 = vadd.f32 %v15302_v54, %v2843_v56 }
 0x4be   : > { %v5075_v47 = vsel %vm11616_vm0, %v5070_v23, %v5074_v60  ;;  %v5065_v10 = vsel %vm11616_vm0, %v5060_v55, %v5064_v39  ;;  %v6628_v31 = vpack.c.b16 %v6620_v44, %v6619_v13  ;;  %v2846_v60 = vmul.f32 %v15284_v6, %v15270_v26  ;;  %v9037_v26 = vld [vmem:[%s16028_s10] sm:$0x3] }
 0x4bf   : > { %9228 = vrot.lane.b32.xlu2 %v2874_v58, %s16410_s16  ;;  %v2880_v58 = vmax.f32 %v2864_v17, 0.0  ;;  %v6960_v63 = vunpack.c.l.b16 %v5075_v47  ;;  %v6959_v48 = vunpack.c.l.b16 %v5065_v10  ;;  %v2857_v16 = vadd.f32 %v15302_v54, %v2837_v28 }
 0x4c0   : > { %v7174_v34 = vpop.permute.xlu0 %7173  ;;  %v2879_v49 = vmax.f32 %v2863_v4, 0.0  ;;  %v2866_v44 = vadd.f32 %v15302_v54, %v2846_v60  ;;  %v2849_v47 = vmul.f32 %v15284_v6, %v15328_v18  ;;  %v9103_v13 = vsel %vm16425_vm6, %v9037_v26, 0  ;;  %v8909_v60 = vld [vmem:[#allocation4 + $0x18] sm:$0xe]  ;;  %vm16432_vm6 = vmmov %vm16412_vm1 }
 0x4c1   : > { %v7382_v38 = vsel %vm2676_vm11, %v7366_v50, %v7174_v34  ;;  %v6969_v51 = vpack.c.b16 %v6960_v63, %v6959_v48  ;;  %9112 = vmatpush.bf16.msrb.mxu3 %v9103_v13  ;;  %v8057_v63 = vld [vmem:[#allocation4 + $0x8] sm:$0x1]  ;;  %vm8113_vm0 = vcmask 1046528  }
 0x4c2   : > { %v2882_v15 = vmax.f32 %v2866_v44, 0.0  ;;  %v2869_v28 = vadd.f32 %v15302_v54, %v2849_v47 }
 0x4c3   : > { %v7214_v8 = vpop.permute.xlu1 %7213 }
 0x4c4   : > { %6687 = vrot.lane.b32.xlu0 %v10151_v3, %s16416_s24  ;;  %v7398_v2 = vsel %vm2693_vm4, %v7382_v38, %v7214_v8  ;;  %v2825_v38 = vpop.f32.mrf.mxu1 }
 0x4c5   : > { %v7414_v9 = vsel %vm2710_vm10, %v7398_v2, %v7254_v37  ;;  %v2850_v36 = vmul.f32 %v15284_v6, %v2825_v38  ;;  %v2860_v2 = vadd.f32 %v15302_v54, %v2840_v33 }
 0x4c7   : > { %9234 = vrot.lane.b32.xlu2 %v2877_v61, %s16410_s16  ;;  %v2870_v27 = vadd.f32 %v15302_v54, %v2850_v36  ;;  %v2876_v43 = vmax.f32 %v2860_v2, 0.0 }
 0x4c8   : > { %v7294_v41 = vpop.permute.xlu0 %7293 }
 0x4c9   : > { %v7430_v42 = vsel %vm2727_vm14, %v7414_v9, %v7294_v41  ;;  %v2886_v45 = vmax.f32 %v2870_v27, 0.0 }
 0x4ca   : > { %7453 = vrot.lane.b32.xlu1 %v7430_v42, %s16413_s23  ;;  %v15383_v42 = vld [vmem:[%s16027_s9] ss:$0 sm:$0xff] }
 0x4cb   : > { %v6684_v52 = vpop.permute.xlu1 %6683 }
 0x4cc   : > { %v6938_v32 = vsel %vm6930_vm5, %v14710_v46, %v6684_v52  ;;  %v2873_v46 = vmax.f32 %v2857_v16, 0.0  ;;  %v15389_v55 = vpop.f32.mrf.mxu1  ;;  %v8332_v16 = vld [vmem:[#allocation4 + $0xc] sm:$0xff]  }
 0x4cd   : > { %v8364_v36 = vunpack.c.l.bf16 %v8332_v16 }
 0x4cf   : > { %9240 = vrot.lane.b32.xlu2 %v2880_v58, %s16410_s16 }
 0x4d0   : > { %v7008_v34 = vpop.permute.xlu0 %7007 }
 0x4d1   : > { %v7450_v50 = vpop.permute.xlu2 %7449  ;;  %v7319_v14 = vsel %vm16424_vm7, %v6969_v51, %v7008_v34  ;;  %v2885_v34 = vmax.f32 %v2869_v28, 0.0  ;;  %v8365_v51 = vunpack.c.h.bf16 %v8332_v16  ;;  %vm16426_vm7 = vmmov %vm16412_vm1 }
 0x4d2   : > { %6643 = vrot.lane.b32.xlu1 %v6628_v31, %s16423_s19  ;;  %v7467_v3 = vsel %vm7459_vm9, %v6938_v32, %v7450_v50  ;;  %v10170_v32 = vld [vmem:[#allocation4] sm:$0xff]   ;;  %s10078_s19 = sshll.u32 %s10420_s29, 5 }
 0x4d3   : > { %v7048_v8 = vpop.permute.xlu1 %7047  ;;  %10041 = vmatmul.msk.bf16.gmra.mxu2 %vm7528_vm2, %v7467_v3  ;;  %v8202_v50 = vld [vmem:[#allocation4] sm:$0xe]  ;;  %v10171_v38 = vunpack.c.l.bf16 %v10170_v32  ;;  %v10172_v3 = vunpack.c.h.bf16 %v10170_v32  ;;  %v8469_v2 = vrot.slane %v8365_v51, 1 }
 0x4d4   : > { %v7336_v1 = vsel %vm2625_vm12, %v7319_v14, %v7048_v8  ;;  %v2830_v10 = vpop.f32.mrf.mxu1  ;;  %v8081_v8 = vunpack.c.l.bf16 %v8057_v63  ;;  %v8226_v48 = vunpack.c.l.bf16 %v8202_v50 }
 0x4d5   : > { %v2852_v31 = vmul.f32 %v15284_v6, %v2830_v10  ;;  %v8114_v33 = vrot.slane %v10171_v38, 1 }
 0x4d6   : > { %v8117_v27 = vrot.slane %v8081_v8, 1 }
 0x4d7   : > { %9246 = vrot.lane.b32.xlu2 %v2883_v12, %s16410_s16  ;;  %v2872_v40 = vadd.f32 %v15302_v54, %v2852_v31  ;;  %v8412_v12 = vld [vmem:[#allocation4 + $0x14] sm:$0x1] }
 0x4d8   : > { %v7136_v39 = vpop.permute.xlu0 %7135  ;;  %v8436_v14 = vunpack.c.l.bf16 %v8412_v12 }
 0x4d9   : > { %v7088_v7 = vpop.permute.xlu2 %7087  ;;  %v2888_v18 = vmax.f32 %v2872_v40, 0.0 }
 0x4da   : > { %9226 = vrot.lane.b32.xlu1 %v2873_v46, %s16410_s16  ;;  %v7352_v20 = vsel %vm2642_vm13, %v7336_v1, %v7088_v7  ;;  %v8556_v46 = vld [vmem:[#allocation4 + $0xc] sm:$0xe]  ;;  %v8243_v7 = vrot.slane %v8226_v48, 2  ;;  %v8244_v1 = vrot.slane %v10172_v3, 2  ;;  %v8599_v44 = vrot.slane %v8436_v14, 2 }
 0x4db   : > { %v7176_v61 = vpop.permute.xlu1 %7175  ;;  %v7368_v57 = vsel %vm2659_vm3, %v7352_v20, %v7136_v39  ;;  %v8115_v39 = vrot.slane %v10172_v3, 1  ;;  %v8468_v20 = vrot.slane %v8364_v36, 1  ;;  %v8580_v56 = vunpack.c.l.bf16 %v8556_v46  ;;  %v8043_v46 = vld [vmem:[#allocation4 + $0xc] sm:$0xff]  }
 0x4dc   : > { %v7384_v53 = vsel %vm2676_vm11, %v7368_v57, %v7176_v61  ;;  %v8246_v61 = vrot.slane %v8081_v8, 2  ;;  %v15427_v8 = vmul.f32 %v15284_v6, %v15139_v21  ;;  %v15431_v48 = vmul.f32 %v15284_v6, %v15208_v29 }
 0x4dd   : > { %v8118_v57 = vsel %vm8113_vm0, %v8115_v39, %v8117_v27  ;;  %v8470_v4 = vsel %vm8113_vm0, %v8468_v20, %v8469_v2  ;;  %v8067_v29 = vunpack.c.l.bf16 %v8043_v46  ;;  %v8068_v27 = vunpack.c.h.bf16 %v8043_v46  ;;  %v8557_v20 = vld [vmem:[#allocation4 + $0x18] sm:$0xe]  ;;  %v8910_v46 = vld [vmem:[#allocation4 + $0x24] sm:$0xe] }
 0x4df   : > { %9252 = vrot.lane.b32.xlu2 %v2886_v45, %s16410_s16  ;;  %v8116_v45 = vsel %vm8113_vm0, %v8114_v33, %v8115_v39  ;;  %v8058_v33 = vld [vmem:[#allocation4 + $0x14] sm:$0x1]  ;;  %v8203_v39 = vld [vmem:[#allocation4 + $0xc] sm:$0xe] }
 0x4e0   : > { %v7256_v24 = vpop.permute.xlu0 %7255 }
 0x4e1   : > { %v7216_v37 = vpop.permute.xlu2 %7215 }
 0x4e2   : > { %9232 = vrot.lane.b32.xlu1 %v2876_v43, %s16410_s16  ;;  %v7400_v41 = vsel %vm2693_vm4, %v7384_v53, %v7216_v37  ;;  %v8471_v43 = vrot.slane %v8436_v14, 1  ;;  %v8170_v37 = vmax.f32 %v10171_v38, %v8116_v45  ;;  %v8171_v53 = vmax.f32 %v10172_v3, %v8118_v57 }
 0x4e3   : > { %v7296_v9 = vpop.permute.xlu1 %7295  ;;  %v7416_v5 = vsel %vm2710_vm10, %v7400_v41, %v7256_v24  ;;  %v8245_v24 = vsel %vm8242_vm15, %v8243_v7, %v8244_v1  ;;  %v8247_v41 = vsel %vm8242_vm15, %v8244_v1, %v8246_v61  ;;  %v8082_v7 = vunpack.c.l.bf16 %v8058_v33  ;;  %v8413_v61 = vld [vmem:[#allocation4 + $0x20] sm:$0x1] }
 0x4e4   : > { %v7432_v17 = vsel %vm2727_vm14, %v7416_v5, %v7296_v9  ;;  %v10202_v9 = vld [vmem:[#allocation4 + $0x18] sm:$0xff]   ;;  %v8765_v5 = vld [vmem:[#allocation4 + $0x20] sm:$0x1]  ;;  %v8227_v1 = vunpack.c.l.bf16 %v8203_v39 }
 0x4e5   : > { %7455 = vrot.lane.b32.xlu0 %v7432_v17, %s16413_s23  ;;  %v8596_v17 = vrot.slane %v8580_v56, 2  ;;  %v15415_v47 = vunpack.c.h.bf16 %v10202_v9  ;;  %v8789_v26 = vunpack.c.l.bf16 %v8765_v5  ;;  %v8581_v56 = vunpack.c.l.bf16 %v8557_v20 }
 0x4e7   : > { %v15420_v40 = vrot.slane %v15415_v47, 1  ;;  %v15423_v32 = vrot.slane %v15415_v47, 2  ;;  %v8952_v3 = vrot.slane %v8789_v26, 2 }
 0x4e8   : > { %v7557_v52 = vpop.f32.mrf.mxu2 }
 0x4e9   : > { %v7601_v22 = vmul.f32 %v15378_v11, %v7557_v52  ;;  %v8299_v52 = vmax.f32 %v8170_v37, %v8245_v24  ;;  %v8953_v21 = vsel %vm8242_vm15, %v15423_v32, %v8952_v3  ;;  %v8119_v37 = vrot.slane %v8067_v29, 1 }
 0x4ea   : > { %9238 = vrot.lane.b32.xlu1 %v2879_v49, %s16410_s16  ;;  %v8597_v49 = vrot.slane %v8365_v51, 2  ;;  %v8122_v24 = vrot.slane %v8082_v7, 1 }
 0x4eb   : > { %v7621_v23 = vadd.f32 %v15383_v42, %v7601_v22  ;;  %v8300_v22 = vmax.f32 %v8171_v53, %v8247_v41  ;;  %v8380_v13 = vmax.f32 %v8299_v52, %v8364_v36  ;;  %v8120_v53 = vrot.slane %v8068_v27, 1 }
 0x4ec   : > { %v8600_v10 = vsel %vm8242_vm15, %v8597_v49, %v8599_v44  ;;  %v8248_v41 = vrot.slane %v8227_v1, 2 }
 0x4ed   : > { %v7637_v58 = vmax.f32 %v7621_v23, 0.0  ;;  %v8472_v23 = vsel %vm8113_vm0, %v8469_v2, %v8471_v43  ;;  %v8381_v28 = vmax.f32 %v8300_v22, %v8365_v51  ;;  %v8524_v63 = vmax.f32 %v8380_v13, %v8470_v4  ;;  %v6686_v2 = vpop.permute.xlu2 %6685 }
 0x4ee   : > { %v8437_v43 = vunpack.c.l.bf16 %v8413_v61  ;;  %v8249_v4 = vrot.slane %v8068_v27, 2  ;;  %v8123_v52 = vsel %vm8113_vm0, %v8120_v53, %v8122_v24  ;;  %v6940_v24 = vsel %vm6930_vm5, %v14665_v62, %v6686_v2 }
 0x4ef   : > { %9290 = vrot.lane.b32.xlu2 %v7637_v58, %s16407_s20  ;;  %v8598_v58 = vsel %vm8242_vm15, %v8596_v17, %v8597_v49  ;;  %v8525_v50 = vmax.f32 %v8381_v28, %v8472_v23  ;;  %v8251_v17 = vrot.slane %v8082_v7, 2  ;;  %v8601_v23 = vrot.slane %v8581_v56, 2  ;;  %v8687_v28 = vld [vmem:[#allocation4 + $0x24] sm:$0xff]  }
 0x4f0   : > { %v8652_v36 = vmax.f32 %v8524_v63, %v8598_v58  ;;  %v15446_v49 = vpop.f32.mrf.mxu2  ;;  %v8476_v22 = vrot.slane %v8437_v43, 1  ;;  %v8173_v13 = vmax.f32 %v8068_v27, %v8123_v52  ;;  %v7010_v27 = vpop.permute.xlu1 %7009 }
 0x4f1   : > { %v8653_v51 = vmax.f32 %v8525_v50, %v8600_v10  ;;  %v8766_v10 = vld [vmem:[#allocation4 + $0x2c] sm:$0x1] }
 0x4f2   : > { %9244 = vrot.lane.b32.xlu1 %v2882_v15, %s16410_s16  ;;  %v15413_v15 = vunpack.c.l.bf16 %v10202_v9  ;;  %v8477_v63 = vsel %vm8113_vm0, %v15420_v40, %v8476_v22 }
 0x4f3   : > { %v8734_v57 = vmax.f32 %v8653_v51, %v15415_v47  ;;  %v8719_v51 = vunpack.c.l.bf16 %v8687_v28 }
 0x4f4   : > { %v8821_v31 = vrot.slane %v15413_v15, 1  ;;  %v8733_v45 = vmax.f32 %v8652_v36, %v15413_v15  ;;  %v8604_v36 = vrot.slane %v8437_v43, 2 }
 0x4f5   : > { %v8826_v61 = vrot.slane %v8719_v51, 1 }
 0x4f6   : > { %v15435_v16 = vsel %vm8113_vm0, %v8821_v31, %v15420_v40  ;;  %v8250_v31 = vsel %vm8242_vm15, %v8248_v41, %v8249_v4  ;;  %v8605_v1 = vsel %vm8242_vm15, %v15423_v32, %v8604_v36  ;;  %v2848_v36 = vmul.f32 %v15284_v6, %v15313_v35 }
 0x4f7   : > { %v8877_v9 = vmax.f32 %v8733_v45, %v15435_v16  ;;  %v7050_v45 = vpop.permute.xlu2 %7049 }
 0x4fa   : > { %9250 = vrot.lane.b32.xlu1 %v2885_v34, %s16410_s16  ;;  %v8933_v34 = vunpack.c.l.bf16 %v8909_v60  ;;  %v8121_v60 = vsel %vm8113_vm0, %v8119_v37, %v8120_v53  ;;  %v8934_v37 = vunpack.c.l.bf16 %v8910_v46  ;;  %v15465_v53 = vadd.f32 %v15302_v54, %v15427_v8 }
 0x4fc   : > { %v8949_v38 = vrot.slane %v8933_v34, 2  ;;  %v2845_v34 = vmul.f32 %v15284_v6, %v15249_v59  ;;  %v8954_v52 = vrot.slane %v8934_v37, 2  ;;  %v15503_v37 = vadd.f32 %v15302_v54, %v2848_v36 }
 0x4fe   : > { %v8951_v14 = vsel %vm8242_vm15, %v8949_v38, %v15423_v32  ;;  %v15478_v2 = vadd.f32 %v15302_v54, %v2845_v34 }
 0x4ff   : > { %v9005_v44 = vmax.f32 %v8877_v9, %v8951_v14  ;;  %v8720_v14 = vunpack.c.h.bf16 %v8687_v28  ;;  %v7178_v19 = vpop.permute.xlu2 %7177 }
 0x501   : > { %v9021_v50 = vpack.c.bf16 %v9005_v44, %v9005_v44  ;;  %v8827_v20 = vrot.slane %v8720_v14, 1 }
 0x502   : > { %9256 = vrot.lane.b32.xlu1 %v2888_v18, %s16410_s16  ;;  %v8824_v18 = vrot.slane %v8789_v26, 1  ;;  %v8172_v26 = vmax.f32 %v8067_v29, %v8121_v60  ;;  %v8603_v29 = vsel %vm8242_vm15, %v8601_v23, %v15423_v32  ;;  %v15473_v23 = vadd.f32 %v15302_v54, %v15431_v48 }
 0x503   : > { %v9054_v33 = vunpack.c.l.b16 %v9021_v50  ;;  %v8828_v62 = vsel %vm8113_vm0, %v8826_v61, %v8827_v20 }
 0x504   : > { %v8825_v12 = vsel %vm8113_vm0, %v15420_v40, %v8824_v18  ;;  %v8252_v18 = vsel %vm8242_vm15, %v8249_v4, %v8251_v17  ;;  %v8301_v3 = vmax.f32 %v8172_v26, %v8250_v31  ;;  %v2878_v34 = vmax.f32 %v15473_v23, 0.0 }
 0x505   : > { %v8878_v5 = vmax.f32 %v8734_v57, %v8825_v12  ;;  %v8302_v12 = vmax.f32 %v8173_v13, %v8252_v18  ;;  %v7602_v23 = vmul.f32 %v15378_v11, %v15446_v49  ;;  %v8416_v49 = vld [vmem:[#allocation4 + $0x44] sm:$0x1] }
 0x506   : > { %v8382_v59 = vmax.f32 %v8301_v3, %v15413_v15  ;;  %v7322_v3 = vsel %vm16426_vm7, %v6970_v30, %v7010_v27  ;;  %vm16433_vm7 = vmmov %vm16412_vm1 }
 0x507   : > { %v9006_v58 = vmax.f32 %v8878_v5, %v8953_v21  ;;  %v8790_v21 = vunpack.c.l.bf16 %v8766_v10  ;;  %v8383_v7 = vmax.f32 %v8302_v12, %v15415_v47  ;;  %v8955_v5 = vrot.slane %v8720_v14, 2 }
 0x508   : > { %v8526_v43 = vmax.f32 %v8382_v59, %v15435_v16  ;;  %v8204_v59 = vld [vmem:[#allocation4 + $0x18] sm:$0xe] }
 0x509   : > { %v9022_v38 = vpack.c.bf16 %v9006_v58, %v9006_v58  ;;  %v8829_v56 = vrot.slane %v8790_v21, 1  ;;  %v8527_v9 = vmax.f32 %v8383_v7, %v8477_v63  ;;  %v8957_v22 = vrot.slane %v8790_v21, 2 }
 0x50a   : > { %v8654_v60 = vmax.f32 %v8526_v43, %v8603_v29  ;;  %v8956_v10 = vsel %vm8242_vm15, %v8954_v52, %v8955_v5  ;;  %v2875_v63 = vmax.f32 %v15465_v53, 0.0  ;;  %v8336_v29 = vld [vmem:[#allocation4 + $0x24] sm:$0xff]  }
 0x50b   : > { %v9055_v39 = vunpack.c.l.b16 %v9022_v38  ;;  %v8655_v44 = vmax.f32 %v8527_v9, %v8605_v1  ;;  %v8830_v13 = vsel %vm8113_vm0, %v8827_v20, %v8829_v56  ;;  %v8958_v18 = vsel %vm8242_vm15, %v8955_v5, %v8957_v22  ;;  %v8558_v52 = vld [vmem:[#allocation4 + $0x24] sm:$0xe] }
 0x50c   : > { %v8735_v26 = vmax.f32 %v8654_v60, %v8719_v51  ;;  %v2881_v38 = vmax.f32 %v15478_v2, 0.0  ;;  %v7138_v51 = vpop.permute.xlu1 %7137  ;;  %v8228_v1 = vunpack.c.l.bf16 %v8204_v59  ;;  %v8368_v20 = vunpack.c.l.bf16 %v8336_v29 }
 0x50d   : > { %v9070_v57 = vpack.c.b16 %v9055_v39, %v9054_v33  ;;  %v8736_v28 = vmax.f32 %v8655_v44, %v8720_v14  ;;  %v7338_v14 = vsel %vm2625_vm12, %v7322_v3, %v7050_v45  ;;  %v8059_v33 = vld [vmem:[#allocation4 + $0x20] sm:$0x1]  ;;  %v8174_v39 = vmax.f32 %v15413_v15, %v15435_v16 }
 0x50e   : > { %v8879_v31 = vmax.f32 %v8735_v26, %v8828_v62  ;;  %v8083_v7 = vunpack.c.l.bf16 %v8059_v33  ;;  %v8369_v45 = vunpack.c.h.bf16 %v8336_v29 }
 0x50f   : > { %10068 = vmatmul.msk.bf16.vlgmr.msrb.gmra.mxu3 %vm16412_vm1, %v9070_v57  ;;  %v8880_v50 = vmax.f32 %v8736_v28, %v8830_v13  ;;  %v8414_v57 = vld [vmem:[#allocation4 + $0x2c] sm:$0x1]  ;;  %v8478_v13 = vrot.slane %v8368_v20, 1 }
 0x510   : > { %v9007_v12 = vmax.f32 %v8879_v31, %v8956_v10  ;;  %v8127_v16 = vrot.slane %v8083_v7, 1  ;;  %v8256_v9 = vrot.slane %v8083_v7, 2  ;;  %v8438_v60 = vunpack.c.l.bf16 %v8414_v57 }
 0x511   : > { %v9008_v46 = vmax.f32 %v8880_v50, %v8958_v18  ;;  %v8479_v28 = vrot.slane %v8369_v45, 1  ;;  %v8607_v31 = vrot.slane %v8369_v45, 2  ;;  %v8767_v50 = vld [vmem:[#allocation4 + $0x38] sm:$0x1] }
 0x512   : > { %v9023_v27 = vpack.c.bf16 %v9007_v12, %v9007_v12  ;;  %v8257_v62 = vsel %vm8242_vm15, %v15423_v32, %v8256_v9  ;;  %v8481_v10 = vrot.slane %v8438_v60, 1  ;;  %v8609_v18 = vrot.slane %v8438_v60, 2  ;;  %v8205_v9 = vld [vmem:[#allocation4 + $0x24] sm:$0xe] }
 0x513   : > { %v9024_v61 = vpack.c.bf16 %v9008_v46, %v9008_v46  ;;  %v8480_v12 = vsel %vm8113_vm0, %v8478_v13, %v8479_v28 }
 0x514   : > { %v9056_v15 = vunpack.c.l.b16 %v9023_v27  ;;  %v8610_v33 = vsel %vm8242_vm15, %v8607_v31, %v8609_v18 }
 0x51d   : > { %v7562_v41 = vpop.f32.mrf.mxu2 }
 0x51e   : > { %v7603_v4 = vmul.f32 %v15378_v11, %v7562_v41  ;;  %v7452_v17 = vpop.permute.xlu0 %7451  ;;  %v8253_v41 = vrot.slane %v8228_v1, 2 }
 0x51f   : > { %v7469_v8 = vsel %vm7459_vm9, %v6940_v24, %v7452_v17  ;;  %v9057_v24 = vunpack.c.l.b16 %v9024_v61  ;;  %v8128_v17 = vsel %vm8113_vm0, %v15420_v40, %v8127_v16  ;;  %v8582_v40 = vunpack.c.l.bf16 %v8558_v52  ;;  %v8047_v61 = vld [vmem:[#allocation4 + $0x24] sm:$0xff]  }
 0x520   : > { %v7623_v58 = vadd.f32 %v15383_v42, %v7603_v4  ;;  %10042 = vmatmul.msk.bf16.gmra.mxu2 %vm7528_vm2, %v7469_v8  ;;  %v8175_v8 = vmax.f32 %v15415_v47, %v8128_v17  ;;  %v8255_v44 = vsel %vm8242_vm15, %v8253_v41, %v15423_v32  ;;  %v8482_v32 = vsel %vm8113_vm0, %v8479_v28, %v8481_v10  ;;  %v8060_v41 = vld [vmem:[#allocation4 + $0x2c] sm:$0x1] }
 0x521   : > { %v9071_v22 = vpack.c.b16 %v9057_v24, %v9056_v15  ;;  %v8303_v26 = vmax.f32 %v8174_v39, %v8255_v44  ;;  %v8606_v46 = vrot.slane %v8582_v40, 2  ;;  %v7298_v39 = vpop.permute.xlu2 %7297  ;;  %v8084_v44 = vunpack.c.l.bf16 %v8060_v41 }
 0x522   : > { %v7639_v48 = vmax.f32 %v7623_v58, 0.0  ;;  %v10224_v58 = vld [vmem:[#allocation4 + $0x30] sm:$0xff]  }
 0x523   : > { %v8384_v47 = vmax.f32 %v8303_v26, %v8368_v20  ;;  %v15517_v36 = vunpack.c.l.bf16 %v10224_v58  ;;  %v8608_v1 = vsel %vm8242_vm15, %v8606_v46, %v8607_v31  ;;  %v2851_v20 = vmul.f32 %v15284_v6, %v15389_v55 }
 0x524   : > { %9294 = vrot.lane.b32.xlu1 %v7639_v48, %s16407_s20  ;;  %v8304_v48 = vmax.f32 %v8175_v8, %v8257_v62  ;;  %v2884_v26 = vmax.f32 %v15503_v37, 0.0  ;;  %v8132_v18 = vrot.slane %v8084_v44, 1 }
 0x525   : > { %v7564_v21 = vpop.f32.mrf.mxu2  ;;  %v8528_v29 = vmax.f32 %v8384_v47, %v8480_v12  ;;  %v15553_v47 = vadd.f32 %v15302_v54, %v2851_v20  ;;  %v8691_v20 = vld [vmem:[#allocation4 + $0x3c] sm:$0xff]  }
 0x526   : > { %v7604_v0 = vmul.f32 %v15378_v11, %v7564_v21  ;;  %v7090_v30 = vpop.permute.xlu0 %7089  ;;  %v8385_v21 = vmax.f32 %v8304_v48, %v8369_v45 }
 0x527   : > { %v7354_v35 = vsel %vm2642_vm13, %v7338_v14, %v7090_v30  ;;  %vm16427_vm13 = vmmov %vm16412_vm1  ;;  %v8911_v30 = vld [vmem:[#allocation4 + $0x30] sm:$0xe]  ;;  %v8656_v45 = vmax.f32 %v8528_v29, %v8608_v1  ;;  %v2887_v53 = vmax.f32 %v15553_v47, 0.0 }
 0x528   : > { %v7624_v43 = vadd.f32 %v15383_v42, %v7604_v0  ;;  %v7370_v56 = vsel %vm2659_vm3, %v7354_v35, %v7138_v51  ;;  %10069 = vmatmul.msk.bf16.gmra.mxu3 %vm16427_vm13, %v9071_v22  ;;  %v7258_v51 = vpop.permute.xlu1 %7257  ;;  %v8791_v0 = vunpack.c.l.bf16 %v8767_v50  ;;  %v8529_v7 = vmax.f32 %v8385_v21, %v8482_v32  ;;  %v16428_v21 = vld [vmem:[#allocation44_spill] sm:$0xff]  ;;  %vm16434_vm13 = vmmov %vm16412_vm1 }
 0x529   : > { %v7386_v4 = vsel %vm2676_vm11, %v7370_v56, %v7178_v19  ;;  %v15522_v19 = vunpack.c.h.bf16 %v10224_v58  ;;  %v8831_v35 = vrot.slane %v15517_v36, 1  ;;  %v8935_v15 = vunpack.c.l.bf16 %v8911_v30  ;;  %vm16429_vm11 = vmmov %vm16412_vm1 }
 0x52a   : > { %v7640_v5 = vmax.f32 %v7624_v43, 0.0  ;;  %v8834_v43 = vrot.slane %v8791_v0, 1  ;;  %v8657_v56 = vmax.f32 %v8529_v7, %v8610_v33  ;;  %v8962_v24 = vrot.slane %v8791_v0, 2 }
 0x52b   : > { %v15531_v57 = vrot.slane %v15522_v19, 1  ;;  %v15534_v16 = vrot.slane %v15522_v19, 2  ;;  %v8959_v60 = vrot.slane %v8935_v15, 2  ;;  %v8072_v22 = vunpack.c.h.bf16 %v8047_v61 }
 0x52c   : > { %9296 = vrot.lane.b32.xlu2 %v7640_v5, %s16407_s20  ;;  %v8737_v5 = vmax.f32 %v8656_v45, %v15517_v36  ;;  %v8738_v17 = vmax.f32 %v8657_v56, %v15522_v19  ;;  %v8229_v58 = vunpack.c.l.bf16 %v8205_v9  ;;  %v6925_v46 = vsel %vm6913_vm8, %v16428_v21, %v14714_v25  ;;  %v8768_v9 = vld [vmem:[#allocation4 + $0x44] sm:$0x1] }
 0x52d   : > { %v15539_v6 = vsel %vm8113_vm0, %v8831_v35, %v15531_v57  ;;  %v8835_v55 = vsel %vm8113_vm0, %v15531_v57, %v8834_v43  ;;  %v8963_v52 = vsel %vm8242_vm15, %v15534_v16, %v8962_v24  ;;  %v8961_v28 = vsel %vm8242_vm15, %v8959_v60, %v15534_v16  ;;  %v8912_v60 = vld [vmem:[#allocation4 + $0x3c] sm:$0xe] }
 0x52e   : > { %v7218_v3 = vpop.permute.xlu0 %7217  ;;  %v8881_v8 = vmax.f32 %v8737_v5, %v15539_v6  ;;  %v8882_v13 = vmax.f32 %v8738_v17, %v8835_v55  ;;  %v8130_v10 = vrot.slane %v8072_v22, 1  ;;  %v8258_v50 = vrot.slane %v8229_v58, 2 }
 0x52f   : > { %v7402_v14 = vsel %vm2693_vm4, %v7386_v4, %v7218_v3  ;;  %v8071_v4 = vunpack.c.l.bf16 %v8047_v61  ;;  %v8259_v3 = vrot.slane %v8072_v22, 2  ;;  %v8724_v17 = vunpack.c.h.bf16 %v8691_v20 }
 0x530   : > { %v7418_v59 = vsel %vm2710_vm10, %v7402_v14, %v7258_v51  ;;  %v9009_v31 = vmax.f32 %v8881_v8, %v8961_v28  ;;  %v9010_v12 = vmax.f32 %v8882_v13, %v8963_v52  ;;  %v8261_v51 = vrot.slane %v8084_v44, 2  ;;  %v8415_v14 = vld [vmem:[#allocation4 + $0x38] sm:$0x1]  ;;  %vm16431_vm10 = vmmov %vm16412_vm1 }
 0x531   : > { %v7434_v27 = vsel %vm2727_vm14, %v7418_v59, %v7298_v39  ;;  %v8129_v62 = vrot.slane %v8071_v4, 1  ;;  %v8133_v39 = vsel %vm8113_vm0, %v8130_v10, %v8132_v18  ;;  %v8260_v30 = vsel %vm8242_vm15, %v8258_v50, %v8259_v3 }
 0x532   : > { %7457 = vrot.lane.b32.xlu0 %v7434_v27, %s16413_s23  ;;  %v9025_v33 = vpack.c.bf16 %v9009_v31, %v9009_v31  ;;  %v9026_v29 = vpack.c.bf16 %v9010_v12, %v9010_v12  ;;  %v8177_v0 = vmax.f32 %v8072_v22, %v8133_v39  ;;  %v8559_v27 = vld [vmem:[#allocation4 + $0x30] sm:$0xe]  ;;  %v8262_v35 = vsel %vm8242_vm15, %v8259_v3, %v8261_v51 }
 0x533   : > { %v8131_v32 = vsel %vm8113_vm0, %v8129_v62, %v8130_v10  ;;  %v8439_v61 = vunpack.c.l.bf16 %v8415_v14  ;;  %v8583_v24 = vunpack.c.l.bf16 %v8559_v27  ;;  %v8792_v28 = vunpack.c.l.bf16 %v8768_v9 }
 0x534   : > { %v8176_v59 = vmax.f32 %v8071_v4, %v8131_v32  ;;  %v9058_v1 = vunpack.c.l.b16 %v9025_v33  ;;  %v9059_v45 = vunpack.c.l.b16 %v9026_v29  ;;  %v8306_v43 = vmax.f32 %v8177_v0, %v8262_v35  ;;  %v8340_v0 = vld [vmem:[#allocation4 + $0x3c] sm:$0xff]  }
 0x535   : > { %v8486_v15 = vrot.slane %v8439_v61, 1  ;;  %v8614_v41 = vrot.slane %v8439_v61, 2  ;;  %v8723_v4 = vunpack.c.l.bf16 %v8691_v20  ;;  %v8611_v44 = vrot.slane %v8583_v24, 2 }
 0x536   : > { %v6688_v48 = vpop.permute.xlu0 %6687  ;;  %v8305_v25 = vmax.f32 %v8176_v59, %v8260_v30  ;;  %v9072_v5 = vpack.c.b16 %v9059_v45, %v9058_v1  ;;  %v8387_v55 = vmax.f32 %v8306_v43, %v15522_v19  ;;  %v8837_v18 = vrot.slane %v8724_v17, 1  ;;  %v8206_v59 = vld [vmem:[#allocation4 + $0x30] sm:$0xe] }
 0x537   : > { %v6942_v54 = vsel %vm6930_vm5, %v6925_v46, %v6688_v48  ;;  %v8487_v22 = vsel %vm8113_vm0, %v15531_v57, %v8486_v15  ;;  %v8615_v62 = vsel %vm8242_vm15, %v15534_v16, %v8614_v41  ;;  %v8836_v10 = vrot.slane %v8723_v4, 1  ;;  %v8061_v48 = vld [vmem:[#allocation4 + $0x38] sm:$0x1] }
 0x538   : > { %v15550_v40 = vpop.f32.mrf.mxu2  ;;  %v8386_v56 = vmax.f32 %v8305_v25, %v15517_v36  ;;  %10070 = vmatmul.msk.bf16.gmra.mxu3 %vm16429_vm11, %v9072_v5  ;;  %v8531_v13 = vmax.f32 %v8387_v55, %v8487_v22  ;;  %v8613_v31 = vsel %vm8242_vm15, %v8611_v44, %v15534_v16  ;;  %v8936_v50 = vunpack.c.l.bf16 %v8912_v60  ;;  %v8560_v5 = vld [vmem:[#allocation4 + $0x3c] sm:$0xe] }
 0x539   : > { %v8965_v3 = vrot.slane %v8724_v17, 2  ;;  %v8839_v14 = vrot.slane %v8792_v28, 1  ;;  %v8838_v21 = vsel %vm8113_vm0, %v8836_v10, %v8837_v18  ;;  %v8967_v33 = vrot.slane %v8792_v28, 2  ;;  %v10225_v28 = vld [vmem:[#allocation4 + $0x48] sm:$0xff]   ;;  %v8769_v10 = vld [vmem:[#allocation4 + $0x50] sm:$0x1] }
 0x53a   : > { %9230 = vrot.lane.b32.xlu0 %v2875_v63, %s16410_s16  ;;  %v8530_v8 = vmax.f32 %v8386_v56, %v15539_v6  ;;  %v8659_v51 = vmax.f32 %v8531_v13, %v8615_v62  ;;  %v8964_v46 = vrot.slane %v8936_v50, 2  ;;  %v8085_v39 = vunpack.c.l.bf16 %v8061_v48  ;;  %v16430_v48 = vld [vmem:[#allocation47_spill] sm:$0xff] }
 0x53b   : > { %v8840_v30 = vsel %vm8113_vm0, %v8837_v18, %v8839_v14  ;;  %v8178_v61 = vmax.f32 %v15517_v36, %v15539_v6  ;;  %v8230_v20 = vunpack.c.l.bf16 %v8206_v59  ;;  %v8372_v43 = vunpack.c.l.bf16 %v8340_v0 }
 0x53c   : > { %v7454_v7 = vpop.permute.xlu1 %7453  ;;  %v8658_v32 = vmax.f32 %v8530_v8, %v8613_v31  ;;  %v8740_v29 = vmax.f32 %v8659_v51, %v8724_v17  ;;  %v8966_v27 = vsel %vm8242_vm15, %v8964_v46, %v8965_v3  ;;  %v8137_v1 = vrot.slane %v8085_v39, 1 }
 0x53d   : > { %v7471_v63 = vsel %vm7459_vm9, %v6942_v54, %v7454_v7  ;;  %v8968_v7 = vsel %vm8242_vm15, %v8965_v3, %v8967_v33  ;;  %v8266_v45 = vrot.slane %v8085_v39, 2  ;;  %v8373_v56 = vunpack.c.h.bf16 %v8340_v0  ;;  %v8913_v3 = vld [vmem:[#allocation4 + $0x48] sm:$0xe] }
 0x53e   : > { %10043 = vmatmul.msk.bf16.gmra.mxu2 %vm7528_vm2, %v7471_v63  ;;  %v8739_v54 = vmax.f32 %v8658_v32, %v8723_v4  ;;  %v8884_v25 = vmax.f32 %v8740_v29, %v8840_v30  ;;  %v8138_v63 = vsel %vm8113_vm0, %v15531_v57, %v8137_v1  ;;  %v8263_v9 = vrot.slane %v8230_v20, 2  ;;  %v6690_v57 = vpop.permute.xlu2 %6689  ;;  %v8062_v20 = vld [vmem:[#allocation4 + $0x44] sm:$0x1] }
 0x53f   : > { %v8179_v41 = vmax.f32 %v15522_v19, %v8138_v63  ;;  %v8267_v36 = vsel %vm8242_vm15, %v15534_v16, %v8266_v45  ;;  %v8440_v6 = vunpack.c.l.bf16 %v8416_v49  ;;  %v8488_v55 = vrot.slane %v8372_v43, 1  ;;  %v8207_v45 = vld [vmem:[#allocation4 + $0x3c] sm:$0xe] }
 0x540   : > { %v7569_v52 = vpop.f32.mrf.mxu2  ;;  %v8883_v35 = vmax.f32 %v8739_v54, %v8838_v21  ;;  %v9012_v24 = vmax.f32 %v8884_v25, %v8968_v7  ;;  %v8489_v4 = vrot.slane %v8373_v56, 1  ;;  %v15604_v19 = vadd.f32 %v15383_v42, %v7602_v23 }
 0x541   : > { %v7606_v58 = vmul.f32 %v15378_v11, %v7569_v52  ;;  %v8265_v52 = vsel %vm8242_vm15, %v8263_v9, %v15534_v16  ;;  %v8308_v22 = vmax.f32 %v8179_v41, %v8267_v36  ;;  %v8491_v44 = vrot.slane %v8440_v6, 1 }
 0x542   : > { %9236 = vrot.lane.b32.xlu0 %v2878_v34, %s16410_s16  ;;  %v9011_v15 = vmax.f32 %v8883_v35, %v8966_v27  ;;  %v9028_v60 = vpack.c.bf16 %v9012_v24, %v9012_v24  ;;  %v8307_v8 = vmax.f32 %v8178_v61, %v8265_v52  ;;  %v8584_v2 = vunpack.c.l.bf16 %v8560_v5 }
 0x543   : > { %v7626_v12 = vadd.f32 %v15383_v42, %v7606_v58  ;;  %v8389_v58 = vmax.f32 %v8308_v22, %v8373_v56  ;;  %v8490_v13 = vsel %vm8113_vm0, %v8488_v55, %v8489_v4  ;;  %v6944_v31 = vsel %vm6930_vm5, %v16430_v48, %v6690_v57 }
 0x544   : > { %v9027_v17 = vpack.c.bf16 %v9011_v15, %v9011_v15  ;;  %v9061_v62 = vunpack.c.l.b16 %v9028_v60  ;;  %v8388_v18 = vmax.f32 %v8307_v8, %v8372_v43  ;;  %v8492_v16 = vsel %vm8113_vm0, %v8489_v4, %v8491_v44 }
 0x545   : > { %v7642_v34 = vmax.f32 %v7626_v12, 0.0  ;;  %v8616_v50 = vrot.slane %v8584_v2, 2  ;;  %v8051_v12 = vld [vmem:[#allocation4 + $0x3c] sm:$0xff]   ;;  %v8533_v51 = vmax.f32 %v8389_v58, %v8492_v16  ;;  %v8617_v14 = vrot.slane %v8373_v56, 2  ;;  %v8417_v58 = vld [vmem:[#allocation4 + $0x50] sm:$0x1] }
 0x546   : > { %v8619_v21 = vrot.slane %v8440_v6, 2  ;;  %v8532_v46 = vmax.f32 %v8388_v18, %v8490_v13  ;;  %v15610_v33 = vunpack.c.l.bf16 %v10225_v28  ;;  %v15612_v39 = vunpack.c.h.bf16 %v10225_v28  ;;  %v8695_v18 = vld [vmem:[#allocation4 + $0x54] sm:$0xff]  }
 0x547   : > { %9300 = vrot.lane.b32.xlu1 %v7642_v34, %s16407_s20  ;;  %v8793_v59 = vunpack.c.l.bf16 %v8769_v10  ;;  %v8618_v23 = vsel %vm8242_vm15, %v8616_v50, %v8617_v14  ;;  %v8937_v54 = vunpack.c.l.bf16 %v8913_v3  ;;  %v8075_v29 = vunpack.c.l.bf16 %v8051_v12 }
 0x548   : > { %v8620_v34 = vsel %vm8242_vm15, %v8617_v14, %v8619_v21  ;;  %v8660_v0 = vmax.f32 %v8532_v46, %v8618_v23  ;;  %v8841_v27 = vrot.slane %v15610_v33, 1  ;;  %v15622_v7 = vrot.slane %v15612_v39, 1  ;;  %v8770_v23 = vld [vmem:[#allocation4 + $0x5c] sm:$0x1] }
 0x549   : > { %v8661_v30 = vmax.f32 %v8533_v51, %v8620_v34  ;;  %v8844_v1 = vrot.slane %v8793_v59, 1  ;;  %v8969_v35 = vrot.slane %v8937_v54, 2  ;;  %v15625_v25 = vrot.slane %v15612_v39, 2 }
 0x54a   : > { %9242 = vrot.lane.b32.xlu0 %v2881_v38, %s16410_s16  ;;  %v9060_v38 = vunpack.c.l.b16 %v9027_v17  ;;  %v8972_v61 = vrot.slane %v8793_v59, 2  ;;  %v8741_v49 = vmax.f32 %v8660_v0, %v15610_v33  ;;  %v15631_v37 = vsel %vm8113_vm0, %v8841_v27, %v15622_v7 }
 0x54b   : > { %v8742_v63 = vmax.f32 %v8661_v30, %v15612_v39  ;;  %v7605_v43 = vmul.f32 %v15378_v11, %v15550_v40  ;;  %v8845_v56 = vsel %vm8113_vm0, %v15622_v7, %v8844_v1  ;;  %v8971_v15 = vsel %vm8242_vm15, %v8969_v35, %v15625_v25 }
 0x54c   : > { %v9073_v32 = vpack.c.b16 %v9061_v62, %v9060_v38  ;;  %v8973_v24 = vsel %vm8242_vm15, %v15625_v25, %v8972_v61  ;;  %v8885_v9 = vmax.f32 %v8741_v49, %v15631_v37  ;;  %v8086_v36 = vunpack.c.l.bf16 %v8062_v20  ;;  %v8914_v20 = vld [vmem:[#allocation4 + $0x54] sm:$0xe] }
 0x54d   : > { %v8886_v5 = vmax.f32 %v8742_v63, %v8845_v56  ;;  %v8139_v6 = vrot.slane %v8075_v29, 1  ;;  %v8231_v40 = vunpack.c.l.bf16 %v8207_v45  ;;  %v8441_v21 = vunpack.c.l.bf16 %v8417_v58 }
 0x54e   : > { %10071 = vmatmul.msk.bf16.gmra.mxu3 %vm16431_vm10, %v9073_v32  ;;  %v9013_v52 = vmax.f32 %v8885_v9, %v8971_v15  ;;  %v8142_v8 = vrot.slane %v8086_v36, 1  ;;  %v8271_v62 = vrot.slane %v8086_v36, 2  ;;  %v7638_v47 = vmax.f32 %v15604_v19, 0.0  ;;  %v8063_v36 = vld [vmem:[#allocation4 + $0x50] sm:$0x1] }
 0x54f   : > { %v9014_v22 = vmax.f32 %v8886_v5, %v8973_v24  ;;  %v8268_v38 = vrot.slane %v8231_v40, 2  ;;  %v8727_v59 = vunpack.c.l.bf16 %v8695_v18  ;;  %v8496_v0 = vrot.slane %v8441_v21, 1  ;;  %v8208_v40 = vld [vmem:[#allocation4 + $0x48] sm:$0xe] }
 0x550   : > { %v9029_v13 = vpack.c.bf16 %v9013_v52, %v9013_v52  ;;  %v8624_v30 = vrot.slane %v8441_v21, 2  ;;  %v7625_v27 = vadd.f32 %v15383_v42, %v7605_v43  ;;  %v8728_v61 = vunpack.c.h.bf16 %v8695_v18 }
 0x551   : > { %v9030_v28 = vpack.c.bf16 %v9014_v22, %v9014_v22  ;;  %v8497_v19 = vsel %vm8113_vm0, %v15622_v7, %v8496_v0  ;;  %v8846_v15 = vrot.slane %v8727_v59, 1  ;;  %v8938_v5 = vunpack.c.l.bf16 %v8914_v20  ;;  %v8344_v22 = vld [vmem:[#allocation4 + $0x54] sm:$0xff]  }
 0x552   : > { %9248 = vrot.lane.b32.xlu0 %v2884_v26, %s16410_s16  ;;  %v8076_v26 = vunpack.c.h.bf16 %v8051_v12  ;;  %v9062_v32 = vunpack.c.l.b16 %v9029_v13  ;;  %v8625_v63 = vsel %vm8242_vm15, %v15625_v25, %v8624_v30 }
 0x553   : > { %v9063_v51 = vunpack.c.l.b16 %v9030_v28  ;;  %v8974_v52 = vrot.slane %v8938_v5, 2  ;;  %v8182_v28 = vmax.f32 %v15610_v33, %v15631_v37 }
 0x554   : > { %v8140_v57 = vrot.slane %v8076_v26, 1  ;;  %v8269_v17 = vrot.slane %v8076_v26, 2 }
 0x555   : > { %v9074_v34 = vpack.c.b16 %v9063_v51, %v9062_v32  ;;  %v8562_v32 = vld [vmem:[#allocation4 + $0x54] sm:$0xe] }
 0x556   : > { %v7572_v41 = vpop.f32.mrf.mxu2  ;;  %v8141_v2 = vsel %vm8113_vm0, %v8139_v6, %v8140_v57  ;;  %v8143_v10 = vsel %vm8113_vm0, %v8140_v57, %v8142_v8  ;;  %v8270_v3 = vsel %vm8242_vm15, %v8268_v38, %v8269_v17  ;;  %v8272_v12 = vsel %vm8242_vm15, %v8269_v17, %v8271_v62  ;;  %v8418_v62 = vld [vmem:[#allocation4 + $0x5c] sm:$0x1] }
 0x557   : > { %v7607_v55 = vmul.f32 %v15378_v11, %v7572_v41  ;;  %v7456_v4 = vpop.permute.xlu0 %7455  ;;  %v8180_v48 = vmax.f32 %v8075_v29, %v8141_v2  ;;  %v8181_v50 = vmax.f32 %v8076_v26, %v8143_v10  ;;  %v8794_v26 = vunpack.c.l.bf16 %v8770_v23 }
 0x558   : > { %v7473_v60 = vsel %vm7459_vm9, %v6944_v31, %v7456_v4  ;;  %v8561_v31 = vld [vmem:[#allocation4 + $0x48] sm:$0xe]  ;;  %v8847_v41 = vrot.slane %v8728_v61, 1  ;;  %v7641_v6 = vmax.f32 %v7625_v27, 0.0  ;;  %v8975_v4 = vrot.slane %v8728_v61, 2 }
 0x559   : > { %v7627_v44 = vadd.f32 %v15383_v42, %v7607_v55  ;;  %10044 = vmatmul.msk.bf16.gmra.mxu2 %vm7528_vm2, %v7473_v60  ;;  %v8309_v14 = vmax.f32 %v8180_v48, %v8270_v3  ;;  %v8585_v46 = vunpack.c.l.bf16 %v8561_v31  ;;  %v8849_v9 = vrot.slane %v8794_v26, 1 }
 0x55a   : > { %9254 = vrot.lane.b32.xlu0 %v2887_v53, %s16410_s16  ;;  %v8310_v53 = vmax.f32 %v8181_v50, %v8272_v12  ;;  %v8977_v57 = vrot.slane %v8794_v26, 2  ;;  %v8087_v38 = vunpack.c.l.bf16 %v8063_v36  ;;  %v8976_v13 = vsel %vm8242_vm15, %v8974_v52, %v8975_v4  ;;  %v8915_v26 = vld [vmem:[#allocation4 + $0x60] sm:$0xe] }
 0x55b   : > { %v7643_v16 = vmax.f32 %v7627_v44, 0.0  ;;  %v8390_v29 = vmax.f32 %v8309_v14, %v15610_v33  ;;  %v8621_v35 = vrot.slane %v8585_v46, 2  ;;  %v8850_v60 = vsel %vm8113_vm0, %v8847_v41, %v8849_v9 }
 0x55c   : > { %v8391_v1 = vmax.f32 %v8310_v53, %v15612_v39  ;;  %v8978_v2 = vsel %vm8242_vm15, %v8975_v4, %v8977_v57  ;;  %v8232_v10 = vunpack.c.l.bf16 %v8208_v40  ;;  %v8147_v31 = vrot.slane %v8087_v38, 1  ;;  %v8064_v40 = vld [vmem:[#allocation4 + $0x5c] sm:$0x1] }
 0x55d   : > { %9302 = vrot.lane.b32.xlu2 %v7643_v16, %s16407_s20  ;;  %v8534_v49 = vmax.f32 %v8390_v29, %v15631_v37  ;;  %v8623_v43 = vsel %vm8242_vm15, %v8621_v35, %v15625_v25  ;;  %v8276_v18 = vrot.slane %v8087_v38, 2  ;;  %v8376_v16 = vunpack.c.l.bf16 %v8344_v22  ;;  %v10226_v29 = vld [vmem:[#allocation4 + $0x60] sm:$0xff]   ;;  %v8209_v38 = vld [vmem:[#allocation4 + $0x54] sm:$0xe] }
 0x55e   : > { %v7574_v54 = vpop.f32.mrf.mxu2  ;;  %10072 = vmatmul.msk.bf16.gmra.mxu3 %vm16432_vm6, %v9074_v34  ;;  %v8535_v56 = vmax.f32 %v8391_v1, %v8497_v19  ;;  %v8273_v3 = vrot.slane %v8232_v10, 2  ;;  %v8377_v12 = vunpack.c.h.bf16 %v8344_v22  ;;  %v8148_v14 = vsel %vm8113_vm0, %v15622_v7, %v8147_v31  ;;  %v8771_v1 = vld [vmem:[#allocation4 + $0x68] sm:$0x1] }
 0x55f   : > { %v7608_v45 = vmul.f32 %v15378_v11, %v7574_v54  ;;  %v8662_v24 = vmax.f32 %v8534_v49, %v8623_v43  ;;  %v8848_v11 = vsel %vm8113_vm0, %v8846_v15, %v8847_v41  ;;  %v8277_v21 = vsel %vm8242_vm15, %v15625_v25, %v8276_v18 }
 0x560   : > { %v8663_v55 = vmax.f32 %v8535_v56, %v8625_v63  ;;  %v8183_v37 = vmax.f32 %v15612_v39, %v8148_v14  ;;  %v8275_v53 = vsel %vm8242_vm15, %v8273_v3, %v15625_v25  ;;  %v8499_v46 = vrot.slane %v8377_v12, 1 }
 0x561   : > { %v8743_v17 = vmax.f32 %v8662_v24, %v8727_v59  ;;  %v7628_v8 = vadd.f32 %v15383_v42, %v7608_v45  ;;  %v8442_v42 = vunpack.c.l.bf16 %v8418_v62  ;;  %v8311_v23 = vmax.f32 %v8182_v28, %v8275_v53  ;;  %v8055_v24 = vld [vmem:[#allocation4 + $0x54] sm:$0xff]   ;;  %v8419_v28 = vld [vmem:[#allocation4 + $0x68] sm:$0x1] }
 0x562   : > { %9292 = vrot.lane.b32.xlu0 %v7638_v47, %s16407_s20  ;;  %v8744_v44 = vmax.f32 %v8663_v55, %v8728_v61  ;;  %v8498_v47 = vrot.slane %v8376_v16, 1  ;;  %v8586_v54 = vunpack.c.l.bf16 %v8562_v32  ;;  %v8312_v7 = vmax.f32 %v8183_v37, %v8277_v21  ;;  %v8563_v21 = vld [vmem:[#allocation4 + $0x60] sm:$0xe] }
 0x563   : > { %v8887_v58 = vmax.f32 %v8743_v17, %v8848_v11  ;;  %v8501_v34 = vrot.slane %v8442_v42, 1  ;;  %v8627_v27 = vrot.slane %v8377_v12, 2  ;;  %v7644_v35 = vmax.f32 %v7628_v8, 0.0 }
 0x564   : > { %v8888_v48 = vmax.f32 %v8744_v44, %v8850_v60  ;;  %v8500_v30 = vsel %vm8113_vm0, %v8498_v47, %v8499_v46  ;;  %v8392_v20 = vmax.f32 %v8311_v23, %v8376_v16  ;;  %v8393_v19 = vmax.f32 %v8312_v7, %v8377_v12 }
 0x565   : > { %v9015_v50 = vmax.f32 %v8887_v58, %v8976_v13  ;;  %v8502_v39 = vsel %vm8113_vm0, %v8499_v46, %v8501_v34  ;;  %v8626_v49 = vrot.slane %v8586_v54, 2  ;;  %v8629_v25 = vrot.slane %v8442_v42, 2  ;;  %v8699_v54 = vld [vmem:[#allocation4 + $0x6c] sm:$0xff]  }
 0x566   : > { %v9016_v51 = vmax.f32 %v8888_v48, %v8978_v2  ;;  %v15685_v63 = vunpack.c.l.bf16 %v10226_v29  ;;  %v8536_v56 = vmax.f32 %v8392_v20, %v8500_v30  ;;  %v15687_v43 = vunpack.c.h.bf16 %v10226_v29  ;;  %v8772_v20 = vld [vmem:[#allocation4 + $0x74] sm:$0x1] }
 0x567   : > { %v9031_v33 = vpack.c.bf16 %v9015_v50, %v9015_v50  ;;  %v8795_v15 = vunpack.c.l.bf16 %v8771_v1  ;;  %v8537_v41 = vmax.f32 %v8393_v19, %v8502_v39  ;;  %v8628_v9 = vsel %vm8242_vm15, %v8626_v49, %v8627_v27 }
 0x568   : > { %v9032_v59 = vpack.c.bf16 %v9016_v51, %v9016_v51  ;;  %v8630_v5 = vsel %vm8242_vm15, %v8627_v27, %v8629_v25  ;;  %v8851_v36 = vrot.slane %v15685_v63, 1  ;;  %v8852_v55 = vrot.slane %v15687_v43, 1 }
 0x569   : > { %v9064_v0 = vunpack.c.l.b16 %v9031_v33  ;;  %v8854_v4 = vrot.slane %v8795_v15, 1  ;;  %v8939_v57 = vunpack.c.l.bf16 %v8915_v26  ;;  %v8665_v17 = vmax.f32 %v8537_v41, %v8630_v5  ;;  %v8916_v26 = vld [vmem:[#allocation4 + $0x6c] sm:$0xe] }
 0x56a   : > { %9298 = vrot.lane.b32.xlu0 %v7641_v6, %s16407_s20  ;;  %v9065_v61 = vunpack.c.l.b16 %v9032_v59  ;;  %v8664_v6 = vmax.f32 %v8536_v56, %v8628_v9  ;;  %v8980_v11 = vrot.slane %v15687_v43, 2  ;;  %v8982_v60 = vrot.slane %v8795_v15, 2 }
 0x56b   : > { %v8079_v52 = vunpack.c.l.bf16 %v8055_v24  ;;  %v8853_v8 = vsel %vm8113_vm0, %v8851_v36, %v8852_v55  ;;  %v8855_v44 = vsel %vm8113_vm0, %v8852_v55, %v8854_v4  ;;  %v8979_v2 = vrot.slane %v8939_v57, 2 }
 0x56c   : > { %v9075_v45 = vpack.c.b16 %v9065_v61, %v9064_v0  ;;  %v8745_v22 = vmax.f32 %v8664_v6, %v15685_v63  ;;  %v8746_v62 = vmax.f32 %v8665_v17, %v15687_v43  ;;  %v8080_v58 = vunpack.c.h.bf16 %v8055_v24 }
 0x56d   : > { %v8088_v13 = vunpack.c.l.bf16 %v8064_v40  ;;  %v8981_v48 = vsel %vm8242_vm15, %v8979_v2, %v8980_v11  ;;  %v8983_v31 = vsel %vm8242_vm15, %v8980_v11, %v8982_v60  ;;  %v8149_v18 = vrot.slane %v8079_v52, 1 }
 0x56e   : > { %10073 = vmatmul.msk.bf16.gmra.mxu3 %vm16412_vm1, %v9075_v45  ;;  %v8889_v10 = vmax.f32 %v8745_v22, %v8853_v8  ;;  %v8890_v16 = vmax.f32 %v8746_v62, %v8855_v44  ;;  %v8150_v50 = vrot.slane %v8080_v58, 1  ;;  %v8233_v12 = vunpack.c.l.bf16 %v8209_v38 }
 0x56f   : > { %v8152_v3 = vrot.slane %v8088_v13, 1  ;;  %v8279_v32 = vrot.slane %v8080_v58, 2  ;;  %v8281_v51 = vrot.slane %v8088_v13, 2  ;;  %v8443_v14 = vunpack.c.l.bf16 %v8419_v28 }
 0x570   : > { %v9017_v42 = vmax.f32 %v8889_v10, %v8981_v48  ;;  %v9018_v47 = vmax.f32 %v8890_v16, %v8983_v31  ;;  %v8151_v33 = vsel %vm8113_vm0, %v8149_v18, %v8150_v50  ;;  %v8278_v53 = vrot.slane %v8233_v12, 2  ;;  %v16436_v12 = vld [vmem:[#allocation51_spill] sm:$0xff] }
 0x571   : > { %v8153_v37 = vsel %vm8113_vm0, %v8150_v50, %v8152_v3  ;;  %v8184_v59 = vmax.f32 %v8079_v52, %v8151_v33  ;;  %v8282_v34 = vsel %vm8242_vm15, %v8279_v32, %v8281_v51  ;;  %v8506_v7 = vrot.slane %v8443_v14, 1  ;;  %v6644_v50 = vpop.permute.xlu1 %6643  ;;  %v16435_v3 = vld [vmem:[#allocation52_spill] sm:$0xff] }
 0x572   : > { %9304 = vrot.lane.b32.xlu0 %v7644_v35, %s16407_s20  ;;  %v9033_v46 = vpack.c.bf16 %v9017_v42, %v9017_v42  ;;  %v8185_v23 = vmax.f32 %v8080_v58, %v8153_v37  ;;  %v9034_v29 = vpack.c.bf16 %v9018_v47, %v9018_v47  ;;  %v8280_v0 = vsel %vm8242_vm15, %v8278_v53, %v8279_v32  ;;  %v15724_v47 = vld [vmem:[%s16026_s8] ss:$0 sm:$0xff] }
 0x573   : > { %v8587_v30 = vunpack.c.l.bf16 %v8563_v21  ;;  %v8313_v1 = vmax.f32 %v8184_v59, %v8280_v0  ;;  %v8634_v61 = vrot.slane %v8443_v14, 2  ;;  %v8507_v19 = vsel %vm8113_vm0, %v8852_v55, %v8506_v7  ;;  %v6692_v14 = vpop.permute.xlu2 %6691  ;;  %v15732_v59 = vld [vmem:[%s16027_s9] ss:$0 sm:$0xff] }
 0x574   : > { %v9066_v27 = vunpack.c.l.b16 %v9033_v46  ;;  %v8314_v35 = vmax.f32 %v8185_v23, %v8282_v34  ;;  %v9067_v39 = vunpack.c.l.b16 %v9034_v29  ;;  %v8731_v25 = vunpack.c.l.bf16 %v8699_v54 }
 0x575   : > { %v8631_v49 = vrot.slane %v8587_v30, 2  ;;  %v8394_v45 = vmax.f32 %v8313_v1, %v15685_v63  ;;  %v8635_v15 = vsel %vm8242_vm15, %v8980_v11, %v8634_v61  ;;  %v8732_v24 = vunpack.c.h.bf16 %v8699_v54 }
 0x576   : > { %v8395_v56 = vmax.f32 %v8314_v35, %v15687_v43  ;;  %v9076_v41 = vpack.c.b16 %v9067_v39, %v9066_v27  ;;  %v8796_v5 = vunpack.c.l.bf16 %v8772_v20  ;;  %v8856_v36 = vrot.slane %v8731_v25, 1 }
 0x577   : > { %v8633_v9 = vsel %vm8242_vm15, %v8631_v49, %v8980_v11  ;;  %v8538_v6 = vmax.f32 %v8394_v45, %v8853_v8  ;;  %v8857_v57 = vrot.slane %v8732_v24, 1  ;;  %v8940_v40 = vunpack.c.l.bf16 %v8916_v26 }
 0x578   : > { %v8539_v4 = vmax.f32 %v8395_v56, %v8507_v19  ;;  %v8859_v55 = vrot.slane %v8796_v5, 1  ;;  %v8985_v17 = vrot.slane %v8732_v24, 2  ;;  %v8987_v60 = vrot.slane %v8796_v5, 2 }
 0x579   : > { %v8666_v63 = vmax.f32 %v8538_v6, %v8633_v9  ;;  %v8984_v43 = vrot.slane %v8940_v40, 2  ;;  %v8858_v22 = vsel %vm8113_vm0, %v8856_v36, %v8857_v57  ;;  %v16438_v6 = vld [vmem:[#allocation14_spill] sm:$0xff] }
 0x57a   : > { %v8667_v52 = vmax.f32 %v8539_v4, %v8635_v15  ;;  %v8860_v44 = vsel %vm8113_vm0, %v8857_v57, %v8859_v55  ;;  %v8988_v8 = vsel %vm8242_vm15, %v8985_v17, %v8987_v60  ;;  %vm16437_vm0 = vcmask 424960   ;;  %v16439_v60 = vld [vmem:[#allocation17_spill] sm:$0xff] }
 0x57b   : > { %v8747_v2 = vmax.f32 %v8666_v63, %v8731_v25  ;;  %v8986_v38 = vsel %vm8242_vm15, %v8984_v43, %v8985_v17  ;;  %v6912_v42 = vsel %vm16437_vm0, %v16436_v12, %v16435_v3  ;;  %v9229_v36 = vpop.permute.xlu2 %9228 }
 0x57c   : > { %v8748_v11 = vmax.f32 %v8667_v52, %v8732_v24  ;;  %v6929_v32 = vsel %vm6913_vm8, %v6912_v42, %v6644_v50  ;;  %v9403_v4 = vsel %vm2625_vm12, %v16438_v6, %v9229_v36 }
 0x57d   : > { %v8891_v62 = vmax.f32 %v8747_v2, %v8858_v22  ;;  %v6946_v53 = vsel %vm6930_vm5, %v6929_v32, %v6692_v14 }
 0x57e   : > { %10074 = vmatmul.msk.bf16.gmra.mxu3 %vm16433_vm7, %v9076_v41  ;;  %v8892_v58 = vmax.f32 %v8748_v11, %v8860_v44 }
 0x57f   : > { %v9019_v13 = vmax.f32 %v8891_v62, %v8986_v38 }
 0x580   : > { %v9020_v28 = vmax.f32 %v8892_v58, %v8988_v8  ;;  %v15784_v58 = vld [vmem:[%s16029_s11] ss:$0 sm:$0xff] }
 0x581   : > { %v9035_v10 = vpack.c.bf16 %v9019_v13, %v9019_v13 }
 0x582   : > { %v9036_v48 = vpack.c.bf16 %v9020_v28, %v9020_v28 }
 0x583   : > { %v9068_v31 = vunpack.c.l.b16 %v9035_v10  ;;  %v9235_v17 = vpop.permute.xlu2 %9234 }
 0x584   : > { %v9069_v18 = vunpack.c.l.b16 %v9036_v48  ;;  %v9406_v63 = vsel %vm2625_vm12, %v16439_v60, %v9235_v17  ;;  %v15792_v48 = vld [vmem:[%s16030_s12] ss:$0 sm:$0xff] }
 0x586   : > { %v9077_v16 = vpack.c.b16 %v9069_v18, %v9068_v31 }
 0x58e   : > { %10075 = vmatmul.msk.bf16.gmra.mxu3 %vm16434_vm13, %v9077_v16 }
 0x592   : > { %v9114_v51 = vpop.f32.mrf.mxu3 }
 0x593   : > { %v9158_v10 = vmul.f32 %v15784_v58, %v9114_v51 }
 0x595   : > { %v9178_v16 = vadd.f32 %v15792_v48, %v9158_v10 }
 0x597   : > { %v9194_v50 = vmax.f32 %v9178_v16, 0.0 }
 0x59a   : > { %v15736_v54 = vpop.f32.mrf.mxu3 }
 0x5a3   : > { %v7577_v21 = vpop.f32.mrf.mxu2 }
 0x5a4   : > { %v7609_v33 = vmul.f32 %v15724_v47, %v7577_v21  ;;  %v7458_v37 = vpop.permute.xlu0 %7457 }
 0x5a5   : > { %v7475_v46 = vsel %vm7459_vm9, %v6946_v53, %v7458_v37 }
 0x5a6   : > { %v7629_v23 = vadd.f32 %v15732_v59, %v7609_v33  ;;  %10045 = vmatmul.msk.bf16.gmra.mxu2 %vm7528_vm2, %v7475_v46 }
 0x5a8   : > { %v7645_v34 = vmax.f32 %v7629_v23, 0.0 }
 0x5aa   : > { %9306 = vrot.lane.b32.xlu1 %v7645_v34, %s16407_s20 }
 0x5ab   : > { %v7579_v29 = vpop.f32.mrf.mxu2  ;;  %v15743_v1 = vpop.f32.mrf.mxu3 }
 0x5ac   : > { %v7610_v0 = vmul.f32 %v15724_v47, %v7579_v29  ;;  %v15740_v7 = vpop.permute.xlu0 %9230 }
 0x5ae   : > { %v7630_v30 = vadd.f32 %v15732_v59, %v7610_v0 }
 0x5b0   : > { %v7646_v27 = vmax.f32 %v7630_v30, 0.0 }
 0x5b2   : > { %9308 = vrot.lane.b32.xlu2 %v7646_v27, %s16407_s20 }
 0x5b3   : > { %v9121_v61 = vpop.f32.mrf.mxu3 }
 0x5b4   : > { %v15746_v35 = vpop.permute.xlu0 %9236  ;;  %v9161_v3 = vmul.f32 %v15784_v58, %v9121_v61 }
 0x5b6   : > { %v9181_v42 = vadd.f32 %v15792_v48, %v9161_v3 }
 0x5b8   : > { %v9197_v51 = vmax.f32 %v9181_v42, 0.0  ;;  %v9227_v42 = vpop.permute.xlu1 %9226 }
 0x5bb   : > { %v15752_v25 = vpop.f32.mrf.mxu3 }
 0x5bc   : > { %v15748_v20 = vpop.permute.xlu0 %9242 }
 0x5c1   : > { %v7582_v39 = vpop.f32.mrf.mxu2 }
 0x5c2   : > { %v7611_v19 = vmul.f32 %v15724_v47, %v7582_v39 }
 0x5c3   : > { %v15759_v41 = vpop.f32.mrf.mxu3 }
 0x5c4   : > { %v7631_v49 = vadd.f32 %v15732_v59, %v7611_v19  ;;  %v15754_v26 = vpop.permute.xlu0 %9248 }
 0x5c6   : > { %v7647_v45 = vmax.f32 %v7631_v49, 0.0 }
 0x5c8   : > { %9310 = vrot.lane.b32.xlu0 %v7647_v45, %s16407_s20 }
 0x5c9   : > { %v7584_v56 = vpop.f32.mrf.mxu2 }
 0x5ca   : > { %v7612_v15 = vmul.f32 %v15724_v47, %v7584_v56 }
 0x5cc   : > { %v7632_v24 = vadd.f32 %v15732_v59, %v7612_v15  ;;  %v15761_v9 = vpop.permute.xlu0 %9254 }
 0x5ce   : > { %v7648_v5 = vmax.f32 %v7632_v24, 0.0  ;;  %v15816_v24 = vpop.permute.xlu2 %9240 }
 0x5d0   : > { %9312 = vrot.lane.b32.xlu1 %v7648_v5, %s16407_s20  ;;  %v9159_v5 = vmul.f32 %v15784_v58, %v15736_v54 }
 0x5d1   : > { %v9129_v57 = vpop.f32.mrf.mxu3 }
 0x5d2   : > { %v9164_v32 = vmul.f32 %v15784_v58, %v9129_v57 }
 0x5d4   : > { %v9293_v40 = vpop.permute.xlu0 %9292  ;;  %v9184_v14 = vadd.f32 %v15792_v48, %v9164_v32 }
 0x5d5   : > { %v15767_v55 = vsel %vm2659_vm3, %v9403_v4, %v9293_v40  ;;  %v9179_v4 = vadd.f32 %v15792_v48, %v9159_v5 }
 0x5d6   : > { %v9200_v33 = vmax.f32 %v9184_v14, 0.0 }
 0x5d7   : > { %v9195_v60 = vmax.f32 %v9179_v4, 0.0 }
 0x5d9   : > { %v15771_v52 = vpop.f32.mrf.mxu3 }
 0x5dc   : > { %v9299_v43 = vpop.permute.xlu0 %9298  ;;  %v7587_v44 = vpop.f32.mrf.mxu2 }
 0x5dd   : > { %v15774_v22 = vsel %vm2659_vm3, %v9406_v63, %v9299_v43  ;;  %v7613_v2 = vmul.f32 %v15724_v47, %v7587_v44  ;;  %v9160_v63 = vmul.f32 %v15784_v58, %v15743_v1  ;;  %v9162_v43 = vmul.f32 %v15784_v58, %v15752_v25  ;;  %v9247_v44 = vpop.permute.xlu2 %9246 }
 0x5de   : > { %v9163_v25 = vmul.f32 %v15784_v58, %v15759_v41 }
 0x5df   : > { %v7633_v11 = vadd.f32 %v15732_v59, %v7613_v2  ;;  %v16440_v2 = vld [vmem:[#allocation23_spill] sm:$0xff] }
 0x5e0   : > { %v9183_v10 = vadd.f32 %v15792_v48, %v9163_v25 }
 0x5e1   : > { %v7649_v38 = vmax.f32 %v7633_v11, 0.0  ;;  %v15778_v8 = vpop.f32.mrf.mxu3  ;;  %v9412_v11 = vsel %vm2625_vm12, %v16440_v2, %v9247_v44 }
 0x5e3   : > { %9314 = vrot.lane.b32.xlu2 %v7649_v38, %s16407_s20 }
 0x5e4   : > { %v7589_v62 = vpop.f32.mrf.mxu2  ;;  %v15822_v57 = vpop.permute.xlu0 %9304 }
 0x5e5   : > { %v7614_v13 = vmul.f32 %v15724_v47, %v7589_v62 }
 0x5e7   : > { %v7634_v28 = vadd.f32 %v15732_v59, %v7614_v13 }
 0x5e9   : > { %v7650_v31 = vmax.f32 %v7634_v28, 0.0  ;;  %v9136_v18 = vpop.f32.mrf.mxu3  ;;  %v9165_v28 = vmul.f32 %v15784_v58, %v15771_v52 }
 0x5ea   : > { %v9167_v37 = vmul.f32 %v15784_v58, %v9136_v18  ;;  %v9199_v18 = vmax.f32 %v9183_v10, 0.0 }
 0x5eb   : > { %9316 = vrot.lane.b32.xlu0 %v7650_v31, %s16407_s20  ;;  %v9185_v31 = vadd.f32 %v15792_v48, %v9165_v28 }
 0x5ec   : > { %v9187_v53 = vadd.f32 %v15792_v48, %v9167_v37 }
 0x5ed   : > { %v9201_v16 = vmax.f32 %v9185_v31, 0.0 }
 0x5ee   : > { %v9203_v23 = vmax.f32 %v9187_v53, 0.0 }
 0x5f1   : > { %v9139_v12 = vpop.f32.mrf.mxu3 }
 0x5f2   : > { %v9168_v3 = vmul.f32 %v15784_v58, %v9139_v12 }
 0x5f3   : > { %9354 = vrot.lane.b32.xlu0 %v9194_v50, %s16383_s25  ;;  %v9166_v50 = vmul.f32 %v15784_v58, %v15778_v8  ;;  %v9233_v8 = vpop.permute.xlu1 %9232 }
 0x5f4   : > { %v9188_v52 = vadd.f32 %v15792_v48, %v9168_v3 }
 0x5f5   : > { %v9186_v41 = vadd.f32 %v15792_v48, %v9166_v50 }
 0x5f7   : > { %v9202_v32 = vmax.f32 %v9186_v41, 0.0 }
 0x5f9   : > { %v15801_v21 = vpop.f32.mrf.mxu3 }
 0x5fa   : > { %v9169_v14 = vmul.f32 %v15784_v58, %v15801_v21 }
 0x5fb   : > { %9360 = vrot.lane.b32.xlu0 %v9197_v51, %s16383_s25  ;;  %v9204_v51 = vmax.f32 %v9188_v52, 0.0  ;;  %v16447_v52 = vld [vmem:[#allocation28_spill] sm:$0xff] }
 0x5fc   : > { %v9189_v12 = vadd.f32 %v15792_v48, %v9169_v14 }
 0x5fe   : > { %v9205_v53 = vmax.f32 %v9189_v12, 0.0 }
 0x601   : > { %v9144_v46 = vpop.f32.mrf.mxu3 }
 0x602   : > { %v9170_v34 = vmul.f32 %v15784_v58, %v9144_v46 }
 0x603   : > { %9366 = vrot.lane.b32.xlu0 %v9200_v33, %s16383_s25 }
 0x604   : > { %v9190_v29 = vadd.f32 %v15792_v48, %v9170_v34  ;;  %v9253_v34 = vpop.permute.xlu2 %9252 }
 0x606   : > { %v9206_v30 = vmax.f32 %v9190_v29, 0.0  ;;  %v9239_v29 = vpop.permute.xlu1 %9238 }
 0x609   : > { %v9146_v0 = vpop.f32.mrf.mxu3 }
 0x60a   : > { %v9171_v33 = vmul.f32 %v15784_v58, %v9146_v0  ;;  %v16441_v0 = vld [vmem:[#allocation26_spill] sm:$0xff] }
 0x60b   : > { %9372 = vrot.lane.b32.xlu0 %v9203_v23, %s16383_s25 }
 0x60c   : > { %v9191_v37 = vadd.f32 %v15792_v48, %v9171_v33 }
 0x60e   : > { %v9207_v46 = vmax.f32 %v9191_v37, 0.0  ;;  %v16448_v37 = vld [vmem:[#allocation15_spill] sm:$0xff] }
 0x611   : > { %v9149_v27 = vpop.f32.mrf.mxu3 }
 0x612   : > { %v9172_v23 = vmul.f32 %v15784_v58, %v9149_v27  ;;  %v16442_v27 = vld [vmem:[#allocation13_spill] sm:$0xff] }
 0x613   : > { %9378 = vrot.lane.b32.xlu0 %v9206_v30, %s16383_s25  ;;  %v9415_v30 = vsel %vm2625_vm12, %v16441_v0, %v9253_v34 }
 0x614   : > { %v9192_v21 = vadd.f32 %v15792_v48, %v9172_v23 }
 0x619   : > { %v9151_v61 = vpop.f32.mrf.mxu3 }
 0x61a   : > { %v9173_v39 = vmul.f32 %v15784_v58, %v9151_v61  ;;  %v9208_v61 = vmax.f32 %v9192_v21, 0.0  ;;  %v9291_v58 = vpop.permute.xlu2 %9290 }
 0x61c   : > { %v9193_v19 = vadd.f32 %v15792_v48, %v9173_v39 }
 0x61e   : > { %v9209_v49 = vmax.f32 %v9193_v19, 0.0 }
 0x620   : > { %9384 = vrot.lane.b32.xlu0 %v9209_v49, %s16383_s25  ;;  %v9402_v49 = vsel %vm2625_vm12, %v16442_v27, %v9227_v42 }
 0x622   : > { %v9297_v5 = vpop.permute.xlu2 %9296 }
 0x629   : > { %v7592_v45 = vpop.f32.mrf.mxu2 }
 0x62a   : > { %v7615_v56 = vmul.f32 %v15724_v47, %v7592_v45  ;;  %v9245_v45 = vpop.permute.xlu1 %9244 }
 0x62c   : > { %v7635_v15 = vadd.f32 %v15732_v59, %v7615_v56 }
 0x62e   : > { %v7651_v36 = vmax.f32 %v7635_v15, 0.0 }
 0x630   : > { %9318 = vrot.lane.b32.xlu1 %v7651_v36, %s16407_s20  ;;  %v16443_v36 = vld [vmem:[#allocation16_spill] sm:$0xff] }
 0x631   : > { %v7594_v6 = vpop.f32.mrf.mxu2 }
 0x632   : > { %v7616_v40 = vmul.f32 %v15724_v47, %v7594_v6  ;;  %v9180_v47 = vadd.f32 %v15792_v48, %v9160_v63  ;;  %v9405_v6 = vsel %vm2625_vm12, %v16443_v36, %v9233_v8  ;;  %v9303_v63 = vpop.permute.xlu2 %9302 }
 0x633   : > { %v9421_v4 = vsel %vm2659_vm3, %v9405_v6, %v9297_v5 }
 0x634   : > { %v7636_v17 = vadd.f32 %v15732_v59, %v7616_v40  ;;  %v9182_v59 = vadd.f32 %v15792_v48, %v9162_v43  ;;  %v9196_v1 = vmax.f32 %v9180_v47, 0.0  ;;  %v9418_v48 = vsel %vm2659_vm3, %v9402_v49, %v9291_v58  ;;  %v16444_v43 = vld [vmem:[#allocation19_spill] sm:$0xff]  ;;  %v16450_v58 = vld [vmem:[#allocation21_spill] sm:$0xff] }
 0x635   : > { %v9410_v27 = vsel %vm2625_vm12, %v16450_v58, %v15748_v20 }
 0x636   : > { %v7652_v54 = vmax.f32 %v7636_v17, 0.0  ;;  %v9198_v13 = vmax.f32 %v9182_v59, 0.0 }
 0x638   : > { %9356 = vrot.lane.b32.xlu1 %v9195_v60, %s16383_s25  ;;  %9320 = vrot.lane.b32.xlu2 %v7652_v54, %s16407_s20  ;;  %s16123_s20 = sand.u32 1, %s10408_s26   ;;  %v9251_v60 = vpop.permute.xlu1 %9250  ;;  %v9408_v54 = vsel %vm2625_vm12, %v16444_v43, %v9239_v29  ;;  %v16449_v29 = vld [vmem:[#allocation18_spill] sm:$0xff] }
 0x639   : > { %s9571_s30 = sshll.u32 %s16123_s20, 7  ;;  %v9424_v44 = vsel %vm2659_vm3, %v9408_v54, %v9303_v63  ;;  %v9407_v0 = vsel %vm2625_vm12, %v16449_v29, %v15746_v35 }
 0x63a   : > { %v9311_v38 = vpop.permute.xlu0 %9310  ;;  %s15878_s17 = scalar_lea.vmem [#allocation5], %s9571_s30  ;;  %v9309_v59 = vpop.permute.xlu2 %9308  ;;  %s10358_s30 = scalar_lea.hbm %s16031_s13, 512 }
 0x63b   : > { %v15837_v62 = vsel %vm2659_vm3, %v9412_v11, %v9311_v38  ;;  %v16445_v38 = vld [vmem:[#allocation22_spill] sm:$0xff]  ;;  %s9481_s20 = sshll.u32 %s15878_s17, 4  ;;  %s9482_s20 = int_to_ptr.vmem [resolvable:$true] %s9481_s20 }
 0x640   : > { %9362 = vrot.lane.b32.xlu1 %v9198_v13, %s16383_s25  ;;  %9358 = vrot.lane.b32.xlu2 %v9196_v1, %s16383_s25  ;;  %v9257_v47 = vpop.permute.xlu1 %9256  ;;  %v9411_v1 = vsel %vm2625_vm12, %v16445_v38, %v9245_v45 }
 0x641   : > { %v9427_v13 = vsel %vm2659_vm3, %v9411_v1, %v9309_v59 }
 0x642   : > { %v9315_v31 = vpop.permute.xlu2 %9314 }
 0x648   : > { %9368 = vrot.lane.b32.xlu1 %v9201_v16, %s16383_s25  ;;  %9364 = vrot.lane.b32.xlu2 %v9199_v18, %s16383_s25  ;;  %v9295_v10 = vpop.permute.xlu1 %9294  ;;  %v16446_v18 = vld [vmem:[#allocation25_spill] sm:$0xff] }
 0x649   : > { %v9414_v16 = vsel %vm2625_vm12, %v16446_v18, %v9251_v60 }
 0x64a   : > { %v9430_v50 = vsel %vm2659_vm3, %v9414_v16, %v9315_v31 }
 0x650   : > { %9374 = vrot.lane.b32.xlu1 %v9204_v51, %s16383_s25  ;;  %9370 = vrot.lane.b32.xlu2 %v9202_v32, %s16383_s25  ;;  %v9301_v41 = vpop.permute.xlu1 %9300  ;;  %v9417_v32 = vsel %vm2625_vm12, %v16447_v52, %v9257_v47 }
 0x658   : > { %9380 = vrot.lane.b32.xlu1 %v9207_v46, %s16383_s25  ;;  %9376 = vrot.lane.b32.xlu2 %v9205_v53, %s16383_s25  ;;  %v9307_v51 = vpop.permute.xlu1 %9306  ;;  %v9404_v53 = vsel %vm2625_vm12, %v16448_v37, %v15740_v7 }
 0x659   : > { %v9420_v21 = vsel %vm2659_vm3, %v9404_v53, %v9295_v10  ;;  %v9426_v49 = vsel %vm2659_vm3, %v9410_v27, %v9307_v51 }
 0x65d   : > { %v9317_v39 = vpop.permute.xlu0 %9316 }
 0x65e   : > { %v15868_v19 = vsel %vm2659_vm3, %v9415_v30, %v9317_v39  ;;  %v9423_v30 = vsel %vm2659_vm3, %v9407_v0, %v9301_v41 }
 0x660   : > { %9382 = vrot.lane.b32.xlu2 %v9208_v61, %s16383_s25  ;;  %v9313_v46 = vpop.permute.xlu1 %9312  ;;  %s10077_s25 = sshll.u32 %s10416_s28, 4 }
 0x661   : > { %s9478_s24 = sadd.s32 %s10078_s19, %s10077_s25  ;;  %s16454_s25 = sand.u32 1, %s10408_s26  }
 0x662   : > { %s10079_s23 = sshll.u32 %s9478_s24, 3  ;;  %s9467_s19 = scalar_lea.sflag [#allocation6], %s16454_s25 }
 0x663   : > { %s9480_s28 = scalar_lea.hbm %s16031_s13, %s10079_s23 }
 0x664   : > { %s9483_s29 = sshll.u32 %s9480_s28, 4  ;;  %s9484_s29 = int_to_ptr.hbm [resolvable:$true] %s9483_s29 }
 0x665   : > { %v9355_v56 = vpop.permute.xlu0 %9354  ;;  %s10352_s24 = sshra.s32 %s9484_s29, 4  ;;  %s10353_s24 = int_to_ptr.hbm [resolvable:$true] %s10352_s24 }
 0x666   : > { %v9434_v15 = vsel %vm2693_vm4, %v9418_v48, %v9355_v56  ;;  %s10354_s0 = scalar_lea.hbm %s10353_s24, 128  ;;  %p10359_p2 = scmp.lt.s32.totalorder %s10353_s24, %s16031_s13 }
 0x667   : > { %9450 = vst.msk [vmem:[%s15878_s17] sm:$0xff] %vm2727_vm14, %v9434_v15  ;;  %v16451_v15 = vld [vmem:[#allocation24_spill] sm:$0xff]  ;;  %p10355_p13 = scmp.ne.s32.totalorder %s10353_s24, %s10354_s0  ;;  %p10360_p4 = scmp.lt.s32.totalorder %s10358_s30, %s10354_s0 }
 0x668   : > { %v9413_v5 = vsel %vm2625_vm12, %v16451_v15, %v15754_v26 }
 0x669   : > { %v9429_v20 = vsel %vm2659_vm3, %v9413_v5, %v9313_v46  ;;  %p10356_p0 = pnand %p10355_p13, %p10575_p3  ;;  %p10361_p5 = por %p10360_p4, %p10359_p2 }
 0x66b   : > { %p10357_p1 = pneg %p10356_p0 }
 0x66d   : > { %v9361_v40 = vpop.permute.xlu0 %9360  ;;  %p10362_p6 = pnand %p10361_p5, %p10357_p1 }
 0x66e   : > { %v9437_v17 = vsel %vm2693_vm4, %v9421_v4, %v9361_v40  ;;  %v16452_v40 = vld [vmem:[#allocation20_spill] sm:$0xff] }
 0x66f   : > { %9453 = vst.msk [vmem:[%s15878_s17 + $0x18] sm:$0xff] %vm2727_vm14, %v9437_v17  ;;  %v9409_v26 = vsel %vm2625_vm12, %v16452_v40, %v15816_v24  ;;  %v16453_v17 = vld [vmem:[#allocation27_spill] sm:$0xff] }
 0x670   : > { %v9416_v60 = vsel %vm2625_vm12, %v16453_v17, %v15761_v9  ;;  %v9425_v63 = vsel %vm2659_vm3, %v9409_v26, %v15822_v57 }
 0x675   : > { %v9367_v2 = vpop.permute.xlu0 %9366 }
 0x676   : > { %v9440_v11 = vsel %vm2693_vm4, %v9424_v44, %v9367_v2 }
 0x677   : > { %9456 = vst.msk [vmem:[%s15878_s17 + $0x30] sm:$0xff] %vm2727_vm14, %v9440_v11 }
 0x67d   : > { %v9373_v25 = vpop.permute.xlu0 %9372 }
 0x67e   : > { %v9443_v28 = vsel %vm2693_vm4, %v9427_v13, %v9373_v25 }
 0x67f   : > { %9459 = vst.msk [vmem:[%s15878_s17 + $0x48] sm:$0xff] %vm2727_vm14, %v9443_v28 }
 0x685   : > { %v9379_v3 = vpop.permute.xlu0 %9378 }
 0x686   : > { %v9446_v42 = vsel %vm2693_vm4, %v9430_v50, %v9379_v3 }
 0x687   : > { %9462 = vst.msk [vmem:[%s15878_s17 + $0x60] sm:$0xff] %vm2727_vm14, %v9446_v42 }
 0x692   : > { %v9321_v14 = vpop.permute.xlu2 %9320  ;;  %v9385_v8 = vpop.permute.xlu0 %9384 }
 0x693   : > { %v9433_v33 = vsel %vm2659_vm3, %v9417_v32, %v9321_v14 }
 0x694   : > { %v9449_v12 = vsel %vm2693_vm4, %v9433_v33, %v9385_v8 }
 0x695   : > { %9465 = vst.msk [vmem:[%s15878_s17 + $0x78] sm:$0xff] %vm2727_vm14, %v9449_v12 }
 0x69a   : > { %v9359_v23 = vpop.permute.xlu2 %9358 }
 0x69b   : > { %v9436_v34 = vsel %vm2693_vm4, %v9420_v21, %v9359_v23 }
 0x69c   : > { %9452 = vst.msk [vmem:[%s15878_s17 + $0x10] sm:$0xff] %vm2727_vm14, %v9436_v34 }
 0x6a2   : > { %v9365_v61 = vpop.permute.xlu2 %9364  ;;  %v9319_v7 = vpop.permute.xlu1 %9318 }
 0x6a3   : > { %v9439_v39 = vsel %vm2693_vm4, %v9423_v30, %v9365_v61  ;;  %v9432_v43 = vsel %vm2659_vm3, %v9416_v60, %v9319_v7 }
 0x6a4   : > { %9455 = vst.msk [vmem:[%s15878_s17 + $0x28] sm:$0xff] %vm2727_vm14, %v9439_v39 }
 0x6aa   : > { %v9371_v48 = vpop.permute.xlu2 %9370  ;;  %v9357_v45 = vpop.permute.xlu1 %9356 }
 0x6ab   : > { %v9442_v35 = vsel %vm2693_vm4, %v9426_v49, %v9371_v48  ;;  %v9435_v56 = vsel %vm2693_vm4, %v15767_v55, %v9357_v45 }
 0x6ac   : > { %9458 = vst.msk [vmem:[%s15878_s17 + $0x40] sm:$0xff] %vm2727_vm14, %v9442_v35 }
 0x6ad   : > { %9451 = vst.msk [vmem:[%s15878_s17 + $0x8] sm:$0xff] %vm2727_vm14, %v9435_v56 }
 0x6b2   : > { %v9377_v36 = vpop.permute.xlu2 %9376  ;;  %v9363_v6 = vpop.permute.xlu1 %9362 }
 0x6b3   : > { %v9445_v4 = vsel %vm2693_vm4, %v9429_v20, %v9377_v36  ;;  %v9438_v55 = vsel %vm2693_vm4, %v15774_v22, %v9363_v6 }
 0x6b4   : > { %9461 = vst.msk [vmem:[%s15878_s17 + $0x58] sm:$0xff] %vm2727_vm14, %v9445_v4 }
 0x6b5   : > { %9454 = vst.msk [vmem:[%s15878_s17 + $0x20] sm:$0xff] %vm2727_vm14, %v9438_v55 }
 0x6ba   : > { %v9383_v22 = vpop.permute.xlu2 %9382  ;;  %v9369_v54 = vpop.permute.xlu1 %9368 }
 0x6bb   : > { %v9448_v44 = vsel %vm2693_vm4, %v9432_v43, %v9383_v22  ;;  %v9441_v2 = vsel %vm2693_vm4, %v9425_v63, %v9369_v54 }
 0x6bc   : > { %9464 = vst.msk [vmem:[%s15878_s17 + $0x70] sm:$0xff] %vm2727_vm14, %v9448_v44 }
 0x6bd   : > { %9457 = vst.msk [vmem:[%s15878_s17 + $0x38] sm:$0xff] %vm2727_vm14, %v9441_v2 }
 0x6c2   : > { %v9375_v9 = vpop.permute.xlu1 %9374 }
 0x6c3   : > { %v9444_v24 = vsel %vm2693_vm4, %v15837_v62, %v9375_v9 }
 0x6c4   : > { %9460 = vst.msk [vmem:[%s15878_s17 + $0x50] sm:$0xff] %vm2727_vm14, %v9444_v24 }
 0x6ca   : > { %v9381_v57 = vpop.permute.xlu1 %9380 }
 0x6cb   : > { %v9447_v11 = vsel %vm2693_vm4, %v15868_v19, %v9381_v57 }
 0x6cc   : > { %9463 = vst.msk [vmem:[%s15878_s17 + $0x68] sm:$0xff] %vm2727_vm14, %v9447_v11 }
 0x6cd   : > { %10365 = shalt.err (!%p10362_p6)
}
 0x6ce   : > { %s10453_s17 = smov 128  }
 0x6cf   : > { %10229 = dma.vmem_to_hbm [thread:$0]  (%p10575_p3), %s9482_s20, 2048, %s9484_s29, %s9467_s19, %s10453_s17, %s10453_s17, %s16410_s16  }
 0x6d0 PF: > { %s16455_s25 = sld [smem:[#allocation8_spill]]  ;;  %p10235_p7 = scmp.ge.s32.totalorder %s10432_s15, 2 }
 0x6d2   : > { %p10232_p9 = pnand %p10235_p7, %p10584_p8 }
 0x6d4   : > { %p10233_p10 = pneg %p10232_p9 }
 0x6d6   : > { %s9498_s23 = sand.u32 1, %s16455_s25  }
 0x6d7   : > { %s9499_s1 = scalar_lea.sflag [#allocation6], %s9498_s23 }
 0x6d8   : > { %10399 = dma.done.wait (%p10233_p10), %s9499_s1, 2048  }
 0x6d9   : > { %10401 = vsyncadd (%p10233_p10), %s9499_s1, 4294965248  ;;  %s26_s15 = sadd.s32 1, %s10432_s15   ;;  %s16456_s28 = sld [smem:[#allocation9_spill]] }
 0x6da   : > { %p23_p11 = scmp.ge.s32.totalorder %s26_s15, 6   ;;  %s16457_s29 = sld [smem:[#allocation10_spill]] }
 0x6db   : > { %s16458_s30 = sld [smem:[#allocation11_spill]]  ;;  %s16460_s25 = smov %s10408_s26 }
 0x6dc   : > { %s16459_s14 = sld [smem:[#allocation12_spill]]  ;;  %s16461_s26 = smov %s10412_s27 }
 0x6dd   : > { %s16462_s27 = smov %s10593_s18  ;;  %25 = sbr.rel (!%p23_p11) target bundleno = 8 (0x8), region = 117 }
 0x6e2   :  { %9505 = vsyncpa [#allocation6], 1 }
 0x6e3   :  { %9507 = vsyncpa [#allocation6 + $0x1], 1 }

</bundles_post_ra>
